<compile_context>
chip_gen: v7x
topology: tpu7x:2x2x1
jax: 0.10.0
libtpu: 0.0.40
codegen_flags: <defaults>
</compile_context>

<pallas_src>
import functools
import math

import jax
import jax.numpy as jnp
from jax.experimental import pallas as pl
from jax.experimental.pallas import tpu as pltpu

_BF16 = jnp.bfloat16
_EPS = 1e-5
_NEG_SLOPE = 0.01                       # nn.LeakyReLU() default
_VMEM_BUDGET = 24 * 1024 * 1024         # conservative (v7x physical VMEM = 64 MiB)


# ---------------------------------------------------------------------------
# Small helpers
# ---------------------------------------------------------------------------
def _leaky(y):
    return jnp.where(y > 0, y, _NEG_SLOPE * y)


def _full_spec(shape):
    """Whole-array block (exempt from the (8,128) divisibility rule)."""
    nd = len(shape)
    return pl.BlockSpec(shape, lambda i, nd=nd: (0,) * nd)


def _assert_fits_vmem(inputs, out_shape):
    nbytes = sum(2 * a.size * a.dtype.itemsize for a in inputs)          # dbl buf
    nbytes += 2 * math.prod(out_shape.shape) * out_shape.dtype.itemsize  # out buf
    nbytes += 4 * math.prod(out_shape.shape) * 4                         # headroom
    assert nbytes < _VMEM_BUDGET, (
        f"fused layer working set {nbytes} B exceeds VMEM budget; "
        "need the tiled fallback (see TODO at top of file)")


def _run_fused(kernel, inputs, out_shape):
    _assert_fits_vmem(inputs, out_shape)
    return pl.pallas_call(
        kernel,
        grid=(1,),
        in_specs=[_full_spec(a.shape) for a in inputs],
        out_specs=_full_spec(out_shape.shape),
        out_shape=out_shape,
        compiler_params=pltpu.CompilerParams(
            dimension_semantics=("arbitrary",)),
    )(*inputs)


# ---------------------------------------------------------------------------
# Fused kernels (one pallas_call = one conv layer)
# ---------------------------------------------------------------------------
def _conv_bias_kernel(p_ref, w_ref, b_ref, o_ref):
    # conv_in / conv_out: single MXU matmul + bias (no BN / activation)
    acc = jnp.dot(p_ref[...], w_ref[...], preferred_element_type=jnp.float32)
    o_ref[...] = acc + b_ref[...]


def _conv_bn_act_kernel(p_ref, w_ref, g_ref, bt_ref, o_ref):
    # conv3x3 + BatchNorm(batch stats, two-pass) + LeakyReLU
    acc = jnp.dot(p_ref[...], w_ref[...], preferred_element_type=jnp.float32)
    mean = jnp.mean(acc, axis=0, keepdims=True)
    d = acc - mean
    var = jnp.mean(d * d, axis=0, keepdims=True)
    scale = g_ref[...] * jax.lax.rsqrt(var + _EPS)
    o_ref[...] = _leaky(d * scale + bt_ref[...])


def _conv_bn_act_res_kernel(p_ref, w_ref, g_ref, bt_ref, res_ref, o_ref):
    # conv3x3 + BN + LeakyReLU + residual add (up path)
    acc = jnp.dot(p_ref[...], w_ref[...], preferred_element_type=jnp.float32)
    mean = jnp.mean(acc, axis=0, keepdims=True)
    d = acc - mean
    var = jnp.mean(d * d, axis=0, keepdims=True)
    scale = g_ref[...] * jax.lax.rsqrt(var + _EPS)
    o_ref[...] = _leaky(d * scale + bt_ref[...]) + res_ref[...]


def _conv_bn_act_pool_kernel(p_ref, w_ref, g_ref, bt_ref, o_ref, *, m_rows):
    # conv3x3 + BN + LeakyReLU + MaxPool2d(2); rows are quadrant-major.
    acc = jnp.dot(p_ref[...], w_ref[...], preferred_element_type=jnp.float32)
    mean = jnp.mean(acc, axis=0, keepdims=True)
    d = acc - mean
    var = jnp.mean(d * d, axis=0, keepdims=True)
    scale = g_ref[...] * jax.lax.rsqrt(var + _EPS)
    y = _leaky(d * scale + bt_ref[...])                 # (4*m_rows, C)
    y4 = y.reshape(4, m_rows, y.shape[-1])
    o_ref[...] = jnp.max(y4, axis=0)                    # 2x2 max pool


def _conv_bn_act_pool_tproj_kernel(p_ref, w_ref, g_ref, bt_ref, tp_ref, o_ref,
                                   *, m_rows, batch, hw):
    # As above, plus the per-batch time-projection broadcast add fused in.
    acc = jnp.dot(p_ref[...], w_ref[...], preferred_element_type=jnp.float32)
    mean = jnp.mean(acc, axis=0, keepdims=True)
    d = acc - mean
    var = jnp.mean(d * d, axis=0, keepdims=True)
    scale = g_ref[...] * jax.lax.rsqrt(var + _EPS)
    y = _leaky(d * scale + bt_ref[...])
    y4 = y.reshape(4, m_rows, y.shape[-1])
    pooled = jnp.max(y4, axis=0)                        # (m_rows, C), batch-major
    c = pooled.shape[-1]
    tp = jnp.broadcast_to(tp_ref[...][:, None, :], (batch, hw, c)).reshape(m_rows, c)
    o_ref[...] = pooled + tp


def _convt_bn_act_kernel(p_ref, w_ref, g_ref, bt_ref, o_ref, *, cout):
    # ConvTranspose2d(4,2,1) with the 4 output phases packed along channels:
    # one matmul -> (N, 4*cout); BN stats combined across the 4 phase blocks.
    acc = jnp.dot(p_ref[...], w_ref[...], preferred_element_type=jnp.float32)
    n4 = 4 * acc.shape[0]
    blocks = [acc[:, p * cout:(p + 1) * cout] for p in range(4)]
    mean = sum(jnp.sum(b, axis=0, keepdims=True) for b in blocks) / n4
    centered = [b - mean for b in blocks]
    var = sum(jnp.sum(c * c, axis=0, keepdims=True) for c in centered) / n4
    scale = g_ref[...] * jax.lax.rsqrt(var + _EPS)
    shift = bt_ref[...]
    o_ref[...] = jnp.concatenate(
        [_leaky(c * scale + shift) for c in centered], axis=-1)


# ---------------------------------------------------------------------------
# im2col / weight builders (layout glue, wrapper-side, all in bf16)
# ---------------------------------------------------------------------------
def _im2col_3x3(x):
    """(B,H,W,C) -> (B*H*W, 9C); taps ordered (ny,nx,cin), matching
    w.reshape(9C, Cout) for a (3,3,Cin,Cout) kernel."""
    B, H, W, C = x.shape
    xp = jnp.pad(x, ((0, 0), (1, 1), (1, 1), (0, 0)))
    taps = [xp[:, ny:ny + H, nx:nx + W, :] for ny in range(3) for nx in range(3)]
    return jnp.concatenate(taps, axis=-1).reshape(B * H * W, 9 * C)


def _im2col_3x3_quadrant_rows(x):
    """(B,H,W,C) -> (4*M, 9C), M=B*(H//2)*(W//2); rows ordered quadrant-major
    ((dy,dx) outer, (b,hh,ww) inner) so MaxPool2d(2) = max over a leading 4."""
    B, H, W, C = x.shape
    Hh, Wh = H // 2, W // 2
    xp = jnp.pad(x, ((0, 0), (1, 1), (1, 1), (0, 0)))
    quads = []
    for dy in (0, 1):
        for dx in (0, 1):
            taps = [xp[:, dy + ny:dy + ny + H:2, dx + nx:dx + nx + W:2, :]
                    for ny in range(3) for nx in range(3)]
            quads.append(jnp.concatenate(taps, axis=-1).reshape(B * Hh * Wh, 9 * C))
    return jnp.concatenate(quads, axis=0)


# Subpixel decomposition of ConvTranspose2d(k=4, s=2, p=1):
# output[2m+py, 2n+px] uses 2x2 input taps; (input offset dy, kernel row ky):
_PHASE_TAPS = {0: ((-1, 3), (0, 1)), 1: ((0, 2), (1, 0))}


def _convt_packed_weight(wt):
    """wt: PyTorch ConvTranspose2d weight (Cin, Cout, 4, 4) ->
    (9*Cin, 4*Cout) block-structured matrix (zeros on unused taps) matching the
    standard 3x3 im2col slab; output channel order = (py, px, cout)."""
    Cin, Cout = wt.shape[0], wt.shape[1]
    big = jnp.zeros((3, 3, Cin, 2, 2, Cout), wt.dtype)
    for py in (0, 1):
        for dy, ky in _PHASE_TAPS[py]:
            for px in (0, 1):
                for dx, kx in _PHASE_TAPS[px]:
                    big = big.at[dy + 1, dx + 1, :, py, px, :].set(wt[:, :, ky, kx])
    return big.reshape(9 * Cin, 4 * Cout)


# ---------------------------------------------------------------------------
# Layer wrappers
# ---------------------------------------------------------------------------
def conv3x3_bias(x, w, b):
    """3x3 conv, pad=1, bias, no BN/activation (conv_in / conv_out)."""
    B, H, W, Cin = x.shape
    Cout = w.shape[-1]
    slab = _im2col_3x3(x.astype(_BF16))
    N, Kc = slab.shape
    out = _run_fused(
        _conv_bias_kernel,
        [slab, w.reshape(Kc, Cout).astype(_BF16),
         b.reshape(1, Cout).astype(jnp.float32)],
        jax.ShapeDtypeStruct((N, Cout), jnp.float32))
    return out.reshape(B, H, W, Cout)


def conv3x3_bn_lrelu(x, w, gamma, beta, res=None):
    """3x3 conv + BatchNorm(batch stats) + LeakyReLU [+ residual add], fully
    fused in one pallas_call.  Conv bias is skipped (cancels under BN mean)."""
    B, H, W, Cin = x.shape
    Cout = w.shape[-1]
    N = B * H * W
    slab = _im2col_3x3(x.astype(_BF16))
    Kc = slab.shape[1]
    inputs = [slab, w.reshape(Kc, Cout).astype(_BF16),
              gamma.reshape(1, Cout).astype(jnp.float32),
              beta.reshape(1, Cout).astype(jnp.float32)]
    if res is None:
        kern = _conv_bn_act_kernel
    else:
        kern = _conv_bn_act_res_kernel
        inputs.append(res.reshape(N, Cout).astype(jnp.float32))
    out = _run_fused(kern, inputs, jax.ShapeDtypeStruct((N, Cout), jnp.float32))
    return out.reshape(B, H, W, Cout)


def conv3x3_bn_lrelu_pool(x, w, gamma, beta, tproj=None):
    """3x3 conv + BN + LeakyReLU + MaxPool2d(2), with the optional per-batch
    time-projection add fused into the pooled epilogue.  One pallas_call."""
    B, H, W, Cin = x.shape
    Cout = w.shape[-1]
    Hh, Wh = H // 2, W // 2
    M = B * Hh * Wh
    slab = _im2col_3x3_quadrant_rows(x.astype(_BF16))          # (4M, 9Cin)
    Kc = slab.shape[1]
    inputs = [slab, w.reshape(Kc, Cout).astype(_BF16),
              gamma.reshape(1, Cout).astype(jnp.float32),
              beta.reshape(1, Cout).astype(jnp.float32)]
    if tproj is None:
        kern = functools.partial(_conv_bn_act_pool_kernel, m_rows=M)
    else:
        kern = functools.partial(_conv_bn_act_pool_tproj_kernel,
                                 m_rows=M, batch=B, hw=Hh * Wh)
        inputs.append(tproj.astype(jnp.float32))               # (B, Cout)
    out = _run_fused(kern, inputs, jax.ShapeDtypeStruct((M, Cout), jnp.float32))
    return out.reshape(B, Hh, Wh, Cout)


def convT4x4s2_bn_lrelu(x, wt, gamma, beta):
    """ConvTranspose2d(k=4, s=2, p=1) + BN + LeakyReLU.  The 4 output phases
    are packed along the channel axis (one im2col slab, one matmul); the
    de-interleave to (B, 2H, 2W, Cout) is wrapper-side layout glue.
    Transposed-conv bias is skipped (cancels under BN mean)."""
    B, H, W, Cin = x.shape
    Cout = wt.shape[1]
    N = B * H * W
    slab = _im2col_3x3(x.astype(_BF16))                        # (N, 9Cin)
    wbig = _convt_packed_weight(wt).astype(_BF16)              # (9Cin, 4Cout)
    inputs = [slab, wbig,
              gamma.reshape(1, Cout).astype(jnp.float32),
              beta.reshape(1, Cout).astype(jnp.float32)]
    kern = functools.partial(_convt_bn_act_kernel, cout=Cout)
    out = _run_fused(kern, inputs,
                     jax.ShapeDtypeStruct((N, 4 * Cout), jnp.float32))
    # de-interleave phases: (b,h,w,py,px,c) -> (b, 2h+py, 2w+px, c)
    out = out.reshape(B, H, W, 2, 2, Cout).transpose(0, 1, 3, 2, 4, 5)
    return out.reshape(B, 2 * H, 2 * W, Cout)


# ---------------------------------------------------------------------------
# Deterministic parameter init (shapes follow SimpleUNet.__init__)
# ---------------------------------------------------------------------------
def init_params(key, channels, hidden_dims):
    keys = iter(jax.random.split(key, 128))

    def nrm(shape, scale=0.1):
        return scale * jax.random.normal(next(keys), shape, jnp.float32)

    def conv(cin, cout, k):
        # PyTorch Conv2d weight (Cout, Cin, k, k) -> (k, k, Cin, Cout)
        w = nrm((cout, cin, k, k))
        return jnp.transpose(w, (2, 3, 1, 0)), nrm((cout,))

    def bn(c):
        return jnp.ones((c,), jnp.float32), jnp.zeros((c,), jnp.float32)

    params = {}
    params["conv_in_w"], params["conv_in_b"] = conv(channels, hidden_dims[0], 3)

    downs = []
    for i in range(len(hidden_dims) - 1):
        w1, b1 = conv(hidden_dims[i], hidden_dims[i + 1], 3)
        g1, be1 = bn(hidden_dims[i + 1])
        w2, b2 = conv(hidden_dims[i + 1], hidden_dims[i + 1], 3)
        g2, be2 = bn(hidden_dims[i + 1])
        downs.append(dict(w1=w1, b1=b1, g1=g1, be1=be1,
                          w2=w2, b2=b2, g2=g2, be2=be2))
    params["downs"] = downs

    hm = hidden_dims[-1]
    mw1, mb1 = conv(hm, 2 * hm, 3)
    mg1, mbe1 = bn(2 * hm)
    mw2, mb2 = conv(2 * hm, hm, 3)
    mg2, mbe2 = bn(hm)
    params["mid"] = dict(w1=mw1, b1=mb1, g1=mg1, be1=mbe1,
                         w2=mw2, b2=mb2, g2=mg2, be2=mbe2)

    ups = []
    for i in range(len(hidden_dims) - 1, 0, -1):
        cin, cout = hidden_dims[i], hidden_dims[i - 1]
        wt = nrm((cin, cout, 4, 4))       # ConvTranspose2d weight (Cin, Cout, 4, 4)
        bt = nrm((cout,))
        gt, bet = bn(cout)
        w2, b2 = conv(cout, cout, 3)
        g2, be2 = bn(cout)
        ups.append(dict(wt=wt, bt=bt, gt=gt, bet=bet,
                        w2=w2, b2=b2, g2=g2, be2=be2))
    params["ups"] = ups

    # time_embed: Linear(1,32), SiLU, Linear(32,32), SiLU (store W.T)
    params["te_w1"] = jnp.transpose(nrm((32, 1)))      # (1, 32)
    params["te_b1"] = nrm((32,))
    params["te_w2"] = jnp.transpose(nrm((32, 32)))     # (32, 32)
    params["te_b2"] = nrm((32,))

    # t_projection: PyTorch creates nn.Conv2d(32, mid_ch, 1) FRESH (random)
    # inside forward(); here it is a deterministic in-script 1x1 projection.
    tpw = nrm((hm, 32, 1, 1))
    params["tp_w"] = jnp.transpose(tpw[:, :, 0, 0])    # (32, hm)
    params["tp_b"] = nrm((hm,))

    # NOTE: self.time_projections (ModuleList) is never used in forward() -> omitted.
    params["conv_out_w"], params["conv_out_b"] = conv(hidden_dims[0], channels, 3)
    return params


# ---------------------------------------------------------------------------
# Forward pass (mirrors SimpleUNet.forward)
# ---------------------------------------------------------------------------
@jax.jit
def simple_unet_forward(params, x_nchw, t):
    x = jnp.transpose(x_nchw, (0, 2, 3, 1)).astype(jnp.float32)  # NCHW -> NHWC

    # time_embed MLP + 1x1 t_projection: microscopic (B,32) matmuls left to
    # plain XLA; the spatial broadcast-add is fused into the Pallas epilogue
    # of the last down level (which is where it lands in the PyTorch forward).
    h = t.astype(jnp.float32).reshape(-1, 1) @ params["te_w1"] + params["te_b1"]
    h = h * jax.nn.sigmoid(h)                        # SiLU
    h = h @ params["te_w2"] + params["te_b2"]
    h = h * jax.nn.sigmoid(h)                        # SiLU
    tproj = h @ params["tp_w"] + params["tp_b"]      # (B, Cmid)

    x = conv3x3_bias(x, params["conv_in_w"], params["conv_in_b"])

    residuals = []
    n_down = len(params["downs"])
    for li, dp in enumerate(params["downs"]):
        residuals.append(x)
        x = conv3x3_bn_lrelu(x, dp["w1"], dp["g1"], dp["be1"])
        x = conv3x3_bn_lrelu_pool(x, dp["w2"], dp["g2"], dp["be2"],
                                  tproj=tproj if li == n_down - 1 else None)
    if n_down == 0:   # degenerate config: add the time projection directly
        x = x + tproj[:, None, None, :]

    mp = params["mid"]
    x = conv3x3_bn_lrelu(x, mp["w1"], mp["g1"], mp["be1"])
    x = conv3x3_bn_lrelu(x, mp["w2"], mp["g2"], mp["be2"])

    for upp, res in zip(params["ups"], reversed(residuals)):
        x = convT4x4s2_bn_lrelu(x, upp["wt"], upp["gt"], upp["bet"])
        x = conv3x3_bn_lrelu(x, upp["w2"], upp["g2"], upp["be2"], res=res)

    x = conv3x3_bias(x, params["conv_out_w"], params["conv_out_b"])
    return jnp.transpose(x, (0, 3, 1, 2))            # NHWC -> NCHW


if __name__ == "__main__":
    channels = 4
    hidden_dims = (8, 16)
    B, H, W = 2, 16, 16

    key = jax.random.PRNGKey(0)
    kp, kx, kt = jax.random.split(key, 3)
    params = init_params(kp, channels, hidden_dims)
    x = jax.random.normal(kx, (B, channels, H, W), jnp.float32)
    t = jax.random.randint(kt, (B,), 0, 1000).astype(jnp.float32)

    out = simple_unet_forward(params, x, t)
    out = jax.block_until_ready(out)
    assert out.shape == (B, channels, H, W), out.shape
    assert bool(jnp.all(jnp.isfinite(out)))
    print("KERNEL_OK")
</pallas_src>

<mosaic_0001>
module attributes {stable_mosaic.version = 11 : i64} {
  func.func @_conv_bias_kernel(%arg0: i32, %arg1: memref<512x36xbf16, #tpu.memory_space<vmem>>, %arg2: memref<36x8xbf16, #tpu.memory_space<vmem>>, %arg3: memref<1x8xf32, #tpu.memory_space<vmem>>, %arg4: memref<512x8xf32, #tpu.memory_space<vmem>>) attributes {dimension_semantics = [#tpu.dimension_semantics<arbitrary>], iteration_bounds = array<i64: 1>, scalar_prefetch = 0 : i64, scratch_operands = 0 : i64, tpu.core_type = #tpu.core_type<tc>, window_params = [{pipeline_mode = #tpu.pipeline_mode<synchronous>, transform_indices = @transform_0, window_bounds = array<i64: 512, 36>}, {pipeline_mode = #tpu.pipeline_mode<synchronous>, transform_indices = @transform_1, window_bounds = array<i64: 36, 8>}, {pipeline_mode = #tpu.pipeline_mode<synchronous>, transform_indices = @transform_2, window_bounds = array<i64: 1, 8>}, {pipeline_mode = #tpu.pipeline_mode<synchronous>, transform_indices = @transform_3, window_bounds = array<i64: 512, 8>}]} {
    %c0 = arith.constant 0 : index
    %c0_0 = arith.constant 0 : index
    %0 = vector.load %arg1[%c0, %c0_0] : memref<512x36xbf16, #tpu.memory_space<vmem>>, vector<512x36xbf16>
    %c0_1 = arith.constant 0 : index
    %c0_2 = arith.constant 0 : index
    %1 = vector.load %arg2[%c0_1, %c0_2] : memref<36x8xbf16, #tpu.memory_space<vmem>>, vector<36x8xbf16>
    %cst = arith.constant dense<0.000000e+00> : vector<512x8xf32>
    %2 = tpu.matmul %0, %1, %cst {dimension_numbers = #tpu.dot_dimension_numbers<[1], [0], [0], [1], [0, 0, 1, 1], [], []>} : vector<512x36xbf16>, vector<36x8xbf16>, vector<512x8xf32> -> vector<512x8xf32>
    %c0_3 = arith.constant 0 : index
    %c0_4 = arith.constant 0 : index
    %3 = vector.load %arg3[%c0_3, %c0_4] : memref<1x8xf32, #tpu.memory_space<vmem>>, vector<1x8xf32>
    %4 = vector.broadcast %3 : vector<1x8xf32> to vector<512x8xf32>
    %5 = arith.addf %2, %4 : vector<512x8xf32>
    %c0_5 = arith.constant 0 : index
    %c0_6 = arith.constant 0 : index
    %6 = vector.load %arg4[%c0_5, %c0_6] : memref<512x8xf32, #tpu.memory_space<vmem>>, vector<512x8xf32>
    tpu.vector_store %arg4[%c0_5, %c0_6], %5 {strides = array<i32>} : memref<512x8xf32, #tpu.memory_space<vmem>>, vector<512x8xf32>,
    return
  }
  func.func @transform_0(%arg0: i32) -> (i32, i32) {
    %c0_i32 = arith.constant 0 : i32
    %c0_i32_0 = arith.constant 0 : i32
    %c0_i32_1 = arith.constant 0 : i32
    return %c0_i32, %c0_i32_0 : i32, i32
  }
  func.func @transform_1(%arg0: i32) -> (i32, i32) {
    %c0_i32 = arith.constant 0 : i32
    %c0_i32_0 = arith.constant 0 : i32
    %c0_i32_1 = arith.constant 0 : i32
    return %c0_i32, %c0_i32_0 : i32, i32
  }
  func.func @transform_2(%arg0: i32) -> (i32, i32) {
    %c0_i32 = arith.constant 0 : i32
    %c0_i32_0 = arith.constant 0 : i32
    %c0_i32_1 = arith.constant 0 : i32
    return %c0_i32, %c0_i32_0 : i32, i32
  }
  func.func @transform_3(%arg0: i32) -> (i32, i32) {
    %c0_i32 = arith.constant 0 : i32
    %c0_i32_0 = arith.constant 0 : i32
    %c0_i32_1 = arith.constant 0 : i32
    return %c0_i32, %c0_i32_0 : i32, i32
  }
}

module attributes {stable_mosaic.version = 11 : i64} {
  func.func @_conv_bn_act_kernel(%arg0: i32, %arg1: memref<512x72xbf16, #tpu.memory_space<vmem>>, %arg2: memref<72x16xbf16, #tpu.memory_space<vmem>>, %arg3: memref<1x16xf32, #tpu.memory_space<vmem>>, %arg4: memref<1x16xf32, #tpu.memory_space<vmem>>, %arg5: memref<512x16xf32, #tpu.memory_space<vmem>>) attributes {dimension_semantics = [#tpu.dimension_semantics<arbitrary>], iteration_bounds = array<i64: 1>, scalar_prefetch = 0 : i64, scratch_operands = 0 : i64, tpu.core_type = #tpu.core_type<tc>, window_params = [{pipeline_mode = #tpu.pipeline_mode<synchronous>, transform_indices = @transform_0, window_bounds = array<i64: 512, 72>}, {pipeline_mode = #tpu.pipeline_mode<synchronous>, transform_indices = @transform_1, window_bounds = array<i64: 72, 16>}, {pipeline_mode = #tpu.pipeline_mode<synchronous>, transform_indices = @transform_2, window_bounds = array<i64: 1, 16>}, {pipeline_mode = #tpu.pipeline_mode<synchronous>, transform_indices = @transform_3, window_bounds = array<i64: 1, 16>}, {pipeline_mode = #tpu.pipeline_mode<synchronous>, transform_indices = @transform_4, window_bounds = array<i64: 512, 16>}]} {
    %c0 = arith.constant 0 : index
    %c0_0 = arith.constant 0 : index
    %0 = vector.load %arg1[%c0, %c0_0] : memref<512x72xbf16, #tpu.memory_space<vmem>>, vector<512x72xbf16>
    %c0_1 = arith.constant 0 : index
    %c0_2 = arith.constant 0 : index
    %1 = vector.load %arg2[%c0_1, %c0_2] : memref<72x16xbf16, #tpu.memory_space<vmem>>, vector<72x16xbf16>
    %cst = arith.constant dense<0.000000e+00> : vector<512x16xf32>
    %2 = tpu.matmul %0, %1, %cst {dimension_numbers = #tpu.dot_dimension_numbers<[1], [0], [0], [1], [0, 0, 1, 1], [], []>} : vector<512x72xbf16>, vector<72x16xbf16>, vector<512x16xf32> -> vector<512x16xf32>
    %cst_3 = arith.constant dense<0.000000e+00> : vector<16xf32>
    %3 = vector.multi_reduction <add>, %2, %cst_3 [0] : vector<512x16xf32> to vector<16xf32>
    %4 = vector.shape_cast %3 : vector<16xf32> to vector<1x16xf32>
    %cst_4 = arith.constant 5.120000e+02 : f32
    %5 = vector.broadcast %cst_4 : f32 to vector<1x16xf32>
    %6 = arith.divf %4, %5 : vector<1x16xf32>
    %7 = vector.broadcast %6 : vector<1x16xf32> to vector<512x16xf32>
    %8 = arith.subf %2, %7 : vector<512x16xf32>
    %9 = arith.mulf %8, %8 : vector<512x16xf32>
    %cst_5 = arith.constant dense<0.000000e+00> : vector<16xf32>
    %10 = vector.multi_reduction <add>, %9, %cst_5 [0] : vector<512x16xf32> to vector<16xf32>
    %11 = vector.shape_cast %10 : vector<16xf32> to vector<1x16xf32>
    %cst_6 = arith.constant 5.120000e+02 : f32
    %12 = vector.broadcast %cst_6 : f32 to vector<1x16xf32>
    %13 = arith.divf %11, %12 : vector<1x16xf32>
    %c0_7 = arith.constant 0 : index
    %c0_8 = arith.constant 0 : index
    %14 = vector.load %arg3[%c0_7, %c0_8] : memref<1x16xf32, #tpu.memory_space<vmem>>, vector<1x16xf32>
    %cst_9 = arith.constant 9.99999974E-6 : f32
    %15 = vector.broadcast %cst_9 : f32 to vector<1x16xf32>
    %16 = arith.addf %13, %15 : vector<1x16xf32>
    %17 = math.rsqrt %16 : vector<1x16xf32>
    %18 = arith.mulf %14, %17 : vector<1x16xf32>
    %19 = vector.broadcast %18 : vector<1x16xf32> to vector<512x16xf32>
    %20 = arith.mulf %8, %19 : vector<512x16xf32>
    %c0_10 = arith.constant 0 : index
    %c0_11 = arith.constant 0 : index
    %21 = vector.load %arg4[%c0_10, %c0_11] : memref<1x16xf32, #tpu.memory_space<vmem>>, vector<1x16xf32>
    %22 = vector.broadcast %21 : vector<1x16xf32> to vector<512x16xf32>
    %23 = arith.addf %20, %22 : vector<512x16xf32>
    %cst_12 = arith.constant 0.000000e+00 : f32
    %24 = vector.broadcast %cst_12 : f32 to vector<512x16xf32>
    %25 = arith.cmpf ogt, %23, %24 : vector<512x16xf32>
    %cst_13 = arith.constant 0.00999999977 : f32
    %26 = vector.broadcast %cst_13 : f32 to vector<512x16xf32>
    %27 = arith.mulf %26, %23 : vector<512x16xf32>
    %28 = arith.select %25, %23, %27 : vector<512x16xi1>, vector<512x16xf32>
    %c0_14 = arith.constant 0 : index
    %c0_15 = arith.constant 0 : index
    %29 = vector.load %arg5[%c0_14, %c0_15] : memref<512x16xf32, #tpu.memory_space<vmem>>, vector<512x16xf32>
    tpu.vector_store %arg5[%c0_14, %c0_15], %28 {strides = array<i32>} : memref<512x16xf32, #tpu.memory_space<vmem>>, vector<512x16xf32>,
    return
  }
  func.func @transform_0(%arg0: i32) -> (i32, i32) {
    %c0_i32 = arith.constant 0 : i32
    %c0_i32_0 = arith.constant 0 : i32
    %c0_i32_1 = arith.constant 0 : i32
    return %c0_i32, %c0_i32_0 : i32, i32
  }
  func.func @transform_1(%arg0: i32) -> (i32, i32) {
    %c0_i32 = arith.constant 0 : i32
    %c0_i32_0 = arith.constant 0 : i32
    %c0_i32_1 = arith.constant 0 : i32
    return %c0_i32, %c0_i32_0 : i32, i32
  }
  func.func @transform_2(%arg0: i32) -> (i32, i32) {
    %c0_i32 = arith.constant 0 : i32
    %c0_i32_0 = arith.constant 0 : i32
    %c0_i32_1 = arith.constant 0 : i32
    return %c0_i32, %c0_i32_0 : i32, i32
  }
  func.func @transform_3(%arg0: i32) -> (i32, i32) {
    %c0_i32 = arith.constant 0 : i32
    %c0_i32_0 = arith.constant 0 : i32
    %c0_i32_1 = arith.constant 0 : i32
    return %c0_i32, %c0_i32_0 : i32, i32
  }
  func.func @transform_4(%arg0: i32) -> (i32, i32) {
    %c0_i32 = arith.constant 0 : i32
    %c0_i32_0 = arith.constant 0 : i32
    %c0_i32_1 = arith.constant 0 : i32
    return %c0_i32, %c0_i32_0 : i32, i32
  }
}

module attributes {stable_mosaic.version = 11 : i64} {
  func.func @_conv_bn_act_pool_tproj_kernel(%arg0: i32, %arg1: memref<512x144xbf16, #tpu.memory_space<vmem>>, %arg2: memref<144x16xbf16, #tpu.memory_space<vmem>>, %arg3: memref<1x16xf32, #tpu.memory_space<vmem>>, %arg4: memref<1x16xf32, #tpu.memory_space<vmem>>, %arg5: memref<2x16xf32, #tpu.memory_space<vmem>>, %arg6: memref<128x16xf32, #tpu.memory_space<vmem>>) attributes {dimension_semantics = [#tpu.dimension_semantics<arbitrary>], iteration_bounds = array<i64: 1>, scalar_prefetch = 0 : i64, scratch_operands = 0 : i64, tpu.core_type = #tpu.core_type<tc>, window_params = [{pipeline_mode = #tpu.pipeline_mode<synchronous>, transform_indices = @transform_0, window_bounds = array<i64: 512, 144>}, {pipeline_mode = #tpu.pipeline_mode<synchronous>, transform_indices = @transform_1, window_bounds = array<i64: 144, 16>}, {pipeline_mode = #tpu.pipeline_mode<synchronous>, transform_indices = @transform_2, window_bounds = array<i64: 1, 16>}, {pipeline_mode = #tpu.pipeline_mode<synchronous>, transform_indices = @transform_3, window_bounds = array<i64: 1, 16>}, {pipeline_mode = #tpu.pipeline_mode<synchronous>, transform_indices = @transform_4, window_bounds = array<i64: 2, 16>}, {pipeline_mode = #tpu.pipeline_mode<synchronous>, transform_indices = @transform_5, window_bounds = array<i64: 128, 16>}]} {
    %c0 = arith.constant 0 : index
    %c0_0 = arith.constant 0 : index
    %0 = vector.load %arg1[%c0, %c0_0] : memref<512x144xbf16, #tpu.memory_space<vmem>>, vector<512x144xbf16>
    %c0_1 = arith.constant 0 : index
    %c0_2 = arith.constant 0 : index
    %1 = vector.load %arg2[%c0_1, %c0_2] : memref<144x16xbf16, #tpu.memory_space<vmem>>, vector<144x16xbf16>
    %cst = arith.constant dense<0.000000e+00> : vector<512x16xf32>
    %2 = tpu.matmul %0, %1, %cst {dimension_numbers = #tpu.dot_dimension_numbers<[1], [0], [0], [1], [0, 0, 1, 1], [], []>} : vector<512x144xbf16>, vector<144x16xbf16>, vector<512x16xf32> -> vector<512x16xf32>
    %cst_3 = arith.constant dense<0.000000e+00> : vector<16xf32>
    %3 = vector.multi_reduction <add>, %2, %cst_3 [0] : vector<512x16xf32> to vector<16xf32>
    %4 = vector.shape_cast %3 : vector<16xf32> to vector<1x16xf32>
    %cst_4 = arith.constant 5.120000e+02 : f32
    %5 = vector.broadcast %cst_4 : f32 to vector<1x16xf32>
    %6 = arith.divf %4, %5 : vector<1x16xf32>
    %7 = vector.broadcast %6 : vector<1x16xf32> to vector<512x16xf32>
    %8 = arith.subf %2, %7 : vector<512x16xf32>
    %9 = arith.mulf %8, %8 : vector<512x16xf32>
    %cst_5 = arith.constant dense<0.000000e+00> : vector<16xf32>
    %10 = vector.multi_reduction <add>, %9, %cst_5 [0] : vector<512x16xf32> to vector<16xf32>
    %11 = vector.shape_cast %10 : vector<16xf32> to vector<1x16xf32>
    %cst_6 = arith.constant 5.120000e+02 : f32
    %12 = vector.broadcast %cst_6 : f32 to vector<1x16xf32>
    %13 = arith.divf %11, %12 : vector<1x16xf32>
    %c0_7 = arith.constant 0 : index
    %c0_8 = arith.constant 0 : index
    %14 = vector.load %arg3[%c0_7, %c0_8] : memref<1x16xf32, #tpu.memory_space<vmem>>, vector<1x16xf32>
    %cst_9 = arith.constant 9.99999974E-6 : f32
    %15 = vector.broadcast %cst_9 : f32 to vector<1x16xf32>
    %16 = arith.addf %13, %15 : vector<1x16xf32>
    %17 = math.rsqrt %16 : vector<1x16xf32>
    %18 = arith.mulf %14, %17 : vector<1x16xf32>
    %19 = vector.broadcast %18 : vector<1x16xf32> to vector<512x16xf32>
    %20 = arith.mulf %8, %19 : vector<512x16xf32>
    %c0_10 = arith.constant 0 : index
    %c0_11 = arith.constant 0 : index
    %21 = vector.load %arg4[%c0_10, %c0_11] : memref<1x16xf32, #tpu.memory_space<vmem>>, vector<1x16xf32>
    %22 = vector.broadcast %21 : vector<1x16xf32> to vector<512x16xf32>
    %23 = arith.addf %20, %22 : vector<512x16xf32>
    %cst_12 = arith.constant 0.000000e+00 : f32
    %24 = vector.broadcast %cst_12 : f32 to vector<512x16xf32>
    %25 = arith.cmpf ogt, %23, %24 : vector<512x16xf32>
    %cst_13 = arith.constant 0.00999999977 : f32
    %26 = vector.broadcast %cst_13 : f32 to vector<512x16xf32>
    %27 = arith.mulf %26, %23 : vector<512x16xf32>
    %28 = arith.select %25, %23, %27 : vector<512x16xi1>, vector<512x16xf32>
    %29 = vector.shape_cast %28 : vector<512x16xf32> to vector<4x128x16xf32>
    %cst_14 = arith.constant dense<0xFF800000> : vector<128x16xf32>
    %30 = vector.multi_reduction <maximumf>, %29, %cst_14 [0] : vector<4x128x16xf32> to vector<128x16xf32>
    %c0_15 = arith.constant 0 : index
    %c0_16 = arith.constant 0 : index
    %31 = vector.load %arg5[%c0_15, %c0_16] : memref<2x16xf32, #tpu.memory_space<vmem>>, vector<2x16xf32>
    %32 = vector.shape_cast %31 : vector<2x16xf32> to vector<2x1x16xf32>
    %33 = vector.shape_cast %32 : vector<2x1x16xf32> to vector<2x1x16xf32>
    %34 = vector.broadcast %33 : vector<2x1x16xf32> to vector<2x64x16xf32>
    %35 = vector.shape_cast %34 : vector<2x64x16xf32> to vector<128x16xf32>
    %36 = arith.addf %30, %35 : vector<128x16xf32>
    %c0_17 = arith.constant 0 : index
    %c0_18 = arith.constant 0 : index
    %37 = vector.load %arg6[%c0_17, %c0_18] : memref<128x16xf32, #tpu.memory_space<vmem>>, vector<128x16xf32>
    tpu.vector_store %arg6[%c0_17, %c0_18], %36 {strides = array<i32>} : memref<128x16xf32, #tpu.memory_space<vmem>>, vector<128x16xf32>,
    return
  }
  func.func @transform_0(%arg0: i32) -> (i32, i32) {
    %c0_i32 = arith.constant 0 : i32
    %c0_i32_0 = arith.constant 0 : i32
    %c0_i32_1 = arith.constant 0 : i32
    return %c0_i32, %c0_i32_0 : i32, i32
  }
  func.func @transform_1(%arg0: i32) -> (i32, i32) {
    %c0_i32 = arith.constant 0 : i32
    %c0_i32_0 = arith.constant 0 : i32
    %c0_i32_1 = arith.constant 0 : i32
    return %c0_i32, %c0_i32_0 : i32, i32
  }
  func.func @transform_2(%arg0: i32) -> (i32, i32) {
    %c0_i32 = arith.constant 0 : i32
    %c0_i32_0 = arith.constant 0 : i32
    %c0_i32_1 = arith.constant 0 : i32
    return %c0_i32, %c0_i32_0 : i32, i32
  }
  func.func @transform_3(%arg0: i32) -> (i32, i32) {
    %c0_i32 = arith.constant 0 : i32
    %c0_i32_0 = arith.constant 0 : i32
    %c0_i32_1 = arith.constant 0 : i32
    return %c0_i32, %c0_i32_0 : i32, i32
  }
  func.func @transform_4(%arg0: i32) -> (i32, i32) {
    %c0_i32 = arith.constant 0 : i32
    %c0_i32_0 = arith.constant 0 : i32
    %c0_i32_1 = arith.constant 0 : i32
    return %c0_i32, %c0_i32_0 : i32, i32
  }
  func.func @transform_5(%arg0: i32) -> (i32, i32) {
    %c0_i32 = arith.constant 0 : i32
    %c0_i32_0 = arith.constant 0 : i32
    %c0_i32_1 = arith.constant 0 : i32
    return %c0_i32, %c0_i32_0 : i32, i32
  }
}

module attributes {stable_mosaic.version = 11 : i64} {
  func.func @_conv_bn_act_kernel(%arg0: i32, %arg1: memref<128x144xbf16, #tpu.memory_space<vmem>>, %arg2: memref<144x32xbf16, #tpu.memory_space<vmem>>, %arg3: memref<1x32xf32, #tpu.memory_space<vmem>>, %arg4: memref<1x32xf32, #tpu.memory_space<vmem>>, %arg5: memref<128x32xf32, #tpu.memory_space<vmem>>) attributes {dimension_semantics = [#tpu.dimension_semantics<arbitrary>], iteration_bounds = array<i64: 1>, scalar_prefetch = 0 : i64, scratch_operands = 0 : i64, tpu.core_type = #tpu.core_type<tc>, window_params = [{pipeline_mode = #tpu.pipeline_mode<synchronous>, transform_indices = @transform_0, window_bounds = array<i64: 128, 144>}, {pipeline_mode = #tpu.pipeline_mode<synchronous>, transform_indices = @transform_1, window_bounds = array<i64: 144, 32>}, {pipeline_mode = #tpu.pipeline_mode<synchronous>, transform_indices = @transform_2, window_bounds = array<i64: 1, 32>}, {pipeline_mode = #tpu.pipeline_mode<synchronous>, transform_indices = @transform_3, window_bounds = array<i64: 1, 32>}, {pipeline_mode = #tpu.pipeline_mode<synchronous>, transform_indices = @transform_4, window_bounds = array<i64: 128, 32>}]} {
    %c0 = arith.constant 0 : index
    %c0_0 = arith.constant 0 : index
    %0 = vector.load %arg1[%c0, %c0_0] : memref<128x144xbf16, #tpu.memory_space<vmem>>, vector<128x144xbf16>
    %c0_1 = arith.constant 0 : index
    %c0_2 = arith.constant 0 : index
    %1 = vector.load %arg2[%c0_1, %c0_2] : memref<144x32xbf16, #tpu.memory_space<vmem>>, vector<144x32xbf16>
    %cst = arith.constant dense<0.000000e+00> : vector<128x32xf32>
    %2 = tpu.matmul %0, %1, %cst {dimension_numbers = #tpu.dot_dimension_numbers<[1], [0], [0], [1], [0, 0, 1, 1], [], []>} : vector<128x144xbf16>, vector<144x32xbf16>, vector<128x32xf32> -> vector<128x32xf32>
    %cst_3 = arith.constant dense<0.000000e+00> : vector<32xf32>
    %3 = vector.multi_reduction <add>, %2, %cst_3 [0] : vector<128x32xf32> to vector<32xf32>
    %4 = vector.shape_cast %3 : vector<32xf32> to vector<1x32xf32>
    %cst_4 = arith.constant 1.280000e+02 : f32
    %5 = vector.broadcast %cst_4 : f32 to vector<1x32xf32>
    %6 = arith.divf %4, %5 : vector<1x32xf32>
    %7 = vector.broadcast %6 : vector<1x32xf32> to vector<128x32xf32>
    %8 = arith.subf %2, %7 : vector<128x32xf32>
    %9 = arith.mulf %8, %8 : vector<128x32xf32>
    %cst_5 = arith.constant dense<0.000000e+00> : vector<32xf32>
    %10 = vector.multi_reduction <add>, %9, %cst_5 [0] : vector<128x32xf32> to vector<32xf32>
    %11 = vector.shape_cast %10 : vector<32xf32> to vector<1x32xf32>
    %cst_6 = arith.constant 1.280000e+02 : f32
    %12 = vector.broadcast %cst_6 : f32 to vector<1x32xf32>
    %13 = arith.divf %11, %12 : vector<1x32xf32>
    %c0_7 = arith.constant 0 : index
    %c0_8 = arith.constant 0 : index
    %14 = vector.load %arg3[%c0_7, %c0_8] : memref<1x32xf32, #tpu.memory_space<vmem>>, vector<1x32xf32>
    %cst_9 = arith.constant 9.99999974E-6 : f32
    %15 = vector.broadcast %cst_9 : f32 to vector<1x32xf32>
    %16 = arith.addf %13, %15 : vector<1x32xf32>
    %17 = math.rsqrt %16 : vector<1x32xf32>
    %18 = arith.mulf %14, %17 : vector<1x32xf32>
    %19 = vector.broadcast %18 : vector<1x32xf32> to vector<128x32xf32>
    %20 = arith.mulf %8, %19 : vector<128x32xf32>
    %c0_10 = arith.constant 0 : index
    %c0_11 = arith.constant 0 : index
    %21 = vector.load %arg4[%c0_10, %c0_11] : memref<1x32xf32, #tpu.memory_space<vmem>>, vector<1x32xf32>
    %22 = vector.broadcast %21 : vector<1x32xf32> to vector<128x32xf32>
    %23 = arith.addf %20, %22 : vector<128x32xf32>
    %cst_12 = arith.constant 0.000000e+00 : f32
    %24 = vector.broadcast %cst_12 : f32 to vector<128x32xf32>
    %25 = arith.cmpf ogt, %23, %24 : vector<128x32xf32>
    %cst_13 = arith.constant 0.00999999977 : f32
    %26 = vector.broadcast %cst_13 : f32 to vector<128x32xf32>
    %27 = arith.mulf %26, %23 : vector<128x32xf32>
    %28 = arith.select %25, %23, %27 : vector<128x32xi1>, vector<128x32xf32>
    %c0_14 = arith.constant 0 : index
    %c0_15 = arith.constant 0 : index
    %29 = vector.load %arg5[%c0_14, %c0_15] : memref<128x32xf32, #tpu.memory_space<vmem>>, vector<128x32xf32>
    tpu.vector_store %arg5[%c0_14, %c0_15], %28 {strides = array<i32>} : memref<128x32xf32, #tpu.memory_space<vmem>>, vector<128x32xf32>,
    return
  }
  func.func @transform_0(%arg0: i32) -> (i32, i32) {
    %c0_i32 = arith.constant 0 : i32
    %c0_i32_0 = arith.constant 0 : i32
    %c0_i32_1 = arith.constant 0 : i32
    return %c0_i32, %c0_i32_0 : i32, i32
  }
  func.func @transform_1(%arg0: i32) -> (i32, i32) {
    %c0_i32 = arith.constant 0 : i32
    %c0_i32_0 = arith.constant 0 : i32
    %c0_i32_1 = arith.constant 0 : i32
    return %c0_i32, %c0_i32_0 : i32, i32
  }
  func.func @transform_2(%arg0: i32) -> (i32, i32) {
    %c0_i32 = arith.constant 0 : i32
    %c0_i32_0 = arith.constant 0 : i32
    %c0_i32_1 = arith.constant 0 : i32
    return %c0_i32, %c0_i32_0 : i32, i32
  }
  func.func @transform_3(%arg0: i32) -> (i32, i32) {
    %c0_i32 = arith.constant 0 : i32
    %c0_i32_0 = arith.constant 0 : i32
    %c0_i32_1 = arith.constant 0 : i32
    return %c0_i32, %c0_i32_0 : i32, i32
  }
  func.func @transform_4(%arg0: i32) -> (i32, i32) {
    %c0_i32 = arith.constant 0 : i32
    %c0_i32_0 = arith.constant 0 : i32
    %c0_i32_1 = arith.constant 0 : i32
    return %c0_i32, %c0_i32_0 : i32, i32
  }
}

module attributes {stable_mosaic.version = 11 : i64} {
  func.func @_conv_bn_act_kernel(%arg0: i32, %arg1: memref<128x288xbf16, #tpu.memory_space<vmem>>, %arg2: memref<288x16xbf16, #tpu.memory_space<vmem>>, %arg3: memref<1x16xf32, #tpu.memory_space<vmem>>, %arg4: memref<1x16xf32, #tpu.memory_space<vmem>>, %arg5: memref<128x16xf32, #tpu.memory_space<vmem>>) attributes {dimension_semantics = [#tpu.dimension_semantics<arbitrary>], iteration_bounds = array<i64: 1>, scalar_prefetch = 0 : i64, scratch_operands = 0 : i64, tpu.core_type = #tpu.core_type<tc>, window_params = [{pipeline_mode = #tpu.pipeline_mode<synchronous>, transform_indices = @transform_0, window_bounds = array<i64: 128, 288>}, {pipeline_mode = #tpu.pipeline_mode<synchronous>, transform_indices = @transform_1, window_bounds = array<i64: 288, 16>}, {pipeline_mode = #tpu.pipeline_mode<synchronous>, transform_indices = @transform_2, window_bounds = array<i64: 1, 16>}, {pipeline_mode = #tpu.pipeline_mode<synchronous>, transform_indices = @transform_3, window_bounds = array<i64: 1, 16>}, {pipeline_mode = #tpu.pipeline_mode<synchronous>, transform_indices = @transform_4, window_bounds = array<i64: 128, 16>}]} {
    %c0 = arith.constant 0 : index
    %c0_0 = arith.constant 0 : index
    %0 = vector.load %arg1[%c0, %c0_0] : memref<128x288xbf16, #tpu.memory_space<vmem>>, vector<128x288xbf16>
    %c0_1 = arith.constant 0 : index
    %c0_2 = arith.constant 0 : index
    %1 = vector.load %arg2[%c0_1, %c0_2] : memref<288x16xbf16, #tpu.memory_space<vmem>>, vector<288x16xbf16>
    %cst = arith.constant dense<0.000000e+00> : vector<128x16xf32>
    %2 = tpu.matmul %0, %1, %cst {dimension_numbers = #tpu.dot_dimension_numbers<[1], [0], [0], [1], [0, 0, 1, 1], [], []>} : vector<128x288xbf16>, vector<288x16xbf16>, vector<128x16xf32> -> vector<128x16xf32>
    %cst_3 = arith.constant dense<0.000000e+00> : vector<16xf32>
    %3 = vector.multi_reduction <add>, %2, %cst_3 [0] : vector<128x16xf32> to vector<16xf32>
    %4 = vector.shape_cast %3 : vector<16xf32> to vector<1x16xf32>
    %cst_4 = arith.constant 1.280000e+02 : f32
    %5 = vector.broadcast %cst_4 : f32 to vector<1x16xf32>
    %6 = arith.divf %4, %5 : vector<1x16xf32>
    %7 = vector.broadcast %6 : vector<1x16xf32> to vector<128x16xf32>
    %8 = arith.subf %2, %7 : vector<128x16xf32>
    %9 = arith.mulf %8, %8 : vector<128x16xf32>
    %cst_5 = arith.constant dense<0.000000e+00> : vector<16xf32>
    %10 = vector.multi_reduction <add>, %9, %cst_5 [0] : vector<128x16xf32> to vector<16xf32>
    %11 = vector.shape_cast %10 : vector<16xf32> to vector<1x16xf32>
    %cst_6 = arith.constant 1.280000e+02 : f32
    %12 = vector.broadcast %cst_6 : f32 to vector<1x16xf32>
    %13 = arith.divf %11, %12 : vector<1x16xf32>
    %c0_7 = arith.constant 0 : index
    %c0_8 = arith.constant 0 : index
    %14 = vector.load %arg3[%c0_7, %c0_8] : memref<1x16xf32, #tpu.memory_space<vmem>>, vector<1x16xf32>
    %cst_9 = arith.constant 9.99999974E-6 : f32
    %15 = vector.broadcast %cst_9 : f32 to vector<1x16xf32>
    %16 = arith.addf %13, %15 : vector<1x16xf32>
    %17 = math.rsqrt %16 : vector<1x16xf32>
    %18 = arith.mulf %14, %17 : vector<1x16xf32>
    %19 = vector.broadcast %18 : vector<1x16xf32> to vector<128x16xf32>
    %20 = arith.mulf %8, %19 : vector<128x16xf32>
    %c0_10 = arith.constant 0 : index
    %c0_11 = arith.constant 0 : index
    %21 = vector.load %arg4[%c0_10, %c0_11] : memref<1x16xf32, #tpu.memory_space<vmem>>, vector<1x16xf32>
    %22 = vector.broadcast %21 : vector<1x16xf32> to vector<128x16xf32>
    %23 = arith.addf %20, %22 : vector<128x16xf32>
    %cst_12 = arith.constant 0.000000e+00 : f32
    %24 = vector.broadcast %cst_12 : f32 to vector<128x16xf32>
    %25 = arith.cmpf ogt, %23, %24 : vector<128x16xf32>
    %cst_13 = arith.constant 0.00999999977 : f32
    %26 = vector.broadcast %cst_13 : f32 to vector<128x16xf32>
    %27 = arith.mulf %26, %23 : vector<128x16xf32>
    %28 = arith.select %25, %23, %27 : vector<128x16xi1>, vector<128x16xf32>
    %c0_14 = arith.constant 0 : index
    %c0_15 = arith.constant 0 : index
    %29 = vector.load %arg5[%c0_14, %c0_15] : memref<128x16xf32, #tpu.memory_space<vmem>>, vector<128x16xf32>
    tpu.vector_store %arg5[%c0_14, %c0_15], %28 {strides = array<i32>} : memref<128x16xf32, #tpu.memory_space<vmem>>, vector<128x16xf32>,
    return
  }
  func.func @transform_0(%arg0: i32) -> (i32, i32) {
    %c0_i32 = arith.constant 0 : i32
    %c0_i32_0 = arith.constant 0 : i32
    %c0_i32_1 = arith.constant 0 : i32
    return %c0_i32, %c0_i32_0 : i32, i32
  }
  func.func @transform_1(%arg0: i32) -> (i32, i32) {
    %c0_i32 = arith.constant 0 : i32
    %c0_i32_0 = arith.constant 0 : i32
    %c0_i32_1 = arith.constant 0 : i32
    return %c0_i32, %c0_i32_0 : i32, i32
  }
  func.func @transform_2(%arg0: i32) -> (i32, i32) {
    %c0_i32 = arith.constant 0 : i32
    %c0_i32_0 = arith.constant 0 : i32
    %c0_i32_1 = arith.constant 0 : i32
    return %c0_i32, %c0_i32_0 : i32, i32
  }
  func.func @transform_3(%arg0: i32) -> (i32, i32) {
    %c0_i32 = arith.constant 0 : i32
    %c0_i32_0 = arith.constant 0 : i32
    %c0_i32_1 = arith.constant 0 : i32
    return %c0_i32, %c0_i32_0 : i32, i32
  }
  func.func @transform_4(%arg0: i32) -> (i32, i32) {
    %c0_i32 = arith.constant 0 : i32
    %c0_i32_0 = arith.constant 0 : i32
    %c0_i32_1 = arith.constant 0 : i32
    return %c0_i32, %c0_i32_0 : i32, i32
  }
}

module attributes {stable_mosaic.version = 11 : i64} {
  func.func @_convt_bn_act_kernel(%arg0: i32, %arg1: memref<128x144xbf16, #tpu.memory_space<vmem>>, %arg2: memref<144x32xbf16, #tpu.memory_space<vmem>>, %arg3: memref<1x8xf32, #tpu.memory_space<vmem>>, %arg4: memref<1x8xf32, #tpu.memory_space<vmem>>, %arg5: memref<128x32xf32, #tpu.memory_space<vmem>>) attributes {dimension_semantics = [#tpu.dimension_semantics<arbitrary>], iteration_bounds = array<i64: 1>, scalar_prefetch = 0 : i64, scratch_operands = 0 : i64, tpu.core_type = #tpu.core_type<tc>, window_params = [{pipeline_mode = #tpu.pipeline_mode<synchronous>, transform_indices = @transform_0, window_bounds = array<i64: 128, 144>}, {pipeline_mode = #tpu.pipeline_mode<synchronous>, transform_indices = @transform_1, window_bounds = array<i64: 144, 32>}, {pipeline_mode = #tpu.pipeline_mode<synchronous>, transform_indices = @transform_2, window_bounds = array<i64: 1, 8>}, {pipeline_mode = #tpu.pipeline_mode<synchronous>, transform_indices = @transform_3, window_bounds = array<i64: 1, 8>}, {pipeline_mode = #tpu.pipeline_mode<synchronous>, transform_indices = @transform_4, window_bounds = array<i64: 128, 32>}]} {
    %c0 = arith.constant 0 : index
    %c0_0 = arith.constant 0 : index
    %0 = vector.load %arg1[%c0, %c0_0] : memref<128x144xbf16, #tpu.memory_space<vmem>>, vector<128x144xbf16>
    %c0_1 = arith.constant 0 : index
    %c0_2 = arith.constant 0 : index
    %1 = vector.load %arg2[%c0_1, %c0_2] : memref<144x32xbf16, #tpu.memory_space<vmem>>, vector<144x32xbf16>
    %cst = arith.constant dense<0.000000e+00> : vector<128x32xf32>
    %2 = tpu.matmul %0, %1, %cst {dimension_numbers = #tpu.dot_dimension_numbers<[1], [0], [0], [1], [0, 0, 1, 1], [], []>} : vector<128x144xbf16>, vector<144x32xbf16>, vector<128x32xf32> -> vector<128x32xf32>
    %3 = vector.extract_strided_slice %2 {offsets = [0, 0], sizes = [128, 8], strides = [1, 1]} : vector<128x32xf32> to vector<128x8xf32>
    %4 = vector.extract_strided_slice %2 {offsets = [0, 8], sizes = [128, 8], strides = [1, 1]} : vector<128x32xf32> to vector<128x8xf32>
    %5 = vector.extract_strided_slice %2 {offsets = [0, 16], sizes = [128, 8], strides = [1, 1]} : vector<128x32xf32> to vector<128x8xf32>
    %6 = vector.extract_strided_slice %2 {offsets = [0, 24], sizes = [128, 8], strides = [1, 1]} : vector<128x32xf32> to vector<128x8xf32>
    %cst_3 = arith.constant dense<0.000000e+00> : vector<8xf32>
    %7 = vector.multi_reduction <add>, %3, %cst_3 [0] : vector<128x8xf32> to vector<8xf32>
    %8 = vector.shape_cast %7 : vector<8xf32> to vector<1x8xf32>
    %cst_4 = arith.constant 0.000000e+00 : f32
    %9 = vector.broadcast %cst_4 : f32 to vector<1x8xf32>
    %10 = arith.addf %9, %8 : vector<1x8xf32>
    %cst_5 = arith.constant dense<0.000000e+00> : vector<8xf32>
    %11 = vector.multi_reduction <add>, %4, %cst_5 [0] : vector<128x8xf32> to vector<8xf32>
    %12 = vector.shape_cast %11 : vector<8xf32> to vector<1x8xf32>
    %13 = arith.addf %10, %12 : vector<1x8xf32>
    %cst_6 = arith.constant dense<0.000000e+00> : vector<8xf32>
    %14 = vector.multi_reduction <add>, %5, %cst_6 [0] : vector<128x8xf32> to vector<8xf32>
    %15 = vector.shape_cast %14 : vector<8xf32> to vector<1x8xf32>
    %16 = arith.addf %13, %15 : vector<1x8xf32>
    %cst_7 = arith.constant dense<0.000000e+00> : vector<8xf32>
    %17 = vector.multi_reduction <add>, %6, %cst_7 [0] : vector<128x8xf32> to vector<8xf32>
    %18 = vector.shape_cast %17 : vector<8xf32> to vector<1x8xf32>
    %19 = arith.addf %16, %18 : vector<1x8xf32>
    %cst_8 = arith.constant 5.120000e+02 : f32
    %20 = vector.broadcast %cst_8 : f32 to vector<1x8xf32>
    %21 = arith.divf %19, %20 : vector<1x8xf32>
    %22 = vector.broadcast %21 : vector<1x8xf32> to vector<128x8xf32>
    %23 = arith.subf %3, %22 : vector<128x8xf32>
    %24 = vector.broadcast %21 : vector<1x8xf32> to vector<128x8xf32>
    %25 = arith.subf %4, %24 : vector<128x8xf32>
    %26 = vector.broadcast %21 : vector<1x8xf32> to vector<128x8xf32>
    %27 = arith.subf %5, %26 : vector<128x8xf32>
    %28 = vector.broadcast %21 : vector<1x8xf32> to vector<128x8xf32>
    %29 = arith.subf %6, %28 : vector<128x8xf32>
    %30 = arith.mulf %23, %23 : vector<128x8xf32>
    %cst_9 = arith.constant dense<0.000000e+00> : vector<8xf32>
    %31 = vector.multi_reduction <add>, %30, %cst_9 [0] : vector<128x8xf32> to vector<8xf32>
    %32 = vector.shape_cast %31 : vector<8xf32> to vector<1x8xf32>
    %cst_10 = arith.constant 0.000000e+00 : f32
    %33 = vector.broadcast %cst_10 : f32 to vector<1x8xf32>
    %34 = arith.addf %33, %32 : vector<1x8xf32>
    %35 = arith.mulf %25, %25 : vector<128x8xf32>
    %cst_11 = arith.constant dense<0.000000e+00> : vector<8xf32>
    %36 = vector.multi_reduction <add>, %35, %cst_11 [0] : vector<128x8xf32> to vector<8xf32>
    %37 = vector.shape_cast %36 : vector<8xf32> to vector<1x8xf32>
    %38 = arith.addf %34, %37 : vector<1x8xf32>
    %39 = arith.mulf %27, %27 : vector<128x8xf32>
    %cst_12 = arith.constant dense<0.000000e+00> : vector<8xf32>
    %40 = vector.multi_reduction <add>, %39, %cst_12 [0] : vector<128x8xf32> to vector<8xf32>
    %41 = vector.shape_cast %40 : vector<8xf32> to vector<1x8xf32>
    %42 = arith.addf %38, %41 : vector<1x8xf32>
    %43 = arith.mulf %29, %29 : vector<128x8xf32>
    %cst_13 = arith.constant dense<0.000000e+00> : vector<8xf32>
    %44 = vector.multi_reduction <add>, %43, %cst_13 [0] : vector<128x8xf32> to vector<8xf32>
    %45 = vector.shape_cast %44 : vector<8xf32> to vector<1x8xf32>
    %46 = arith.addf %42, %45 : vector<1x8xf32>
    %cst_14 = arith.constant 5.120000e+02 : f32
    %47 = vector.broadcast %cst_14 : f32 to vector<1x8xf32>
    %48 = arith.divf %46, %47 : vector<1x8xf32>
    %c0_15 = arith.constant 0 : index
    %c0_16 = arith.constant 0 : index
    %49 = vector.load %arg3[%c0_15, %c0_16] : memref<1x8xf32, #tpu.memory_space<vmem>>, vector<1x8xf32>
    %cst_17 = arith.constant 9.99999974E-6 : f32
    %50 = vector.broadcast %cst_17 : f32 to vector<1x8xf32>
    %51 = arith.addf %48, %50 : vector<1x8xf32>
    %52 = math.rsqrt %51 : vector<1x8xf32>
    %53 = arith.mulf %49, %52 : vector<1x8xf32>
    %c0_18 = arith.constant 0 : index
    %c0_19 = arith.constant 0 : index
    %54 = vector.load %arg4[%c0_18, %c0_19] : memref<1x8xf32, #tpu.memory_space<vmem>>, vector<1x8xf32>
    %55 = vector.broadcast %53 : vector<1x8xf32> to vector<128x8xf32>
    %56 = arith.mulf %23, %55 : vector<128x8xf32>
    %57 = vector.broadcast %54 : vector<1x8xf32> to vector<128x8xf32>
    %58 = arith.addf %56, %57 : vector<128x8xf32>
    %cst_20 = arith.constant 0.000000e+00 : f32
    %59 = vector.broadcast %cst_20 : f32 to vector<128x8xf32>
    %60 = arith.cmpf ogt, %58, %59 : vector<128x8xf32>
    %cst_21 = arith.constant 0.00999999977 : f32
    %61 = vector.broadcast %cst_21 : f32 to vector<128x8xf32>
    %62 = arith.mulf %61, %58 : vector<128x8xf32>
    %63 = arith.select %60, %58, %62 : vector<128x8xi1>, vector<128x8xf32>
    %64 = vector.broadcast %53 : vector<1x8xf32> to vector<128x8xf32>
    %65 = arith.mulf %25, %64 : vector<128x8xf32>
    %66 = vector.broadcast %54 : vector<1x8xf32> to vector<128x8xf32>
    %67 = arith.addf %65, %66 : vector<128x8xf32>
    %cst_22 = arith.constant 0.000000e+00 : f32
    %68 = vector.broadcast %cst_22 : f32 to vector<128x8xf32>
    %69 = arith.cmpf ogt, %67, %68 : vector<128x8xf32>
    %cst_23 = arith.constant 0.00999999977 : f32
    %70 = vector.broadcast %cst_23 : f32 to vector<128x8xf32>
    %71 = arith.mulf %70, %67 : vector<128x8xf32>
    %72 = arith.select %69, %67, %71 : vector<128x8xi1>, vector<128x8xf32>
    %73 = vector.broadcast %53 : vector<1x8xf32> to vector<128x8xf32>
    %74 = arith.mulf %27, %73 : vector<128x8xf32>
    %75 = vector.broadcast %54 : vector<1x8xf32> to vector<128x8xf32>
    %76 = arith.addf %74, %75 : vector<128x8xf32>
    %cst_24 = arith.constant 0.000000e+00 : f32
    %77 = vector.broadcast %cst_24 : f32 to vector<128x8xf32>
    %78 = arith.cmpf ogt, %76, %77 : vector<128x8xf32>
    %cst_25 = arith.constant 0.00999999977 : f32
    %79 = vector.broadcast %cst_25 : f32 to vector<128x8xf32>
    %80 = arith.mulf %79, %76 : vector<128x8xf32>
    %81 = arith.select %78, %76, %80 : vector<128x8xi1>, vector<128x8xf32>
    %82 = vector.broadcast %53 : vector<1x8xf32> to vector<128x8xf32>
    %83 = arith.mulf %29, %82 : vector<128x8xf32>
    %84 = vector.broadcast %54 : vector<1x8xf32> to vector<128x8xf32>
    %85 = arith.addf %83, %84 : vector<128x8xf32>
    %cst_26 = arith.constant 0.000000e+00 : f32
    %86 = vector.broadcast %cst_26 : f32 to vector<128x8xf32>
    %87 = arith.cmpf ogt, %85, %86 : vector<128x8xf32>
    %cst_27 = arith.constant 0.00999999977 : f32
    %88 = vector.broadcast %cst_27 : f32 to vector<128x8xf32>
    %89 = arith.mulf %88, %85 : vector<128x8xf32>
    %90 = arith.select %87, %85, %89 : vector<128x8xi1>, vector<128x8xf32>
    %91 = tpu.concatenate %63, %72, %81, %90 in 1 : vector<128x8xf32>, vector<128x8xf32>, vector<128x8xf32>, vector<128x8xf32> -> vector<128x32xf32>
    %c0_28 = arith.constant 0 : index
    %c0_29 = arith.constant 0 : index
    %92 = vector.load %arg5[%c0_28, %c0_29] : memref<128x32xf32, #tpu.memory_space<vmem>>, vector<128x32xf32>
    tpu.vector_store %arg5[%c0_28, %c0_29], %91 {strides = array<i32>} : memref<128x32xf32, #tpu.memory_space<vmem>>, vector<128x32xf32>,
    return
  }
  func.func @transform_0(%arg0: i32) -> (i32, i32) {
    %c0_i32 = arith.constant 0 : i32
    %c0_i32_0 = arith.constant 0 : i32
    %c0_i32_1 = arith.constant 0 : i32
    return %c0_i32, %c0_i32_0 : i32, i32
  }
  func.func @transform_1(%arg0: i32) -> (i32, i32) {
    %c0_i32 = arith.constant 0 : i32
    %c0_i32_0 = arith.constant 0 : i32
    %c0_i32_1 = arith.constant 0 : i32
    return %c0_i32, %c0_i32_0 : i32, i32
  }
  func.func @transform_2(%arg0: i32) -> (i32, i32) {
    %c0_i32 = arith.constant 0 : i32
    %c0_i32_0 = arith.constant 0 : i32
    %c0_i32_1 = arith.constant 0 : i32
    return %c0_i32, %c0_i32_0 : i32, i32
  }
  func.func @transform_3(%arg0: i32) -> (i32, i32) {
    %c0_i32 = arith.constant 0 : i32
    %c0_i32_0 = arith.constant 0 : i32
    %c0_i32_1 = arith.constant 0 : i32
    return %c0_i32, %c0_i32_0 : i32, i32
  }
  func.func @transform_4(%arg0: i32) -> (i32, i32) {
    %c0_i32 = arith.constant 0 : i32
    %c0_i32_0 = arith.constant 0 : i32
    %c0_i32_1 = arith.constant 0 : i32
    return %c0_i32, %c0_i32_0 : i32, i32
  }
}

module attributes {stable_mosaic.version = 11 : i64} {
  func.func @_conv_bn_act_res_kernel(%arg0: i32, %arg1: memref<512x72xbf16, #tpu.memory_space<vmem>>, %arg2: memref<72x8xbf16, #tpu.memory_space<vmem>>, %arg3: memref<1x8xf32, #tpu.memory_space<vmem>>, %arg4: memref<1x8xf32, #tpu.memory_space<vmem>>, %arg5: memref<512x8xf32, #tpu.memory_space<vmem>>, %arg6: memref<512x8xf32, #tpu.memory_space<vmem>>) attributes {dimension_semantics = [#tpu.dimension_semantics<arbitrary>], iteration_bounds = array<i64: 1>, scalar_prefetch = 0 : i64, scratch_operands = 0 : i64, tpu.core_type = #tpu.core_type<tc>, window_params = [{pipeline_mode = #tpu.pipeline_mode<synchronous>, transform_indices = @transform_0, window_bounds = array<i64: 512, 72>}, {pipeline_mode = #tpu.pipeline_mode<synchronous>, transform_indices = @transform_1, window_bounds = array<i64: 72, 8>}, {pipeline_mode = #tpu.pipeline_mode<synchronous>, transform_indices = @transform_2, window_bounds = array<i64: 1, 8>}, {pipeline_mode = #tpu.pipeline_mode<synchronous>, transform_indices = @transform_3, window_bounds = array<i64: 1, 8>}, {pipeline_mode = #tpu.pipeline_mode<synchronous>, transform_indices = @transform_4, window_bounds = array<i64: 512, 8>}, {pipeline_mode = #tpu.pipeline_mode<synchronous>, transform_indices = @transform_5, window_bounds = array<i64: 512, 8>}]} {
    %c0 = arith.constant 0 : index
    %c0_0 = arith.constant 0 : index
    %0 = vector.load %arg1[%c0, %c0_0] : memref<512x72xbf16, #tpu.memory_space<vmem>>, vector<512x72xbf16>
    %c0_1 = arith.constant 0 : index
    %c0_2 = arith.constant 0 : index
    %1 = vector.load %arg2[%c0_1, %c0_2] : memref<72x8xbf16, #tpu.memory_space<vmem>>, vector<72x8xbf16>
    %cst = arith.constant dense<0.000000e+00> : vector<512x8xf32>
    %2 = tpu.matmul %0, %1, %cst {dimension_numbers = #tpu.dot_dimension_numbers<[1], [0], [0], [1], [0, 0, 1, 1], [], []>} : vector<512x72xbf16>, vector<72x8xbf16>, vector<512x8xf32> -> vector<512x8xf32>
    %cst_3 = arith.constant dense<0.000000e+00> : vector<8xf32>
    %3 = vector.multi_reduction <add>, %2, %cst_3 [0] : vector<512x8xf32> to vector<8xf32>
    %4 = vector.shape_cast %3 : vector<8xf32> to vector<1x8xf32>
    %cst_4 = arith.constant 5.120000e+02 : f32
    %5 = vector.broadcast %cst_4 : f32 to vector<1x8xf32>
    %6 = arith.divf %4, %5 : vector<1x8xf32>
    %7 = vector.broadcast %6 : vector<1x8xf32> to vector<512x8xf32>
    %8 = arith.subf %2, %7 : vector<512x8xf32>
    %9 = arith.mulf %8, %8 : vector<512x8xf32>
    %cst_5 = arith.constant dense<0.000000e+00> : vector<8xf32>
    %10 = vector.multi_reduction <add>, %9, %cst_5 [0] : vector<512x8xf32> to vector<8xf32>
    %11 = vector.shape_cast %10 : vector<8xf32> to vector<1x8xf32>
    %cst_6 = arith.constant 5.120000e+02 : f32
    %12 = vector.broadcast %cst_6 : f32 to vector<1x8xf32>
    %13 = arith.divf %11, %12 : vector<1x8xf32>
    %c0_7 = arith.constant 0 : index
    %c0_8 = arith.constant 0 : index
    %14 = vector.load %arg3[%c0_7, %c0_8] : memref<1x8xf32, #tpu.memory_space<vmem>>, vector<1x8xf32>
    %cst_9 = arith.constant 9.99999974E-6 : f32
    %15 = vector.broadcast %cst_9 : f32 to vector<1x8xf32>
    %16 = arith.addf %13, %15 : vector<1x8xf32>
    %17 = math.rsqrt %16 : vector<1x8xf32>
    %18 = arith.mulf %14, %17 : vector<1x8xf32>
    %19 = vector.broadcast %18 : vector<1x8xf32> to vector<512x8xf32>
    %20 = arith.mulf %8, %19 : vector<512x8xf32>
    %c0_10 = arith.constant 0 : index
    %c0_11 = arith.constant 0 : index
    %21 = vector.load %arg4[%c0_10, %c0_11] : memref<1x8xf32, #tpu.memory_space<vmem>>, vector<1x8xf32>
    %22 = vector.broadcast %21 : vector<1x8xf32> to vector<512x8xf32>
    %23 = arith.addf %20, %22 : vector<512x8xf32>
    %cst_12 = arith.constant 0.000000e+00 : f32
    %24 = vector.broadcast %cst_12 : f32 to vector<512x8xf32>
    %25 = arith.cmpf ogt, %23, %24 : vector<512x8xf32>
    %cst_13 = arith.constant 0.00999999977 : f32
    %26 = vector.broadcast %cst_13 : f32 to vector<512x8xf32>
    %27 = arith.mulf %26, %23 : vector<512x8xf32>
    %28 = arith.select %25, %23, %27 : vector<512x8xi1>, vector<512x8xf32>
    %c0_14 = arith.constant 0 : index
    %c0_15 = arith.constant 0 : index
    %29 = vector.load %arg5[%c0_14, %c0_15] : memref<512x8xf32, #tpu.memory_space<vmem>>, vector<512x8xf32>
    %30 = arith.addf %28, %29 : vector<512x8xf32>
    %c0_16 = arith.constant 0 : index
    %c0_17 = arith.constant 0 : index
    %31 = vector.load %arg6[%c0_16, %c0_17] : memref<512x8xf32, #tpu.memory_space<vmem>>, vector<512x8xf32>
    tpu.vector_store %arg6[%c0_16, %c0_17], %30 {strides = array<i32>} : memref<512x8xf32, #tpu.memory_space<vmem>>, vector<512x8xf32>,
    return
  }
  func.func @transform_0(%arg0: i32) -> (i32, i32) {
    %c0_i32 = arith.constant 0 : i32
    %c0_i32_0 = arith.constant 0 : i32
    %c0_i32_1 = arith.constant 0 : i32
    return %c0_i32, %c0_i32_0 : i32, i32
  }
  func.func @transform_1(%arg0: i32) -> (i32, i32) {
    %c0_i32 = arith.constant 0 : i32
    %c0_i32_0 = arith.constant 0 : i32
    %c0_i32_1 = arith.constant 0 : i32
    return %c0_i32, %c0_i32_0 : i32, i32
  }
  func.func @transform_2(%arg0: i32) -> (i32, i32) {
    %c0_i32 = arith.constant 0 : i32
    %c0_i32_0 = arith.constant 0 : i32
    %c0_i32_1 = arith.constant 0 : i32
    return %c0_i32, %c0_i32_0 : i32, i32
  }
  func.func @transform_3(%arg0: i32) -> (i32, i32) {
    %c0_i32 = arith.constant 0 : i32
    %c0_i32_0 = arith.constant 0 : i32
    %c0_i32_1 = arith.constant 0 : i32
    return %c0_i32, %c0_i32_0 : i32, i32
  }
  func.func @transform_4(%arg0: i32) -> (i32, i32) {
    %c0_i32 = arith.constant 0 : i32
    %c0_i32_0 = arith.constant 0 : i32
    %c0_i32_1 = arith.constant 0 : i32
    return %c0_i32, %c0_i32_0 : i32, i32
  }
  func.func @transform_5(%arg0: i32) -> (i32, i32) {
    %c0_i32 = arith.constant 0 : i32
    %c0_i32_0 = arith.constant 0 : i32
    %c0_i32_1 = arith.constant 0 : i32
    return %c0_i32, %c0_i32_0 : i32, i32
  }
}

module attributes {stable_mosaic.version = 11 : i64} {
  func.func @_conv_bias_kernel(%arg0: i32, %arg1: memref<512x72xbf16, #tpu.memory_space<vmem>>, %arg2: memref<72x4xbf16, #tpu.memory_space<vmem>>, %arg3: memref<1x4xf32, #tpu.memory_space<vmem>>, %arg4: memref<512x4xf32, #tpu.memory_space<vmem>>) attributes {dimension_semantics = [#tpu.dimension_semantics<arbitrary>], iteration_bounds = array<i64: 1>, scalar_prefetch = 0 : i64, scratch_operands = 0 : i64, tpu.core_type = #tpu.core_type<tc>, window_params = [{pipeline_mode = #tpu.pipeline_mode<synchronous>, transform_indices = @transform_0, window_bounds = array<i64: 512, 72>}, {pipeline_mode = #tpu.pipeline_mode<synchronous>, transform_indices = @transform_1, window_bounds = array<i64: 72, 4>}, {pipeline_mode = #tpu.pipeline_mode<synchronous>, transform_indices = @transform_2, window_bounds = array<i64: 1, 4>}, {pipeline_mode = #tpu.pipeline_mode<synchronous>, transform_indices = @transform_3, window_bounds = array<i64: 512, 4>}]} {
    %c0 = arith.constant 0 : index
    %c0_0 = arith.constant 0 : index
    %0 = vector.load %arg1[%c0, %c0_0] : memref<512x72xbf16, #tpu.memory_space<vmem>>, vector<512x72xbf16>
    %c0_1 = arith.constant 0 : index
    %c0_2 = arith.constant 0 : index
    %1 = vector.load %arg2[%c0_1, %c0_2] : memref<72x4xbf16, #tpu.memory_space<vmem>>, vector<72x4xbf16>
    %cst = arith.constant dense<0.000000e+00> : vector<512x4xf32>
    %2 = tpu.matmul %0, %1, %cst {dimension_numbers = #tpu.dot_dimension_numbers<[1], [0], [0], [1], [0, 0, 1, 1], [], []>} : vector<512x72xbf16>, vector<72x4xbf16>, vector<512x4xf32> -> vector<512x4xf32>
    %c0_3 = arith.constant 0 : index
    %c0_4 = arith.constant 0 : index
    %3 = vector.load %arg3[%c0_3, %c0_4] : memref<1x4xf32, #tpu.memory_space<vmem>>, vector<1x4xf32>
    %4 = vector.broadcast %3 : vector<1x4xf32> to vector<512x4xf32>
    %5 = arith.addf %2, %4 : vector<512x4xf32>
    %c0_5 = arith.constant 0 : index
    %c0_6 = arith.constant 0 : index
    %6 = vector.load %arg4[%c0_5, %c0_6] : memref<512x4xf32, #tpu.memory_space<vmem>>, vector<512x4xf32>
    tpu.vector_store %arg4[%c0_5, %c0_6], %5 {strides = array<i32>} : memref<512x4xf32, #tpu.memory_space<vmem>>, vector<512x4xf32>,
    return
  }
  func.func @transform_0(%arg0: i32) -> (i32, i32) {
    %c0_i32 = arith.constant 0 : i32
    %c0_i32_0 = arith.constant 0 : i32
    %c0_i32_1 = arith.constant 0 : i32
    return %c0_i32, %c0_i32_0 : i32, i32
  }
  func.func @transform_1(%arg0: i32) -> (i32, i32) {
    %c0_i32 = arith.constant 0 : i32
    %c0_i32_0 = arith.constant 0 : i32
    %c0_i32_1 = arith.constant 0 : i32
    return %c0_i32, %c0_i32_0 : i32, i32
  }
  func.func @transform_2(%arg0: i32) -> (i32, i32) {
    %c0_i32 = arith.constant 0 : i32
    %c0_i32_0 = arith.constant 0 : i32
    %c0_i32_1 = arith.constant 0 : i32
    return %c0_i32, %c0_i32_0 : i32, i32
  }
  func.func @transform_3(%arg0: i32) -> (i32, i32) {
    %c0_i32 = arith.constant 0 : i32
    %c0_i32_0 = arith.constant 0 : i32
    %c0_i32_1 = arith.constant 0 : i32
    return %c0_i32, %c0_i32_0 : i32, i32
  }
}

</mosaic_0001>

<bundles_post_ra>
// kernel: simple_unet_forward.8
= control target key start
LH: loop header
LB: loop body
LE: loop exit
PB: predicated region body
PF: predicated region fallthrough
CT: control target
= control target key end

     0   :  { %vm266_vm0 = vcmask 293888   ;;  %vm363_vm1 = vcmask 1041408   ;;  %vm656_vm2 = vcmask 64512   ;;  %s1423_s1 = inlined_call_operand.vmem [shape: bf16[36,8], index: 1, kind: input, shape index: {}]   ;;  %s1424_s0 = inlined_call_operand.vmem [shape: bf16[512,36], index: 0, kind: input, shape index: {}]   ;;  %s1425_s2 = inlined_call_operand.vmem [shape: f32[1,8], index: 2, kind: input, shape index: {}]   ;;  %s1426_s3 = inlined_call_operand.vmem [shape: f32[512,8], index: 3, kind: output, shape index: {}]  }
   0x1   :  { %v906_v0 = vld [vmem:[%s1423_s1] sm:$0xff]   ;;  %v907_v1 = vld [vmem:[%s1423_s1 + $0x8] sm:$0xff]   ;;  %v908_v2 = vld [vmem:[%s1423_s1 + $0x10] ss:$0 sps:$4 sm:$0x33]  }
   0x2   :  { %828 = vmatprep.subr.bf16.mxu0 %v906_v0  ;;  %898 = vmatprep.subr.bf16.mxu1 %v906_v0  ;;  %v909_v3 = vld [vmem:[%s1424_s0] sm:$0xff]   ;;  %v365_v5 = vsel %vm363_vm1, %v908_v2, 0  ;;  %v911_v6 = vld [vmem:[%s1424_s0 + $0x8] sm:$0xff]   ;;  %v913_v8 = vld [vmem:[%s1424_s0 + $0x10] sm:$0xff]  }
   0x3   :  { %829 = vmatpush3.bf16.msra.mxu0 %v906_v0  ;;  %901 = vmatpush3.bf16.msra.mxu1 %v906_v0  ;;  %v910_v4 = vld [vmem:[%s1424_s0 + $0x80] sm:$0xff]   ;;  %v912_v7 = vld [vmem:[%s1424_s0 + $0x88] sm:$0xff]   ;;  %v914_v9 = vld [vmem:[%s1424_s0 + $0x90] sm:$0xff]  }
   0x4   :  { %830 = vmatprep.subr.bf16.mxu0 %v907_v1  ;;  %899 = vmatprep.subr.bf16.mxu1 %v907_v1  ;;  %v915_v10 = vld [vmem:[%s1424_s0 + $0x18] sm:$0xff]   ;;  %v917_v12 = vld [vmem:[%s1424_s0 + $0x20] sm:$0xff]   ;;  %v919_v14 = vld [vmem:[%s1424_s0 + $0x28] sm:$0xff]  }
   0x5   :  { %834 = vmatprep.mubr.msk.bf16.mxu0 %vm266_vm0, %v909_v3  ;;  %866 = vmatprep.mubr.msk.bf16.mxu1 %vm266_vm0, %v910_v4  ;;  %v916_v11 = vld [vmem:[%s1424_s0 + $0x98] sm:$0xff]   ;;  %v918_v13 = vld [vmem:[%s1424_s0 + $0xa0] sm:$0xff]   ;;  %v920_v15 = vld [vmem:[%s1424_s0 + $0xa8] sm:$0xff]  }
   0x6   :  { %v921_v16 = vld [vmem:[%s1424_s0 + $0x30] sm:$0xff]   ;;  %v923_v18 = vld [vmem:[%s1424_s0 + $0x38] sm:$0xff]   ;;  %v925_v20 = vld [vmem:[%s1424_s0 + $0x40] sm:$0xff]  }
   0x7   :  { %831 = vmatpush3.bf16.msra.mxu0 %v907_v1  ;;  %902 = vmatpush3.bf16.msra.mxu1 %v907_v1  ;;  %v922_v17 = vld [vmem:[%s1424_s0 + $0xb0] sm:$0xff]   ;;  %v924_v19 = vld [vmem:[%s1424_s0 + $0xb8] sm:$0xff]   ;;  %v926_v21 = vld [vmem:[%s1424_s0 + $0xc0] sm:$0xff]  }
   0x8   :  { %904 = vmatprep.subr.msk.bf16.mxu0 %vm363_vm1, %v908_v2  ;;  %905 = vmatprep.subr.msk.bf16.mxu1 %vm363_vm1, %v908_v2  ;;  %v927_v22 = vld [vmem:[%s1424_s0 + $0x48] sm:$0xff]   ;;  %v929_v24 = vld [vmem:[%s1424_s0 + $0x50] sm:$0xff]   ;;  %v931_v26 = vld [vmem:[%s1424_s0 + $0x58] sm:$0xff]  }
   0x9   :  { %v928_v23 = vld [vmem:[%s1424_s0 + $0xc8] sm:$0xff]   ;;  %v930_v25 = vld [vmem:[%s1424_s0 + $0xd0] sm:$0xff]   ;;  %v932_v27 = vld [vmem:[%s1424_s0 + $0xd8] sm:$0xff]  }
   0xa   :  { %v933_v28 = vld [vmem:[%s1424_s0 + $0x60] sm:$0xff]   ;;  %v935_v30 = vld [vmem:[%s1424_s0 + $0x68] sm:$0xff]   ;;  %v937_v32 = vld [vmem:[%s1424_s0 + $0x70] sm:$0xff]  }
   0xb   :  { %833 = vmatpush3.bf16.msra.mxu0 %v365_v5  ;;  %903 = vmatpush3.bf16.msra.mxu1 %v365_v5  ;;  %v934_v29 = vld [vmem:[%s1424_s0 + $0xe0] sm:$0xff]   ;;  %v936_v31 = vld [vmem:[%s1424_s0 + $0xe8] sm:$0xff]   ;;  %v938_v33 = vld [vmem:[%s1424_s0 + $0xf0] sm:$0xff]  }
   0xc   :  { %v939_v34 = vld [vmem:[%s1424_s0 + $0x78] sm:$0xff]   ;;  %v1101_v36 = vld [vmem:[%s1425_s2] ss:$0 sm:$0xff] }
   0xd   :  { %v940_v35 = vld [vmem:[%s1424_s0 + $0xf8] sm:$0xff]  }
   0xe   :  { %835 = vmatmul.mubr.msk.bf16.vlgmr.msra.gmra.mrb[0].mxu0 %vm266_vm0, %v911_v6  ;;  %867 = vmatmul.mubr.msk.bf16.vlgmr.msra.gmra.mrb[0].mxu1 %vm266_vm0, %v912_v7 }
   0xf   :  { %838 = vmatprep.mubr.msk.bf16.mxu0 %vm266_vm0, %v913_v8  ;;  %870 = vmatprep.mubr.msk.bf16.mxu1 %vm266_vm0, %v914_v9 }
  0x16   :  { %839 = vmatmul.mubr.msk.bf16.gmra.mrb[4].mxu0 %vm266_vm0, %v915_v10  ;;  %871 = vmatmul.mubr.msk.bf16.gmra.mrb[4].mxu1 %vm266_vm0, %v916_v11 }
  0x17   :  { %842 = vmatprep.mubr.msk.bf16.mxu0 %vm266_vm0, %v917_v12  ;;  %874 = vmatprep.mubr.msk.bf16.mxu1 %vm266_vm0, %v918_v13 }
  0x1e   :  { %843 = vmatmul.mubr.msk.bf16.gmra.mrb[8].mxu0 %vm266_vm0, %v919_v14  ;;  %875 = vmatmul.mubr.msk.bf16.gmra.mrb[8].mxu1 %vm266_vm0, %v920_v15 }
  0x1f   :  { %846 = vmatprep.mubr.msk.bf16.mxu0 %vm266_vm0, %v921_v16  ;;  %878 = vmatprep.mubr.msk.bf16.mxu1 %vm266_vm0, %v922_v17 }
  0x26   :  { %847 = vmatmul.mubr.msk.bf16.gmra.mrb[12].mxu0 %vm266_vm0, %v923_v18  ;;  %879 = vmatmul.mubr.msk.bf16.gmra.mrb[12].mxu1 %vm266_vm0, %v924_v19 }
  0x27   :  { %850 = vmatprep.mubr.msk.bf16.mxu0 %vm266_vm0, %v925_v20  ;;  %882 = vmatprep.mubr.msk.bf16.mxu1 %vm266_vm0, %v926_v21 }
  0x2e   :  { %851 = vmatmul.mubr.msk.bf16.gmra.mrb[16].mxu0 %vm266_vm0, %v927_v22  ;;  %883 = vmatmul.mubr.msk.bf16.gmra.mrb[16].mxu1 %vm266_vm0, %v928_v23 }
  0x2f   :  { %854 = vmatprep.mubr.msk.bf16.mxu0 %vm266_vm0, %v929_v24  ;;  %886 = vmatprep.mubr.msk.bf16.mxu1 %vm266_vm0, %v930_v25 }
  0x36   :  { %855 = vmatmul.mubr.msk.bf16.gmra.mrb[20].mxu0 %vm266_vm0, %v931_v26  ;;  %887 = vmatmul.mubr.msk.bf16.gmra.mrb[20].mxu1 %vm266_vm0, %v932_v27 }
  0x37   :  { %858 = vmatprep.mubr.msk.bf16.mxu0 %vm266_vm0, %v933_v28  ;;  %890 = vmatprep.mubr.msk.bf16.mxu1 %vm266_vm0, %v934_v29 }
  0x3e   :  { %859 = vmatmul.mubr.msk.bf16.gmra.mrb[24].mxu0 %vm266_vm0, %v935_v30  ;;  %891 = vmatmul.mubr.msk.bf16.gmra.mrb[24].mxu1 %vm266_vm0, %v936_v31 }
  0x3f   :  { %862 = vmatprep.mubr.msk.bf16.mxu0 %vm266_vm0, %v937_v32  ;;  %894 = vmatprep.mubr.msk.bf16.mxu1 %vm266_vm0, %v938_v33 }
  0x46   :  { %863 = vmatmul.mubr.msk.bf16.gmra.mrb[28].mxu0 %vm266_vm0, %v939_v34  ;;  %895 = vmatmul.mubr.msk.bf16.gmra.mrb[28].mxu1 %vm266_vm0, %v940_v35 }
  0xe1   :  { %v836_v37 = vpop.f32.mrb[0].mxu0  ;;  %v868_v38 = vpop.f32.mrb[0].mxu1 }
  0xe2   :  { %v410_v39 = vadd.f32 %v836_v37, %v1101_v36  ;;  %v538_v40 = vadd.f32 %v868_v38, %v1101_v36  ;;  %v401_v41 = vpop.f32.mrb[1].mxu0  ;;  %v529_v42 = vpop.f32.mrb[1].mxu1 }
  0xe3   :  { %v402_v43 = vadd.f32 %v1101_v36, %v401_v41  ;;  %v530_v44 = vadd.f32 %v1101_v36, %v529_v42  ;;  %v837_v45 = vpop.f32.mrb[2].mxu0  ;;  %v869_v46 = vpop.f32.mrb[2].mxu1 }
  0xe4   :  { %659 = vst.msk [vmem:[%s1426_s3 + $0x10] sm:$0xff] %vm656_vm2, %v410_v39  ;;  %691 = vst.msk [vmem:[%s1426_s3 + $0x110] sm:$0xff] %vm656_vm2, %v538_v40  ;;  %v413_v47 = vadd.f32 %v837_v45, %v1101_v36  ;;  %v541_v48 = vadd.f32 %v869_v46, %v1101_v36  ;;  %v404_v49 = vpop.f32.mrb[3].mxu0  ;;  %v532_v50 = vpop.f32.mrb[3].mxu1 }
  0xe5   :  { %657 = vst.msk [vmem:[%s1426_s3] sm:$0xff] %vm656_vm2, %v402_v43  ;;  %689 = vst.msk [vmem:[%s1426_s3 + $0x100] sm:$0xff] %vm656_vm2, %v530_v44  ;;  %v405_v51 = vadd.f32 %v1101_v36, %v404_v49  ;;  %v533_v52 = vadd.f32 %v1101_v36, %v532_v50 }
  0xe6   :  { %660 = vst.msk [vmem:[%s1426_s3 + $0x18] sm:$0xff] %vm656_vm2, %v413_v47  ;;  %692 = vst.msk [vmem:[%s1426_s3 + $0x118] sm:$0xff] %vm656_vm2, %v541_v48 }
  0xe7   :  { %658 = vst.msk [vmem:[%s1426_s3 + $0x8] sm:$0xff] %vm656_vm2, %v405_v51  ;;  %690 = vst.msk [vmem:[%s1426_s3 + $0x108] sm:$0xff] %vm656_vm2, %v533_v52 }
  0xe9   :  { %v840_v53 = vpop.f32.mrb[4].mxu0  ;;  %v872_v54 = vpop.f32.mrb[4].mxu1 }
  0xea   :  { %v426_v55 = vadd.f32 %v840_v53, %v1101_v36  ;;  %v554_v56 = vadd.f32 %v872_v54, %v1101_v36  ;;  %v417_v57 = vpop.f32.mrb[5].mxu0  ;;  %v545_v58 = vpop.f32.mrb[5].mxu1 }
  0xeb   :  { %v418_v59 = vadd.f32 %v1101_v36, %v417_v57  ;;  %v546_v60 = vadd.f32 %v1101_v36, %v545_v58  ;;  %v841_v61 = vpop.f32.mrb[6].mxu0  ;;  %v873_v62 = vpop.f32.mrb[6].mxu1 }
  0xec   :  { %663 = vst.msk [vmem:[%s1426_s3 + $0x30] sm:$0xff] %vm656_vm2, %v426_v55  ;;  %695 = vst.msk [vmem:[%s1426_s3 + $0x130] sm:$0xff] %vm656_vm2, %v554_v56  ;;  %v429_v63 = vadd.f32 %v841_v61, %v1101_v36  ;;  %v557_v0 = vadd.f32 %v873_v62, %v1101_v36  ;;  %v420_v1 = vpop.f32.mrb[7].mxu0  ;;  %v548_v2 = vpop.f32.mrb[7].mxu1 }
  0xed   :  { %661 = vst.msk [vmem:[%s1426_s3 + $0x20] sm:$0xff] %vm656_vm2, %v418_v59  ;;  %693 = vst.msk [vmem:[%s1426_s3 + $0x120] sm:$0xff] %vm656_vm2, %v546_v60  ;;  %v421_v3 = vadd.f32 %v1101_v36, %v420_v1  ;;  %v549_v4 = vadd.f32 %v1101_v36, %v548_v2 }
  0xee   :  { %664 = vst.msk [vmem:[%s1426_s3 + $0x38] sm:$0xff] %vm656_vm2, %v429_v63  ;;  %696 = vst.msk [vmem:[%s1426_s3 + $0x138] sm:$0xff] %vm656_vm2, %v557_v0 }
  0xef   :  { %662 = vst.msk [vmem:[%s1426_s3 + $0x28] sm:$0xff] %vm656_vm2, %v421_v3  ;;  %694 = vst.msk [vmem:[%s1426_s3 + $0x128] sm:$0xff] %vm656_vm2, %v549_v4 }
  0xf1   :  { %v844_v5 = vpop.f32.mrb[8].mxu0  ;;  %v876_v6 = vpop.f32.mrb[8].mxu1 }
  0xf2   :  { %v442_v7 = vadd.f32 %v844_v5, %v1101_v36  ;;  %v570_v8 = vadd.f32 %v876_v6, %v1101_v36  ;;  %v433_v9 = vpop.f32.mrb[9].mxu0  ;;  %v561_v10 = vpop.f32.mrb[9].mxu1 }
  0xf3   :  { %v434_v11 = vadd.f32 %v1101_v36, %v433_v9  ;;  %v562_v12 = vadd.f32 %v1101_v36, %v561_v10  ;;  %v845_v13 = vpop.f32.mrb[10].mxu0  ;;  %v877_v14 = vpop.f32.mrb[10].mxu1 }
  0xf4   :  { %667 = vst.msk [vmem:[%s1426_s3 + $0x50] sm:$0xff] %vm656_vm2, %v442_v7  ;;  %699 = vst.msk [vmem:[%s1426_s3 + $0x150] sm:$0xff] %vm656_vm2, %v570_v8  ;;  %v445_v15 = vadd.f32 %v845_v13, %v1101_v36  ;;  %v573_v16 = vadd.f32 %v877_v14, %v1101_v36  ;;  %v436_v17 = vpop.f32.mrb[11].mxu0  ;;  %v564_v18 = vpop.f32.mrb[11].mxu1 }
  0xf5   :  { %665 = vst.msk [vmem:[%s1426_s3 + $0x40] sm:$0xff] %vm656_vm2, %v434_v11  ;;  %697 = vst.msk [vmem:[%s1426_s3 + $0x140] sm:$0xff] %vm656_vm2, %v562_v12  ;;  %v437_v19 = vadd.f32 %v1101_v36, %v436_v17  ;;  %v565_v20 = vadd.f32 %v1101_v36, %v564_v18 }
  0xf6   :  { %668 = vst.msk [vmem:[%s1426_s3 + $0x58] sm:$0xff] %vm656_vm2, %v445_v15  ;;  %700 = vst.msk [vmem:[%s1426_s3 + $0x158] sm:$0xff] %vm656_vm2, %v573_v16 }
  0xf7   :  { %666 = vst.msk [vmem:[%s1426_s3 + $0x48] sm:$0xff] %vm656_vm2, %v437_v19  ;;  %698 = vst.msk [vmem:[%s1426_s3 + $0x148] sm:$0xff] %vm656_vm2, %v565_v20 }
  0xf9   :  { %v848_v21 = vpop.f32.mrb[12].mxu0  ;;  %v880_v22 = vpop.f32.mrb[12].mxu1 }
  0xfa   :  { %v458_v23 = vadd.f32 %v848_v21, %v1101_v36  ;;  %v586_v24 = vadd.f32 %v880_v22, %v1101_v36  ;;  %v449_v25 = vpop.f32.mrb[13].mxu0  ;;  %v577_v26 = vpop.f32.mrb[13].mxu1 }
  0xfb   :  { %v450_v27 = vadd.f32 %v1101_v36, %v449_v25  ;;  %v578_v28 = vadd.f32 %v1101_v36, %v577_v26  ;;  %v849_v29 = vpop.f32.mrb[14].mxu0  ;;  %v881_v30 = vpop.f32.mrb[14].mxu1 }
  0xfc   :  { %671 = vst.msk [vmem:[%s1426_s3 + $0x70] sm:$0xff] %vm656_vm2, %v458_v23  ;;  %703 = vst.msk [vmem:[%s1426_s3 + $0x170] sm:$0xff] %vm656_vm2, %v586_v24  ;;  %v461_v31 = vadd.f32 %v849_v29, %v1101_v36  ;;  %v589_v32 = vadd.f32 %v881_v30, %v1101_v36  ;;  %v452_v33 = vpop.f32.mrb[15].mxu0  ;;  %v580_v34 = vpop.f32.mrb[15].mxu1 }
  0xfd   :  { %669 = vst.msk [vmem:[%s1426_s3 + $0x60] sm:$0xff] %vm656_vm2, %v450_v27  ;;  %701 = vst.msk [vmem:[%s1426_s3 + $0x160] sm:$0xff] %vm656_vm2, %v578_v28  ;;  %v453_v35 = vadd.f32 %v1101_v36, %v452_v33  ;;  %v581_v37 = vadd.f32 %v1101_v36, %v580_v34 }
  0xfe   :  { %672 = vst.msk [vmem:[%s1426_s3 + $0x78] sm:$0xff] %vm656_vm2, %v461_v31  ;;  %704 = vst.msk [vmem:[%s1426_s3 + $0x178] sm:$0xff] %vm656_vm2, %v589_v32 }
  0xff   :  { %670 = vst.msk [vmem:[%s1426_s3 + $0x68] sm:$0xff] %vm656_vm2, %v453_v35  ;;  %702 = vst.msk [vmem:[%s1426_s3 + $0x168] sm:$0xff] %vm656_vm2, %v581_v37 }
 0x101   :  { %v852_v38 = vpop.f32.mrb[16].mxu0  ;;  %v884_v39 = vpop.f32.mrb[16].mxu1 }
 0x102   :  { %v474_v40 = vadd.f32 %v852_v38, %v1101_v36  ;;  %v602_v41 = vadd.f32 %v884_v39, %v1101_v36  ;;  %v465_v42 = vpop.f32.mrb[17].mxu0  ;;  %v593_v43 = vpop.f32.mrb[17].mxu1 }
 0x103   :  { %v466_v44 = vadd.f32 %v1101_v36, %v465_v42  ;;  %v594_v45 = vadd.f32 %v1101_v36, %v593_v43  ;;  %v853_v46 = vpop.f32.mrb[18].mxu0  ;;  %v885_v47 = vpop.f32.mrb[18].mxu1 }
 0x104   :  { %675 = vst.msk [vmem:[%s1426_s3 + $0x90] sm:$0xff] %vm656_vm2, %v474_v40  ;;  %707 = vst.msk [vmem:[%s1426_s3 + $0x190] sm:$0xff] %vm656_vm2, %v602_v41  ;;  %v477_v48 = vadd.f32 %v853_v46, %v1101_v36  ;;  %v605_v49 = vadd.f32 %v885_v47, %v1101_v36  ;;  %v468_v50 = vpop.f32.mrb[19].mxu0  ;;  %v596_v51 = vpop.f32.mrb[19].mxu1 }
 0x105   :  { %673 = vst.msk [vmem:[%s1426_s3 + $0x80] sm:$0xff] %vm656_vm2, %v466_v44  ;;  %705 = vst.msk [vmem:[%s1426_s3 + $0x180] sm:$0xff] %vm656_vm2, %v594_v45  ;;  %v469_v52 = vadd.f32 %v1101_v36, %v468_v50  ;;  %v597_v53 = vadd.f32 %v1101_v36, %v596_v51 }
 0x106   :  { %676 = vst.msk [vmem:[%s1426_s3 + $0x98] sm:$0xff] %vm656_vm2, %v477_v48  ;;  %708 = vst.msk [vmem:[%s1426_s3 + $0x198] sm:$0xff] %vm656_vm2, %v605_v49 }
 0x107   :  { %674 = vst.msk [vmem:[%s1426_s3 + $0x88] sm:$0xff] %vm656_vm2, %v469_v52  ;;  %706 = vst.msk [vmem:[%s1426_s3 + $0x188] sm:$0xff] %vm656_vm2, %v597_v53 }
 0x109   :  { %v856_v54 = vpop.f32.mrb[20].mxu0  ;;  %v888_v55 = vpop.f32.mrb[20].mxu1 }
 0x10a   :  { %v490_v56 = vadd.f32 %v856_v54, %v1101_v36  ;;  %v618_v57 = vadd.f32 %v888_v55, %v1101_v36  ;;  %v481_v58 = vpop.f32.mrb[21].mxu0  ;;  %v609_v59 = vpop.f32.mrb[21].mxu1 }
 0x10b   :  { %v482_v60 = vadd.f32 %v1101_v36, %v481_v58  ;;  %v610_v61 = vadd.f32 %v1101_v36, %v609_v59  ;;  %v857_v62 = vpop.f32.mrb[22].mxu0  ;;  %v889_v63 = vpop.f32.mrb[22].mxu1 }
 0x10c   :  { %679 = vst.msk [vmem:[%s1426_s3 + $0xb0] sm:$0xff] %vm656_vm2, %v490_v56  ;;  %711 = vst.msk [vmem:[%s1426_s3 + $0x1b0] sm:$0xff] %vm656_vm2, %v618_v57  ;;  %v493_v0 = vadd.f32 %v857_v62, %v1101_v36  ;;  %v621_v1 = vadd.f32 %v889_v63, %v1101_v36  ;;  %v484_v2 = vpop.f32.mrb[23].mxu0  ;;  %v612_v3 = vpop.f32.mrb[23].mxu1 }
 0x10d   :  { %677 = vst.msk [vmem:[%s1426_s3 + $0xa0] sm:$0xff] %vm656_vm2, %v482_v60  ;;  %709 = vst.msk [vmem:[%s1426_s3 + $0x1a0] sm:$0xff] %vm656_vm2, %v610_v61  ;;  %v485_v4 = vadd.f32 %v1101_v36, %v484_v2  ;;  %v613_v5 = vadd.f32 %v1101_v36, %v612_v3 }
 0x10e   :  { %680 = vst.msk [vmem:[%s1426_s3 + $0xb8] sm:$0xff] %vm656_vm2, %v493_v0  ;;  %712 = vst.msk [vmem:[%s1426_s3 + $0x1b8] sm:$0xff] %vm656_vm2, %v621_v1 }
 0x10f   :  { %678 = vst.msk [vmem:[%s1426_s3 + $0xa8] sm:$0xff] %vm656_vm2, %v485_v4  ;;  %710 = vst.msk [vmem:[%s1426_s3 + $0x1a8] sm:$0xff] %vm656_vm2, %v613_v5 }
 0x111   :  { %v860_v6 = vpop.f32.mrb[24].mxu0  ;;  %v892_v7 = vpop.f32.mrb[24].mxu1 }
 0x112   :  { %v506_v8 = vadd.f32 %v860_v6, %v1101_v36  ;;  %v634_v9 = vadd.f32 %v892_v7, %v1101_v36  ;;  %v497_v10 = vpop.f32.mrb[25].mxu0  ;;  %v625_v11 = vpop.f32.mrb[25].mxu1 }
 0x113   :  { %v498_v12 = vadd.f32 %v1101_v36, %v497_v10  ;;  %v626_v13 = vadd.f32 %v1101_v36, %v625_v11  ;;  %v861_v14 = vpop.f32.mrb[26].mxu0  ;;  %v893_v15 = vpop.f32.mrb[26].mxu1 }
 0x114   :  { %683 = vst.msk [vmem:[%s1426_s3 + $0xd0] sm:$0xff] %vm656_vm2, %v506_v8  ;;  %715 = vst.msk [vmem:[%s1426_s3 + $0x1d0] sm:$0xff] %vm656_vm2, %v634_v9  ;;  %v509_v16 = vadd.f32 %v861_v14, %v1101_v36  ;;  %v637_v17 = vadd.f32 %v893_v15, %v1101_v36  ;;  %v500_v18 = vpop.f32.mrb[27].mxu0  ;;  %v628_v19 = vpop.f32.mrb[27].mxu1 }
 0x115   :  { %681 = vst.msk [vmem:[%s1426_s3 + $0xc0] sm:$0xff] %vm656_vm2, %v498_v12  ;;  %713 = vst.msk [vmem:[%s1426_s3 + $0x1c0] sm:$0xff] %vm656_vm2, %v626_v13  ;;  %v501_v20 = vadd.f32 %v1101_v36, %v500_v18  ;;  %v629_v21 = vadd.f32 %v1101_v36, %v628_v19 }
 0x116   :  { %684 = vst.msk [vmem:[%s1426_s3 + $0xd8] sm:$0xff] %vm656_vm2, %v509_v16  ;;  %716 = vst.msk [vmem:[%s1426_s3 + $0x1d8] sm:$0xff] %vm656_vm2, %v637_v17 }
 0x117   :  { %682 = vst.msk [vmem:[%s1426_s3 + $0xc8] sm:$0xff] %vm656_vm2, %v501_v20  ;;  %714 = vst.msk [vmem:[%s1426_s3 + $0x1c8] sm:$0xff] %vm656_vm2, %v629_v21 }
 0x119   :  { %v864_v22 = vpop.f32.mrb[28].mxu0  ;;  %v896_v23 = vpop.f32.mrb[28].mxu1 }
 0x11a   :  { %v522_v24 = vadd.f32 %v864_v22, %v1101_v36  ;;  %v650_v25 = vadd.f32 %v896_v23, %v1101_v36  ;;  %v513_v26 = vpop.f32.mrb[29].mxu0  ;;  %v641_v27 = vpop.f32.mrb[29].mxu1 }
 0x11b   :  { %v514_v28 = vadd.f32 %v1101_v36, %v513_v26  ;;  %v642_v29 = vadd.f32 %v1101_v36, %v641_v27  ;;  %v865_v30 = vpop.f32.mrb[30].mxu0  ;;  %v897_v31 = vpop.f32.mrb[30].mxu1 }
 0x11c   :  { %687 = vst.msk [vmem:[%s1426_s3 + $0xf0] sm:$0xff] %vm656_vm2, %v522_v24  ;;  %719 = vst.msk [vmem:[%s1426_s3 + $0x1f0] sm:$0xff] %vm656_vm2, %v650_v25  ;;  %v525_v32 = vadd.f32 %v865_v30, %v1101_v36  ;;  %v653_v33 = vadd.f32 %v897_v31, %v1101_v36  ;;  %v516_v34 = vpop.f32.mrb[31].mxu0  ;;  %v644_v35 = vpop.f32.mrb[31].mxu1 }
 0x11d   :  { %685 = vst.msk [vmem:[%s1426_s3 + $0xe0] sm:$0xff] %vm656_vm2, %v514_v28  ;;  %717 = vst.msk [vmem:[%s1426_s3 + $0x1e0] sm:$0xff] %vm656_vm2, %v642_v29  ;;  %v517_v37 = vadd.f32 %v1101_v36, %v516_v34  ;;  %v645_v38 = vadd.f32 %v1101_v36, %v644_v35 }
 0x11e   :  { %688 = vst.msk [vmem:[%s1426_s3 + $0xf8] sm:$0xff] %vm656_vm2, %v525_v32  ;;  %720 = vst.msk [vmem:[%s1426_s3 + $0x1f8] sm:$0xff] %vm656_vm2, %v653_v33 }
 0x11f   :  { %686 = vst.msk [vmem:[%s1426_s3 + $0xe8] sm:$0xff] %vm656_vm2, %v517_v37  ;;  %718 = vst.msk [vmem:[%s1426_s3 + $0x1e8] sm:$0xff] %vm656_vm2, %v645_v38 }

// kernel: simple_unet_forward.9
= control target key start
LH: loop header
LB: loop body
LE: loop exit
PB: predicated region body
PF: predicated region fallthrough
CT: control target
= control target key end

     0   :  { %vm278_vm0 = vcmask 588800   ;;  %vm375_vm1 = vcmask 1043456   ;;  %vm668_vm2 = vcmask 130048   ;;  %s3837_s1 = inlined_call_operand.vmem [shape: bf16[72,16], index: 1, kind: input, shape index: {}]   ;;  %s3838_s0 = inlined_call_operand.vmem [shape: bf16[512,72], index: 0, kind: input, shape index: {}]   ;;  %s3839_s2 = inlined_call_operand.vmem [shape: f32[1,16], index: 2, kind: input, shape index: {}]   ;;  %s3840_s3 = inlined_call_operand.vmem [shape: f32[1,16], index: 3, kind: input, shape index: {}]   ;;  %s3841_s4 = inlined_call_operand.vmem [shape: f32[512,16], index: 4, kind: output, shape index: {}]  }
   0x1   :  { %v1664_v0 = vld [vmem:[%s3837_s1] sm:$0xff]   ;;  %v1665_v1 = vld [vmem:[%s3837_s1 + $0x8] sm:$0xff]   ;;  %v1666_v2 = vld [vmem:[%s3837_s1 + $0x10] sm:$0xff]  }
   0x2   :  { %1578 = vmatprep.subr.bf16.mxu0 %v1664_v0  ;;  %1652 = vmatprep.subr.bf16.mxu1 %v1664_v0  ;;  %v1669_v3 = vld [vmem:[%s3838_s0] sm:$0xff]   ;;  %v1667_v4 = vld [vmem:[%s3837_s1 + $0x18] sm:$0xff]   ;;  %v1670_v7 = vld [vmem:[%s3838_s0 + $0x8] sm:$0xff]  }
   0x3   :  { %1579 = vmatpush3.bf16.msra.mxu0 %v1664_v0  ;;  %1657 = vmatpush3.bf16.msra.mxu1 %v1664_v0  ;;  %v1668_v5 = vld [vmem:[%s3837_s1 + $0x20] ss:$0 sps:$4 sm:$0xff]   ;;  %v1671_v8 = vld [vmem:[%s3838_s0 + $0x10] sm:$0xff]   ;;  %v1686_v10 = vld [vmem:[%s3838_s0 + $0x88] sm:$0xff]  }
   0x4   :  { %1580 = vmatprep.subr.bf16.mxu0 %v1665_v1  ;;  %1653 = vmatprep.subr.bf16.mxu1 %v1665_v1  ;;  %v377_v6 = vsel %vm375_vm1, %v1668_v5, 0  ;;  %v1685_v9 = vld [vmem:[%s3838_s0 + $0x80] sm:$0xff]   ;;  %v1687_v11 = vld [vmem:[%s3838_s0 + $0x90] sm:$0xff]   ;;  %v1672_v12 = vld [vmem:[%s3838_s0 + $0x18] sm:$0xff]  }
   0x5   :  { %1588 = vmatprep.mubr.msk.bf16.mxu0 %vm278_vm0, %v1669_v3  ;;  %1620 = vmatprep.mubr.msk.bf16.mxu1 %vm278_vm0, %v1685_v9  ;;  %v1673_v13 = vld [vmem:[%s3838_s0 + $0x20] sm:$0xff]   ;;  %v1688_v14 = vld [vmem:[%s3838_s0 + $0x98] sm:$0xff]   ;;  %v1674_v16 = vld [vmem:[%s3838_s0 + $0x28] sm:$0xff]  }
   0x6   :  { %v1689_v15 = vld [vmem:[%s3838_s0 + $0xa0] sm:$0xff]   ;;  %v1675_v17 = vld [vmem:[%s3838_s0 + $0x30] sm:$0xff]   ;;  %v1690_v18 = vld [vmem:[%s3838_s0 + $0xa8] sm:$0xff]  }
   0x7   :  { %1581 = vmatpush3.bf16.msra.mxu0 %v1665_v1  ;;  %1658 = vmatpush3.bf16.msra.mxu1 %v1665_v1  ;;  %v1691_v19 = vld [vmem:[%s3838_s0 + $0xb0] sm:$0xff]   ;;  %v1676_v20 = vld [vmem:[%s3838_s0 + $0x38] sm:$0xff]   ;;  %v1677_v21 = vld [vmem:[%s3838_s0 + $0x40] sm:$0xff]  }
   0x8   :  { %1582 = vmatprep.subr.bf16.mxu0 %v1666_v2  ;;  %1654 = vmatprep.subr.bf16.mxu1 %v1666_v2  ;;  %v1692_v22 = vld [vmem:[%s3838_s0 + $0xb8] sm:$0xff]   ;;  %v1693_v23 = vld [vmem:[%s3838_s0 + $0xc0] sm:$0xff]   ;;  %v1678_v24 = vld [vmem:[%s3838_s0 + $0x48] sm:$0xff]  }
   0x9   :  { %v1679_v25 = vld [vmem:[%s3838_s0 + $0x50] sm:$0xff]   ;;  %v1694_v26 = vld [vmem:[%s3838_s0 + $0xc8] sm:$0xff]   ;;  %v1680_v28 = vld [vmem:[%s3838_s0 + $0x58] sm:$0xff]  }
   0xa   :  { %v1695_v27 = vld [vmem:[%s3838_s0 + $0xd0] sm:$0xff]   ;;  %v1681_v29 = vld [vmem:[%s3838_s0 + $0x60] sm:$0xff]   ;;  %v1696_v30 = vld [vmem:[%s3838_s0 + $0xd8] sm:$0xff]  }
   0xb   :  { %1583 = vmatpush3.bf16.msra.mxu0 %v1666_v2  ;;  %1659 = vmatpush3.bf16.msra.mxu1 %v1666_v2  ;;  %v1697_v31 = vld [vmem:[%s3838_s0 + $0xe0] sm:$0xff]   ;;  %v1682_v32 = vld [vmem:[%s3838_s0 + $0x68] sm:$0xff]   ;;  %v1683_v33 = vld [vmem:[%s3838_s0 + $0x70] sm:$0xff]  }
   0xc   :  { %1584 = vmatprep.subr.bf16.mxu0 %v1667_v4  ;;  %1655 = vmatprep.subr.bf16.mxu1 %v1667_v4  ;;  %v1698_v34 = vld [vmem:[%s3838_s0 + $0xe8] sm:$0xff]   ;;  %v1699_v35 = vld [vmem:[%s3838_s0 + $0xf0] sm:$0xff]   ;;  %v1684_v36 = vld [vmem:[%s3838_s0 + $0x78] sm:$0xff]  }
   0xd   :  { %v1700_v37 = vld [vmem:[%s3838_s0 + $0xf8] sm:$0xff]  }
   0xf   :  { %1585 = vmatpush3.bf16.msra.mxu0 %v1667_v4  ;;  %1660 = vmatpush3.bf16.msra.mxu1 %v1667_v4 }
  0x10   :  { %1662 = vmatprep.subr.msk.bf16.mxu0 %vm375_vm1, %v1668_v5  ;;  %1663 = vmatprep.subr.msk.bf16.mxu1 %vm375_vm1, %v1668_v5 }
  0x13   :  { %1587 = vmatpush3.bf16.msra.mxu0 %v377_v6  ;;  %1661 = vmatpush3.bf16.msra.mxu1 %v377_v6 }
  0x16   :  { %1589 = vmatmul.mubr.msk.bf16.vlgmr.msra.gmra.mrb[0].mxu0 %vm278_vm0, %v1670_v7  ;;  %1621 = vmatmul.mubr.msk.bf16.vlgmr.msra.gmra.mrb[0].mxu1 %vm278_vm0, %v1686_v10 }
  0x17   :  { %1592 = vmatprep.mubr.msk.bf16.mxu0 %vm278_vm0, %v1671_v8  ;;  %1624 = vmatprep.mubr.msk.bf16.mxu1 %vm278_vm0, %v1687_v11 }
  0x1e   :  { %1593 = vmatmul.mubr.msk.bf16.gmra.mrb[4].mxu0 %vm278_vm0, %v1672_v12  ;;  %1625 = vmatmul.mubr.msk.bf16.gmra.mrb[4].mxu1 %vm278_vm0, %v1688_v14 }
  0x1f   :  { %1596 = vmatprep.mubr.msk.bf16.mxu0 %vm278_vm0, %v1673_v13  ;;  %1628 = vmatprep.mubr.msk.bf16.mxu1 %vm278_vm0, %v1689_v15 }
  0x26   :  { %1597 = vmatmul.mubr.msk.bf16.gmra.mrb[8].mxu0 %vm278_vm0, %v1674_v16  ;;  %1629 = vmatmul.mubr.msk.bf16.gmra.mrb[8].mxu1 %vm278_vm0, %v1690_v18 }
  0x27   :  { %1600 = vmatprep.mubr.msk.bf16.mxu0 %vm278_vm0, %v1675_v17  ;;  %1632 = vmatprep.mubr.msk.bf16.mxu1 %vm278_vm0, %v1691_v19 }
  0x2e   :  { %1601 = vmatmul.mubr.msk.bf16.gmra.mrb[12].mxu0 %vm278_vm0, %v1676_v20  ;;  %1633 = vmatmul.mubr.msk.bf16.gmra.mrb[12].mxu1 %vm278_vm0, %v1692_v22 }
  0x2f   :  { %1604 = vmatprep.mubr.msk.bf16.mxu0 %vm278_vm0, %v1677_v21  ;;  %1636 = vmatprep.mubr.msk.bf16.mxu1 %vm278_vm0, %v1693_v23 }
  0x36   :  { %1605 = vmatmul.mubr.msk.bf16.gmra.mrb[16].mxu0 %vm278_vm0, %v1678_v24  ;;  %1637 = vmatmul.mubr.msk.bf16.gmra.mrb[16].mxu1 %vm278_vm0, %v1694_v26 }
  0x37   :  { %1608 = vmatprep.mubr.msk.bf16.mxu0 %vm278_vm0, %v1679_v25  ;;  %1640 = vmatprep.mubr.msk.bf16.mxu1 %vm278_vm0, %v1695_v27 }
  0x3e   :  { %1609 = vmatmul.mubr.msk.bf16.gmra.mrb[20].mxu0 %vm278_vm0, %v1680_v28  ;;  %1641 = vmatmul.mubr.msk.bf16.gmra.mrb[20].mxu1 %vm278_vm0, %v1696_v30 }
  0x3f   :  { %1612 = vmatprep.mubr.msk.bf16.mxu0 %vm278_vm0, %v1681_v29  ;;  %1644 = vmatprep.mubr.msk.bf16.mxu1 %vm278_vm0, %v1697_v31 }
  0x46   :  { %1613 = vmatmul.mubr.msk.bf16.gmra.mrb[24].mxu0 %vm278_vm0, %v1682_v32  ;;  %1645 = vmatmul.mubr.msk.bf16.gmra.mrb[24].mxu1 %vm278_vm0, %v1698_v34 }
  0x47   :  { %1616 = vmatprep.mubr.msk.bf16.mxu0 %vm278_vm0, %v1683_v33  ;;  %1648 = vmatprep.mubr.msk.bf16.mxu1 %vm278_vm0, %v1699_v35 }
  0x4e   :  { %1617 = vmatmul.mubr.msk.bf16.gmra.mrb[28].mxu0 %vm278_vm0, %v1684_v36  ;;  %1649 = vmatmul.mubr.msk.bf16.gmra.mrb[28].mxu1 %vm278_vm0, %v1700_v37 }
  0xe9   :  { %v1871_v38 = vpop.f32.mrb[0].mxu0  ;;  %v1877_v41 = vpop.f32.mrb[0].mxu1 }
  0xea   :  { %v1873_v39 = vpop.f32.mrb[1].mxu0  ;;  %v1881_v43 = vpop.f32.mrb[1].mxu1  ;;  %v672_v49 = vsel %vm668_vm2, %v1871_v38, 0.0 }
  0xeb   :  { %v1875_v40 = vpop.f32.mrb[2].mxu0  ;;  %v669_v44 = vsel %vm668_vm2, %v1873_v39, 0.0  ;;  %v1887_v46 = vpop.f32.mrb[2].mxu1 }
  0xec   :  { %v1879_v42 = vpop.f32.mrb[3].mxu0  ;;  %v1889_v48 = vpop.f32.mrb[3].mxu1  ;;  %v674_v51 = vsel %vm668_vm2, %v1875_v40, 0.0 }
  0xed   :  { %v670_v45 = vsel %vm668_vm2, %v1879_v42, 0.0 }
  0xee   :  { %v671_v47 = vadd.f32 %v670_v45, %v669_v44 }
  0xf0   :  { %v673_v50 = vadd.f32 %v672_v49, %v671_v47 }
  0xf1   :  { %v1895_v52 = vpop.f32.mrb[4].mxu0  ;;  %v1903_v57 = vpop.f32.mrb[4].mxu1 }
  0xf2   :  { %v1897_v53 = vpop.f32.mrb[5].mxu0  ;;  %v675_v54 = vadd.f32 %v674_v51, %v673_v50  ;;  %v1907_v60 = vpop.f32.mrb[5].mxu1  ;;  %v680_v1 = vsel %vm668_vm2, %v1895_v52, 0.0 }
  0xf3   :  { %v676_v55 = vsel %vm668_vm2, %v1897_v53, 0.0  ;;  %v1901_v56 = vpop.f32.mrb[6].mxu0  ;;  %v1911_v62 = vpop.f32.mrb[6].mxu1 }
  0xf4   :  { %v677_v58 = vadd.f32 %v676_v55, %v675_v54  ;;  %v1905_v59 = vpop.f32.mrb[7].mxu0  ;;  %v1913_v0 = vpop.f32.mrb[7].mxu1  ;;  %v682_v3 = vsel %vm668_vm2, %v1901_v56, 0.0 }
  0xf5   :  { %v678_v61 = vsel %vm668_vm2, %v1905_v59, 0.0 }
  0xf6   :  { %v679_v63 = vadd.f32 %v678_v61, %v677_v58 }
  0xf8   :  { %v681_v2 = vadd.f32 %v680_v1, %v679_v63 }
  0xf9   :  { %v1919_v4 = vpop.f32.mrb[8].mxu0  ;;  %v1927_v9 = vpop.f32.mrb[8].mxu1 }
  0xfa   :  { %v1921_v5 = vpop.f32.mrb[9].mxu0  ;;  %v683_v6 = vadd.f32 %v682_v3, %v681_v2  ;;  %v1931_v12 = vpop.f32.mrb[9].mxu1  ;;  %v688_v17 = vsel %vm668_vm2, %v1919_v4, 0.0 }
  0xfb   :  { %v684_v7 = vsel %vm668_vm2, %v1921_v5, 0.0  ;;  %v1925_v8 = vpop.f32.mrb[10].mxu0  ;;  %v1935_v14 = vpop.f32.mrb[10].mxu1 }
  0xfc   :  { %v685_v10 = vadd.f32 %v684_v7, %v683_v6  ;;  %v1929_v11 = vpop.f32.mrb[11].mxu0  ;;  %v1937_v16 = vpop.f32.mrb[11].mxu1  ;;  %v690_v19 = vsel %vm668_vm2, %v1925_v8, 0.0 }
  0xfd   :  { %v686_v13 = vsel %vm668_vm2, %v1929_v11, 0.0 }
  0xfe   :  { %v687_v15 = vadd.f32 %v686_v13, %v685_v10 }
 0x100   :  { %v689_v18 = vadd.f32 %v688_v17, %v687_v15 }
 0x101   :  { %v1943_v20 = vpop.f32.mrb[12].mxu0  ;;  %v1951_v25 = vpop.f32.mrb[12].mxu1 }
 0x102   :  { %v1945_v21 = vpop.f32.mrb[13].mxu0  ;;  %v691_v22 = vadd.f32 %v690_v19, %v689_v18  ;;  %v1955_v28 = vpop.f32.mrb[13].mxu1  ;;  %v696_v33 = vsel %vm668_vm2, %v1943_v20, 0.0 }
 0x103   :  { %v692_v23 = vsel %vm668_vm2, %v1945_v21, 0.0  ;;  %v1949_v24 = vpop.f32.mrb[14].mxu0  ;;  %v1959_v30 = vpop.f32.mrb[14].mxu1 }
 0x104   :  { %v693_v26 = vadd.f32 %v692_v23, %v691_v22  ;;  %v1953_v27 = vpop.f32.mrb[15].mxu0  ;;  %v1961_v32 = vpop.f32.mrb[15].mxu1  ;;  %v698_v35 = vsel %vm668_vm2, %v1949_v24, 0.0 }
 0x105   :  { %v694_v29 = vsel %vm668_vm2, %v1953_v27, 0.0 }
 0x106   :  { %v695_v31 = vadd.f32 %v694_v29, %v693_v26 }
 0x108   :  { %v697_v34 = vadd.f32 %v696_v33, %v695_v31 }
 0x109   :  { %v1967_v36 = vpop.f32.mrb[16].mxu0  ;;  %v1975_v49 = vpop.f32.mrb[16].mxu1 }
 0x10a   :  { %v1969_v37 = vpop.f32.mrb[17].mxu0  ;;  %v699_v44 = vadd.f32 %v698_v35, %v697_v34  ;;  %v1979_v54 = vpop.f32.mrb[17].mxu1  ;;  %v704_v1 = vsel %vm668_vm2, %v1967_v36, 0.0 }
 0x10b   :  { %v700_v45 = vsel %vm668_vm2, %v1969_v37, 0.0  ;;  %v1973_v47 = vpop.f32.mrb[18].mxu0  ;;  %v1983_v58 = vpop.f32.mrb[18].mxu1 }
 0x10c   :  { %3905 = vst [vmem:[#allocation2_spill] sm:$0xff] %v1973_v47  ;;  %v701_v50 = vadd.f32 %v700_v45, %v699_v44  ;;  %v1977_v51 = vpop.f32.mrb[19].mxu0  ;;  %v1985_v63 = vpop.f32.mrb[19].mxu1  ;;  %v706_v3 = vsel %vm668_vm2, %v1973_v47, 0.0 }
 0x10d   :  { %v702_v55 = vsel %vm668_vm2, %v1977_v51, 0.0 }
 0x10e   :  { %v703_v61 = vadd.f32 %v702_v55, %v701_v50 }
 0x110   :  { %v705_v2 = vadd.f32 %v704_v1, %v703_v61 }
 0x111   :  { %v1991_v6 = vpop.f32.mrb[20].mxu0  ;;  %v1999_v17 = vpop.f32.mrb[20].mxu1 }
 0x112   :  { %3906 = vst [vmem:[#allocation3_spill] sm:$0xff] %v1991_v6  ;;  %v1993_v7 = vpop.f32.mrb[21].mxu0  ;;  %v707_v10 = vadd.f32 %v706_v3, %v705_v2  ;;  %v2003_v22 = vpop.f32.mrb[21].mxu1  ;;  %v712_v33 = vsel %vm668_vm2, %v1991_v6, 0.0 }
 0x113   :  { %3907 = vst [vmem:[#allocation4_spill] sm:$0xff] %v1993_v7  ;;  %v708_v13 = vsel %vm668_vm2, %v1993_v7, 0.0  ;;  %v1997_v15 = vpop.f32.mrb[22].mxu0  ;;  %v2007_v26 = vpop.f32.mrb[22].mxu1 }
 0x114   :  { %3908 = vst [vmem:[#allocation5_spill] sm:$0xff] %v1997_v15  ;;  %v709_v18 = vadd.f32 %v708_v13, %v707_v10  ;;  %v2001_v19 = vpop.f32.mrb[23].mxu0  ;;  %v2009_v31 = vpop.f32.mrb[23].mxu1  ;;  %v714_v35 = vsel %vm668_vm2, %v1997_v15, 0.0 }
 0x115   :  { %3909 = vst [vmem:[#allocation6_spill] sm:$0xff] %v2001_v19  ;;  %v710_v23 = vsel %vm668_vm2, %v2001_v19, 0.0 }
 0x116   :  { %v711_v29 = vadd.f32 %v710_v23, %v709_v18 }
 0x118   :  { %v713_v34 = vadd.f32 %v712_v33, %v711_v29 }
 0x119   :  { %v2015_v44 = vpop.f32.mrb[24].mxu0  ;;  %v2023_v1 = vpop.f32.mrb[24].mxu1 }
 0x11a   :  { %3910 = vst [vmem:[#allocation7_spill] sm:$0xff] %v2015_v44  ;;  %v2017_v45 = vpop.f32.mrb[25].mxu0  ;;  %v715_v50 = vadd.f32 %v714_v35, %v713_v34  ;;  %3913 = vst [vmem:[#allocation10_spill] sm:$0xff] %v2023_v1  ;;  %v2027_v10 = vpop.f32.mrb[25].mxu1  ;;  %v720_v33 = vsel %vm668_vm2, %v2015_v44, 0.0 }
 0x11b   :  { %3911 = vst [vmem:[#allocation8_spill] sm:$0xff] %v2017_v45  ;;  %v716_v55 = vsel %vm668_vm2, %v2017_v45, 0.0  ;;  %v2021_v61 = vpop.f32.mrb[26].mxu0  ;;  %v2031_v18 = vpop.f32.mrb[26].mxu1 }
 0x11c   :  { %3912 = vst [vmem:[#allocation9_spill] sm:$0xff] %v2021_v61  ;;  %v717_v2 = vadd.f32 %v716_v55, %v715_v50  ;;  %v2025_v3 = vpop.f32.mrb[27].mxu0  ;;  %3915 = vst [vmem:[#allocation12_spill] sm:$0xff] %v2031_v18  ;;  %v2033_v29 = vpop.f32.mrb[27].mxu1  ;;  %v722_v35 = vsel %vm668_vm2, %v2021_v61, 0.0 }
 0x11d   :  { %3914 = vst [vmem:[#allocation11_spill] sm:$0xff] %v2025_v3  ;;  %v718_v13 = vsel %vm668_vm2, %v2025_v3, 0.0  ;;  %3916 = vst [vmem:[#allocation13_spill] sm:$0xff] %v2033_v29 }
 0x11e   :  { %v719_v23 = vadd.f32 %v718_v13, %v717_v2 }
 0x120   :  { %v721_v34 = vadd.f32 %v720_v33, %v719_v23 }
 0x121   :  { %v2039_v50 = vpop.f32.mrb[28].mxu0  ;;  %v2047_v2 = vpop.f32.mrb[28].mxu1 }
 0x122   :  { %3917 = vst [vmem:[#allocation14_spill] sm:$0xff] %v2039_v50  ;;  %v2041_v55 = vpop.f32.mrb[29].mxu0  ;;  %v723_v45 = vadd.f32 %v722_v35, %v721_v34  ;;  %v2051_v44 = vpop.f32.mrb[29].mxu1  ;;  %v728_v34 = vsel %vm668_vm2, %v2039_v50, 0.0  ;;  %v738_v50 = vsel %vm668_vm2, %v1887_v46, 0.0 }
 0x123   :  { %3918 = vst [vmem:[#allocation15_spill] sm:$0xff] %v2041_v55  ;;  %v724_v3 = vsel %vm668_vm2, %v2041_v55, 0.0  ;;  %v2045_v15 = vpop.f32.mrb[30].mxu0  ;;  %3921 = vst [vmem:[#allocation18_spill] sm:$0xff] %v2051_v44  ;;  %v2055_v33 = vpop.f32.mrb[30].mxu1 }
 0x124   :  { %3919 = vst [vmem:[#allocation16_spill] sm:$0xff] %v2045_v15  ;;  %v725_v13 = vadd.f32 %v724_v3, %v723_v45  ;;  %v2049_v6 = vpop.f32.mrb[31].mxu0  ;;  %v2057_v19 = vpop.f32.mrb[31].mxu1  ;;  %v730_v55 = vsel %vm668_vm2, %v2045_v15, 0.0  ;;  %v732_v45 = vsel %vm668_vm2, %v1881_v43, 0.0 }
 0x125   :  { %3920 = vst [vmem:[#allocation17_spill] sm:$0xff] %v2049_v6  ;;  %v726_v23 = vsel %vm668_vm2, %v2049_v6, 0.0  ;;  %v734_v6 = vsel %vm668_vm2, %v1889_v48, 0.0 }
 0x126   :  { %v727_v61 = vadd.f32 %v726_v23, %v725_v13  ;;  %v736_v13 = vsel %vm668_vm2, %v1877_v41, 0.0 }
 0x128   :  { %v729_v35 = vadd.f32 %v728_v34, %v727_v61  ;;  %v740_v61 = vsel %vm668_vm2, %v1907_v60, 0.0 }
 0x12a   :  { %v731_v3 = vadd.f32 %v730_v55, %v729_v35  ;;  %v742_v55 = vsel %vm668_vm2, %v1913_v0, 0.0 }
 0x12c   :  { %v733_v7 = vadd.f32 %v732_v45, %v731_v3  ;;  %v744_v45 = vsel %vm668_vm2, %v1903_v57, 0.0 }
 0x12e   :  { %v735_v47 = vadd.f32 %v734_v6, %v733_v7  ;;  %v746_v7 = vsel %vm668_vm2, %v1911_v62, 0.0 }
 0x130   :  { %v737_v23 = vadd.f32 %v736_v13, %v735_v47  ;;  %v748_v47 = vsel %vm668_vm2, %v1931_v12, 0.0 }
 0x132   :  { %v739_v34 = vadd.f32 %v738_v50, %v737_v23  ;;  %v750_v50 = vsel %vm668_vm2, %v1937_v16, 0.0 }
 0x134   :  { %v741_v15 = vadd.f32 %v740_v61, %v739_v34  ;;  %v752_v61 = vsel %vm668_vm2, %v1927_v9, 0.0  ;;  %v754_v34 = vsel %vm668_vm2, %v1935_v14, 0.0 }
 0x136   :  { %v743_v35 = vadd.f32 %v742_v55, %v741_v15  ;;  %v756_v55 = vsel %vm668_vm2, %v1955_v28, 0.0 }
 0x138   :  { %v745_v6 = vadd.f32 %v744_v45, %v743_v35 }
 0x13a   :  { %v747_v3 = vadd.f32 %v746_v7, %v745_v6  ;;  %v758_v6 = vsel %vm668_vm2, %v1961_v32, 0.0 }
 0x13c   :  { %v749_v13 = vadd.f32 %v748_v47, %v747_v3  ;;  %v760_v47 = vsel %vm668_vm2, %v1951_v25, 0.0 }
 0x13e   :  { %v751_v23 = vadd.f32 %v750_v50, %v749_v13  ;;  %v762_v13 = vsel %vm668_vm2, %v1959_v30, 0.0  ;;  %v764_v50 = vsel %vm668_vm2, %v1979_v54, 0.0 }
 0x140   :  { %v753_v15 = vadd.f32 %v752_v61, %v751_v23 }
 0x142   :  { %v755_v35 = vadd.f32 %v754_v34, %v753_v15  ;;  %v766_v15 = vsel %vm668_vm2, %v1985_v63, 0.0 }
 0x144   :  { %v757_v45 = vadd.f32 %v756_v55, %v755_v35  ;;  %v768_v55 = vsel %vm668_vm2, %v1975_v49, 0.0 }
 0x146   :  { %v759_v7 = vadd.f32 %v758_v6, %v757_v45  ;;  %v770_v45 = vsel %vm668_vm2, %v1983_v58, 0.0  ;;  %v772_v6 = vsel %vm668_vm2, %v2003_v22, 0.0 }
 0x148   :  { %v761_v3 = vadd.f32 %v760_v47, %v759_v7 }
 0x14a   :  { %v763_v23 = vadd.f32 %v762_v13, %v761_v3  ;;  %v774_v3 = vsel %vm668_vm2, %v2009_v31, 0.0 }
 0x14c   :  { %v765_v61 = vadd.f32 %v764_v50, %v763_v23  ;;  %v776_v50 = vsel %vm668_vm2, %v1999_v17, 0.0 }
 0x14e   :  { %v767_v34 = vadd.f32 %v766_v15, %v765_v61  ;;  %v778_v61 = vsel %vm668_vm2, %v2007_v26, 0.0  ;;  %v780_v15 = vsel %vm668_vm2, %v2027_v10, 0.0 }
 0x150   :  { %v769_v35 = vadd.f32 %v768_v55, %v767_v34 }
 0x152   :  { %v771_v7 = vadd.f32 %v770_v45, %v769_v35  ;;  %v782_v35 = vsel %vm668_vm2, %v2033_v29, 0.0 }
 0x154   :  { %v773_v47 = vadd.f32 %v772_v6, %v771_v7  ;;  %v784_v6 = vsel %vm668_vm2, %v2023_v1, 0.0 }
 0x156   :  { %v775_v13 = vadd.f32 %v774_v3, %v773_v47  ;;  %v786_v47 = vsel %vm668_vm2, %v2031_v18, 0.0  ;;  %v788_v3 = vsel %vm668_vm2, %v2051_v44, 0.0 }
 0x158   :  { %v777_v23 = vadd.f32 %v776_v50, %v775_v13 }
 0x15a   :  { %v779_v34 = vadd.f32 %v778_v61, %v777_v23  ;;  %v790_v23 = vsel %vm668_vm2, %v2057_v19, 0.0 }
 0x15c   :  { %v781_v55 = vadd.f32 %v780_v15, %v779_v34  ;;  %v792_v15 = vsel %vm668_vm2, %v2047_v2, 0.0 }
 0x15e   :  { %v783_v45 = vadd.f32 %v782_v35, %v781_v55  ;;  %v794_v55 = vsel %vm668_vm2, %v2055_v33, 0.0 }
 0x160   :  { %v785_v7 = vadd.f32 %v784_v6, %v783_v45 }
 0x162   :  { %v787_v13 = vadd.f32 %v786_v47, %v785_v7 }
 0x164   :  { %v789_v50 = vadd.f32 %v788_v3, %v787_v13 }
 0x166   :  { %v791_v61 = vadd.f32 %v790_v23, %v789_v50  ;;  %v3930_v23 = vld [vmem:[#allocation3_spill] sm:$0xff] }
 0x168   :  { %v793_v34 = vadd.f32 %v792_v15, %v791_v61  ;;  %v3932_v61 = vld [vmem:[#allocation5_spill] sm:$0xff]  ;;  %v3933_v15 = vld [vmem:[#allocation8_spill] sm:$0xff] }
 0x16a   :  { %v795_v35 = vadd.f32 %v794_v55, %v793_v34  ;;  %v3935_v55 = vld [vmem:[#allocation11_spill] sm:$0xff] }
 0x16c   :  { %v796_v45 = vrot.slane %v795_v35, 4 }
 0x16e   :  { %v797_v6 = vadd.f32 %v796_v45, %v795_v35  ;;  %v3937_v45 = vld [vmem:[#allocation7_spill] sm:$0xff] }
 0x170   :  { %v798_v18 = vrot.slane %v797_v6, 2 }
 0x172   :  { %v799_v1 = vadd.f32 %v798_v18, %v797_v6  ;;  %v3927_v18 = vld [vmem:[#allocation4_spill] sm:$0xff] }
 0x174   :  { %v800_v29 = vrot.slane %v799_v1, 1 }
 0x176   :  { %v801_v44 = vadd.f32 %v800_v29, %v799_v1  ;;  %v3926_v1 = vld [vmem:[#allocation2_spill] sm:$0xff] }
 0x177   :  { %v3928_v29 = vld [vmem:[#allocation6_spill] sm:$0xff] }
 0x178   :  { %v2127_v7 = vmul.f32 0.001953125, %v801_v44 }
 0x17a   :  { %v2131_v47 = vsub.f32 %v1873_v39, %v2127_v7  ;;  %v2135_v3 = vsub.f32 %v1879_v42, %v2127_v7  ;;  %v2139_v13 = vsub.f32 %v1871_v38, %v2127_v7  ;;  %v2143_v50 = vsub.f32 %v1875_v40, %v2127_v7 }
 0x17b   :  { %v2147_v44 = vsub.f32 %v1897_v53, %v2127_v7  ;;  %v2151_v39 = vsub.f32 %v1905_v59, %v2127_v7  ;;  %v2155_v42 = vsub.f32 %v1895_v52, %v2127_v7  ;;  %v2159_v38 = vsub.f32 %v1901_v56, %v2127_v7 }
 0x17c   :  { %3922 = vst [vmem:[#allocation19_spill] sm:$0xff] %v2131_v47  ;;  %3923 = vst [vmem:[#allocation20_spill] sm:$0xff] %v2135_v3  ;;  %v2163_v40 = vsub.f32 %v1921_v5, %v2127_v7  ;;  %v2167_v53 = vsub.f32 %v1929_v11, %v2127_v7  ;;  %v2171_v59 = vsub.f32 %v1919_v4, %v2127_v7 }
 0x17d   :  { %3924 = vst [vmem:[#allocation21_spill] sm:$0xff] %v2139_v13  ;;  %3925 = vst [vmem:[#allocation22_spill] sm:$0xff] %v2143_v50  ;;  %v2175_v52 = vsub.f32 %v1925_v8, %v2127_v7  ;;  %v2179_v56 = vsub.f32 %v1945_v21, %v2127_v7  ;;  %v2183_v5 = vsub.f32 %v1953_v27, %v2127_v7 }
 0x17e   :  { %v2187_v11 = vsub.f32 %v1943_v20, %v2127_v7  ;;  %v2191_v4 = vsub.f32 %v1949_v24, %v2127_v7  ;;  %v2195_v8 = vsub.f32 %v1969_v37, %v2127_v7  ;;  %v2199_v21 = vsub.f32 %v1977_v51, %v2127_v7 }
 0x17f   :  { %v2203_v27 = vsub.f32 %v1967_v36, %v2127_v7  ;;  %v2207_v20 = vsub.f32 %v3926_v1, %v2127_v7  ;;  %v2211_v24 = vsub.f32 %v3927_v18, %v2127_v7  ;;  %v2215_v37 = vsub.f32 %v3928_v29, %v2127_v7  ;;  %v3938_v1 = vld [vmem:[#allocation9_spill] sm:$0xff]  ;;  %v3939_v29 = vld [vmem:[#allocation15_spill] sm:$0xff] }
 0x180   :  { %v2219_v51 = vsub.f32 %v3930_v23, %v2127_v7  ;;  %v2223_v36 = vsub.f32 %v3932_v61, %v2127_v7  ;;  %v2227_v34 = vsub.f32 %v3933_v15, %v2127_v7  ;;  %v2231_v35 = vsub.f32 %v3935_v55, %v2127_v7  ;;  %v3940_v61 = vld [vmem:[#allocation17_spill] sm:$0xff] }
 0x181   :  { %3929 = vst [vmem:[#allocation2_spill] sm:$0xff] %v2215_v37  ;;  %v2235_v6 = vsub.f32 %v3937_v45, %v2127_v7  ;;  %v2239_v18 = vsub.f32 %v3938_v1, %v2127_v7  ;;  %v2243_v23 = vsub.f32 %v3939_v29, %v2127_v7  ;;  %v2247_v15 = vsub.f32 %v3940_v61, %v2127_v7 }
 0x182   :  { %3931 = vst [vmem:[#allocation4_spill] sm:$0xff] %v2219_v51  ;;  %3934 = vst [vmem:[#allocation6_spill] sm:$0xff] %v2227_v34  ;;  %v3941_v34 = vld [vmem:[#allocation14_spill] sm:$0xff]  ;;  %v2259_v1 = vsub.f32 %v1881_v43, %v2127_v7  ;;  %v2263_v29 = vsub.f32 %v1889_v48, %v2127_v7  ;;  %v2267_v61 = vsub.f32 %v1877_v41, %v2127_v7 }
 0x183   :  { %3936 = vst [vmem:[#allocation3_spill] sm:$0xff] %v2231_v35  ;;  %v2251_v55 = vsub.f32 %v3941_v34, %v2127_v7  ;;  %v3942_v35 = vld [vmem:[#allocation16_spill] sm:$0xff]  ;;  %v2271_v34 = vsub.f32 %v1887_v46, %v2127_v7  ;;  %v2279_v43 = vsub.f32 %v1913_v0, %v2127_v7  ;;  %v2283_v48 = vsub.f32 %v1903_v57, %v2127_v7 }
 0x184   :  { %v2255_v45 = vsub.f32 %v3942_v35, %v2127_v7  ;;  %v2275_v35 = vsub.f32 %v1907_v60, %v2127_v7  ;;  %v2287_v41 = vsub.f32 %v1911_v62, %v2127_v7  ;;  %v2291_v46 = vsub.f32 %v1931_v12, %v2127_v7 }
 0x185   :  { %v2295_v60 = vsub.f32 %v1937_v16, %v2127_v7  ;;  %v2299_v0 = vsub.f32 %v1927_v9, %v2127_v7  ;;  %v2303_v57 = vsub.f32 %v1935_v14, %v2127_v7  ;;  %v2307_v62 = vsub.f32 %v1955_v28, %v2127_v7 }
 0x186   :  { %v2311_v12 = vsub.f32 %v1961_v32, %v2127_v7  ;;  %v2315_v16 = vsub.f32 %v1951_v25, %v2127_v7  ;;  %v2319_v9 = vsub.f32 %v1959_v30, %v2127_v7  ;;  %v2323_v14 = vsub.f32 %v1979_v54, %v2127_v7 }
 0x187   :  { %v2327_v28 = vsub.f32 %v1985_v63, %v2127_v7  ;;  %v2331_v32 = vsub.f32 %v1975_v49, %v2127_v7  ;;  %v2335_v25 = vsub.f32 %v1983_v58, %v2127_v7  ;;  %v2339_v30 = vsub.f32 %v2003_v22, %v2127_v7 }
 0x188   :  { %3943 = vst [vmem:[#allocation5_spill] sm:$0xff] %v2323_v14  ;;  %v2343_v54 = vsub.f32 %v2009_v31, %v2127_v7  ;;  %v2347_v63 = vsub.f32 %v1999_v17, %v2127_v7  ;;  %v2351_v49 = vsub.f32 %v2007_v26, %v2127_v7  ;;  %v2355_v58 = vsub.f32 %v2027_v10, %v2127_v7 }
 0x189   :  { %3944 = vst [vmem:[#allocation8_spill] sm:$0xff] %v2327_v28  ;;  %3945 = vst [vmem:[#allocation11_spill] sm:$0xff] %v2331_v32  ;;  %v2375_v10 = vsub.f32 %v2057_v19, %v2127_v7  ;;  %v871_v19 = vmul.f32 %v2143_v50, %v2143_v50  ;;  %v874_v50 = vmul.f32 %v2155_v42, %v2155_v42 }
 0x18a   :  { %3946 = vst [vmem:[#allocation7_spill] sm:$0xff] %v2335_v25  ;;  %3947 = vst [vmem:[#allocation9_spill] sm:$0xff] %v2339_v30  ;;  %v3952_v25 = vld [vmem:[#allocation13_spill] sm:$0xff]  ;;  %v3954_v30 = vld [vmem:[#allocation10_spill] sm:$0xff] }
 0x18b   :  { %3948 = vst [vmem:[#allocation15_spill] sm:$0xff] %v2343_v54  ;;  %3949 = vst [vmem:[#allocation17_spill] sm:$0xff] %v2347_v63  ;;  %v2359_v22 = vsub.f32 %v3952_v25, %v2127_v7  ;;  %v2363_v31 = vsub.f32 %v3954_v30, %v2127_v7  ;;  %v3956_v54 = vld [vmem:[#allocation12_spill] sm:$0xff]  ;;  %v3958_v63 = vld [vmem:[#allocation18_spill] sm:$0xff]  ;;  %v2379_v25 = vsub.f32 %v2047_v2, %v2127_v7 }
 0x18c   :  { %3950 = vst [vmem:[#allocation14_spill] sm:$0xff] %v2351_v49  ;;  %3951 = vst [vmem:[#allocation16_spill] sm:$0xff] %v2355_v58  ;;  %v2367_v17 = vsub.f32 %v3956_v54, %v2127_v7  ;;  %v2371_v26 = vsub.f32 %v3958_v63, %v2127_v7  ;;  %v2383_v30 = vsub.f32 %v2055_v33, %v2127_v7 }
 0x18d   :  { %3953 = vst [vmem:[#allocation13_spill] sm:$0xff] %v2359_v22  ;;  %3955 = vst [vmem:[#allocation10_spill] sm:$0xff] %v2363_v31  ;;  %v868_v54 = vmul.f32 %v2131_v47, %v2131_v47  ;;  %v870_v63 = vmul.f32 %v2139_v13, %v2139_v13  ;;  %v872_v33 = vmul.f32 %v2147_v44, %v2147_v44 }
 0x18e   :  { %3957 = vst [vmem:[#allocation12_spill] sm:$0xff] %v2367_v17  ;;  %3959 = vst [vmem:[#allocation18_spill] sm:$0xff] %v2371_v26  ;;  %v869_v17 = vmul.f32 %v2135_v3, %v2135_v3  ;;  %v873_v3 = vmul.f32 %v2151_v39, %v2151_v39 }
 0x18f   :  { %3960 = vst [vmem:[#allocation23_spill] sm:$0xff] %v2375_v10  ;;  %3961 = vst [vmem:[#allocation24_spill] sm:$0xff] %v2379_v25  ;;  %v932_v10 = vsel %vm668_vm2, %v868_v54, 0.0  ;;  %v935_v7 = vsel %vm668_vm2, %v870_v63, 0.0  ;;  %v939_v54 = vsel %vm668_vm2, %v872_v33, 0.0  ;;  %v943_v63 = vsel %vm668_vm2, %v874_v50, 0.0 }
 0x190   :  { %3962 = vst [vmem:[#allocation25_spill] sm:$0xff] %v2383_v30  ;;  %v933_v2 = vsel %vm668_vm2, %v869_v17, 0.0  ;;  %v937_v30 = vsel %vm668_vm2, %v871_v19, 0.0  ;;  %v875_v17 = vmul.f32 %v2159_v38, %v2159_v38  ;;  %v880_v50 = vmul.f32 %v2179_v56, %v2179_v56 }
 0x191   :  { %v934_v25 = vadd.f32 %v933_v2, %v932_v10  ;;  %v941_v10 = vsel %vm668_vm2, %v873_v3, 0.0  ;;  %v879_v3 = vmul.f32 %v2175_v52, %v2175_v52 }
 0x193   :  { %v936_v47 = vadd.f32 %v935_v7, %v934_v25  ;;  %v876_v25 = vmul.f32 %v2163_v40, %v2163_v40 }
 0x195   :  { %v938_v13 = vadd.f32 %v937_v30, %v936_v47  ;;  %v877_v47 = vmul.f32 %v2167_v53, %v2167_v53  ;;  %v945_v30 = vsel %vm668_vm2, %v875_v17, 0.0  ;;  %v947_v33 = vsel %vm668_vm2, %v876_v25, 0.0 }
 0x196   :  { %v881_v17 = vmul.f32 %v2183_v5, %v2183_v5  ;;  %v882_v25 = vmul.f32 %v2187_v11, %v2187_v11 }
 0x197   :  { %v940_v26 = vadd.f32 %v939_v54, %v938_v13  ;;  %v878_v13 = vmul.f32 %v2171_v59, %v2171_v59 }
 0x199   :  { %v942_v2 = vadd.f32 %v941_v10, %v940_v26  ;;  %v949_v26 = vsel %vm668_vm2, %v877_v47, 0.0  ;;  %v883_v47 = vmul.f32 %v2191_v4, %v2191_v4 }
 0x19b   :  { %v944_v7 = vadd.f32 %v943_v63, %v942_v2  ;;  %v951_v2 = vsel %vm668_vm2, %v878_v13, 0.0  ;;  %v884_v13 = vmul.f32 %v2195_v8, %v2195_v8 }
 0x19d   :  { %v946_v19 = vadd.f32 %v945_v30, %v944_v7  ;;  %v953_v7 = vsel %vm668_vm2, %v879_v3, 0.0  ;;  %v885_v3 = vmul.f32 %v2199_v21, %v2199_v21 }
 0x19f   :  { %v948_v54 = vadd.f32 %v947_v33, %v946_v19  ;;  %v955_v19 = vsel %vm668_vm2, %v880_v50, 0.0  ;;  %v886_v50 = vmul.f32 %v2203_v27, %v2203_v27 }
 0x1a1   :  { %v950_v10 = vadd.f32 %v949_v26, %v948_v54  ;;  %v957_v54 = vsel %vm668_vm2, %v881_v17, 0.0  ;;  %v887_v17 = vmul.f32 %v2207_v20, %v2207_v20 }
 0x1a3   :  { %v952_v63 = vadd.f32 %v951_v2, %v950_v10  ;;  %v959_v10 = vsel %vm668_vm2, %v882_v25, 0.0  ;;  %v888_v25 = vmul.f32 %v2211_v24, %v2211_v24 }
 0x1a5   :  { %v954_v30 = vadd.f32 %v953_v7, %v952_v63  ;;  %v961_v63 = vsel %vm668_vm2, %v883_v47, 0.0  ;;  %v889_v47 = vmul.f32 %v2215_v37, %v2215_v37 }
 0x1a7   :  { %v956_v33 = vadd.f32 %v955_v19, %v954_v30  ;;  %v963_v30 = vsel %vm668_vm2, %v884_v13, 0.0  ;;  %v890_v13 = vmul.f32 %v2219_v51, %v2219_v51 }
 0x1a9   :  { %v958_v26 = vadd.f32 %v957_v54, %v956_v33  ;;  %v965_v33 = vsel %vm668_vm2, %v885_v3, 0.0  ;;  %v891_v3 = vmul.f32 %v2223_v36, %v2223_v36 }
 0x1ab   :  { %v960_v2 = vadd.f32 %v959_v10, %v958_v26  ;;  %v967_v26 = vsel %vm668_vm2, %v886_v50, 0.0  ;;  %v3963_v50 = vld [vmem:[#allocation6_spill] sm:$0xff] }
 0x1ad   :  { %v962_v7 = vadd.f32 %v961_v63, %v960_v2  ;;  %v969_v2 = vsel %vm668_vm2, %v887_v17, 0.0  ;;  %v3964_v17 = vld [vmem:[#allocation3_spill] sm:$0xff] }
 0x1af   :  { %v964_v19 = vadd.f32 %v963_v30, %v962_v7  ;;  %v971_v7 = vsel %vm668_vm2, %v888_v25, 0.0  ;;  %v894_v25 = vmul.f32 %v2235_v6, %v2235_v6 }
 0x1b1   :  { %v966_v54 = vadd.f32 %v965_v33, %v964_v19  ;;  %v973_v19 = vsel %vm668_vm2, %v889_v47, 0.0  ;;  %v895_v47 = vmul.f32 %v2239_v18, %v2239_v18 }
 0x1b3   :  { %v968_v10 = vadd.f32 %v967_v26, %v966_v54  ;;  %v892_v54 = vmul.f32 %v3963_v50, %v3963_v50  ;;  %v975_v26 = vsel %vm668_vm2, %v890_v13, 0.0  ;;  %v896_v13 = vmul.f32 %v2243_v23, %v2243_v23 }
 0x1b5   :  { %v970_v63 = vadd.f32 %v969_v2, %v968_v10  ;;  %v893_v10 = vmul.f32 %v3964_v17, %v3964_v17  ;;  %v977_v2 = vsel %vm668_vm2, %v891_v3, 0.0  ;;  %v985_v3 = vsel %vm668_vm2, %v895_v47, 0.0 }
 0x1b6   :  { %v901_v47 = vmul.f32 %v2263_v29, %v2263_v29 }
 0x1b7   :  { %v972_v30 = vadd.f32 %v971_v7, %v970_v63  ;;  %v979_v63 = vsel %vm668_vm2, %v892_v54, 0.0  ;;  %v987_v54 = vsel %vm668_vm2, %v896_v13, 0.0  ;;  %v902_v13 = vmul.f32 %v2267_v61, %v2267_v61 }
 0x1b9   :  { %v974_v33 = vadd.f32 %v973_v19, %v972_v30  ;;  %v981_v30 = vsel %vm668_vm2, %v893_v10, 0.0  ;;  %v899_v10 = vmul.f32 %v2255_v45, %v2255_v45 }
 0x1bb   :  { %v976_v37 = vadd.f32 %v975_v26, %v974_v33  ;;  %v983_v33 = vsel %vm668_vm2, %v894_v25, 0.0  ;;  %v900_v25 = vmul.f32 %v2259_v1, %v2259_v1 }
 0x1bd   :  { %v978_v51 = vadd.f32 %v977_v2, %v976_v37  ;;  %v897_v37 = vmul.f32 %v2247_v15, %v2247_v15 }
 0x1bf   :  { %v980_v7 = vadd.f32 %v979_v63, %v978_v51  ;;  %v898_v51 = vmul.f32 %v2251_v55, %v2251_v55 }
 0x1c1   :  { %v982_v19 = vadd.f32 %v981_v30, %v980_v7  ;;  %v989_v7 = vsel %vm668_vm2, %v897_v37, 0.0  ;;  %v903_v37 = vmul.f32 %v2271_v34, %v2271_v34 }
 0x1c3   :  { %v984_v26 = vadd.f32 %v983_v33, %v982_v19  ;;  %v991_v19 = vsel %vm668_vm2, %v898_v51, 0.0  ;;  %v904_v51 = vmul.f32 %v2275_v35, %v2275_v35 }
 0x1c5   :  { %v986_v2 = vadd.f32 %v985_v3, %v984_v26  ;;  %v993_v26 = vsel %vm668_vm2, %v899_v10, 0.0  ;;  %v905_v10 = vmul.f32 %v2279_v43, %v2279_v43 }
 0x1c7   :  { %v988_v63 = vadd.f32 %v987_v54, %v986_v2  ;;  %v995_v2 = vsel %vm668_vm2, %v900_v25, 0.0  ;;  %v906_v25 = vmul.f32 %v2283_v48, %v2283_v48 }
 0x1c9   :  { %v990_v30 = vadd.f32 %v989_v7, %v988_v63  ;;  %v997_v63 = vsel %vm668_vm2, %v901_v47, 0.0  ;;  %v907_v47 = vmul.f32 %v2287_v41, %v2287_v41 }
 0x1cb   :  { %v992_v33 = vadd.f32 %v991_v19, %v990_v30  ;;  %v999_v30 = vsel %vm668_vm2, %v902_v13, 0.0  ;;  %v908_v13 = vmul.f32 %v2291_v46, %v2291_v46 }
 0x1cd   :  { %v994_v3 = vadd.f32 %v993_v26, %v992_v33  ;;  %v1001_v33 = vsel %vm668_vm2, %v903_v37, 0.0  ;;  %v909_v37 = vmul.f32 %v2295_v60, %v2295_v60 }
 0x1cf   :  { %v996_v54 = vadd.f32 %v995_v2, %v994_v3  ;;  %v1003_v3 = vsel %vm668_vm2, %v904_v51, 0.0  ;;  %v910_v51 = vmul.f32 %v2299_v0, %v2299_v0 }
 0x1d1   :  { %v998_v7 = vadd.f32 %v997_v63, %v996_v54  ;;  %v1005_v54 = vsel %vm668_vm2, %v905_v10, 0.0  ;;  %v911_v10 = vmul.f32 %v2303_v57, %v2303_v57 }
 0x1d3   :  { %v1000_v19 = vadd.f32 %v999_v30, %v998_v7  ;;  %v1007_v7 = vsel %vm668_vm2, %v906_v25, 0.0  ;;  %v912_v25 = vmul.f32 %v2307_v62, %v2307_v62 }
 0x1d5   :  { %v1002_v26 = vadd.f32 %v1001_v33, %v1000_v19  ;;  %v1009_v19 = vsel %vm668_vm2, %v907_v47, 0.0  ;;  %v913_v47 = vmul.f32 %v2311_v12, %v2311_v12 }
 0x1d7   :  { %v1004_v2 = vadd.f32 %v1003_v3, %v1002_v26  ;;  %v1011_v26 = vsel %vm668_vm2, %v908_v13, 0.0  ;;  %v914_v13 = vmul.f32 %v2315_v16, %v2315_v16 }
 0x1d9   :  { %v1006_v63 = vadd.f32 %v1005_v54, %v1004_v2  ;;  %v1013_v2 = vsel %vm668_vm2, %v909_v37, 0.0  ;;  %v915_v37 = vmul.f32 %v2319_v9, %v2319_v9 }
 0x1db   :  { %v1008_v30 = vadd.f32 %v1007_v7, %v1006_v63  ;;  %v1015_v63 = vsel %vm668_vm2, %v910_v51, 0.0  ;;  %v916_v51 = vmul.f32 %v2323_v14, %v2323_v14 }
 0x1dd   :  { %v1010_v33 = vadd.f32 %v1009_v19, %v1008_v30  ;;  %v1017_v30 = vsel %vm668_vm2, %v911_v10, 0.0  ;;  %v917_v10 = vmul.f32 %v2327_v28, %v2327_v28 }
 0x1df   :  { %v1012_v3 = vadd.f32 %v1011_v26, %v1010_v33  ;;  %v1019_v33 = vsel %vm668_vm2, %v912_v25, 0.0  ;;  %v918_v25 = vmul.f32 %v2331_v32, %v2331_v32 }
 0x1e1   :  { %v1014_v54 = vadd.f32 %v1013_v2, %v1012_v3  ;;  %v1021_v3 = vsel %vm668_vm2, %v913_v47, 0.0  ;;  %v3965_v47 = vld [vmem:[#allocation7_spill] sm:$0xff] }
 0x1e3   :  { %v1016_v7 = vadd.f32 %v1015_v63, %v1014_v54  ;;  %v1023_v54 = vsel %vm668_vm2, %v914_v13, 0.0  ;;  %v3966_v13 = vld [vmem:[#allocation9_spill] sm:$0xff] }
 0x1e5   :  { %v1018_v19 = vadd.f32 %v1017_v30, %v1016_v7  ;;  %v1025_v7 = vsel %vm668_vm2, %v915_v37, 0.0  ;;  %v3967_v37 = vld [vmem:[#allocation15_spill] sm:$0xff] }
 0x1e7   :  { %v1020_v26 = vadd.f32 %v1019_v33, %v1018_v19  ;;  %v1027_v19 = vsel %vm668_vm2, %v916_v51, 0.0  ;;  %v3968_v51 = vld [vmem:[#allocation17_spill] sm:$0xff] }
 0x1e9   :  { %v1022_v2 = vadd.f32 %v1021_v3, %v1020_v26  ;;  %v919_v26 = vmul.f32 %v3965_v47, %v3965_v47  ;;  %v1029_v3 = vsel %vm668_vm2, %v917_v10, 0.0  ;;  %v923_v10 = vmul.f32 %v2351_v49, %v2351_v49 }
 0x1eb   :  { %v1024_v63 = vadd.f32 %v1023_v54, %v1022_v2  ;;  %v920_v2 = vmul.f32 %v3966_v13, %v3966_v13  ;;  %v1031_v54 = vsel %vm668_vm2, %v918_v25, 0.0 }
 0x1ed   :  { %v1026_v30 = vadd.f32 %v1025_v7, %v1024_v63  ;;  %v921_v63 = vmul.f32 %v3967_v37, %v3967_v37  ;;  %v1033_v7 = vsel %vm668_vm2, %v919_v26, 0.0  ;;  %v1041_v26 = vsel %vm668_vm2, %v923_v10, 0.0  ;;  %v3971_v10 = vld [vmem:[#allocation23_spill] sm:$0xff] }
 0x1ef   :  { %v1028_v33 = vadd.f32 %v1027_v19, %v1026_v30  ;;  %v922_v30 = vmul.f32 %v3968_v51, %v3968_v51  ;;  %v1035_v19 = vsel %vm668_vm2, %v920_v2, 0.0 }
 0x1f1   :  { %v1030_v14 = vadd.f32 %v1029_v3, %v1028_v33  ;;  %v1037_v33 = vsel %vm668_vm2, %v921_v63, 0.0  ;;  %v1039_v25 = vsel %vm668_vm2, %v922_v30, 0.0  ;;  %v3969_v63 = vld [vmem:[#allocation12_spill] sm:$0xff]  ;;  %v3970_v30 = vld [vmem:[#allocation18_spill] sm:$0xff] }
 0x1f3   :  { %v1032_v28 = vadd.f32 %v1031_v54, %v1030_v14  ;;  %v924_v14 = vmul.f32 %v2355_v58, %v2355_v58 }
 0x1f5   :  { %v1034_v32 = vadd.f32 %v1033_v7, %v1032_v28  ;;  %v925_v28 = vmul.f32 %v2359_v22, %v2359_v22  ;;  %v1043_v2 = vsel %vm668_vm2, %v924_v14, 0.0  ;;  %v3972_v14 = vld [vmem:[#allocation24_spill] sm:$0xff] }
 0x1f7   :  { %v1036_v47 = vadd.f32 %v1035_v19, %v1034_v32  ;;  %v926_v32 = vmul.f32 %v2363_v31, %v2363_v31 }
 0x1f9   :  { %v1038_v3 = vadd.f32 %v1037_v33, %v1036_v47  ;;  %v927_v47 = vmul.f32 %v3969_v63, %v3969_v63  ;;  %v1045_v33 = vsel %vm668_vm2, %v925_v28, 0.0  ;;  %v3973_v28 = vld [vmem:[#allocation25_spill] sm:$0xff] }
 0x1fb   :  { %v1040_v54 = vadd.f32 %v1039_v25, %v1038_v3  ;;  %v928_v3 = vmul.f32 %v3970_v30, %v3970_v30  ;;  %v1047_v25 = vsel %vm668_vm2, %v926_v32, 0.0 }
 0x1fd   :  { %v1042_v7 = vadd.f32 %v1041_v26, %v1040_v54  ;;  %v929_v54 = vmul.f32 %v3971_v10, %v3971_v10  ;;  %v1049_v26 = vsel %vm668_vm2, %v927_v47, 0.0 }
 0x1ff   :  { %v1044_v19 = vadd.f32 %v1043_v2, %v1042_v7  ;;  %v930_v7 = vmul.f32 %v3972_v14, %v3972_v14  ;;  %v1051_v2 = vsel %vm668_vm2, %v928_v3, 0.0 }
 0x201   :  { %v1046_v58 = vadd.f32 %v1045_v33, %v1044_v19  ;;  %v931_v19 = vmul.f32 %v3973_v28, %v3973_v28  ;;  %v1053_v33 = vsel %vm668_vm2, %v929_v54, 0.0 }
 0x203   :  { %v1048_v22 = vadd.f32 %v1047_v25, %v1046_v58  ;;  %v1055_v58 = vsel %vm668_vm2, %v930_v7, 0.0  ;;  %v1057_v25 = vsel %vm668_vm2, %v931_v19, 0.0  ;;  %v3974_v19 = vld [vmem:[#allocation19_spill] sm:$0xff] }
 0x205   :  { %v1050_v31 = vadd.f32 %v1049_v26, %v1048_v22 }
 0x207   :  { %v1052_v63 = vadd.f32 %v1051_v2, %v1050_v31  ;;  %v1071_v2 = vlaneseq }
 0x209   :  { %v1054_v30 = vadd.f32 %v1053_v33, %v1052_v63  ;;  %v1072_v28 = vshrl.u32 %v1071_v2, 7  ;;  %v1066_v63 = vld [vmem:[%s3839_s2] sm:$0x1]  ;;  %v3975_v33 = vld [vmem:[#allocation20_spill] sm:$0xff] }
 0x20b   :  { %v1056_v32 = vadd.f32 %v1055_v58, %v1054_v30  ;;  %v1073_v54 = vsub.s32 0, %v1072_v28  ;;  %v3977_v58 = vld [vmem:[#allocation22_spill] sm:$0xff] }
 0x20d   :  { %v1058_v10 = vadd.f32 %v1057_v25, %v1056_v32 }
 0x20f   :  { %v1059_v47 = vrot.slane %v1058_v10, 4 }
 0x211   :  { %v1060_v22 = vadd.f32 %v1059_v47, %v1058_v10 }
 0x213   :  { %v1061_v26 = vrot.slane %v1060_v22, 2 }
 0x215   :  { %v1062_v49 = vadd.f32 %v1061_v26, %v1060_v22  ;;  %v3978_v26 = vld [vmem:[#allocation2_spill] sm:$0xff] }
 0x217   :  { %v1063_v14 = vrot.slane %v1062_v49, 1 }
 0x219   :  { %v1064_v51 = vadd.f32 %v1063_v14, %v1062_v49 }
 0x21b   :  { %v1065_v3 = vmul.f32 0.001953125, %v1064_v51  ;;  %v3976_v51 = vld [vmem:[#allocation21_spill] sm:$0xff] }
 0x21d   :  { %v1067_v31 = vadd.f32 1e-05, %v1065_v3  ;;  %v3979_v3 = vld [vmem:[#allocation4_spill] sm:$0xff] }
 0x21f   :  { %1701 = vrsqrt.f32 %v1067_v31 }
 0x229   :  { %v1702_v37 = vpop.eup %1701 }
 0x22a   :  { %v1069_v30 = vmul.f32 %v1702_v37, %v1066_v63  ;;  %v3980_v63 = vld [vmem:[#allocation5_spill] sm:$0xff] }
 0x22c   :  { %v2580_v7 = vrot.slane %v1069_v30, %v1073_v54  ;;  %v3981_v30 = vld [vmem:[#allocation8_spill] sm:$0xff]  ;;  %v3982_v54 = vld [vmem:[#allocation11_spill] sm:$0xff] }
 0x22e   :  { %v2584_v10 = vmul.f32 %v2580_v7, %v3974_v19  ;;  %v2588_v49 = vmul.f32 %v2580_v7, %v3975_v33  ;;  %v2592_v14 = vmul.f32 %v2580_v7, %v3976_v51  ;;  %v2596_v32 = vmul.f32 %v2580_v7, %v3977_v58  ;;  %v3983_v19 = vld [vmem:[#allocation7_spill] sm:$0xff]  ;;  %v3988_v58 = vld [vmem:[#allocation17_spill] sm:$0xff] }
 0x22f   :  { %v2600_v37 = vmul.f32 %v2580_v7, %v2147_v44  ;;  %v2604_v28 = vmul.f32 %v2580_v7, %v2151_v39  ;;  %v2608_v25 = vmul.f32 %v2580_v7, %v2155_v42  ;;  %v2612_v47 = vmul.f32 %v2580_v7, %v2159_v38  ;;  %v3986_v33 = vld [vmem:[#allocation15_spill] sm:$0xff] }
 0x230   :  { %v2616_v22 = vmul.f32 %v2580_v7, %v2163_v40  ;;  %v2620_v44 = vmul.f32 %v2580_v7, %v2167_v53  ;;  %v2624_v39 = vmul.f32 %v2580_v7, %v2171_v59  ;;  %v2628_v42 = vmul.f32 %v2580_v7, %v2175_v52 }
 0x231   :  { %v2632_v38 = vmul.f32 %v2580_v7, %v2179_v56  ;;  %v2636_v40 = vmul.f32 %v2580_v7, %v2183_v5  ;;  %v2640_v53 = vmul.f32 %v2580_v7, %v2187_v11  ;;  %v2644_v59 = vmul.f32 %v2580_v7, %v2191_v4 }
 0x232   :  { %v2648_v52 = vmul.f32 %v2580_v7, %v2195_v8  ;;  %v2652_v56 = vmul.f32 %v2580_v7, %v2199_v21  ;;  %v2656_v5 = vmul.f32 %v2580_v7, %v2203_v27  ;;  %v2660_v11 = vmul.f32 %v2580_v7, %v2207_v20 }
 0x233   :  { %v2664_v4 = vmul.f32 %v2580_v7, %v2211_v24  ;;  %v2668_v8 = vmul.f32 %v2580_v7, %v3978_v26  ;;  %v2672_v21 = vmul.f32 %v2580_v7, %v3979_v3  ;;  %v2676_v27 = vmul.f32 %v2580_v7, %v2223_v36  ;;  %v2805_v3 = vld [vmem:[%s3840_s3] ss:$0 sm:$0xff] }
 0x234   :  { %v2680_v20 = vmul.f32 %v2580_v7, %v3963_v50  ;;  %v2684_v24 = vmul.f32 %v2580_v7, %v3964_v17  ;;  %v2688_v31 = vmul.f32 %v2580_v7, %v2235_v6  ;;  %v2692_v2 = vmul.f32 %v2580_v7, %v2239_v18 }
 0x235   :  { %v2696_v36 = vmul.f32 %v2580_v7, %v2243_v23  ;;  %v2700_v50 = vmul.f32 %v2580_v7, %v2247_v15  ;;  %v2704_v17 = vmul.f32 %v2580_v7, %v2251_v55  ;;  %v2708_v6 = vmul.f32 %v2580_v7, %v2255_v45 }
 0x236   :  { %v2712_v18 = vmul.f32 %v2580_v7, %v2259_v1  ;;  %v2716_v23 = vmul.f32 %v2580_v7, %v2263_v29  ;;  %v2720_v15 = vmul.f32 %v2580_v7, %v2267_v61  ;;  %v2724_v55 = vmul.f32 %v2580_v7, %v2271_v34 }
 0x237   :  { %v2728_v45 = vmul.f32 %v2580_v7, %v2275_v35  ;;  %v2732_v1 = vmul.f32 %v2580_v7, %v2279_v43  ;;  %v2736_v29 = vmul.f32 %v2580_v7, %v2283_v48  ;;  %v2740_v61 = vmul.f32 %v2580_v7, %v2287_v41 }
 0x238   :  { %v2744_v34 = vmul.f32 %v2580_v7, %v2291_v46  ;;  %v2748_v35 = vmul.f32 %v2580_v7, %v2295_v60  ;;  %v2752_v43 = vmul.f32 %v2580_v7, %v2299_v0  ;;  %v2756_v48 = vmul.f32 %v2580_v7, %v2303_v57 }
 0x239   :  { %v2760_v41 = vmul.f32 %v2580_v7, %v2307_v62  ;;  %v2764_v46 = vmul.f32 %v2580_v7, %v2311_v12  ;;  %v2768_v60 = vmul.f32 %v2580_v7, %v2315_v16  ;;  %v2772_v0 = vmul.f32 %v2580_v7, %v2319_v9 }
 0x23a   :  { %v2776_v57 = vmul.f32 %v2580_v7, %v3980_v63  ;;  %v2780_v62 = vmul.f32 %v2580_v7, %v3981_v30  ;;  %v2784_v12 = vmul.f32 %v2580_v7, %v3982_v54  ;;  %v2788_v16 = vmul.f32 %v2580_v7, %v3983_v19  ;;  %v3990_v63 = vld [vmem:[#allocation14_spill] sm:$0xff]  ;;  %v3992_v54 = vld [vmem:[#allocation16_spill] sm:$0xff]  ;;  %v3994_v19 = vld [vmem:[#allocation13_spill] sm:$0xff] }
 0x23b   :  { %v2792_v9 = vmul.f32 %v2580_v7, %v3966_v13  ;;  %v2796_v51 = vmul.f32 %v2580_v7, %v3986_v33  ;;  %v2800_v26 = vmul.f32 %v2580_v7, %v3988_v58  ;;  %v2809_v30 = vmul.f32 %v2580_v7, %v3990_v63 }
 0x23c   :  { %3984 = vst [vmem:[#allocation6_spill] sm:$0xff] %v2788_v16  ;;  %v2813_v13 = vmul.f32 %v2580_v7, %v3992_v54  ;;  %v2817_v33 = vmul.f32 %v2580_v7, %v3994_v19  ;;  %v3998_v16 = vld [vmem:[#allocation18_spill] sm:$0xff] }
 0x23d   :  { %3985 = vst [vmem:[#allocation3_spill] sm:$0xff] %v2792_v9  ;;  %3987 = vst [vmem:[#allocation9_spill] sm:$0xff] %v2796_v51  ;;  %v3996_v51 = vld [vmem:[#allocation10_spill] sm:$0xff]  ;;  %v2829_v63 = vmul.f32 %v2580_v7, %v3998_v16  ;;  %v2849_v16 = vadd.f32 %v2805_v3, %v2588_v49  ;;  %v2869_v49 = vadd.f32 %v2805_v3, %v2608_v25 }
 0x23e   :  { %3989 = vst [vmem:[#allocation19_spill] sm:$0xff] %v2800_v26  ;;  %3991 = vst [vmem:[#allocation20_spill] sm:$0xff] %v2809_v30  ;;  %v2821_v58 = vmul.f32 %v2580_v7, %v3996_v51  ;;  %v3997_v26 = vld [vmem:[#allocation12_spill] sm:$0xff]  ;;  %v3999_v30 = vld [vmem:[#allocation23_spill] sm:$0xff]  ;;  %v2889_v25 = vadd.f32 %v2805_v3, %v2628_v42  ;;  %v2909_v42 = vadd.f32 %v2805_v3, %v2648_v52 }
 0x23f   :  { %3993 = vst [vmem:[#allocation21_spill] sm:$0xff] %v2813_v13  ;;  %3995 = vst [vmem:[#allocation22_spill] sm:$0xff] %v2817_v33  ;;  %v2825_v9 = vmul.f32 %v2580_v7, %v3997_v26  ;;  %v2833_v54 = vmul.f32 %v2580_v7, %v3999_v30  ;;  %v4000_v13 = vld [vmem:[#allocation24_spill] sm:$0xff]  ;;  %v4001_v33 = vld [vmem:[#allocation25_spill] sm:$0xff]  ;;  %v2845_v26 = vadd.f32 %v2805_v3, %v2584_v10  ;;  %vm1212_vm4 = vcmp.gt.f32.partialorder %v2849_v16, 0.0 }
 0x240   :  { %v2837_v19 = vmul.f32 %v2580_v7, %v4000_v13  ;;  %v2841_v51 = vmul.f32 %v2580_v7, %v4001_v33  ;;  %v2853_v30 = vadd.f32 %v2805_v3, %v2592_v14  ;;  %v2857_v13 = vadd.f32 %v2805_v3, %v2596_v32 }
 0x241   :  { %v2861_v7 = vadd.f32 %v2805_v3, %v2600_v37  ;;  %v2865_v10 = vadd.f32 %v2805_v3, %v2604_v28  ;;  %v2873_v14 = vadd.f32 %v2805_v3, %v2612_v47  ;;  %v2877_v32 = vadd.f32 %v2805_v3, %v2616_v22 }
 0x242   :  { %v2881_v37 = vadd.f32 %v2805_v3, %v2620_v44  ;;  %v2885_v28 = vadd.f32 %v2805_v3, %v2624_v39  ;;  %v2893_v47 = vadd.f32 %v2805_v3, %v2632_v38  ;;  %v2897_v22 = vadd.f32 %v2805_v3, %v2636_v40 }
 0x243   :  { %v2901_v44 = vadd.f32 %v2805_v3, %v2640_v53  ;;  %v2905_v39 = vadd.f32 %v2805_v3, %v2644_v59  ;;  %v2913_v38 = vadd.f32 %v2805_v3, %v2652_v56  ;;  %v2917_v40 = vadd.f32 %v2805_v3, %v2656_v5  ;;  %v4007_v33 = vld [vmem:[#allocation6_spill] sm:$0xff] }
 0x244   :  { %v2921_v53 = vadd.f32 %v2805_v3, %v2660_v11  ;;  %v2925_v59 = vadd.f32 %v2805_v3, %v2664_v4  ;;  %v2929_v52 = vadd.f32 %v2805_v3, %v2668_v8  ;;  %v2933_v56 = vadd.f32 %v2805_v3, %v2672_v21 }
 0x245   :  { %v2937_v5 = vadd.f32 %v2805_v3, %v2676_v27  ;;  %v2941_v11 = vadd.f32 %v2805_v3, %v2680_v20  ;;  %v2945_v4 = vadd.f32 %v2805_v3, %v2684_v24  ;;  %v2949_v8 = vadd.f32 %v2805_v3, %v2688_v31 }
 0x246   :  { %v2953_v21 = vadd.f32 %v2805_v3, %v2692_v2  ;;  %v2957_v27 = vadd.f32 %v2805_v3, %v2696_v36  ;;  %v2961_v20 = vadd.f32 %v2805_v3, %v2700_v50  ;;  %v2965_v24 = vadd.f32 %v2805_v3, %v2704_v17 }
 0x247   :  { %v2969_v31 = vadd.f32 %v2805_v3, %v2708_v6  ;;  %v2973_v2 = vadd.f32 %v2805_v3, %v2712_v18  ;;  %v2977_v36 = vadd.f32 %v2805_v3, %v2716_v23  ;;  %v2981_v50 = vadd.f32 %v2805_v3, %v2720_v15 }
 0x248   :  { %v2985_v17 = vadd.f32 %v2805_v3, %v2724_v55  ;;  %v2989_v6 = vadd.f32 %v2805_v3, %v2728_v45  ;;  %v2993_v18 = vadd.f32 %v2805_v3, %v2732_v1  ;;  %v2997_v23 = vadd.f32 %v2805_v3, %v2736_v29 }
 0x249   :  { %v3001_v15 = vadd.f32 %v2805_v3, %v2740_v61  ;;  %v3005_v55 = vadd.f32 %v2805_v3, %v2744_v34  ;;  %v3009_v45 = vadd.f32 %v2805_v3, %v2748_v35  ;;  %v3013_v1 = vadd.f32 %v2805_v3, %v2752_v43 }
 0x24a   :  { %v3017_v29 = vadd.f32 %v2805_v3, %v2756_v48  ;;  %v3021_v61 = vadd.f32 %v2805_v3, %v2760_v41  ;;  %v3025_v34 = vadd.f32 %v2805_v3, %v2764_v46  ;;  %v3029_v35 = vadd.f32 %v2805_v3, %v2768_v60 }
 0x24b   :  { %v3033_v43 = vadd.f32 %v2805_v3, %v2772_v0  ;;  %v3037_v48 = vadd.f32 %v2805_v3, %v2776_v57  ;;  %v3041_v41 = vadd.f32 %v2805_v3, %v2780_v62  ;;  %v3045_v46 = vadd.f32 %v2805_v3, %v2784_v12 }
 0x24c   :  { %4002 = vst [vmem:[#allocation2_spill] sm:$0xff] %v3029_v35  ;;  %v3049_v60 = vadd.f32 %v2805_v3, %v4007_v33  ;;  %v4009_v35 = vld [vmem:[#allocation3_spill] sm:$0xff]  ;;  %vm1211_vm3 = vcmp.gt.f32.partialorder %v2845_v26, 0.0  ;;  %vm1213_vm5 = vcmp.gt.f32.partialorder %v2853_v30, 0.0  ;;  %vm1214_vm6 = vcmp.gt.f32.partialorder %v2857_v13, 0.0 }
 0x24d   :  { %4003 = vst [vmem:[#allocation4_spill] sm:$0xff] %v3033_v43  ;;  %4004 = vst [vmem:[#allocation5_spill] sm:$0xff] %v3037_v48  ;;  %v3053_v0 = vadd.f32 %v2805_v3, %v4009_v35  ;;  %v4010_v43 = vld [vmem:[#allocation9_spill] sm:$0xff]  ;;  %v4012_v48 = vld [vmem:[#allocation19_spill] sm:$0xff]  ;;  %vm1215_vm7 = vcmp.gt.f32.partialorder %v2861_v7, 0.0  ;;  %vm1216_vm8 = vcmp.gt.f32.partialorder %v2865_v10, 0.0 }
 0x24e   :  { %4005 = vst [vmem:[#allocation8_spill] sm:$0xff] %v3041_v41  ;;  %4006 = vst [vmem:[#allocation11_spill] sm:$0xff] %v3045_v46  ;;  %v3057_v57 = vadd.f32 %v2805_v3, %v4010_v43  ;;  %v3061_v62 = vadd.f32 %v2805_v3, %v4012_v48  ;;  %v4014_v41 = vld [vmem:[#allocation20_spill] sm:$0xff]  ;;  %v4016_v46 = vld [vmem:[#allocation21_spill] sm:$0xff]  ;;  %v3077_v43 = vadd.f32 %v2805_v3, %v2821_v58  ;;  %vm1217_vm9 = vcmp.gt.f32.partialorder %v2869_v49, 0.0 }
 0x24f   :  { %4008 = vst [vmem:[#allocation7_spill] sm:$0xff] %v3049_v60  ;;  %v3065_v12 = vadd.f32 %v2805_v3, %v4014_v41  ;;  %v3069_v33 = vadd.f32 %v2805_v3, %v4016_v46  ;;  %v4018_v60 = vld [vmem:[#allocation22_spill] sm:$0xff]  ;;  %v3081_v48 = vadd.f32 %v2805_v3, %v2825_v9  ;;  %v3085_v41 = vadd.f32 %v2805_v3, %v2829_v63 }
 0x250   :  { %4011 = vst [vmem:[#allocation15_spill] sm:$0xff] %v3057_v57  ;;  %4013 = vst [vmem:[#allocation17_spill] sm:$0xff] %v3061_v62  ;;  %v3073_v35 = vadd.f32 %v2805_v3, %v4018_v60  ;;  %v3089_v46 = vadd.f32 %v2805_v3, %v2833_v54  ;;  %vm1218_vm10 = vcmp.gt.f32.partialorder %v2873_v14, 0.0  ;;  %vm1219_vm11 = vcmp.gt.f32.partialorder %v2877_v32, 0.0 }
 0x251   :  { %4015 = vst [vmem:[#allocation14_spill] sm:$0xff] %v3065_v12  ;;  %4017 = vst [vmem:[#allocation16_spill] sm:$0xff] %v3069_v33  ;;  %v3102_v9 = vadd.f32 %v2805_v3, %v2837_v19  ;;  %vm1220_vm12 = vcmp.gt.f32.partialorder %v2881_v37, 0.0  ;;  %v1275_v58 = vmul.f32 0.01, %v2845_v26  ;;  %v3110_v60 = vadd.f32 %v2805_v3, %v2841_v51 }
 0x252   :  { %4019 = vst [vmem:[#allocation13_spill] sm:$0xff] %v3073_v35  ;;  %4020 = vst [vmem:[#allocation10_spill] sm:$0xff] %v3077_v43  ;;  %v1276_v63 = vmul.f32 0.01, %v2849_v16  ;;  %v1277_v54 = vmul.f32 0.01, %v2853_v30 }
 0x253   :  { %4021 = vst [vmem:[#allocation12_spill] sm:$0xff] %v3081_v48  ;;  %4022 = vst [vmem:[#allocation18_spill] sm:$0xff] %v3085_v41  ;;  %vm1221_vm13 = vcmp.gt.f32.partialorder %v2885_v28, 0.0  ;;  %v1279_v41 = vmul.f32 0.01, %v2861_v7  ;;  %vm1222_vm14 = vcmp.gt.f32.partialorder %v2889_v25, 0.0  ;;  %v1339_v3 = vsel %vm1211_vm3, %v2845_v26, %v1275_v58 }
 0x254   :  { %4023 = vst [vmem:[#allocation23_spill] sm:$0xff] %v3089_v46  ;;  %4024 = vst [vmem:[#allocation24_spill] sm:$0xff] %v3102_v9  ;;  %v1278_v46 = vmul.f32 0.01, %v2857_v13  ;;  %v1280_v19 = vmul.f32 0.01, %v2865_v10  ;;  %v1340_v33 = vsel %vm1212_vm4, %v2849_v16, %v1276_v63  ;;  %v1341_v16 = vsel %vm1213_vm5, %v2853_v30, %v1277_v54 }
 0x255   :  { %4025 = vst [vmem:[#allocation25_spill] sm:$0xff] %v3110_v60  ;;  %v1281_v9 = vmul.f32 0.01, %v2869_v49  ;;  %v1282_v48 = vmul.f32 0.01, %v2873_v14  ;;  %vm1223_vm15 = vcmp.gt.f32.partialorder %v2893_v47, 0.0 }
 0x256   :  { %v1283_v43 = vmul.f32 0.01, %v2877_v32  ;;  %v1284_v51 = vmul.f32 0.01, %v2881_v37  ;;  %v3126_v60 = vmul.f32 0.01, %v2885_v28  ;;  %v1342_v30 = vsel %vm1214_vm6, %v2857_v13, %v1278_v46 }
 0x257   :  { %v3129_v35 = vmul.f32 0.01, %v2889_v25  ;;  %1403 = vst.msk [vmem:[%s3841_s4] sm:$0xff] %vm668_vm2, %v1339_v3  ;;  %vm1224_vm0 = vcmp.gt.f32.partialorder %v2897_v22, 0.0  ;;  %v3140_v26 = vmul.f32 0.01, %v2893_v47  ;;  %v1343_v13 = vsel %vm1215_vm7, %v2861_v7, %v1279_v41 }
 0x258   :  { %v3143_v58 = vmul.f32 0.01, %v2897_v22  ;;  %v3146_v12 = vmul.f32 0.01, %v2901_v44  ;;  %1404 = vst.msk [vmem:[%s3841_s4 + $0x8] sm:$0xff] %vm668_vm2, %v1340_v33  ;;  %vm1225_vm1 = vcmp.gt.f32.partialorder %v2901_v44, 0.0  ;;  %v1344_v7 = vsel %vm1216_vm8, %v2865_v10, %v1280_v19 }
 0x259   :  { %v3157_v63 = vmul.f32 0.01, %v2905_v39  ;;  %v3160_v3 = vmul.f32 0.01, %v2909_v42  ;;  %v3163_v62 = vmul.f32 0.01, %v2913_v38  ;;  %v1345_v10 = vsel %vm1217_vm9, %v2869_v49, %v1281_v9 }
 0x25a   :  { %1405 = vst.msk [vmem:[%s3841_s4 + $0x10] sm:$0xff] %vm668_vm2, %v1341_v16  ;;  %vm1226_vm3 = vcmp.gt.f32.partialorder %v2905_v39, 0.0  ;;  %v3174_v33 = vmul.f32 0.01, %v2917_v40  ;;  %v3177_v54 = vmul.f32 0.01, %v2921_v53  ;;  %v1346_v49 = vsel %vm1218_vm10, %v2873_v14, %v1282_v48 }
 0x25b   :  { %4026 = vst [vmem:[#allocation6_spill] sm:$0xff] %v3160_v3  ;;  %v3180_v3 = vmul.f32 0.01, %v2925_v59  ;;  %1406 = vst.msk [vmem:[%s3841_s4 + $0x18] sm:$0xff] %vm668_vm2, %v1342_v30  ;;  %vm1227_vm4 = vcmp.gt.f32.partialorder %v2909_v42, 0.0  ;;  %vm1228_vm5 = vcmp.gt.f32.partialorder %v2913_v38, 0.0  ;;  %v1347_v14 = vsel %vm1219_vm11, %v2877_v32, %v1283_v43 }
 0x25c   :  { %4027 = vst [vmem:[#allocation3_spill] sm:$0xff] %v3177_v54  ;;  %v3191_v46 = vmul.f32 0.01, %v2929_v52  ;;  %v3194_v16 = vmul.f32 0.01, %v2933_v56  ;;  %1407 = vst.msk [vmem:[%s3841_s4 + $0x20] sm:$0xff] %vm668_vm2, %v1343_v13  ;;  %v1348_v43 = vsel %vm1220_vm12, %v2881_v37, %v1284_v51  ;;  %v1349_v51 = vsel %vm1221_vm13, %v2885_v28, %v3126_v60 }
 0x25d   :  { %v3197_v54 = vmul.f32 0.01, %v2937_v5  ;;  %v3208_v41 = vmul.f32 0.01, %v2941_v11  ;;  %v3211_v30 = vmul.f32 0.01, %v2945_v4  ;;  %v1350_v60 = vsel %vm1222_vm14, %v2889_v25, %v3129_v35 }
 0x25e   :  { %4028 = vst [vmem:[#allocation9_spill] sm:$0xff] %v3194_v16  ;;  %v3214_v16 = vmul.f32 0.01, %v2949_v8  ;;  %1408 = vst.msk [vmem:[%s3841_s4 + $0x28] sm:$0xff] %vm668_vm2, %v1344_v7  ;;  %vm1229_vm6 = vcmp.gt.f32.partialorder %v2917_v40, 0.0  ;;  %vm1233_vm10 = vcmp.gt.f32.partialorder %v2933_v56, 0.0  ;;  %v1351_v35 = vsel %vm1223_vm15, %v2893_v47, %v3140_v26 }
 0x25f   :  { %4029 = vst [vmem:[#allocation19_spill] sm:$0xff] %v3211_v30  ;;  %v3225_v19 = vmul.f32 0.01, %v2953_v21  ;;  %v3228_v13 = vmul.f32 0.01, %v2957_v27  ;;  %1409 = vst.msk [vmem:[%s3841_s4 + $0x30] sm:$0xff] %vm668_vm2, %v1345_v10 }
 0x260   :  { %v3231_v30 = vmul.f32 0.01, %v2961_v20  ;;  %v3244_v9 = vmul.f32 0.01, %v2965_v24  ;;  %v3247_v7 = vmul.f32 0.01, %v2969_v31 }
 0x261   :  { %1410 = vst.msk [vmem:[%s3841_s4 + $0x38] sm:$0xff] %vm668_vm2, %v1346_v49  ;;  %v3264_v48 = vmul.f32 0.01, %v2977_v36  ;;  %v3267_v10 = vmul.f32 0.01, %v2981_v50  ;;  %1411 = vst.msk [vmem:[%s3841_s4 + $0x40] sm:$0xff] %vm668_vm2, %v1347_v14 }
 0x262   :  { %4030 = vst [vmem:[#allocation20_spill] sm:$0xff] %v3231_v30  ;;  %v3250_v30 = vmul.f32 0.01, %v2973_v2  ;;  %v3270_v32 = vmul.f32 0.01, %v2985_v17  ;;  %vm1237_vm11 = vcmp.gt.f32.partialorder %v2949_v8, 0.0 }
 0x263   :  { %v3284_v49 = vmul.f32 0.01, %v2989_v6  ;;  %v3290_v37 = vmul.f32 0.01, %v2997_v23  ;;  %1412 = vst.msk [vmem:[%s3841_s4 + $0x48] sm:$0xff] %vm668_vm2, %v1348_v43  ;;  %vm1241_vm12 = vcmp.gt.f32.partialorder %v2965_v24, 0.0 }
 0x264   :  { %4031 = vst [vmem:[#allocation21_spill] sm:$0xff] %v3270_v32  ;;  %v3287_v32 = vmul.f32 0.01, %v2993_v18  ;;  %v3305_v14 = vmul.f32 0.01, %v3001_v15  ;;  %1413 = vst.msk [vmem:[%s3841_s4 + $0x50] sm:$0xff] %vm668_vm2, %v1349_v51 }
 0x265   :  { %4032 = vst [vmem:[#allocation22_spill] sm:$0xff] %v3290_v37  ;;  %v3308_v37 = vmul.f32 0.01, %v3005_v55  ;;  %v3311_v28 = vmul.f32 0.01, %v3009_v45  ;;  %vm1245_vm13 = vcmp.gt.f32.partialorder %v2981_v50, 0.0 }
 0x266   :  { %v3326_v43 = vmul.f32 0.01, %v3013_v1  ;;  %v3332_v25 = vmul.f32 0.01, %v3021_v61  ;;  %1414 = vst.msk [vmem:[%s3841_s4 + $0x58] sm:$0xff] %vm668_vm2, %v1350_v60  ;;  %vm1249_vm14 = vcmp.gt.f32.partialorder %v2997_v23, 0.0  ;;  %v1352_v60 = vsel %vm1224_vm0, %v2897_v22, %v3143_v58 }
 0x267   :  { %4033 = vst [vmem:[#allocation26_spill] sm:$0xff] %v3311_v28  ;;  %v3329_v28 = vmul.f32 0.01, %v3017_v29  ;;  %v3347_v51 = vmul.f32 0.01, %v3025_v34  ;;  %v4040_v47 = vld [vmem:[#allocation4_spill] sm:$0xff] }
 0x268   :  { %4034 = vst [vmem:[#allocation27_spill] sm:$0xff] %v3326_v43  ;;  %4036 = vst [vmem:[#allocation29_spill] sm:$0xff] %v3332_v25  ;;  %v4038_v25 = vld [vmem:[#allocation2_spill] sm:$0xff]  ;;  %v3353_v26 = vmul.f32 0.01, %v4040_v47  ;;  %vm1253_vm15 = vcmp.gt.f32.partialorder %v3013_v1, 0.0 }
 0x269   :  { %4035 = vst [vmem:[#allocation28_spill] sm:$0xff] %v3329_v28  ;;  %4037 = vst [vmem:[#allocation30_spill] sm:$0xff] %v3347_v51  ;;  %v3350_v28 = vmul.f32 0.01, %v4038_v25  ;;  %v4044_v51 = vld [vmem:[#allocation8_spill] sm:$0xff]  ;;  %v4046_v22 = vld [vmem:[#allocation11_spill] sm:$0xff] }
 0x26a   :  { %4041 = vst [vmem:[#allocation4_spill] sm:$0xff] %v3353_v26  ;;  %1415 = vst.msk [vmem:[%s3841_s4 + $0x60] sm:$0xff] %vm668_vm2, %v1351_v35  ;;  %v3371_v43 = vmul.f32 0.01, %v4044_v51  ;;  %v3374_v58 = vmul.f32 0.01, %v4046_v22  ;;  %v1353_v35 = vsel %vm1225_vm1, %v2901_v44, %v3146_v12  ;;  %v1354_v12 = vsel %vm1226_vm3, %v2905_v39, %v3157_v63 }
 0x26b   :  { %4039 = vst [vmem:[#allocation2_spill] sm:$0xff] %v3350_v28  ;;  %v4042_v28 = vld [vmem:[#allocation5_spill] sm:$0xff]  ;;  %1416 = vst.msk [vmem:[%s3841_s4 + $0x68] sm:$0xff] %vm668_vm2, %v1352_v60  ;;  %vm1257_vm0 = vcmp.gt.f32.partialorder %v4038_v25, 0.0  ;;  %v3395_v44 = vmul.f32 0.01, %v3057_v57 }
 0x26c   :  { %v3368_v26 = vmul.f32 0.01, %v4042_v28  ;;  %4045 = vst [vmem:[#allocation31_spill] sm:$0xff] %v3371_v43  ;;  %4047 = vst [vmem:[#allocation11_spill] sm:$0xff] %v3374_v58  ;;  %v4048_v43 = vld [vmem:[#allocation7_spill] sm:$0xff]  ;;  %vm1261_vm1 = vcmp.gt.f32.partialorder %v4046_v22, 0.0 }
 0x26d   :  { %v3389_v58 = vmul.f32 0.01, %v4048_v43  ;;  %4051 = vst [vmem:[#allocation33_spill] sm:$0xff] %v3395_v44  ;;  %1417 = vst.msk [vmem:[%s3841_s4 + $0x70] sm:$0xff] %vm668_vm2, %v1353_v35  ;;  %v4052_v60 = vld [vmem:[#allocation17_spill] sm:$0xff]  ;;  %v4056_v39 = vld [vmem:[#allocation16_spill] sm:$0xff] }
 0x26e   :  { %4043 = vst [vmem:[#allocation5_spill] sm:$0xff] %v3368_v26  ;;  %v3392_v26 = vmul.f32 0.01, %v3053_v0  ;;  %v3410_v44 = vmul.f32 0.01, %v4052_v60  ;;  %v4058_v51 = vld [vmem:[#allocation6_spill] sm:$0xff] }
 0x26f   :  { %4049 = vst [vmem:[#allocation7_spill] sm:$0xff] %v3389_v58  ;;  %v3416_v63 = vmul.f32 0.01, %v4056_v39  ;;  %v1355_v35 = vsel %vm1227_vm4, %v2909_v42, %v4058_v51  ;;  %1418 = vst.msk [vmem:[%s3841_s4 + $0x78] sm:$0xff] %vm668_vm2, %v1354_v12  ;;  %vm1265_vm3 = vcmp.gt.f32.partialorder %v4052_v60, 0.0  ;;  %v4063_v42 = vld [vmem:[#allocation12_spill] sm:$0xff]  ;;  %v1356_v12 = vsel %vm1228_vm5, %v2913_v38, %v3163_v62 }
 0x270   :  { %4050 = vst [vmem:[#allocation32_spill] sm:$0xff] %v3392_v26  ;;  %4053 = vst [vmem:[#allocation17_spill] sm:$0xff] %v3410_v44  ;;  %v4054_v26 = vld [vmem:[#allocation14_spill] sm:$0xff]  ;;  %v3437_v51 = vmul.f32 0.01, %v4063_v42  ;;  %v4068_v38 = vld [vmem:[#allocation24_spill] sm:$0xff] }
 0x271   :  { %v3413_v58 = vmul.f32 0.01, %v4054_v26  ;;  %4057 = vst [vmem:[#allocation16_spill] sm:$0xff] %v3416_v63  ;;  %v4061_v44 = vld [vmem:[#allocation10_spill] sm:$0xff]  ;;  %1419 = vst.msk [vmem:[%s3841_s4 + $0x80] sm:$0xff] %vm668_vm2, %v1355_v35  ;;  %v1357_v35 = vsel %vm1229_vm6, %v2917_v40, %v3174_v33  ;;  %vm1273_vm5 = vcmp.gt.f32.partialorder %v4068_v38, 0.0 }
 0x272   :  { %v3434_v57 = vmul.f32 0.01, %v4061_v44  ;;  %4064 = vst [vmem:[#allocation12_spill] sm:$0xff] %v3437_v51  ;;  %vm1269_vm4 = vcmp.gt.f32.partialorder %v4061_v44, 0.0  ;;  %v3458_v62 = vmul.f32 0.01, %v4068_v38 }
 0x273   :  { %4055 = vst [vmem:[#allocation14_spill] sm:$0xff] %v3413_v58  ;;  %v4059_v58 = vld [vmem:[#allocation13_spill] sm:$0xff]  ;;  %1420 = vst.msk [vmem:[%s3841_s4 + $0x88] sm:$0xff] %vm668_vm2, %v1356_v12  ;;  %vm4072_vm8 = vcmp.gt.f32.partialorder %v2921_v53, 0.0  ;;  %vm4073_vm6 = vcmp.gt.f32.partialorder %v2925_v59, 0.0  ;;  %vm4074_vm7 = vcmp.gt.f32.partialorder %v2929_v52, 0.0 }
 0x274   :  { %v3431_v63 = vmul.f32 0.01, %v4059_v58  ;;  %4062 = vst [vmem:[#allocation10_spill] sm:$0xff] %v3434_v57  ;;  %v4065_v58 = vld [vmem:[#allocation18_spill] sm:$0xff]  ;;  %v4066_v57 = vld [vmem:[#allocation23_spill] sm:$0xff]  ;;  %4069 = vst [vmem:[#allocation24_spill] sm:$0xff] %v3458_v62  ;;  %v1359_v40 = vsel %vm4073_vm6, %v2925_v59, %v3180_v3  ;;  %v1360_v33 = vsel %vm4074_vm7, %v2929_v52, %v3191_v46 }
 0x275   :  { %v3452_v51 = vmul.f32 0.01, %v4065_v58  ;;  %v4070_v58 = vld [vmem:[#allocation25_spill] sm:$0xff]  ;;  %1421 = vst.msk [vmem:[%s3841_s4 + $0x90] sm:$0xff] %vm668_vm2, %v1357_v35  ;;  %vm4077_vm6 = vcmp.gt.f32.partialorder %v2941_v11, 0.0  ;;  %v4078_v3 = vld [vmem:[#allocation19_spill] sm:$0xff] }
 0x276   :  { %4060 = vst [vmem:[#allocation6_spill] sm:$0xff] %v3431_v63  ;;  %v3455_v63 = vmul.f32 0.01, %v4066_v57  ;;  %vm1274_vm9 = vcmp.gt.f32.partialorder %v4070_v58, 0.0  ;;  %v3471_v57 = vmul.f32 0.01, %v4070_v58  ;;  %v1363_v52 = vsel %vm4077_vm6, %v2941_v11, %v3208_v41 }
 0x277   :  { %v4075_v12 = vld [vmem:[#allocation9_spill] sm:$0xff]  ;;  %vm4079_vm7 = vcmp.gt.f32.partialorder %v2945_v4, 0.0  ;;  %1423 = vst.msk [vmem:[%s3841_s4 + $0xa0] sm:$0xff] %vm668_vm2, %v1359_v40  ;;  %1424 = vst.msk [vmem:[%s3841_s4 + $0xa8] sm:$0xff] %vm668_vm2, %v1360_v33  ;;  %vm4083_vm6 = vcmp.gt.f32.partialorder %v2961_v20, 0.0  ;;  %v4094_v41 = vld [vmem:[#allocation26_spill] sm:$0xff] }
 0x278   :  { %4067 = vst [vmem:[#allocation34_spill] sm:$0xff] %v3455_v63  ;;  %v4071_v63 = vld [vmem:[#allocation3_spill] sm:$0xff]  ;;  %v1364_v46 = vsel %vm4079_vm7, %v2945_v4, %v4078_v3  ;;  %v4082_v4 = vld [vmem:[#allocation20_spill] sm:$0xff]  ;;  %1427 = vst.msk [vmem:[%s3841_s4 + $0xc0] sm:$0xff] %vm668_vm2, %v1363_v52  ;;  %vm4085_vm7 = vcmp.gt.f32.partialorder %v2973_v2, 0.0 }
 0x279   :  { %v1358_v62 = vsel %vm4072_vm8, %v2921_v53, %v4071_v63  ;;  %v1361_v53 = vsel %vm1233_vm10, %v2933_v56, %v4075_v12  ;;  %vm4076_vm8 = vcmp.gt.f32.partialorder %v2937_v5, 0.0  ;;  %v1365_v56 = vsel %vm1237_vm11, %v2949_v8, %v3214_v16  ;;  %1428 = vst.msk [vmem:[%s3841_s4 + $0xc8] sm:$0xff] %vm668_vm2, %v1364_v46  ;;  %v4114_v63 = vld [vmem:[#allocation32_spill] sm:$0xff]  ;;  %v4116_v35 = vld [vmem:[#allocation33_spill] sm:$0xff]  ;;  %v4117_v40 = vld [vmem:[#allocation15_spill] sm:$0xff] }
 0x27a   :  { %v1362_v59 = vsel %vm4076_vm8, %v2937_v5, %v3197_v54  ;;  %1422 = vst.msk [vmem:[%s3841_s4 + $0x98] sm:$0xff] %vm668_vm2, %v1358_v62  ;;  %vm4080_vm10 = vcmp.gt.f32.partialorder %v2953_v21, 0.0  ;;  %vm4081_vm8 = vcmp.gt.f32.partialorder %v2957_v27, 0.0  ;;  %v1368_v54 = vsel %vm4083_vm6, %v2961_v20, %v4082_v4  ;;  %1425 = vst.msk [vmem:[%s3841_s4 + $0xb0] sm:$0xff] %vm668_vm2, %v1361_v53  ;;  %v4122_v53 = vld [vmem:[#allocation16_spill] sm:$0xff]  ;;  %v4125_v3 = vld [vmem:[#allocation13_spill] sm:$0xff] }
 0x27b   :  { %v1366_v5 = vsel %vm4080_vm10, %v2953_v21, %v3225_v19  ;;  %v1367_v11 = vsel %vm4081_vm8, %v2957_v27, %v3228_v13  ;;  %1426 = vst.msk [vmem:[%s3841_s4 + $0xb8] sm:$0xff] %vm668_vm2, %v1362_v59  ;;  %v1369_v8 = vsel %vm1241_vm12, %v2965_v24, %v3244_v9  ;;  %vm4084_vm11 = vcmp.gt.f32.partialorder %v2969_v31, 0.0  ;;  %1429 = vst.msk [vmem:[%s3841_s4 + $0xd0] sm:$0xff] %vm668_vm2, %v1365_v56  ;;  %v4099_v19 = vld [vmem:[#allocation29_spill] sm:$0xff]  ;;  %v4101_v9 = vld [vmem:[#allocation30_spill] sm:$0xff] }
 0x27c   :  { %v1370_v21 = vsel %vm4084_vm11, %v2969_v31, %v3247_v7  ;;  %v1371_v27 = vsel %vm4085_vm7, %v2973_v2, %v3250_v30  ;;  %vm4086_vm10 = vcmp.gt.f32.partialorder %v2977_v36, 0.0  ;;  %1430 = vst.msk [vmem:[%s3841_s4 + $0xd8] sm:$0xff] %vm668_vm2, %v1366_v5  ;;  %1431 = vst.msk [vmem:[%s3841_s4 + $0xe0] sm:$0xff] %vm668_vm2, %v1367_v11  ;;  %v1373_v24 = vsel %vm1245_vm13, %v2981_v50, %v3267_v10  ;;  %v4087_v31 = vld [vmem:[#allocation21_spill] sm:$0xff]  ;;  %v4091_v50 = vld [vmem:[#allocation22_spill] sm:$0xff] }
 0x27d   :  { %v1372_v20 = vsel %vm4086_vm10, %v2977_v36, %v3264_v48  ;;  %1432 = vst.msk [vmem:[%s3841_s4 + $0xe8] sm:$0xff] %vm668_vm2, %v1368_v54  ;;  %vm4088_vm12 = vcmp.gt.f32.partialorder %v2985_v17, 0.0  ;;  %vm4089_vm8 = vcmp.gt.f32.partialorder %v2989_v6, 0.0  ;;  %vm4090_vm6 = vcmp.gt.f32.partialorder %v2993_v18, 0.0  ;;  %1433 = vst.msk [vmem:[%s3841_s4 + $0xf0] sm:$0xff] %vm668_vm2, %v1369_v8  ;;  %v4106_v48 = vld [vmem:[#allocation5_spill] sm:$0xff] }
 0x27e   :  { %v1374_v2 = vsel %vm4088_vm12, %v2985_v17, %v4087_v31  ;;  %v1375_v36 = vsel %vm4089_vm8, %v2989_v6, %v3284_v49  ;;  %v1376_v16 = vsel %vm4090_vm6, %v2993_v18, %v3287_v32  ;;  %1434 = vst.msk [vmem:[%s3841_s4 + $0xf8] sm:$0xff] %vm668_vm2, %v1370_v21  ;;  %1435 = vst.msk [vmem:[%s3841_s4 + $0x100] sm:$0xff] %vm668_vm2, %v1371_v27  ;;  %vm4092_vm13 = vcmp.gt.f32.partialorder %v3001_v15, 0.0  ;;  %v4108_v32 = vld [vmem:[#allocation31_spill] sm:$0xff]  ;;  %v4109_v49 = vld [vmem:[#allocation8_spill] sm:$0xff] }
 0x27f   :  { %1436 = vst.msk [vmem:[%s3841_s4 + $0x108] sm:$0xff] %vm668_vm2, %v1372_v20  ;;  %v1377_v17 = vsel %vm1249_vm14, %v2997_v23, %v4091_v50  ;;  %v1378_v6 = vsel %vm4092_vm13, %v3001_v15, %v3305_v14  ;;  %vm4093_vm11 = vcmp.gt.f32.partialorder %v3005_v55, 0.0  ;;  %vm4095_vm7 = vcmp.gt.f32.partialorder %v3009_v45, 0.0  ;;  %1437 = vst.msk [vmem:[%s3841_s4 + $0x110] sm:$0xff] %vm668_vm2, %v1373_v24  ;;  %v4096_v23 = vld [vmem:[#allocation27_spill] sm:$0xff]  ;;  %v4124_v52 = vld [vmem:[#allocation6_spill] sm:$0xff] }
 0x280   :  { %v1379_v18 = vsel %vm4093_vm11, %v3005_v55, %v3308_v37  ;;  %v1380_v30 = vsel %vm4095_vm7, %v3009_v45, %v4094_v41  ;;  %1438 = vst.msk [vmem:[%s3841_s4 + $0x118] sm:$0xff] %vm668_vm2, %v1374_v2  ;;  %1439 = vst.msk [vmem:[%s3841_s4 + $0x120] sm:$0xff] %vm668_vm2, %v1375_v36  ;;  %v1381_v15 = vsel %vm1253_vm15, %v3013_v1, %v4096_v23  ;;  %v4097_v55 = vld [vmem:[#allocation28_spill] sm:$0xff]  ;;  %vm4098_vm14 = vcmp.gt.f32.partialorder %v3017_v29, 0.0  ;;  %v4103_v1 = vld [vmem:[#allocation2_spill] sm:$0xff] }
 0x281   :  { %1440 = vst.msk [vmem:[%s3841_s4 + $0x128] sm:$0xff] %vm668_vm2, %v1376_v16  ;;  %v1382_v45 = vsel %vm4098_vm14, %v3017_v29, %v4097_v55  ;;  %vm4100_vm10 = vcmp.gt.f32.partialorder %v3021_v61, 0.0  ;;  %vm4102_vm12 = vcmp.gt.f32.partialorder %v3025_v34, 0.0  ;;  %1441 = vst.msk [vmem:[%s3841_s4 + $0x130] sm:$0xff] %vm668_vm2, %v1377_v17  ;;  %v1385_v29 = vsel %vm1257_vm0, %v4038_v25, %v4103_v1  ;;  %v4111_v14 = vld [vmem:[#allocation11_spill] sm:$0xff]  ;;  %v4130_v5 = vld [vmem:[#allocation18_spill] sm:$0xff] }
 0x282   :  { %v1383_v13 = vsel %vm4100_vm10, %v3021_v61, %v4099_v19  ;;  %v1384_v7 = vsel %vm4102_vm12, %v3025_v34, %v4101_v9  ;;  %1442 = vst.msk [vmem:[%s3841_s4 + $0x138] sm:$0xff] %vm668_vm2, %v1378_v6  ;;  %1443 = vst.msk [vmem:[%s3841_s4 + $0x140] sm:$0xff] %vm668_vm2, %v1379_v18  ;;  %v4104_v61 = vld [vmem:[#allocation4_spill] sm:$0xff]  ;;  %vm4105_vm15 = vcmp.gt.f32.partialorder %v4040_v47, 0.0  ;;  %vm4107_vm8 = vcmp.gt.f32.partialorder %v4042_v28, 0.0  ;;  %v4112_v25 = vld [vmem:[#allocation7_spill] sm:$0xff] }
 0x283   :  { %1444 = vst.msk [vmem:[%s3841_s4 + $0x148] sm:$0xff] %vm668_vm2, %v1380_v30  ;;  %v1386_v34 = vsel %vm4105_vm15, %v4040_v47, %v4104_v61  ;;  %v1387_v10 = vsel %vm4107_vm8, %v4042_v28, %v4106_v48  ;;  %vm4110_vm6 = vcmp.gt.f32.partialorder %v4109_v49, 0.0  ;;  %1445 = vst.msk [vmem:[%s3841_s4 + $0x150] sm:$0xff] %vm668_vm2, %v1381_v15  ;;  %v1389_v28 = vsel %vm1261_vm1, %v4046_v22, %v4111_v14  ;;  %v4120_v22 = vld [vmem:[#allocation14_spill] sm:$0xff]  ;;  %v4133_v54 = vld [vmem:[#allocation23_spill] sm:$0xff] }
 0x284   :  { %v1388_v37 = vsel %vm4110_vm6, %v4109_v49, %v4108_v32  ;;  %1446 = vst.msk [vmem:[%s3841_s4 + $0x158] sm:$0xff] %vm668_vm2, %v1382_v45  ;;  %1447 = vst.msk [vmem:[%s3841_s4 + $0x160] sm:$0xff] %vm668_vm2, %v1383_v13  ;;  %vm4113_vm0 = vcmp.gt.f32.partialorder %v4048_v43, 0.0  ;;  %vm4115_vm13 = vcmp.gt.f32.partialorder %v3053_v0, 0.0  ;;  %vm4118_vm11 = vcmp.gt.f32.partialorder %v4117_v40, 0.0  ;;  %v4132_v4 = vld [vmem:[#allocation34_spill] sm:$0xff] }
 0x285   :  { %1448 = vst.msk [vmem:[%s3841_s4 + $0x168] sm:$0xff] %vm668_vm2, %v1384_v7  ;;  %v1390_v47 = vsel %vm4113_vm0, %v4048_v43, %v4112_v25  ;;  %v1391_v62 = vsel %vm4115_vm13, %v3053_v0, %v4114_v63  ;;  %v1392_v33 = vsel %vm4118_vm11, %v4117_v40, %v4116_v35  ;;  %1449 = vst.msk [vmem:[%s3841_s4 + $0x170] sm:$0xff] %vm668_vm2, %v1385_v29  ;;  %v4119_v0 = vld [vmem:[#allocation17_spill] sm:$0xff]  ;;  %vm4121_vm1 = vcmp.gt.f32.partialorder %v4054_v26, 0.0 }
 0x286   :  { %1450 = vst.msk [vmem:[%s3841_s4 + $0x178] sm:$0xff] %vm668_vm2, %v1386_v34  ;;  %1451 = vst.msk [vmem:[%s3841_s4 + $0x180] sm:$0xff] %vm668_vm2, %v1387_v10  ;;  %v1393_v43 = vsel %vm1265_vm3, %v4052_v60, %v4119_v0  ;;  %v1394_v12 = vsel %vm4121_vm1, %v4054_v26, %v4120_v22  ;;  %vm4123_vm7 = vcmp.gt.f32.partialorder %v4056_v39, 0.0  ;;  %vm4126_vm14 = vcmp.gt.f32.partialorder %v4125_v3, 0.0  ;;  %v4127_v26 = vld [vmem:[#allocation10_spill] sm:$0xff] }
 0x287   :  { %1452 = vst.msk [vmem:[%s3841_s4 + $0x188] sm:$0xff] %vm668_vm2, %v1388_v37  ;;  %v1395_v59 = vsel %vm4123_vm7, %v4056_v39, %v4122_v53  ;;  %v1396_v46 = vsel %vm4126_vm14, %v4125_v3, %v4124_v52  ;;  %1453 = vst.msk [vmem:[%s3841_s4 + $0x190] sm:$0xff] %vm668_vm2, %v1389_v28  ;;  %v1397_v60 = vsel %vm1269_vm4, %v4061_v44, %v4127_v26  ;;  %v4128_v39 = vld [vmem:[#allocation12_spill] sm:$0xff]  ;;  %vm4129_vm3 = vcmp.gt.f32.partialorder %v4063_v42, 0.0 }
 0x288   :  { %1454 = vst.msk [vmem:[%s3841_s4 + $0x198] sm:$0xff] %vm668_vm2, %v1390_v47  ;;  %1455 = vst.msk [vmem:[%s3841_s4 + $0x1a0] sm:$0xff] %vm668_vm2, %v1391_v62  ;;  %v1398_v56 = vsel %vm4129_vm3, %v4063_v42, %v4128_v39  ;;  %vm4131_vm10 = vcmp.gt.f32.partialorder %v4130_v5, 0.0  ;;  %vm4134_vm12 = vcmp.gt.f32.partialorder %v4133_v54, 0.0  ;;  %v4135_v44 = vld [vmem:[#allocation24_spill] sm:$0xff] }
 0x289   :  { %1456 = vst.msk [vmem:[%s3841_s4 + $0x1a8] sm:$0xff] %vm668_vm2, %v1392_v33  ;;  %v1399_v11 = vsel %vm4131_vm10, %v4130_v5, %v3452_v51  ;;  %v1400_v8 = vsel %vm4134_vm12, %v4133_v54, %v4132_v4  ;;  %1457 = vst.msk [vmem:[%s3841_s4 + $0x1b0] sm:$0xff] %vm668_vm2, %v1393_v43  ;;  %v1401_v42 = vsel %vm1273_vm5, %v4068_v38, %v4135_v44 }
 0x28a   :  { %1458 = vst.msk [vmem:[%s3841_s4 + $0x1b8] sm:$0xff] %vm668_vm2, %v1394_v12  ;;  %1459 = vst.msk [vmem:[%s3841_s4 + $0x1c0] sm:$0xff] %vm668_vm2, %v1395_v59  ;;  %v1402_v51 = vsel %vm1274_vm9, %v4070_v58, %v3471_v57 }
 0x28b   :  { %1460 = vst.msk [vmem:[%s3841_s4 + $0x1c8] sm:$0xff] %vm668_vm2, %v1396_v46  ;;  %1461 = vst.msk [vmem:[%s3841_s4 + $0x1d0] sm:$0xff] %vm668_vm2, %v1397_v60 }
 0x28c   :  { %1462 = vst.msk [vmem:[%s3841_s4 + $0x1d8] sm:$0xff] %vm668_vm2, %v1398_v56  ;;  %1463 = vst.msk [vmem:[%s3841_s4 + $0x1e0] sm:$0xff] %vm668_vm2, %v1399_v11 }
 0x28d   :  { %1464 = vst.msk [vmem:[%s3841_s4 + $0x1e8] sm:$0xff] %vm668_vm2, %v1400_v8  ;;  %1465 = vst.msk [vmem:[%s3841_s4 + $0x1f0] sm:$0xff] %vm668_vm2, %v1401_v42 }
 0x28e   :  { %1466 = vst.msk [vmem:[%s3841_s4 + $0x1f8] sm:$0xff] %vm668_vm2, %v1402_v51 }

// kernel: simple_unet_forward.11
= control target key start
LH: loop header
LB: loop body
LE: loop exit
PB: predicated region body
PF: predicated region fallthrough
CT: control target
= control target key end

     0   :  { %v615_v0 = vmov 0   ;;  %vm178_vm0 = vcmask 130048   ;;  %vm951_vm1 = vcmask 261120   ;;  %vm952_vm14 = vcmask 261120   ;;  %s946_s1 = inlined_call_operand.vmem [shape: bf16[144,32], index: 1, kind: input, shape index: {}]   ;;  %s947_s0 = inlined_call_operand.vmem [shape: bf16[128,144], index: 0, kind: input, shape index: {}]   ;;  %s948_s2 = inlined_call_operand.vmem [shape: f32[1,32], index: 2, kind: input, shape index: {}]   ;;  %s949_s3 = inlined_call_operand.vmem [shape: f32[1,32], index: 3, kind: input, shape index: {}]   ;;  %s950_s4 = inlined_call_operand.vmem [shape: f32[128,32], index: 4, kind: output, shape index: {}]  }
   0x1   :  { %203 = vmatprep.subr.bf16.mxu0 %v615_v0  ;;  %v580_v1 = vld [vmem:[%s946_s1] sm:$0xff]   ;;  %561 = vmatprep.subr.bf16.mxu1 %v615_v0  ;;  %v581_v2 = vld [vmem:[%s946_s1 + $0x8] sm:$0xff]   ;;  %v582_v3 = vld [vmem:[%s946_s1 + $0x10] sm:$0xff]  }
   0x2   :  { %204 = vmatpush1.bf16.msra.mxu0 %v580_v1  ;;  %570 = vmatpush1.bf16.msra.mxu1 %v580_v1  ;;  %v583_v4 = vld [vmem:[%s946_s1 + $0x18] sm:$0xff]   ;;  %v591_v5 = vld [vmem:[%s947_s0 + $0x4] ss:$8 sps:$4 sm:$0xff]   ;;  %v586_v9 = vld [vmem:[%s946_s1 + $0x30] sm:$0xff]  }
   0x3   :  { %205 = vmatprep.subr.bf16.mxu0 %v615_v0  ;;  %562 = vmatprep.subr.bf16.mxu1 %v615_v0  ;;  %v597_v6 = vld [vmem:[%s947_s0 + $0x44] ss:$8 sps:$4 sm:$0xff]   ;;  %v587_v10 = vld [vmem:[%s946_s1 + $0x38] sm:$0xff]   ;;  %v589_v12 = vld [vmem:[%s947_s0] ss:$8 sps:$4 sm:$0xff]  }
   0x4   :  { %552 = vmatprep.mubr.msk.bf16.mxu0 %vm178_vm0, %v591_v5  ;;  %v584_v7 = vld [vmem:[%s946_s1 + $0x20] sm:$0xff]   ;;  %556 = vmatprep.mubr.msk.bf16.mxu1 %vm178_vm0, %v597_v6  ;;  %v585_v8 = vld [vmem:[%s946_s1 + $0x28] sm:$0xff]   ;;  %v592_v14 = vld [vmem:[%s947_s0 + $0x14] ss:$8 sps:$4 sm:$0xff]  }
   0x5   :  { %v588_v11 = vld [vmem:[%s946_s1 + $0x40] sm:$0xff]   ;;  %v601_v15 = vld [vmem:[%s947_s0 + $0x54] ss:$8 sps:$4 sm:$0xff]   ;;  %v594_v16 = vld [vmem:[%s947_s0 + $0x10] ss:$8 sps:$4 sm:$0xff]  }
   0x6   :  { %206 = vmatpush1.bf16.msra.mxu0 %v581_v2  ;;  %571 = vmatpush1.bf16.msra.mxu1 %v581_v2  ;;  %v595_v13 = vld [vmem:[%s947_s0 + $0x40] ss:$8 sps:$4 sm:$0xff]   ;;  %v603_v17 = vld [vmem:[%s947_s0 + $0x50] ss:$8 sps:$4 sm:$0xff]   ;;  %v598_v18 = vld [vmem:[%s947_s0 + $0x24] ss:$8 sps:$4 sm:$0xff]  }
   0x7   :  { %207 = vmatprep.subr.bf16.mxu0 %v615_v0  ;;  %563 = vmatprep.subr.bf16.mxu1 %v615_v0  ;;  %v607_v19 = vld [vmem:[%s947_s0 + $0x64] ss:$8 sps:$4 sm:$0xff]   ;;  %v600_v20 = vld [vmem:[%s947_s0 + $0x20] ss:$8 sps:$4 sm:$0xff]   ;;  %v604_v22 = vld [vmem:[%s947_s0 + $0x34] ss:$8 sps:$4 sm:$0xff]  }
   0x8   :  { %v609_v21 = vld [vmem:[%s947_s0 + $0x60] ss:$8 sps:$4 sm:$0xff]   ;;  %v610_v23 = vld [vmem:[%s947_s0 + $0x74] ss:$8 sps:$4 sm:$0xff]   ;;  %v606_v24 = vld [vmem:[%s947_s0 + $0x30] ss:$8 sps:$4 sm:$0xff]  }
   0x9   :  { %v612_v25 = vld [vmem:[%s947_s0 + $0x70] ss:$8 sps:$4 sm:$0xff]  }
   0xa   :  { %208 = vmatpush1.bf16.msra.mxu0 %v582_v3  ;;  %572 = vmatpush1.bf16.msra.mxu1 %v582_v3 }
   0xb   :  { %209 = vmatprep.subr.bf16.mxu0 %v615_v0  ;;  %564 = vmatprep.subr.bf16.mxu1 %v615_v0 }
   0xe   :  { %210 = vmatpush1.bf16.msra.mxu0 %v583_v4  ;;  %573 = vmatpush1.bf16.msra.mxu1 %v583_v4 }
   0xf   :  { %211 = vmatprep.subr.bf16.mxu0 %v615_v0  ;;  %565 = vmatprep.subr.bf16.mxu1 %v615_v0 }
  0x12   :  { %212 = vmatpush1.bf16.msra.mxu0 %v584_v7  ;;  %574 = vmatpush1.bf16.msra.mxu1 %v584_v7 }
  0x13   :  { %213 = vmatprep.subr.bf16.mxu0 %v615_v0  ;;  %566 = vmatprep.subr.bf16.mxu1 %v615_v0 }
  0x16   :  { %214 = vmatpush1.bf16.msra.mxu0 %v585_v8  ;;  %575 = vmatpush1.bf16.msra.mxu1 %v585_v8 }
  0x17   :  { %215 = vmatprep.subr.bf16.mxu0 %v615_v0  ;;  %567 = vmatprep.subr.bf16.mxu1 %v615_v0 }
  0x1a   :  { %216 = vmatpush1.bf16.msra.mxu0 %v586_v9  ;;  %576 = vmatpush1.bf16.msra.mxu1 %v586_v9 }
  0x1b   :  { %217 = vmatprep.subr.bf16.mxu0 %v615_v0  ;;  %568 = vmatprep.subr.bf16.mxu1 %v615_v0 }
  0x1e   :  { %218 = vmatpush1.bf16.msra.mxu0 %v587_v10  ;;  %577 = vmatpush1.bf16.msra.mxu1 %v587_v10 }
  0x1f   :  { %219 = vmatprep.subr.bf16.mxu0 %v615_v0  ;;  %569 = vmatprep.subr.bf16.mxu1 %v615_v0 }
  0x22   :  { %220 = vmatpush1.bf16.msra.mxu0 %v588_v11  ;;  %578 = vmatpush1.bf16.msra.mxu1 %v588_v11 }
  0x25   :  { %236 = vmatmul.mubr.bf16.vlgmr.msra.gmra.mrb[0].mxu0 %v589_v12  ;;  %268 = vmatmul.mubr.bf16.vlgmr.msra.gmra.mrb[0].mxu1 %v595_v13 }
  0x26   :  { %553 = vmatprep.mubr.msk.bf16.mxu0 %vm178_vm0, %v592_v14  ;;  %557 = vmatprep.mubr.msk.bf16.mxu1 %vm178_vm0, %v601_v15 }
  0x2d   :  { %244 = vmatmul.mubr.bf16.gmra.mrb[4].mxu0 %v594_v16  ;;  %276 = vmatmul.mubr.bf16.gmra.mrb[4].mxu1 %v603_v17 }
  0x2e   :  { %554 = vmatprep.mubr.msk.bf16.mxu0 %vm178_vm0, %v598_v18  ;;  %558 = vmatprep.mubr.msk.bf16.mxu1 %vm178_vm0, %v607_v19 }
  0x35   :  { %252 = vmatmul.mubr.bf16.gmra.mrb[8].mxu0 %v600_v20  ;;  %284 = vmatmul.mubr.bf16.gmra.mrb[8].mxu1 %v609_v21 }
  0x36   :  { %555 = vmatprep.mubr.msk.bf16.mxu0 %vm178_vm0, %v604_v22  ;;  %559 = vmatprep.mubr.msk.bf16.mxu1 %vm178_vm0, %v610_v23 }
  0x3d   :  { %260 = vmatmul.mubr.bf16.gmra.mrb[12].mxu0 %v606_v24  ;;  %292 = vmatmul.mubr.bf16.gmra.mrb[12].mxu1 %v612_v25 }
  0xf8   :  { %v724_v26 = vpop.f32.mrb[0].mxu0  ;;  %v726_v27 = vpop.f32.mrb[0].mxu1 }
  0xf9   :  { %v239_v28 = vpop.f32.mrb[1].mxu0  ;;  %v271_v29 = vpop.f32.mrb[1].mxu1  ;;  %v301_v32 = vsel %vm951_vm1, %v724_v26, 0.0  ;;  %v316_v9 = vsel %vm951_vm1, %v726_v27, 0.0 }
  0xfa   :  { %v728_v30 = vpop.f32.mrb[2].mxu0  ;;  %v730_v31 = vpop.f32.mrb[2].mxu1 }
  0xfb   :  { %v302_v33 = vsel %vm951_vm1, %v728_v30, 0.0  ;;  %v242_v34 = vpop.f32.mrb[3].mxu0  ;;  %v274_v35 = vpop.f32.mrb[3].mxu1  ;;  %v318_v11 = vsel %vm951_vm1, %v730_v31, 0.0 }
  0xfc   :  { %v303_v36 = vadd.f32 %v302_v33, %v301_v32 }
 0x100   :  { %v245_v37 = vpop.f32.mrb[4].mxu0  ;;  %v736_v38 = vpop.f32.mrb[4].mxu1 }
 0x101   :  { %v304_v39 = vsel %vm951_vm1, %v245_v37, 0.0  ;;  %v247_v40 = vpop.f32.mrb[5].mxu0  ;;  %v279_v41 = vpop.f32.mrb[5].mxu1  ;;  %v320_v13 = vsel %vm951_vm1, %v736_v38, 0.0 }
 0x102   :  { %v305_v42 = vadd.f32 %v304_v39, %v303_v36  ;;  %v248_v43 = vpop.f32.mrb[6].mxu0  ;;  %v739_v44 = vpop.f32.mrb[6].mxu1 }
 0x103   :  { %v306_v45 = vsel %vm951_vm1, %v248_v43, 0.0  ;;  %v250_v46 = vpop.f32.mrb[7].mxu0  ;;  %v282_v47 = vpop.f32.mrb[7].mxu1  ;;  %v322_v15 = vsel %vm951_vm1, %v739_v44, 0.0 }
 0x104   :  { %v307_v48 = vadd.f32 %v306_v45, %v305_v42 }
 0x108   :  { %v253_v49 = vpop.f32.mrb[8].mxu0  ;;  %v285_v50 = vpop.f32.mrb[8].mxu1 }
 0x109   :  { %v308_v51 = vsel %vm951_vm1, %v253_v49, 0.0  ;;  %v255_v52 = vpop.f32.mrb[9].mxu0  ;;  %v287_v53 = vpop.f32.mrb[9].mxu1  ;;  %v324_v17 = vsel %vm951_vm1, %v285_v50, 0.0 }
 0x10a   :  { %v309_v54 = vadd.f32 %v308_v51, %v307_v48  ;;  %v256_v55 = vpop.f32.mrb[10].mxu0  ;;  %v288_v56 = vpop.f32.mrb[10].mxu1 }
 0x10b   :  { %v310_v57 = vsel %vm951_vm1, %v256_v55, 0.0  ;;  %v258_v58 = vpop.f32.mrb[11].mxu0  ;;  %v290_v59 = vpop.f32.mrb[11].mxu1  ;;  %v326_v19 = vsel %vm951_vm1, %v288_v56, 0.0 }
 0x10c   :  { %v311_v60 = vadd.f32 %v310_v57, %v309_v54 }
 0x110   :  { %v261_v61 = vpop.f32.mrb[12].mxu0  ;;  %v293_v62 = vpop.f32.mrb[12].mxu1 }
 0x111   :  { %v312_v63 = vsel %vm951_vm1, %v261_v61, 0.0  ;;  %v263_v0 = vpop.f32.mrb[13].mxu0  ;;  %v295_v1 = vpop.f32.mrb[13].mxu1  ;;  %v328_v20 = vsel %vm951_vm1, %v293_v62, 0.0 }
 0x112   :  { %v313_v2 = vadd.f32 %v312_v63, %v311_v60  ;;  %v264_v3 = vpop.f32.mrb[14].mxu0  ;;  %v296_v4 = vpop.f32.mrb[14].mxu1 }
 0x113   :  { %v314_v5 = vsel %vm951_vm1, %v264_v3, 0.0  ;;  %v266_v6 = vpop.f32.mrb[15].mxu0  ;;  %v298_v7 = vpop.f32.mrb[15].mxu1  ;;  %v330_v23 = vsel %vm951_vm1, %v296_v4, 0.0 }
 0x114   :  { %v315_v8 = vadd.f32 %v314_v5, %v313_v2 }
 0x116   :  { %v317_v10 = vadd.f32 %v316_v9, %v315_v8 }
 0x118   :  { %v319_v12 = vadd.f32 %v318_v11, %v317_v10 }
 0x11a   :  { %v321_v14 = vadd.f32 %v320_v13, %v319_v12 }
 0x11c   :  { %v323_v16 = vadd.f32 %v322_v15, %v321_v14 }
 0x11e   :  { %v325_v18 = vadd.f32 %v324_v17, %v323_v16 }
 0x120   :  { %v327_v21 = vadd.f32 %v326_v19, %v325_v18 }
 0x122   :  { %v329_v22 = vadd.f32 %v328_v20, %v327_v21 }
 0x124   :  { %v331_v24 = vadd.f32 %v330_v23, %v329_v22 }
 0x126   :  { %v332_v25 = vrot.slane %v331_v24, 4 }
 0x128   :  { %v333_v28 = vadd.f32 %v332_v25, %v331_v24 }
 0x12a   :  { %v334_v29 = vrot.slane %v333_v28, 2 }
 0x12c   :  { %v335_v32 = vadd.f32 %v334_v29, %v333_v28 }
 0x12e   :  { %v336_v33 = vrot.slane %v335_v32, 1 }
 0x130   :  { %v337_v34 = vadd.f32 %v336_v33, %v335_v32 }
 0x132   :  { %v339_v35 = vmul.f32 0.0078125, %v337_v34 }
 0x134   :  { %v759_v36 = vsub.f32 %v724_v26, %v339_v35  ;;  %v762_v39 = vsub.f32 %v728_v30, %v339_v35  ;;  %v764_v40 = vsub.f32 %v245_v37, %v339_v35  ;;  %v766_v41 = vsub.f32 %v248_v43, %v339_v35 }
 0x135   :  { %v768_v42 = vsub.f32 %v253_v49, %v339_v35  ;;  %v770_v45 = vsub.f32 %v256_v55, %v339_v35  ;;  %v772_v46 = vsub.f32 %v261_v61, %v339_v35  ;;  %v774_v47 = vsub.f32 %v264_v3, %v339_v35 }
 0x136   :  { %v777_v48 = vsub.f32 %v726_v27, %v339_v35  ;;  %v780_v26 = vsub.f32 %v730_v31, %v339_v35  ;;  %v783_v30 = vsub.f32 %v736_v38, %v339_v35  ;;  %v786_v37 = vsub.f32 %v739_v44, %v339_v35 }
 0x137   :  { %v788_v43 = vsub.f32 %v285_v50, %v339_v35  ;;  %v790_v49 = vsub.f32 %v288_v56, %v339_v35  ;;  %v792_v51 = vsub.f32 %v293_v62, %v339_v35  ;;  %v794_v52 = vsub.f32 %v296_v4, %v339_v35 }
 0x138   :  { %v356_v27 = vmul.f32 %v759_v36, %v759_v36  ;;  %v357_v31 = vmul.f32 %v762_v39, %v762_v39  ;;  %v358_v38 = vmul.f32 %v764_v40, %v764_v40  ;;  %v359_v44 = vmul.f32 %v766_v41, %v766_v41 }
 0x139   :  { %v360_v55 = vmul.f32 %v768_v42, %v768_v42  ;;  %v361_v58 = vmul.f32 %v770_v45, %v770_v45  ;;  %v362_v61 = vmul.f32 %v772_v46, %v772_v46  ;;  %v363_v0 = vmul.f32 %v774_v47, %v774_v47 }
 0x13a   :  { %v372_v50 = vsel %vm951_vm1, %v356_v27, 0.0  ;;  %v373_v53 = vsel %vm951_vm1, %v357_v31, 0.0  ;;  %v375_v56 = vsel %vm951_vm1, %v358_v38, 0.0  ;;  %v377_v59 = vsel %vm951_vm1, %v359_v44, 0.0 }
 0x13b   :  { %v374_v54 = vadd.f32 %v373_v53, %v372_v50  ;;  %v379_v62 = vsel %vm951_vm1, %v360_v55, 0.0  ;;  %v381_v1 = vsel %vm951_vm1, %v361_v58, 0.0  ;;  %v364_v3 = vmul.f32 %v777_v48, %v777_v48 }
 0x13c   :  { %v383_v4 = vsel %vm951_vm1, %v362_v61, 0.0  ;;  %v365_v6 = vmul.f32 %v780_v26, %v780_v26  ;;  %v385_v7 = vsel %vm951_vm1, %v363_v0, 0.0  ;;  %v366_v9 = vmul.f32 %v783_v30, %v783_v30 }
 0x13d   :  { %v376_v57 = vadd.f32 %v375_v56, %v374_v54  ;;  %v387_v10 = vsel %vm951_vm1, %v364_v3, 0.0  ;;  %v367_v12 = vmul.f32 %v786_v37, %v786_v37  ;;  %v368_v15 = vmul.f32 %v788_v43, %v788_v43 }
 0x13e   :  { %v389_v13 = vsel %vm951_vm1, %v365_v6, 0.0  ;;  %v391_v16 = vsel %vm951_vm1, %v366_v9, 0.0  ;;  %v369_v18 = vmul.f32 %v790_v49, %v790_v49  ;;  %v370_v21 = vmul.f32 %v792_v51, %v792_v51  ;;  %v560_v6 = vld [vmem:[%s949_s3] ss:$0 sm:$0xff] }
 0x13f   :  { %v378_v60 = vadd.f32 %v377_v59, %v376_v57  ;;  %v393_v19 = vsel %vm951_vm1, %v367_v12, 0.0  ;;  %v395_v22 = vsel %vm951_vm1, %v368_v15, 0.0  ;;  %v371_v24 = vmul.f32 %v794_v52, %v794_v52  ;;  %v410_v57 = vld [vmem:[%s948_s2] sm:$0x1] }
 0x140   :  { %v397_v25 = vsel %vm951_vm1, %v369_v18, 0.0  ;;  %v399_v29 = vsel %vm951_vm1, %v370_v21, 0.0  ;;  %v415_v55 = vlaneseq }
 0x141   :  { %v380_v63 = vadd.f32 %v379_v62, %v378_v60  ;;  %v401_v33 = vsel %vm951_vm1, %v371_v24, 0.0  ;;  %vm953_vm1 = vmmov %vm952_vm14 }
 0x142   :  { %v416_v56 = vshrl.u32 %v415_v55, 7 }
 0x143   :  { %v382_v2 = vadd.f32 %v381_v1, %v380_v63 }
 0x144   :  { %v417_v58 = vsub.s32 0, %v416_v56 }
 0x145   :  { %v384_v5 = vadd.f32 %v383_v4, %v382_v2 }
 0x147   :  { %v386_v8 = vadd.f32 %v385_v7, %v384_v5 }
 0x149   :  { %v388_v11 = vadd.f32 %v387_v10, %v386_v8 }
 0x14b   :  { %v390_v14 = vadd.f32 %v389_v13, %v388_v11 }
 0x14d   :  { %v392_v17 = vadd.f32 %v391_v16, %v390_v14 }
 0x14f   :  { %v394_v20 = vadd.f32 %v393_v19, %v392_v17 }
 0x151   :  { %v396_v23 = vadd.f32 %v395_v22, %v394_v20 }
 0x153   :  { %v398_v28 = vadd.f32 %v397_v25, %v396_v23 }
 0x155   :  { %v400_v32 = vadd.f32 %v399_v29, %v398_v28 }
 0x157   :  { %v402_v34 = vadd.f32 %v401_v33, %v400_v32 }
 0x159   :  { %v403_v35 = vrot.slane %v402_v34, 4 }
 0x15b   :  { %v404_v27 = vadd.f32 %v403_v35, %v402_v34 }
 0x15d   :  { %v405_v31 = vrot.slane %v404_v27, 2 }
 0x15f   :  { %v406_v38 = vadd.f32 %v405_v31, %v404_v27 }
 0x161   :  { %v407_v44 = vrot.slane %v406_v38, 1 }
 0x163   :  { %v408_v50 = vadd.f32 %v407_v44, %v406_v38 }
 0x165   :  { %v409_v53 = vmul.f32 0.0078125, %v408_v50 }
 0x167   :  { %v411_v54 = vadd.f32 1e-05, %v409_v53 }
 0x169   :  { %613 = vrsqrt.f32 %v411_v54 }
 0x173   :  { %v614_v59 = vpop.eup %613 }
 0x174   :  { %v413_v60 = vmul.f32 %v614_v59, %v410_v57 }
 0x176   :  { %v418_v61 = vrot.slane %v413_v60, %v417_v58 }
 0x178   :  { %v420_v62 = vmul.f32 %v418_v61, %v759_v36  ;;  %v421_v63 = vmul.f32 %v418_v61, %v762_v39  ;;  %v422_v0 = vmul.f32 %v418_v61, %v764_v40  ;;  %v423_v1 = vmul.f32 %v418_v61, %v766_v41 }
 0x179   :  { %v424_v2 = vmul.f32 %v418_v61, %v768_v42  ;;  %v425_v3 = vmul.f32 %v418_v61, %v770_v45  ;;  %v426_v4 = vmul.f32 %v418_v61, %v772_v46  ;;  %v427_v5 = vmul.f32 %v418_v61, %v774_v47 }
 0x17a   :  { %v428_v36 = vmul.f32 %v418_v61, %v777_v48  ;;  %v429_v39 = vmul.f32 %v418_v61, %v780_v26  ;;  %v430_v40 = vmul.f32 %v418_v61, %v783_v30  ;;  %v431_v41 = vmul.f32 %v418_v61, %v786_v37 }
 0x17b   :  { %v432_v42 = vmul.f32 %v418_v61, %v788_v43  ;;  %v433_v45 = vmul.f32 %v418_v61, %v790_v49  ;;  %v434_v46 = vmul.f32 %v418_v61, %v792_v51  ;;  %v435_v47 = vmul.f32 %v418_v61, %v794_v52 }
 0x17c   :  { %v443_v7 = vadd.f32 %v560_v6, %v420_v62  ;;  %v444_v8 = vadd.f32 %v560_v6, %v421_v63  ;;  %v445_v9 = vadd.f32 %v560_v6, %v422_v0  ;;  %v446_v10 = vadd.f32 %v560_v6, %v423_v1 }
 0x17d   :  { %v447_v11 = vadd.f32 %v560_v6, %v424_v2  ;;  %v448_v48 = vadd.f32 %v560_v6, %v425_v3  ;;  %v449_v12 = vadd.f32 %v560_v6, %v426_v4  ;;  %v450_v26 = vadd.f32 %v560_v6, %v427_v5 }
 0x17e   :  { %v451_v13 = vadd.f32 %v560_v6, %v428_v36  ;;  %v452_v30 = vadd.f32 %v560_v6, %v429_v39  ;;  %v453_v14 = vadd.f32 %v560_v6, %v430_v40  ;;  %v454_v37 = vadd.f32 %v560_v6, %v431_v41 }
 0x17f   :  { %v455_v15 = vadd.f32 %v560_v6, %v432_v42  ;;  %v456_v43 = vadd.f32 %v560_v6, %v433_v45  ;;  %v457_v16 = vadd.f32 %v560_v6, %v434_v46  ;;  %v458_v49 = vadd.f32 %v560_v6, %v435_v47 }
 0x180   :  { %vm459_vm2 = vcmp.gt.f32.partialorder %v443_v7, 0.0  ;;  %vm460_vm3 = vcmp.gt.f32.partialorder %v444_v8, 0.0  ;;  %vm461_vm4 = vcmp.gt.f32.partialorder %v445_v9, 0.0  ;;  %vm462_vm5 = vcmp.gt.f32.partialorder %v446_v10, 0.0 }
 0x181   :  { %vm463_vm6 = vcmp.gt.f32.partialorder %v447_v11, 0.0  ;;  %vm464_vm7 = vcmp.gt.f32.partialorder %v448_v48, 0.0  ;;  %vm465_vm8 = vcmp.gt.f32.partialorder %v449_v12, 0.0  ;;  %vm466_vm9 = vcmp.gt.f32.partialorder %v450_v26, 0.0 }
 0x182   :  { %vm467_vm10 = vcmp.gt.f32.partialorder %v451_v13, 0.0  ;;  %vm468_vm11 = vcmp.gt.f32.partialorder %v452_v30, 0.0  ;;  %vm469_vm12 = vcmp.gt.f32.partialorder %v453_v14, 0.0  ;;  %vm470_vm13 = vcmp.gt.f32.partialorder %v454_v37, 0.0 }
 0x183   :  { %vm472_vm15 = vcmp.gt.f32.partialorder %v456_v43, 0.0  ;;  %vm473_vm0 = vcmp.gt.f32.partialorder %v457_v16, 0.0  ;;  %v475_v51 = vmul.f32 0.01, %v443_v7  ;;  %v476_v52 = vmul.f32 0.01, %v444_v8 }
 0x184   :  { %v477_v17 = vmul.f32 0.01, %v445_v9  ;;  %v478_v18 = vmul.f32 0.01, %v446_v10  ;;  %v479_v19 = vmul.f32 0.01, %v447_v11 }
 0x185   :  { %v480_v20 = vmul.f32 0.01, %v448_v48  ;;  %v481_v21 = vmul.f32 0.01, %v449_v12  ;;  %v482_v22 = vmul.f32 0.01, %v450_v26  ;;  %v491_v24 = vsel %vm459_vm2, %v443_v7, %v475_v51  ;;  %vm954_vm2 = vmmov %vm953_vm1 }
 0x186   :  { %v483_v23 = vmul.f32 0.01, %v451_v13  ;;  %v484_v25 = vmul.f32 0.01, %v452_v30  ;;  %v485_v28 = vmul.f32 0.01, %v453_v14  ;;  %v492_v32 = vsel %vm460_vm3, %v444_v8, %v476_v52  ;;  %vm955_vm3 = vmmov %vm953_vm1 }
 0x187   :  { %v486_v29 = vmul.f32 0.01, %v454_v37  ;;  %507 = vst.msk [vmem:[%s950_s4] sm:$0xff] %vm952_vm14, %v491_v24  ;;  %v487_v33 = vmul.f32 0.01, %v455_v15  ;;  %v493_v27 = vsel %vm461_vm4, %v445_v9, %v477_v17  ;;  %v494_v38 = vsel %vm462_vm5, %v446_v10, %v478_v18  ;;  %vm956_vm4 = vmmov %vm953_vm1 }
 0x188   :  { %v488_v34 = vmul.f32 0.01, %v456_v43  ;;  %v489_v35 = vmul.f32 0.01, %v457_v16  ;;  %508 = vst.msk [vmem:[%s950_s4 + $0x8] sm:$0xff] %vm953_vm1, %v492_v32  ;;  %v495_v44 = vsel %vm463_vm6, %v447_v11, %v479_v19  ;;  %v496_v50 = vsel %vm464_vm7, %v448_v48, %v480_v20  ;;  %510 = vst.msk [vmem:[%s950_s4 + $0x18] sm:$0xff] %vm953_vm1, %v494_v38 }
 0x189   :  { %v490_v31 = vmul.f32 0.01, %v458_v49  ;;  %509 = vst.msk [vmem:[%s950_s4 + $0x10] sm:$0xff] %vm954_vm2, %v493_v27  ;;  %v497_v53 = vsel %vm465_vm8, %v449_v12, %v481_v21  ;;  %v498_v54 = vsel %vm466_vm9, %v450_v26, %v482_v22  ;;  %v499_v55 = vsel %vm467_vm10, %v451_v13, %v483_v23  ;;  %vm958_vm6 = vmmov %vm953_vm1 }
 0x18a   :  { %v500_v56 = vsel %vm468_vm11, %v452_v30, %v484_v25  ;;  %511 = vst.msk [vmem:[%s950_s4 + $0x20] sm:$0xff] %vm955_vm3, %v495_v44  ;;  %v501_v57 = vsel %vm469_vm12, %v453_v14, %v485_v28  ;;  %v502_v58 = vsel %vm470_vm13, %v454_v37, %v486_v29  ;;  %vm957_vm5 = vcmp.gt.f32.partialorder %v455_v15, 0.0  ;;  %vm959_vm7 = vmmov %vm953_vm1 }
 0x18b   :  { %512 = vst.msk [vmem:[%s950_s4 + $0x28] sm:$0xff] %vm956_vm4, %v496_v50  ;;  %v503_v59 = vsel %vm957_vm5, %v455_v15, %v487_v33  ;;  %v504_v60 = vsel %vm472_vm15, %v456_v43, %v488_v34  ;;  %vm960_vm8 = vmmov %vm953_vm1  ;;  %v505_v61 = vsel %vm473_vm0, %v457_v16, %v489_v35  ;;  %vm962_vm10 = vcmp.gt.f32.partialorder %v458_v49, 0.0 }
 0x18c   :  { %513 = vst.msk [vmem:[%s950_s4 + $0x30] sm:$0xff] %vm958_vm6, %v497_v53  ;;  %vm961_vm9 = vmmov %vm953_vm1  ;;  %v506_v62 = vsel %vm962_vm10, %v458_v49, %v490_v31 }
 0x18d   :  { %514 = vst.msk [vmem:[%s950_s4 + $0x38] sm:$0xff] %vm959_vm7, %v498_v54  ;;  %vm963_vm11 = vmmov %vm953_vm1 }
 0x18e   :  { %515 = vst.msk [vmem:[%s950_s4 + $0x40] sm:$0xff] %vm960_vm8, %v499_v55  ;;  %vm964_vm12 = vmmov %vm953_vm1 }
 0x18f   :  { %516 = vst.msk [vmem:[%s950_s4 + $0x48] sm:$0xff] %vm961_vm9, %v500_v56  ;;  %vm965_vm13 = vmmov %vm953_vm1 }
 0x190   :  { %517 = vst.msk [vmem:[%s950_s4 + $0x50] sm:$0xff] %vm963_vm11, %v501_v57  ;;  %vm966_vm14 = vmmov %vm953_vm1 }
 0x191   :  { %518 = vst.msk [vmem:[%s950_s4 + $0x58] sm:$0xff] %vm964_vm12, %v502_v58  ;;  %vm967_vm15 = vmmov %vm953_vm1 }
 0x192   :  { %519 = vst.msk [vmem:[%s950_s4 + $0x60] sm:$0xff] %vm965_vm13, %v503_v59  ;;  %vm968_vm0 = vmmov %vm953_vm1 }
 0x193   :  { %520 = vst.msk [vmem:[%s950_s4 + $0x68] sm:$0xff] %vm966_vm14, %v504_v60 }
 0x194   :  { %521 = vst.msk [vmem:[%s950_s4 + $0x70] sm:$0xff] %vm967_vm15, %v505_v61 }
 0x195   :  { %522 = vst.msk [vmem:[%s950_s4 + $0x78] sm:$0xff] %vm968_vm0, %v506_v62 }

// kernel: simple_unet_forward.10
= control target key start
LH: loop header
LB: loop body
LE: loop exit
PB: predicated region body
PF: predicated region fallthrough
CT: control target
= control target key end

     0   :  { %v1981_v0 = vmov 0   ;;  %vm4220_vm0 = vcmask 130048   ;;  %s4149_s1 = inlined_call_operand.vmem [shape: bf16[144,16], index: 1, kind: input, shape index: {}]   ;;  %s4150_s0 = inlined_call_operand.vmem [shape: bf16[512,144], index: 0, kind: input, shape index: {}]   ;;  %s4151_s2 = inlined_call_operand.vmem [shape: f32[1,16], index: 2, kind: input, shape index: {}]   ;;  %s4152_s4 = inlined_call_operand.vmem [shape: f32[2,16], index: 4, kind: input, shape index: {}]   ;;  %s4153_s3 = inlined_call_operand.vmem [shape: f32[1,16], index: 3, kind: input, shape index: {}]   ;;  %s4154_s5 = inlined_call_operand.vmem [shape: f32[128,16], index: 5, kind: output, shape index: {}]  }
   0x1   :  { %542 = vmatprep.subr.bf16.mxu0 %v1981_v0  ;;  %v1874_v1 = vld [vmem:[%s4149_s1] sm:$0xff]   ;;  %1854 = vmatprep.subr.bf16.mxu1 %v1981_v0  ;;  %v1875_v2 = vld [vmem:[%s4149_s1 + $0x8] sm:$0xff]   ;;  %v1876_v3 = vld [vmem:[%s4149_s1 + $0x10] sm:$0xff]  }
   0x2   :  { %543 = vmatpush1.bf16.msra.mxu0 %v1874_v1  ;;  %1863 = vmatpush1.bf16.msra.mxu1 %v1874_v1  ;;  %v1877_v4 = vld [vmem:[%s4149_s1 + $0x18] sm:$0xff]   ;;  %v1885_v5 = vld [vmem:[%s4150_s0 + $0x4] ss:$8 sps:$4 sm:$0xff]   ;;  %v1880_v9 = vld [vmem:[%s4149_s1 + $0x30] sm:$0xff]  }
   0x3   :  { %544 = vmatprep.subr.bf16.mxu0 %v1981_v0  ;;  %1855 = vmatprep.subr.bf16.mxu1 %v1981_v0  ;;  %v1878_v6 = vld [vmem:[%s4149_s1 + $0x20] sm:$0xff]   ;;  %v1879_v7 = vld [vmem:[%s4149_s1 + $0x28] sm:$0xff]   ;;  %v1881_v10 = vld [vmem:[%s4149_s1 + $0x38] sm:$0xff]  }
   0x4   :  { %1820 = vmatprep.mubr.msk.bf16.mxu0 %vm4220_vm0, %v1885_v5  ;;  %v1909_v8 = vld [vmem:[%s4150_s0 + $0x104] ss:$8 sps:$4 sm:$0xff]   ;;  %v1883_v12 = vld [vmem:[%s4150_s0] ss:$8 sps:$4 sm:$0xff]   ;;  %v1886_v13 = vld [vmem:[%s4150_s0 + $0x14] ss:$8 sps:$4 sm:$0xff]  }
   0x5   :  { %1836 = vmatprep.mubr.msk.bf16.mxu1 %vm4220_vm0, %v1909_v8  ;;  %v1882_v11 = vld [vmem:[%s4149_s1 + $0x40] sm:$0xff]   ;;  %v1913_v15 = vld [vmem:[%s4150_s0 + $0x114] ss:$8 sps:$4 sm:$0xff]   ;;  %v1888_v16 = vld [vmem:[%s4150_s0 + $0x10] ss:$8 sps:$4 sm:$0xff]  }
   0x6   :  { %545 = vmatpush1.bf16.msra.mxu0 %v1875_v2  ;;  %1864 = vmatpush1.bf16.msra.mxu1 %v1875_v2  ;;  %v1907_v14 = vld [vmem:[%s4150_s0 + $0x100] ss:$8 sps:$4 sm:$0xff]   ;;  %v1889_v17 = vld [vmem:[%s4150_s0 + $0x24] ss:$8 sps:$4 sm:$0xff]   ;;  %v1915_v18 = vld [vmem:[%s4150_s0 + $0x110] ss:$8 sps:$4 sm:$0xff]  }
   0x7   :  { %546 = vmatprep.subr.bf16.mxu0 %v1981_v0  ;;  %1856 = vmatprep.subr.bf16.mxu1 %v1981_v0  ;;  %v1919_v19 = vld [vmem:[%s4150_s0 + $0x124] ss:$8 sps:$4 sm:$0xff]   ;;  %v1891_v20 = vld [vmem:[%s4150_s0 + $0x20] ss:$8 sps:$4 sm:$0xff]   ;;  %v1892_v21 = vld [vmem:[%s4150_s0 + $0x34] ss:$8 sps:$4 sm:$0xff]  }
   0x8   :  { %v1921_v22 = vld [vmem:[%s4150_s0 + $0x120] ss:$8 sps:$4 sm:$0xff]   ;;  %v1925_v23 = vld [vmem:[%s4150_s0 + $0x134] ss:$8 sps:$4 sm:$0xff]   ;;  %v1894_v24 = vld [vmem:[%s4150_s0 + $0x30] ss:$8 sps:$4 sm:$0xff]  }
   0x9   :  { %v1927_v25 = vld [vmem:[%s4150_s0 + $0x130] ss:$8 sps:$4 sm:$0xff]   ;;  %v1895_v26 = vld [vmem:[%s4150_s0 + $0x44] ss:$8 sps:$4 sm:$0xff]   ;;  %v1897_v28 = vld [vmem:[%s4150_s0 + $0x40] ss:$8 sps:$4 sm:$0xff]  }
   0xa   :  { %547 = vmatpush1.bf16.msra.mxu0 %v1876_v3  ;;  %1865 = vmatpush1.bf16.msra.mxu1 %v1876_v3  ;;  %v1931_v27 = vld [vmem:[%s4150_s0 + $0x144] ss:$8 sps:$4 sm:$0xff]   ;;  %v1933_v29 = vld [vmem:[%s4150_s0 + $0x140] ss:$8 sps:$4 sm:$0xff]   ;;  %v1898_v30 = vld [vmem:[%s4150_s0 + $0x54] ss:$8 sps:$4 sm:$0xff]  }
   0xb   :  { %548 = vmatprep.subr.bf16.mxu0 %v1981_v0  ;;  %1857 = vmatprep.subr.bf16.mxu1 %v1981_v0  ;;  %v1937_v31 = vld [vmem:[%s4150_s0 + $0x154] ss:$8 sps:$4 sm:$0xff]   ;;  %v1900_v32 = vld [vmem:[%s4150_s0 + $0x50] ss:$8 sps:$4 sm:$0xff]   ;;  %v1901_v34 = vld [vmem:[%s4150_s0 + $0x64] ss:$8 sps:$4 sm:$0xff]  }
   0xc   :  { %v1939_v33 = vld [vmem:[%s4150_s0 + $0x150] ss:$8 sps:$4 sm:$0xff]   ;;  %v1943_v35 = vld [vmem:[%s4150_s0 + $0x164] ss:$8 sps:$4 sm:$0xff]   ;;  %v1903_v36 = vld [vmem:[%s4150_s0 + $0x60] ss:$8 sps:$4 sm:$0xff]  }
   0xd   :  { %v1945_v37 = vld [vmem:[%s4150_s0 + $0x160] ss:$8 sps:$4 sm:$0xff]   ;;  %v1904_v38 = vld [vmem:[%s4150_s0 + $0x74] ss:$8 sps:$4 sm:$0xff]   ;;  %v1906_v40 = vld [vmem:[%s4150_s0 + $0x70] ss:$8 sps:$4 sm:$0xff]  }
   0xe   :  { %549 = vmatpush1.bf16.msra.mxu0 %v1877_v4  ;;  %1866 = vmatpush1.bf16.msra.mxu1 %v1877_v4  ;;  %v1949_v39 = vld [vmem:[%s4150_s0 + $0x174] ss:$8 sps:$4 sm:$0xff]   ;;  %v1951_v41 = vld [vmem:[%s4150_s0 + $0x170] ss:$8 sps:$4 sm:$0xff]   ;;  %v1910_v42 = vld [vmem:[%s4150_s0 + $0x84] ss:$8 sps:$4 sm:$0xff]  }
   0xf   :  { %550 = vmatprep.subr.bf16.mxu0 %v1981_v0  ;;  %1858 = vmatprep.subr.bf16.mxu1 %v1981_v0  ;;  %v1955_v43 = vld [vmem:[%s4150_s0 + $0x184] ss:$8 sps:$4 sm:$0xff]   ;;  %v1912_v44 = vld [vmem:[%s4150_s0 + $0x80] ss:$8 sps:$4 sm:$0xff]   ;;  %v1916_v46 = vld [vmem:[%s4150_s0 + $0x94] ss:$8 sps:$4 sm:$0xff]  }
  0x10   :  { %v1957_v45 = vld [vmem:[%s4150_s0 + $0x180] ss:$8 sps:$4 sm:$0xff]   ;;  %v1958_v47 = vld [vmem:[%s4150_s0 + $0x194] ss:$8 sps:$4 sm:$0xff]   ;;  %v1918_v48 = vld [vmem:[%s4150_s0 + $0x90] ss:$8 sps:$4 sm:$0xff]  }
  0x11   :  { %v1960_v49 = vld [vmem:[%s4150_s0 + $0x190] ss:$8 sps:$4 sm:$0xff]   ;;  %v1922_v50 = vld [vmem:[%s4150_s0 + $0xa4] ss:$8 sps:$4 sm:$0xff]   ;;  %v1924_v52 = vld [vmem:[%s4150_s0 + $0xa0] ss:$8 sps:$4 sm:$0xff]  }
  0x12   :  { %551 = vmatpush1.bf16.msra.mxu0 %v1878_v6  ;;  %1867 = vmatpush1.bf16.msra.mxu1 %v1878_v6  ;;  %v1961_v51 = vld [vmem:[%s4150_s0 + $0x1a4] ss:$8 sps:$4 sm:$0xff]   ;;  %v1963_v53 = vld [vmem:[%s4150_s0 + $0x1a0] ss:$8 sps:$4 sm:$0xff]   ;;  %v1928_v54 = vld [vmem:[%s4150_s0 + $0xb4] ss:$8 sps:$4 sm:$0xff]  }
  0x13   :  { %552 = vmatprep.subr.bf16.mxu0 %v1981_v0  ;;  %1859 = vmatprep.subr.bf16.mxu1 %v1981_v0  ;;  %v1964_v55 = vld [vmem:[%s4150_s0 + $0x1b4] ss:$8 sps:$4 sm:$0xff]   ;;  %v1930_v56 = vld [vmem:[%s4150_s0 + $0xb0] ss:$8 sps:$4 sm:$0xff]   ;;  %v1934_v58 = vld [vmem:[%s4150_s0 + $0xc4] ss:$8 sps:$4 sm:$0xff]  }
  0x14   :  { %v1966_v57 = vld [vmem:[%s4150_s0 + $0x1b0] ss:$8 sps:$4 sm:$0xff]   ;;  %v1967_v59 = vld [vmem:[%s4150_s0 + $0x1c4] ss:$8 sps:$4 sm:$0xff]   ;;  %v1936_v60 = vld [vmem:[%s4150_s0 + $0xc0] ss:$8 sps:$4 sm:$0xff]  }
  0x15   :  { %v1969_v61 = vld [vmem:[%s4150_s0 + $0x1c0] ss:$8 sps:$4 sm:$0xff]   ;;  %v1940_v62 = vld [vmem:[%s4150_s0 + $0xd4] ss:$8 sps:$4 sm:$0xff]   ;;  %v1972_v1 = vld [vmem:[%s4150_s0 + $0x1d0] ss:$8 sps:$4 sm:$0xff]  }
  0x16   :  { %553 = vmatpush1.bf16.msra.mxu0 %v1879_v7  ;;  %1868 = vmatpush1.bf16.msra.mxu1 %v1879_v7  ;;  %v1970_v63 = vld [vmem:[%s4150_s0 + $0x1d4] ss:$8 sps:$4 sm:$0xff]   ;;  %v1946_v2 = vld [vmem:[%s4150_s0 + $0xe4] ss:$8 sps:$4 sm:$0xff]   ;;  %v1948_v4 = vld [vmem:[%s4150_s0 + $0xe0] ss:$8 sps:$4 sm:$0xff]  }
  0x17   :  { %554 = vmatprep.subr.bf16.mxu0 %v1981_v0  ;;  %1860 = vmatprep.subr.bf16.mxu1 %v1981_v0  ;;  %v1973_v3 = vld [vmem:[%s4150_s0 + $0x1e4] ss:$8 sps:$4 sm:$0xff]   ;;  %v1975_v5 = vld [vmem:[%s4150_s0 + $0x1e0] ss:$8 sps:$4 sm:$0xff]   ;;  %v1952_v6 = vld [vmem:[%s4150_s0 + $0xf4] ss:$8 sps:$4 sm:$0xff]  }
  0x18   :  { %v1976_v7 = vld [vmem:[%s4150_s0 + $0x1f4] ss:$8 sps:$4 sm:$0xff]   ;;  %v1954_v8 = vld [vmem:[%s4150_s0 + $0xf0] ss:$8 sps:$4 sm:$0xff]  }
  0x1a   :  { %555 = vmatpush1.bf16.msra.mxu0 %v1880_v9  ;;  %1869 = vmatpush1.bf16.msra.mxu1 %v1880_v9  ;;  %v1978_v9 = vld [vmem:[%s4150_s0 + $0x1f0] ss:$8 sps:$4 sm:$0xff]  }
  0x1b   :  { %556 = vmatprep.subr.bf16.mxu0 %v1981_v0  ;;  %1861 = vmatprep.subr.bf16.mxu1 %v1981_v0 }
  0x1e   :  { %557 = vmatpush1.bf16.msra.mxu0 %v1881_v10  ;;  %1870 = vmatpush1.bf16.msra.mxu1 %v1881_v10 }
  0x1f   :  { %558 = vmatprep.subr.bf16.mxu0 %v1981_v0  ;;  %1862 = vmatprep.subr.bf16.mxu1 %v1981_v0  ;;  %v1942_v0 = vld [vmem:[%s4150_s0 + $0xd0] ss:$8 sps:$4 sm:$0xff]  }
  0x22   :  { %559 = vmatpush1.bf16.msra.mxu0 %v1882_v11  ;;  %1871 = vmatpush1.bf16.msra.mxu1 %v1882_v11 }
  0x25   :  { %575 = vmatmul.mubr.bf16.vlgmr.msra.gmra.mrb[0].mxu0 %v1883_v12  ;;  %703 = vmatmul.mubr.bf16.vlgmr.msra.gmra.mrb[0].mxu1 %v1907_v14 }
  0x26   :  { %1821 = vmatprep.mubr.msk.bf16.mxu0 %vm4220_vm0, %v1886_v13  ;;  %1837 = vmatprep.mubr.msk.bf16.mxu1 %vm4220_vm0, %v1913_v15 }
  0x2d   :  { %583 = vmatmul.mubr.bf16.gmra.mrb[4].mxu0 %v1888_v16  ;;  %711 = vmatmul.mubr.bf16.gmra.mrb[4].mxu1 %v1915_v18 }
  0x2e   :  { %1822 = vmatprep.mubr.msk.bf16.mxu0 %vm4220_vm0, %v1889_v17  ;;  %1838 = vmatprep.mubr.msk.bf16.mxu1 %vm4220_vm0, %v1919_v19 }
  0x35   :  { %591 = vmatmul.mubr.bf16.gmra.mrb[8].mxu0 %v1891_v20  ;;  %719 = vmatmul.mubr.bf16.gmra.mrb[8].mxu1 %v1921_v22 }
  0x36   :  { %1823 = vmatprep.mubr.msk.bf16.mxu0 %vm4220_vm0, %v1892_v21  ;;  %1839 = vmatprep.mubr.msk.bf16.mxu1 %vm4220_vm0, %v1925_v23 }
  0x3d   :  { %599 = vmatmul.mubr.bf16.gmra.mrb[12].mxu0 %v1894_v24  ;;  %727 = vmatmul.mubr.bf16.gmra.mrb[12].mxu1 %v1927_v25 }
  0x3e   :  { %1824 = vmatprep.mubr.msk.bf16.mxu0 %vm4220_vm0, %v1895_v26  ;;  %1840 = vmatprep.mubr.msk.bf16.mxu1 %vm4220_vm0, %v1931_v27 }
  0x45   :  { %607 = vmatmul.mubr.bf16.gmra.mrb[16].mxu0 %v1897_v28  ;;  %735 = vmatmul.mubr.bf16.gmra.mrb[16].mxu1 %v1933_v29 }
  0x46   :  { %1825 = vmatprep.mubr.msk.bf16.mxu0 %vm4220_vm0, %v1898_v30  ;;  %1841 = vmatprep.mubr.msk.bf16.mxu1 %vm4220_vm0, %v1937_v31 }
  0x4d   :  { %615 = vmatmul.mubr.bf16.gmra.mrb[20].mxu0 %v1900_v32  ;;  %743 = vmatmul.mubr.bf16.gmra.mrb[20].mxu1 %v1939_v33 }
  0x4e   :  { %1826 = vmatprep.mubr.msk.bf16.mxu0 %vm4220_vm0, %v1901_v34  ;;  %1842 = vmatprep.mubr.msk.bf16.mxu1 %vm4220_vm0, %v1943_v35 }
  0x55   :  { %623 = vmatmul.mubr.bf16.gmra.mrb[24].mxu0 %v1903_v36  ;;  %751 = vmatmul.mubr.bf16.gmra.mrb[24].mxu1 %v1945_v37 }
  0x56   :  { %1827 = vmatprep.mubr.msk.bf16.mxu0 %vm4220_vm0, %v1904_v38  ;;  %1843 = vmatprep.mubr.msk.bf16.mxu1 %vm4220_vm0, %v1949_v39 }
  0x5d   :  { %631 = vmatmul.mubr.bf16.gmra.mrb[28].mxu0 %v1906_v40  ;;  %759 = vmatmul.mubr.bf16.gmra.mrb[28].mxu1 %v1951_v41 }
  0x5e   :  { %1828 = vmatprep.mubr.msk.bf16.mxu0 %vm4220_vm0, %v1910_v42  ;;  %1844 = vmatprep.mubr.msk.bf16.mxu1 %vm4220_vm0, %v1955_v43 }
  0x65   :  { %639 = vmatmul.mubr.bf16.gmra.mrb[32].mxu0 %v1912_v44  ;;  %767 = vmatmul.mubr.bf16.gmra.mrb[32].mxu1 %v1957_v45 }
  0x66   :  { %1829 = vmatprep.mubr.msk.bf16.mxu0 %vm4220_vm0, %v1916_v46  ;;  %1845 = vmatprep.mubr.msk.bf16.mxu1 %vm4220_vm0, %v1958_v47 }
  0x6d   :  { %647 = vmatmul.mubr.bf16.gmra.mrb[36].mxu0 %v1918_v48  ;;  %775 = vmatmul.mubr.bf16.gmra.mrb[36].mxu1 %v1960_v49 }
  0x6e   :  { %1830 = vmatprep.mubr.msk.bf16.mxu0 %vm4220_vm0, %v1922_v50  ;;  %1846 = vmatprep.mubr.msk.bf16.mxu1 %vm4220_vm0, %v1961_v51 }
  0x75   :  { %655 = vmatmul.mubr.bf16.gmra.mrb[40].mxu0 %v1924_v52  ;;  %783 = vmatmul.mubr.bf16.gmra.mrb[40].mxu1 %v1963_v53 }
  0x76   :  { %1831 = vmatprep.mubr.msk.bf16.mxu0 %vm4220_vm0, %v1928_v54  ;;  %1847 = vmatprep.mubr.msk.bf16.mxu1 %vm4220_vm0, %v1964_v55 }
  0x7d   :  { %663 = vmatmul.mubr.bf16.gmra.mrb[44].mxu0 %v1930_v56  ;;  %791 = vmatmul.mubr.bf16.gmra.mrb[44].mxu1 %v1966_v57 }
  0x7e   :  { %1832 = vmatprep.mubr.msk.bf16.mxu0 %vm4220_vm0, %v1934_v58  ;;  %1848 = vmatprep.mubr.msk.bf16.mxu1 %vm4220_vm0, %v1967_v59 }
  0x85   :  { %671 = vmatmul.mubr.bf16.gmra.mrb[48].mxu0 %v1936_v60  ;;  %799 = vmatmul.mubr.bf16.gmra.mrb[48].mxu1 %v1969_v61 }
  0x86   :  { %1833 = vmatprep.mubr.msk.bf16.mxu0 %vm4220_vm0, %v1940_v62  ;;  %1849 = vmatprep.mubr.msk.bf16.mxu1 %vm4220_vm0, %v1970_v63 }
  0x8d   :  { %679 = vmatmul.mubr.bf16.gmra.mrb[52].mxu0 %v1942_v0  ;;  %807 = vmatmul.mubr.bf16.gmra.mrb[52].mxu1 %v1972_v1 }
  0x8e   :  { %1834 = vmatprep.mubr.msk.bf16.mxu0 %vm4220_vm0, %v1946_v2  ;;  %1850 = vmatprep.mubr.msk.bf16.mxu1 %vm4220_vm0, %v1973_v3 }
  0x95   :  { %687 = vmatmul.mubr.bf16.gmra.mrb[56].mxu0 %v1948_v4  ;;  %815 = vmatmul.mubr.bf16.gmra.mrb[56].mxu1 %v1975_v5 }
  0x96   :  { %1835 = vmatprep.mubr.msk.bf16.mxu0 %vm4220_vm0, %v1952_v6  ;;  %1851 = vmatprep.mubr.msk.bf16.mxu1 %vm4220_vm0, %v1976_v7 }
  0x9d   :  { %695 = vmatmul.mubr.bf16.gmra.mrb[60].mxu0 %v1954_v8  ;;  %823 = vmatmul.mubr.bf16.gmra.mrb[60].mxu1 %v1978_v9 }
  0xf8   :  { %v2264_v10 = vpop.f32.mrb[0].mxu0  ;;  %v2266_v11 = vpop.f32.mrb[0].mxu1 }
  0xf9   :  { %v578_v12 = vpop.f32.mrb[1].mxu0  ;;  %v706_v13 = vpop.f32.mrb[1].mxu1  ;;  %v831_v16 = vsel %vm4220_vm0, %v2264_v10, 0.0 }
  0xfa   :  { %v2268_v14 = vpop.f32.mrb[2].mxu0  ;;  %v2270_v15 = vpop.f32.mrb[2].mxu1 }
  0xfb   :  { %v832_v17 = vsel %vm4220_vm0, %v2268_v14, 0.0  ;;  %v581_v18 = vpop.f32.mrb[3].mxu0  ;;  %v709_v19 = vpop.f32.mrb[3].mxu1 }
  0xfc   :  { %v833_v20 = vadd.f32 %v832_v17, %v831_v16 }
 0x100   :  { %v2276_v21 = vpop.f32.mrb[4].mxu0  ;;  %v2278_v22 = vpop.f32.mrb[4].mxu1 }
 0x101   :  { %v834_v23 = vsel %vm4220_vm0, %v2276_v21, 0.0  ;;  %v586_v24 = vpop.f32.mrb[5].mxu0  ;;  %v714_v25 = vpop.f32.mrb[5].mxu1 }
 0x102   :  { %v835_v26 = vadd.f32 %v834_v23, %v833_v20  ;;  %v2282_v27 = vpop.f32.mrb[6].mxu0  ;;  %v2284_v28 = vpop.f32.mrb[6].mxu1 }
 0x103   :  { %v836_v29 = vsel %vm4220_vm0, %v2282_v27, 0.0  ;;  %v589_v30 = vpop.f32.mrb[7].mxu0  ;;  %v717_v31 = vpop.f32.mrb[7].mxu1 }
 0x104   :  { %v837_v32 = vadd.f32 %v836_v29, %v835_v26 }
 0x108   :  { %v2288_v33 = vpop.f32.mrb[8].mxu0  ;;  %v2290_v34 = vpop.f32.mrb[8].mxu1 }
 0x109   :  { %v838_v35 = vsel %vm4220_vm0, %v2288_v33, 0.0  ;;  %v594_v36 = vpop.f32.mrb[9].mxu0  ;;  %v722_v37 = vpop.f32.mrb[9].mxu1 }
 0x10a   :  { %v839_v38 = vadd.f32 %v838_v35, %v837_v32  ;;  %v2294_v39 = vpop.f32.mrb[10].mxu0  ;;  %v2296_v40 = vpop.f32.mrb[10].mxu1 }
 0x10b   :  { %v840_v41 = vsel %vm4220_vm0, %v2294_v39, 0.0  ;;  %v597_v42 = vpop.f32.mrb[11].mxu0  ;;  %v725_v43 = vpop.f32.mrb[11].mxu1 }
 0x10c   :  { %v841_v44 = vadd.f32 %v840_v41, %v839_v38 }
 0x110   :  { %v2300_v45 = vpop.f32.mrb[12].mxu0  ;;  %v2302_v46 = vpop.f32.mrb[12].mxu1 }
 0x111   :  { %v842_v47 = vsel %vm4220_vm0, %v2300_v45, 0.0  ;;  %v602_v48 = vpop.f32.mrb[13].mxu0  ;;  %v730_v49 = vpop.f32.mrb[13].mxu1 }
 0x112   :  { %v843_v50 = vadd.f32 %v842_v47, %v841_v44  ;;  %v2306_v51 = vpop.f32.mrb[14].mxu0  ;;  %v2308_v52 = vpop.f32.mrb[14].mxu1 }
 0x113   :  { %v844_v53 = vsel %vm4220_vm0, %v2306_v51, 0.0  ;;  %v605_v54 = vpop.f32.mrb[15].mxu0  ;;  %v733_v55 = vpop.f32.mrb[15].mxu1 }
 0x114   :  { %v845_v56 = vadd.f32 %v844_v53, %v843_v50 }
 0x118   :  { %v2312_v57 = vpop.f32.mrb[16].mxu0  ;;  %v2314_v58 = vpop.f32.mrb[16].mxu1 }
 0x119   :  { %v846_v59 = vsel %vm4220_vm0, %v2312_v57, 0.0  ;;  %v610_v60 = vpop.f32.mrb[17].mxu0  ;;  %v738_v61 = vpop.f32.mrb[17].mxu1 }
 0x11a   :  { %v847_v62 = vadd.f32 %v846_v59, %v845_v56  ;;  %v2318_v63 = vpop.f32.mrb[18].mxu0  ;;  %v2320_v0 = vpop.f32.mrb[18].mxu1 }
 0x11b   :  { %v848_v1 = vsel %vm4220_vm0, %v2318_v63, 0.0  ;;  %v613_v2 = vpop.f32.mrb[19].mxu0  ;;  %v741_v3 = vpop.f32.mrb[19].mxu1 }
 0x11c   :  { %v849_v4 = vadd.f32 %v848_v1, %v847_v62 }
 0x120   :  { %v2324_v5 = vpop.f32.mrb[20].mxu0  ;;  %v2326_v6 = vpop.f32.mrb[20].mxu1 }
 0x121   :  { %v850_v7 = vsel %vm4220_vm0, %v2324_v5, 0.0  ;;  %v618_v8 = vpop.f32.mrb[21].mxu0  ;;  %v746_v9 = vpop.f32.mrb[21].mxu1 }
 0x122   :  { %v851_v12 = vadd.f32 %v850_v7, %v849_v4  ;;  %v2330_v13 = vpop.f32.mrb[22].mxu0  ;;  %v2332_v16 = vpop.f32.mrb[22].mxu1 }
 0x123   :  { %v852_v17 = vsel %vm4220_vm0, %v2330_v13, 0.0  ;;  %v621_v18 = vpop.f32.mrb[23].mxu0  ;;  %v749_v19 = vpop.f32.mrb[23].mxu1 }
 0x124   :  { %v853_v20 = vadd.f32 %v852_v17, %v851_v12 }
 0x128   :  { %v2336_v23 = vpop.f32.mrb[24].mxu0  ;;  %v2338_v24 = vpop.f32.mrb[24].mxu1 }
 0x129   :  { %v854_v25 = vsel %vm4220_vm0, %v2336_v23, 0.0  ;;  %v626_v26 = vpop.f32.mrb[25].mxu0  ;;  %v754_v29 = vpop.f32.mrb[25].mxu1 }
 0x12a   :  { %v855_v30 = vadd.f32 %v854_v25, %v853_v20  ;;  %v2342_v31 = vpop.f32.mrb[26].mxu0  ;;  %v2344_v32 = vpop.f32.mrb[26].mxu1 }
 0x12b   :  { %v856_v35 = vsel %vm4220_vm0, %v2342_v31, 0.0  ;;  %v629_v36 = vpop.f32.mrb[27].mxu0  ;;  %v757_v37 = vpop.f32.mrb[27].mxu1 }
 0x12c   :  { %v857_v38 = vadd.f32 %v856_v35, %v855_v30 }
 0x130   :  { %v2348_v41 = vpop.f32.mrb[28].mxu0  ;;  %v2350_v42 = vpop.f32.mrb[28].mxu1 }
 0x131   :  { %v858_v43 = vsel %vm4220_vm0, %v2348_v41, 0.0  ;;  %v634_v44 = vpop.f32.mrb[29].mxu0  ;;  %v762_v47 = vpop.f32.mrb[29].mxu1 }
 0x132   :  { %v859_v48 = vadd.f32 %v858_v43, %v857_v38  ;;  %v2354_v49 = vpop.f32.mrb[30].mxu0  ;;  %v2356_v50 = vpop.f32.mrb[30].mxu1 }
 0x133   :  { %v860_v53 = vsel %vm4220_vm0, %v2354_v49, 0.0  ;;  %v637_v54 = vpop.f32.mrb[31].mxu0  ;;  %v765_v55 = vpop.f32.mrb[31].mxu1 }
 0x134   :  { %v861_v56 = vadd.f32 %v860_v53, %v859_v48 }
 0x138   :  { %v2360_v59 = vpop.f32.mrb[32].mxu0  ;;  %v2362_v60 = vpop.f32.mrb[32].mxu1 }
 0x139   :  { %v862_v61 = vsel %vm4220_vm0, %v2360_v59, 0.0  ;;  %v642_v62 = vpop.f32.mrb[33].mxu0  ;;  %v770_v1 = vpop.f32.mrb[33].mxu1 }
 0x13a   :  { %v863_v2 = vadd.f32 %v862_v61, %v861_v56  ;;  %v2366_v3 = vpop.f32.mrb[34].mxu0  ;;  %v2368_v4 = vpop.f32.mrb[34].mxu1 }
 0x13b   :  { %v864_v7 = vsel %vm4220_vm0, %v2366_v3, 0.0  ;;  %v645_v8 = vpop.f32.mrb[35].mxu0  ;;  %v773_v9 = vpop.f32.mrb[35].mxu1 }
 0x13c   :  { %v865_v12 = vadd.f32 %v864_v7, %v863_v2 }
 0x140   :  { %v2372_v17 = vpop.f32.mrb[36].mxu0  ;;  %v2374_v18 = vpop.f32.mrb[36].mxu1 }
 0x141   :  { %4238 = vst [vmem:[#allocation2_spill] sm:$0xff] %v2372_v17  ;;  %v866_v19 = vsel %vm4220_vm0, %v2372_v17, 0.0  ;;  %v650_v20 = vpop.f32.mrb[37].mxu0  ;;  %v778_v25 = vpop.f32.mrb[37].mxu1 }
 0x142   :  { %v867_v26 = vadd.f32 %v866_v19, %v865_v12  ;;  %v2378_v29 = vpop.f32.mrb[38].mxu0  ;;  %v2380_v30 = vpop.f32.mrb[38].mxu1 }
 0x143   :  { %4239 = vst [vmem:[#allocation3_spill] sm:$0xff] %v2378_v29  ;;  %v868_v35 = vsel %vm4220_vm0, %v2378_v29, 0.0  ;;  %v653_v36 = vpop.f32.mrb[39].mxu0  ;;  %v781_v37 = vpop.f32.mrb[39].mxu1 }
 0x144   :  { %v869_v38 = vadd.f32 %v868_v35, %v867_v26 }
 0x148   :  { %v2384_v43 = vpop.f32.mrb[40].mxu0  ;;  %v2386_v44 = vpop.f32.mrb[40].mxu1 }
 0x149   :  { %4240 = vst [vmem:[#allocation4_spill] sm:$0xff] %v2384_v43  ;;  %v870_v47 = vsel %vm4220_vm0, %v2384_v43, 0.0  ;;  %v658_v48 = vpop.f32.mrb[41].mxu0  ;;  %v786_v53 = vpop.f32.mrb[41].mxu1 }
 0x14a   :  { %v871_v54 = vadd.f32 %v870_v47, %v869_v38  ;;  %v2390_v55 = vpop.f32.mrb[42].mxu0  ;;  %v2392_v56 = vpop.f32.mrb[42].mxu1 }
 0x14b   :  { %4241 = vst [vmem:[#allocation5_spill] sm:$0xff] %v2390_v55  ;;  %v872_v61 = vsel %vm4220_vm0, %v2390_v55, 0.0  ;;  %v661_v62 = vpop.f32.mrb[43].mxu0  ;;  %v789_v1 = vpop.f32.mrb[43].mxu1 }
 0x14c   :  { %v873_v2 = vadd.f32 %v872_v61, %v871_v54 }
 0x150   :  { %v2396_v7 = vpop.f32.mrb[44].mxu0  ;;  %v2398_v8 = vpop.f32.mrb[44].mxu1 }
 0x151   :  { %4242 = vst [vmem:[#allocation6_spill] sm:$0xff] %v2396_v7  ;;  %v874_v9 = vsel %vm4220_vm0, %v2396_v7, 0.0  ;;  %v666_v12 = vpop.f32.mrb[45].mxu0  ;;  %v794_v19 = vpop.f32.mrb[45].mxu1 }
 0x152   :  { %v875_v20 = vadd.f32 %v874_v9, %v873_v2  ;;  %v2402_v25 = vpop.f32.mrb[46].mxu0  ;;  %v2404_v26 = vpop.f32.mrb[46].mxu1 }
 0x153   :  { %4243 = vst [vmem:[#allocation7_spill] sm:$0xff] %v2402_v25  ;;  %v876_v35 = vsel %vm4220_vm0, %v2402_v25, 0.0  ;;  %v669_v36 = vpop.f32.mrb[47].mxu0  ;;  %v797_v37 = vpop.f32.mrb[47].mxu1 }
 0x154   :  { %v877_v38 = vadd.f32 %v876_v35, %v875_v20 }
 0x158   :  { %v2408_v47 = vpop.f32.mrb[48].mxu0  ;;  %v2410_v48 = vpop.f32.mrb[48].mxu1 }
 0x159   :  { %4244 = vst [vmem:[#allocation8_spill] sm:$0xff] %v2408_v47  ;;  %v878_v53 = vsel %vm4220_vm0, %v2408_v47, 0.0  ;;  %v674_v54 = vpop.f32.mrb[49].mxu0  ;;  %v802_v61 = vpop.f32.mrb[49].mxu1 }
 0x15a   :  { %v879_v62 = vadd.f32 %v878_v53, %v877_v38  ;;  %v2414_v1 = vpop.f32.mrb[50].mxu0  ;;  %v2416_v2 = vpop.f32.mrb[50].mxu1 }
 0x15b   :  { %4245 = vst [vmem:[#allocation9_spill] sm:$0xff] %v2414_v1  ;;  %v880_v9 = vsel %vm4220_vm0, %v2414_v1, 0.0  ;;  %v677_v12 = vpop.f32.mrb[51].mxu0  ;;  %v805_v19 = vpop.f32.mrb[51].mxu1 }
 0x15c   :  { %v881_v20 = vadd.f32 %v880_v9, %v879_v62 }
 0x160   :  { %v2420_v35 = vpop.f32.mrb[52].mxu0  ;;  %v2422_v36 = vpop.f32.mrb[52].mxu1 }
 0x161   :  { %4246 = vst [vmem:[#allocation10_spill] sm:$0xff] %v2420_v35  ;;  %4247 = vst [vmem:[#allocation11_spill] sm:$0xff] %v2422_v36  ;;  %v882_v37 = vsel %vm4220_vm0, %v2420_v35, 0.0  ;;  %v682_v54 = vpop.f32.mrb[53].mxu0  ;;  %v810_v61 = vpop.f32.mrb[53].mxu1 }
 0x162   :  { %v883_v38 = vadd.f32 %v882_v37, %v881_v20  ;;  %v2426_v53 = vpop.f32.mrb[54].mxu0  ;;  %v2428_v47 = vpop.f32.mrb[54].mxu1 }
 0x163   :  { %4248 = vst [vmem:[#allocation12_spill] sm:$0xff] %v2426_v53  ;;  %4249 = vst [vmem:[#allocation13_spill] sm:$0xff] %v2428_v47  ;;  %v884_v1 = vsel %vm4220_vm0, %v2426_v53, 0.0  ;;  %v685_v12 = vpop.f32.mrb[55].mxu0  ;;  %v813_v19 = vpop.f32.mrb[55].mxu1 }
 0x164   :  { %v885_v62 = vadd.f32 %v884_v1, %v883_v38 }
 0x168   :  { %v2432_v9 = vpop.f32.mrb[56].mxu0  ;;  %v2434_v25 = vpop.f32.mrb[56].mxu1 }
 0x169   :  { %4250 = vst [vmem:[#allocation14_spill] sm:$0xff] %v2432_v9  ;;  %4251 = vst [vmem:[#allocation15_spill] sm:$0xff] %v2434_v25  ;;  %v886_v35 = vsel %vm4220_vm0, %v2432_v9, 0.0  ;;  %v690_v54 = vpop.f32.mrb[57].mxu0  ;;  %v818_v61 = vpop.f32.mrb[57].mxu1 }
 0x16a   :  { %v887_v20 = vadd.f32 %v886_v35, %v885_v62  ;;  %v2438_v37 = vpop.f32.mrb[58].mxu0  ;;  %v2440_v7 = vpop.f32.mrb[58].mxu1 }
 0x16b   :  { %4252 = vst [vmem:[#allocation16_spill] sm:$0xff] %v2438_v37  ;;  %v888_v53 = vsel %vm4220_vm0, %v2438_v37, 0.0  ;;  %v693_v12 = vpop.f32.mrb[59].mxu0  ;;  %v821_v19 = vpop.f32.mrb[59].mxu1 }
 0x16c   :  { %v889_v1 = vadd.f32 %v888_v53, %v887_v20  ;;  %v894_v20 = vsel %vm4220_vm0, %v2266_v11, 0.0 }
 0x170   :  { %v2444_v38 = vpop.f32.mrb[60].mxu0  ;;  %v2446_v55 = vpop.f32.mrb[60].mxu1 }
 0x171   :  { %4253 = vst [vmem:[#allocation17_spill] sm:$0xff] %v2444_v38  ;;  %v890_v9 = vsel %vm4220_vm0, %v2444_v38, 0.0  ;;  %v698_v54 = vpop.f32.mrb[61].mxu0  ;;  %v826_v61 = vpop.f32.mrb[61].mxu1  ;;  %v896_v38 = vsel %vm4220_vm0, %v2270_v15, 0.0 }
 0x172   :  { %v891_v35 = vadd.f32 %v890_v9, %v889_v1  ;;  %v2450_v62 = vpop.f32.mrb[62].mxu0  ;;  %v2452_v43 = vpop.f32.mrb[62].mxu1  ;;  %v898_v9 = vsel %vm4220_vm0, %v2278_v22, 0.0  ;;  %v900_v61 = vsel %vm4220_vm0, %v2284_v28, 0.0 }
 0x173   :  { %v892_v37 = vsel %vm4220_vm0, %v2450_v62, 0.0  ;;  %v701_v12 = vpop.f32.mrb[63].mxu0  ;;  %v829_v19 = vpop.f32.mrb[63].mxu1 }
 0x174   :  { %v893_v53 = vadd.f32 %v892_v37, %v891_v35  ;;  %v902_v12 = vsel %vm4220_vm0, %v2290_v34, 0.0  ;;  %v904_v35 = vsel %vm4220_vm0, %v2296_v40, 0.0 }
 0x176   :  { %v895_v29 = vadd.f32 %v894_v20, %v893_v53  ;;  %v906_v53 = vsel %vm4220_vm0, %v2302_v46, 0.0 }
 0x178   :  { %v897_v54 = vadd.f32 %v896_v38, %v895_v29  ;;  %v908_v38 = vsel %vm4220_vm0, %v2308_v52, 0.0 }
 0x17a   :  { %v899_v1 = vadd.f32 %v898_v9, %v897_v54  ;;  %v910_v54 = vsel %vm4220_vm0, %v2314_v58, 0.0 }
 0x17c   :  { %v901_v17 = vadd.f32 %v900_v61, %v899_v1  ;;  %v912_v1 = vsel %vm4220_vm0, %v2320_v0, 0.0  ;;  %v914_v61 = vsel %vm4220_vm0, %v2326_v6, 0.0 }
 0x17e   :  { %v903_v37 = vadd.f32 %v902_v12, %v901_v17 }
 0x180   :  { %v905_v19 = vadd.f32 %v904_v35, %v903_v37  ;;  %v916_v37 = vsel %vm4220_vm0, %v2332_v16, 0.0 }
 0x182   :  { %v907_v29 = vadd.f32 %v906_v53, %v905_v19  ;;  %v918_v19 = vsel %vm4220_vm0, %v2338_v24, 0.0 }
 0x184   :  { %v909_v20 = vadd.f32 %v908_v38, %v907_v29  ;;  %v920_v29 = vsel %vm4220_vm0, %v2344_v32, 0.0 }
 0x186   :  { %v911_v9 = vadd.f32 %v910_v54, %v909_v20  ;;  %v922_v20 = vsel %vm4220_vm0, %v2350_v42, 0.0 }
 0x188   :  { %v913_v17 = vadd.f32 %v912_v1, %v911_v9  ;;  %v924_v9 = vsel %vm4220_vm0, %v2356_v50, 0.0 }
 0x18a   :  { %v915_v12 = vadd.f32 %v914_v61, %v913_v17  ;;  %v926_v17 = vsel %vm4220_vm0, %v2362_v60, 0.0 }
 0x18c   :  { %v917_v35 = vadd.f32 %v916_v37, %v915_v12  ;;  %v928_v12 = vsel %vm4220_vm0, %v2368_v4, 0.0 }
 0x18e   :  { %v919_v53 = vadd.f32 %v918_v19, %v917_v35  ;;  %v930_v35 = vsel %vm4220_vm0, %v2374_v18, 0.0 }
 0x190   :  { %v921_v38 = vadd.f32 %v920_v29, %v919_v53  ;;  %v932_v53 = vsel %vm4220_vm0, %v2380_v30, 0.0 }
 0x192   :  { %v923_v54 = vadd.f32 %v922_v20, %v921_v38  ;;  %v934_v38 = vsel %vm4220_vm0, %v2386_v44, 0.0 }
 0x194   :  { %v925_v1 = vadd.f32 %v924_v9, %v923_v54  ;;  %v936_v54 = vsel %vm4220_vm0, %v2392_v56, 0.0 }
 0x196   :  { %v927_v61 = vadd.f32 %v926_v17, %v925_v1  ;;  %v938_v1 = vsel %vm4220_vm0, %v2398_v8, 0.0 }
 0x198   :  { %v929_v37 = vadd.f32 %v928_v12, %v927_v61  ;;  %v940_v61 = vsel %vm4220_vm0, %v2404_v26, 0.0 }
 0x19a   :  { %v931_v19 = vadd.f32 %v930_v35, %v929_v37  ;;  %v942_v37 = vsel %vm4220_vm0, %v2410_v48, 0.0 }
 0x19c   :  { %v933_v29 = vadd.f32 %v932_v53, %v931_v19  ;;  %v944_v19 = vsel %vm4220_vm0, %v2416_v2, 0.0 }
 0x19e   :  { %v935_v20 = vadd.f32 %v934_v38, %v933_v29  ;;  %v946_v29 = vsel %vm4220_vm0, %v2422_v36, 0.0 }
 0x1a0   :  { %v937_v9 = vadd.f32 %v936_v54, %v935_v20  ;;  %v948_v20 = vsel %vm4220_vm0, %v2428_v47, 0.0 }
 0x1a2   :  { %v939_v17 = vadd.f32 %v938_v1, %v937_v9  ;;  %v950_v9 = vsel %vm4220_vm0, %v2434_v25, 0.0 }
 0x1a4   :  { %v941_v12 = vadd.f32 %v940_v61, %v939_v17  ;;  %v952_v17 = vsel %vm4220_vm0, %v2440_v7, 0.0  ;;  %v954_v61 = vsel %vm4220_vm0, %v2446_v55, 0.0 }
 0x1a6   :  { %v943_v35 = vadd.f32 %v942_v37, %v941_v12 }
 0x1a8   :  { %v945_v53 = vadd.f32 %v944_v19, %v943_v35  ;;  %v956_v35 = vsel %vm4220_vm0, %v2452_v43, 0.0 }
 0x1aa   :  { %v947_v38 = vadd.f32 %v946_v29, %v945_v53 }
 0x1ac   :  { %v949_v54 = vadd.f32 %v948_v20, %v947_v38 }
 0x1ae   :  { %v951_v1 = vadd.f32 %v950_v9, %v949_v54 }
 0x1b0   :  { %v953_v12 = vadd.f32 %v952_v17, %v951_v1 }
 0x1b2   :  { %v955_v37 = vadd.f32 %v954_v61, %v953_v12  ;;  %v4259_v61 = vld [vmem:[#allocation3_spill] sm:$0xff]  ;;  %v4261_v12 = vld [vmem:[#allocation4_spill] sm:$0xff] }
 0x1b4   :  { %v957_v19 = vadd.f32 %v956_v35, %v955_v37  ;;  %v4263_v37 = vld [vmem:[#allocation5_spill] sm:$0xff]  ;;  %v4265_v35 = vld [vmem:[#allocation6_spill] sm:$0xff] }
 0x1b6   :  { %v958_v53 = vrot.slane %v957_v19, 4 }
 0x1b8   :  { %v959_v29 = vadd.f32 %v958_v53, %v957_v19  ;;  %v4267_v19 = vld [vmem:[#allocation7_spill] sm:$0xff] }
 0x1ba   :  { %v960_v47 = vrot.slane %v959_v29, 2 }
 0x1bc   :  { %v961_v38 = vadd.f32 %v960_v47, %v959_v29  ;;  %v4269_v29 = vld [vmem:[#allocation8_spill] sm:$0xff] }
 0x1be   :  { %v962_v20 = vrot.slane %v961_v38, 1 }
 0x1c0   :  { %v963_v36 = vadd.f32 %v962_v20, %v961_v38  ;;  %v4271_v20 = vld [vmem:[#allocation9_spill] sm:$0xff] }
 0x1c2   :  { %v2520_v25 = vmul.f32 0.001953125, %v963_v36  ;;  %v4258_v36 = vld [vmem:[#allocation2_spill] sm:$0xff] }
 0x1c4   :  { %v2524_v54 = vsub.f32 %v2264_v10, %v2520_v25  ;;  %v2528_v9 = vsub.f32 %v2268_v14, %v2520_v25  ;;  %v2532_v1 = vsub.f32 %v2276_v21, %v2520_v25  ;;  %v2536_v17 = vsub.f32 %v2282_v27, %v2520_v25 }
 0x1c5   :  { %v2540_v47 = vsub.f32 %v2288_v33, %v2520_v25  ;;  %v2544_v10 = vsub.f32 %v2294_v39, %v2520_v25  ;;  %v2548_v14 = vsub.f32 %v2300_v45, %v2520_v25  ;;  %v2552_v21 = vsub.f32 %v2306_v51, %v2520_v25 }
 0x1c6   :  { %4254 = vst [vmem:[#allocation18_spill] sm:$0xff] %v2524_v54  ;;  %4255 = vst [vmem:[#allocation19_spill] sm:$0xff] %v2528_v9  ;;  %v2556_v27 = vsub.f32 %v2312_v57, %v2520_v25  ;;  %v2560_v33 = vsub.f32 %v2318_v63, %v2520_v25  ;;  %v2564_v39 = vsub.f32 %v2324_v5, %v2520_v25 }
 0x1c7   :  { %4256 = vst [vmem:[#allocation20_spill] sm:$0xff] %v2532_v1  ;;  %4257 = vst [vmem:[#allocation21_spill] sm:$0xff] %v2536_v17  ;;  %v2568_v45 = vsub.f32 %v2330_v13, %v2520_v25  ;;  %v2572_v51 = vsub.f32 %v2336_v23, %v2520_v25  ;;  %v2576_v57 = vsub.f32 %v2342_v31, %v2520_v25 }
 0x1c8   :  { %v2580_v63 = vsub.f32 %v2348_v41, %v2520_v25  ;;  %v2584_v5 = vsub.f32 %v2354_v49, %v2520_v25  ;;  %v2588_v13 = vsub.f32 %v2360_v59, %v2520_v25  ;;  %v2592_v23 = vsub.f32 %v2366_v3, %v2520_v25 }
 0x1c9   :  { %v2596_v31 = vsub.f32 %v4258_v36, %v2520_v25  ;;  %v2600_v41 = vsub.f32 %v4259_v61, %v2520_v25  ;;  %v2604_v49 = vsub.f32 %v4261_v12, %v2520_v25  ;;  %v2608_v59 = vsub.f32 %v4263_v37, %v2520_v25  ;;  %v4272_v61 = vld [vmem:[#allocation10_spill] sm:$0xff]  ;;  %v4273_v37 = vld [vmem:[#allocation12_spill] sm:$0xff] }
 0x1ca   :  { %v2612_v3 = vsub.f32 %v4265_v35, %v2520_v25  ;;  %v2616_v53 = vsub.f32 %v4267_v19, %v2520_v25  ;;  %v2620_v38 = vsub.f32 %v4269_v29, %v2520_v25  ;;  %v2624_v36 = vsub.f32 %v4271_v20, %v2520_v25 }
 0x1cb   :  { %4260 = vst [vmem:[#allocation2_spill] sm:$0xff] %v2600_v41  ;;  %4262 = vst [vmem:[#allocation3_spill] sm:$0xff] %v2604_v49  ;;  %v2628_v12 = vsub.f32 %v4272_v61, %v2520_v25  ;;  %v2632_v35 = vsub.f32 %v4273_v37, %v2520_v25  ;;  %v2648_v61 = vsub.f32 %v2450_v62, %v2520_v25 }
 0x1cc   :  { %4264 = vst [vmem:[#allocation4_spill] sm:$0xff] %v2608_v59  ;;  %4266 = vst [vmem:[#allocation5_spill] sm:$0xff] %v2612_v3  ;;  %v4274_v3 = vld [vmem:[#allocation14_spill] sm:$0xff]  ;;  %v2652_v37 = vsub.f32 %v2266_v11, %v2520_v25  ;;  %v2668_v62 = vsub.f32 %v2290_v34, %v2520_v25  ;;  %v2672_v11 = vsub.f32 %v2296_v40, %v2520_v25 }
 0x1cd   :  { %4268 = vst [vmem:[#allocation6_spill] sm:$0xff] %v2616_v53  ;;  %4270 = vst [vmem:[#allocation7_spill] sm:$0xff] %v2620_v38  ;;  %v2636_v19 = vsub.f32 %v4274_v3, %v2520_v25  ;;  %v4275_v53 = vld [vmem:[#allocation16_spill] sm:$0xff]  ;;  %v4276_v38 = vld [vmem:[#allocation17_spill] sm:$0xff]  ;;  %v2656_v3 = vsub.f32 %v2270_v15, %v2520_v25  ;;  %v2676_v15 = vsub.f32 %v2302_v46, %v2520_v25 }
 0x1ce   :  { %v2640_v29 = vsub.f32 %v4275_v53, %v2520_v25  ;;  %v2644_v20 = vsub.f32 %v4276_v38, %v2520_v25  ;;  %v2660_v53 = vsub.f32 %v2278_v22, %v2520_v25  ;;  %v2664_v38 = vsub.f32 %v2284_v28, %v2520_v25 }
 0x1cf   :  { %4277 = vst [vmem:[#allocation8_spill] sm:$0xff] %v2676_v15  ;;  %v2680_v22 = vsub.f32 %v2308_v52, %v2520_v25  ;;  %v2684_v28 = vsub.f32 %v2314_v58, %v2520_v25  ;;  %v2688_v34 = vsub.f32 %v2320_v0, %v2520_v25  ;;  %v2692_v40 = vsub.f32 %v2326_v6, %v2520_v25 }
 0x1d0   :  { %v2696_v46 = vsub.f32 %v2332_v16, %v2520_v25  ;;  %v2700_v52 = vsub.f32 %v2338_v24, %v2520_v25  ;;  %v2704_v58 = vsub.f32 %v2344_v32, %v2520_v25  ;;  %v2708_v0 = vsub.f32 %v2350_v42, %v2520_v25 }
 0x1d1   :  { %4278 = vst [vmem:[#allocation9_spill] sm:$0xff] %v2680_v22  ;;  %4279 = vst [vmem:[#allocation10_spill] sm:$0xff] %v2684_v28  ;;  %v2712_v6 = vsub.f32 %v2356_v50, %v2520_v25  ;;  %v2716_v16 = vsub.f32 %v2362_v60, %v2520_v25  ;;  %v2720_v24 = vsub.f32 %v2368_v4, %v2520_v25 }
 0x1d2   :  { %4280 = vst [vmem:[#allocation12_spill] sm:$0xff] %v2688_v34  ;;  %4281 = vst [vmem:[#allocation14_spill] sm:$0xff] %v2692_v40  ;;  %v2724_v32 = vsub.f32 %v2374_v18, %v2520_v25  ;;  %v2728_v42 = vsub.f32 %v2380_v30, %v2520_v25  ;;  %v2732_v50 = vsub.f32 %v2386_v44, %v2520_v25 }
 0x1d3   :  { %4282 = vst [vmem:[#allocation16_spill] sm:$0xff] %v2696_v46  ;;  %4283 = vst [vmem:[#allocation17_spill] sm:$0xff] %v2700_v52  ;;  %v2736_v60 = vsub.f32 %v2392_v56, %v2520_v25  ;;  %v2740_v4 = vsub.f32 %v2398_v8, %v2520_v25  ;;  %v2744_v18 = vsub.f32 %v2404_v26, %v2520_v25 }
 0x1d4   :  { %4284 = vst [vmem:[#allocation22_spill] sm:$0xff] %v2704_v58  ;;  %4285 = vst [vmem:[#allocation23_spill] sm:$0xff] %v2708_v0  ;;  %v2748_v30 = vsub.f32 %v2410_v48, %v2520_v25  ;;  %v2752_v44 = vsub.f32 %v2416_v2, %v2520_v25  ;;  %v2768_v48 = vsub.f32 %v2440_v7, %v2520_v25 }
 0x1d5   :  { %4286 = vst [vmem:[#allocation24_spill] sm:$0xff] %v2712_v6  ;;  %4287 = vst [vmem:[#allocation25_spill] sm:$0xff] %v2716_v16  ;;  %v2772_v2 = vsub.f32 %v2446_v55, %v2520_v25  ;;  %v1033_v7 = vmul.f32 %v2536_v17, %v2536_v17  ;;  %v1036_v17 = vmul.f32 %v2548_v14, %v2548_v14 }
 0x1d6   :  { %4288 = vst [vmem:[#allocation26_spill] sm:$0xff] %v2720_v24  ;;  %4289 = vst [vmem:[#allocation27_spill] sm:$0xff] %v2724_v32 }
 0x1d7   :  { %4290 = vst [vmem:[#allocation28_spill] sm:$0xff] %v2728_v42  ;;  %4291 = vst [vmem:[#allocation29_spill] sm:$0xff] %v2732_v50  ;;  %v4294_v50 = vld [vmem:[#allocation11_spill] sm:$0xff] }
 0x1d8   :  { %4292 = vst [vmem:[#allocation30_spill] sm:$0xff] %v2736_v60  ;;  %4293 = vst [vmem:[#allocation31_spill] sm:$0xff] %v2740_v4  ;;  %v2756_v56 = vsub.f32 %v4294_v50, %v2520_v25  ;;  %v4295_v60 = vld [vmem:[#allocation13_spill] sm:$0xff]  ;;  %v4297_v4 = vld [vmem:[#allocation15_spill] sm:$0xff]  ;;  %v2776_v50 = vsub.f32 %v2452_v43, %v2520_v25  ;;  %v1034_v43 = vmul.f32 %v2540_v47, %v2540_v47 }
 0x1d9   :  { %v2760_v8 = vsub.f32 %v4295_v60, %v2520_v25  ;;  %v2764_v26 = vsub.f32 %v4297_v4, %v2520_v25  ;;  %4299 = vst [vmem:[#allocation15_spill] sm:$0xff] %v2768_v48  ;;  %4300 = vst [vmem:[#allocation32_spill] sm:$0xff] %v2772_v2  ;;  %v1030_v60 = vmul.f32 %v2524_v54, %v2524_v54 }
 0x1da   :  { %4301 = vst [vmem:[#allocation33_spill] sm:$0xff] %v2776_v50  ;;  %v1032_v4 = vmul.f32 %v2532_v1, %v2532_v1  ;;  %v1099_v50 = vsel %vm4220_vm0, %v1033_v7, 0.0 }
 0x1db   :  { %4296 = vst [vmem:[#allocation11_spill] sm:$0xff] %v2760_v8  ;;  %4298 = vst [vmem:[#allocation13_spill] sm:$0xff] %v2764_v26  ;;  %v1031_v8 = vmul.f32 %v2528_v9, %v2528_v9  ;;  %v1094_v48 = vsel %vm4220_vm0, %v1030_v60, 0.0  ;;  %v1035_v9 = vmul.f32 %v2544_v10, %v2544_v10  ;;  %v1101_v60 = vsel %vm4220_vm0, %v1034_v43, 0.0 }
 0x1dc   :  { %v1097_v25 = vsel %vm4220_vm0, %v1032_v4, 0.0  ;;  %v1105_v4 = vsel %vm4220_vm0, %v1036_v17, 0.0  ;;  %v1042_v17 = vmul.f32 %v2572_v51, %v2572_v51 }
 0x1dd   :  { %v1095_v55 = vsel %vm4220_vm0, %v1031_v8, 0.0  ;;  %v1037_v8 = vmul.f32 %v2552_v21, %v2552_v21 }
 0x1de   :  { %v1096_v2 = vadd.f32 %v1095_v55, %v1094_v48  ;;  %v1103_v48 = vsel %vm4220_vm0, %v1035_v9, 0.0  ;;  %v1041_v9 = vmul.f32 %v2568_v45, %v2568_v45 }
 0x1e0   :  { %v1098_v54 = vadd.f32 %v1097_v25, %v1096_v2  ;;  %v1038_v2 = vmul.f32 %v2556_v27, %v2556_v27 }
 0x1e2   :  { %v1100_v1 = vadd.f32 %v1099_v50, %v1098_v54  ;;  %v1039_v54 = vmul.f32 %v2560_v33, %v2560_v33  ;;  %v1107_v50 = vsel %vm4220_vm0, %v1037_v8, 0.0  ;;  %v1109_v43 = vsel %vm4220_vm0, %v1038_v2, 0.0 }
 0x1e3   :  { %v1043_v8 = vmul.f32 %v2576_v57, %v2576_v57  ;;  %v1044_v2 = vmul.f32 %v2580_v63, %v2580_v63 }
 0x1e4   :  { %v1102_v26 = vadd.f32 %v1101_v60, %v1100_v1  ;;  %v1040_v1 = vmul.f32 %v2564_v39, %v2564_v39 }
 0x1e6   :  { %v1104_v55 = vadd.f32 %v1103_v48, %v1102_v26  ;;  %v1111_v26 = vsel %vm4220_vm0, %v1039_v54, 0.0  ;;  %v1045_v54 = vmul.f32 %v2584_v5, %v2584_v5 }
 0x1e8   :  { %v1106_v25 = vadd.f32 %v1105_v4, %v1104_v55  ;;  %v1113_v55 = vsel %vm4220_vm0, %v1040_v1, 0.0  ;;  %v1046_v1 = vmul.f32 %v2588_v13, %v2588_v13 }
 0x1ea   :  { %v1108_v7 = vadd.f32 %v1107_v50, %v1106_v25  ;;  %v1115_v25 = vsel %vm4220_vm0, %v1041_v9, 0.0  ;;  %v1047_v9 = vmul.f32 %v2592_v23, %v2592_v23 }
 0x1ec   :  { %v1110_v60 = vadd.f32 %v1109_v43, %v1108_v7  ;;  %v1117_v7 = vsel %vm4220_vm0, %v1042_v17, 0.0  ;;  %v1048_v17 = vmul.f32 %v2596_v31, %v2596_v31 }
 0x1ee   :  { %v1112_v48 = vadd.f32 %v1111_v26, %v1110_v60  ;;  %v1119_v60 = vsel %vm4220_vm0, %v1043_v8, 0.0  ;;  %v1049_v8 = vmul.f32 %v2600_v41, %v2600_v41 }
 0x1f0   :  { %v1114_v4 = vadd.f32 %v1113_v55, %v1112_v48  ;;  %v1121_v48 = vsel %vm4220_vm0, %v1044_v2, 0.0  ;;  %v1050_v2 = vmul.f32 %v2604_v49, %v2604_v49 }
 0x1f2   :  { %v1116_v50 = vadd.f32 %v1115_v25, %v1114_v4  ;;  %v1123_v4 = vsel %vm4220_vm0, %v1045_v54, 0.0  ;;  %v1051_v54 = vmul.f32 %v2608_v59, %v2608_v59 }
 0x1f4   :  { %v1118_v43 = vadd.f32 %v1117_v7, %v1116_v50  ;;  %v1125_v50 = vsel %vm4220_vm0, %v1046_v1, 0.0  ;;  %v4302_v1 = vld [vmem:[#allocation5_spill] sm:$0xff] }
 0x1f6   :  { %v1120_v26 = vadd.f32 %v1119_v60, %v1118_v43  ;;  %v1127_v43 = vsel %vm4220_vm0, %v1047_v9, 0.0  ;;  %v4303_v9 = vld [vmem:[#allocation6_spill] sm:$0xff] }
 0x1f8   :  { %v1122_v55 = vadd.f32 %v1121_v48, %v1120_v26  ;;  %v1129_v26 = vsel %vm4220_vm0, %v1048_v17, 0.0  ;;  %v4304_v17 = vld [vmem:[#allocation7_spill] sm:$0xff] }
 0x1fa   :  { %v1124_v25 = vadd.f32 %v1123_v4, %v1122_v55  ;;  %v1131_v55 = vsel %vm4220_vm0, %v1049_v8, 0.0  ;;  %v1055_v8 = vmul.f32 %v2624_v36, %v2624_v36 }
 0x1fc   :  { %v1126_v7 = vadd.f32 %v1125_v50, %v1124_v25  ;;  %v1052_v25 = vmul.f32 %v4302_v1, %v4302_v1  ;;  %v1133_v50 = vsel %vm4220_vm0, %v1050_v2, 0.0  ;;  %v1056_v2 = vmul.f32 %v2628_v12, %v2628_v12 }
 0x1fe   :  { %v1128_v60 = vadd.f32 %v1127_v43, %v1126_v7  ;;  %v1053_v7 = vmul.f32 %v4303_v9, %v4303_v9  ;;  %v1135_v43 = vsel %vm4220_vm0, %v1051_v54, 0.0  ;;  %v1143_v54 = vsel %vm4220_vm0, %v1055_v8, 0.0 }
 0x1ff   :  { %v1061_v8 = vmul.f32 %v2648_v61, %v2648_v61 }
 0x200   :  { %v1130_v48 = vadd.f32 %v1129_v26, %v1128_v60  ;;  %v1054_v60 = vmul.f32 %v4304_v17, %v4304_v17  ;;  %v1137_v26 = vsel %vm4220_vm0, %v1052_v25, 0.0  ;;  %v1145_v25 = vsel %vm4220_vm0, %v1056_v2, 0.0 }
 0x201   :  { %v1062_v2 = vmul.f32 %v2652_v37, %v2652_v37 }
 0x202   :  { %v1132_v4 = vadd.f32 %v1131_v55, %v1130_v48  ;;  %v1139_v48 = vsel %vm4220_vm0, %v1053_v7, 0.0 }
 0x204   :  { %v1134_v41 = vadd.f32 %v1133_v50, %v1132_v4  ;;  %v1141_v4 = vsel %vm4220_vm0, %v1054_v60, 0.0  ;;  %v1060_v60 = vmul.f32 %v2644_v20, %v2644_v20 }
 0x206   :  { %v1136_v49 = vadd.f32 %v1135_v43, %v1134_v41  ;;  %v1057_v41 = vmul.f32 %v2632_v35, %v2632_v35 }
 0x208   :  { %v1138_v59 = vadd.f32 %v1137_v26, %v1136_v49  ;;  %v1058_v49 = vmul.f32 %v2636_v19, %v2636_v19  ;;  %v1147_v7 = vsel %vm4220_vm0, %v1057_v41, 0.0  ;;  %v1063_v41 = vmul.f32 %v2656_v3, %v2656_v3 }
 0x20a   :  { %v1140_v55 = vadd.f32 %v1139_v48, %v1138_v59  ;;  %v1059_v59 = vmul.f32 %v2640_v29, %v2640_v29 }
 0x20c   :  { %v1142_v50 = vadd.f32 %v1141_v4, %v1140_v55  ;;  %v1149_v55 = vsel %vm4220_vm0, %v1058_v49, 0.0  ;;  %v1064_v49 = vmul.f32 %v2660_v53, %v2660_v53 }
 0x20e   :  { %v1144_v43 = vadd.f32 %v1143_v54, %v1142_v50  ;;  %v1151_v50 = vsel %vm4220_vm0, %v1059_v59, 0.0  ;;  %v1065_v59 = vmul.f32 %v2664_v38, %v2664_v38 }
 0x210   :  { %v1146_v26 = vadd.f32 %v1145_v25, %v1144_v43  ;;  %v1153_v43 = vsel %vm4220_vm0, %v1060_v60, 0.0  ;;  %v1066_v60 = vmul.f32 %v2668_v62, %v2668_v62 }
 0x212   :  { %v1148_v48 = vadd.f32 %v1147_v7, %v1146_v26  ;;  %v1155_v26 = vsel %vm4220_vm0, %v1061_v8, 0.0  ;;  %v1067_v8 = vmul.f32 %v2672_v11, %v2672_v11 }
 0x214   :  { %v1150_v4 = vadd.f32 %v1149_v55, %v1148_v48  ;;  %v1157_v48 = vsel %vm4220_vm0, %v1062_v2, 0.0  ;;  %v1068_v2 = vmul.f32 %v2676_v15, %v2676_v15 }
 0x216   :  { %v1152_v54 = vadd.f32 %v1151_v50, %v1150_v4  ;;  %v1159_v4 = vsel %vm4220_vm0, %v1063_v41, 0.0  ;;  %v1069_v41 = vmul.f32 %v2680_v22, %v2680_v22  ;;  %v1982_v22 = vmov 1966171168  }
 0x217   :  { %v1688_v15 = vunpack.c.l.s4 %v1982_v22 }
 0x218   :  { %v1154_v25 = vadd.f32 %v1153_v43, %v1152_v54  ;;  %v1161_v54 = vsel %vm4220_vm0, %v1064_v49, 0.0  ;;  %v1070_v49 = vmul.f32 %v2684_v28, %v2684_v28 }
 0x21a   :  { %v1156_v7 = vadd.f32 %v1155_v26, %v1154_v25  ;;  %v1163_v25 = vsel %vm4220_vm0, %v1065_v59, 0.0  ;;  %v1071_v59 = vmul.f32 %v2688_v34, %v2688_v34 }
 0x21c   :  { %v1158_v55 = vadd.f32 %v1157_v48, %v1156_v7  ;;  %v1165_v7 = vsel %vm4220_vm0, %v1066_v60, 0.0  ;;  %v1072_v60 = vmul.f32 %v2692_v40, %v2692_v40 }
 0x21e   :  { %v1160_v50 = vadd.f32 %v1159_v4, %v1158_v55  ;;  %v1167_v55 = vsel %vm4220_vm0, %v1067_v8, 0.0  ;;  %v1073_v8 = vmul.f32 %v2696_v46, %v2696_v46 }
 0x220   :  { %v1162_v43 = vadd.f32 %v1161_v54, %v1160_v50  ;;  %v1169_v50 = vsel %vm4220_vm0, %v1068_v2, 0.0  ;;  %v1074_v2 = vmul.f32 %v2700_v52, %v2700_v52 }
 0x222   :  { %v1164_v26 = vadd.f32 %v1163_v25, %v1162_v43  ;;  %v1171_v43 = vsel %vm4220_vm0, %v1069_v41, 0.0  ;;  %v1075_v41 = vmul.f32 %v2704_v58, %v2704_v58 }
 0x224   :  { %v1166_v48 = vadd.f32 %v1165_v7, %v1164_v26  ;;  %v1173_v26 = vsel %vm4220_vm0, %v1070_v49, 0.0  ;;  %v1076_v49 = vmul.f32 %v2708_v0, %v2708_v0 }
 0x226   :  { %v1168_v4 = vadd.f32 %v1167_v55, %v1166_v48  ;;  %v1175_v48 = vsel %vm4220_vm0, %v1071_v59, 0.0  ;;  %v1077_v59 = vmul.f32 %v2712_v6, %v2712_v6 }
 0x228   :  { %v1170_v54 = vadd.f32 %v1169_v50, %v1168_v4  ;;  %v1177_v4 = vsel %vm4220_vm0, %v1072_v60, 0.0  ;;  %v1078_v60 = vmul.f32 %v2716_v16, %v2716_v16 }
 0x22a   :  { %v1172_v25 = vadd.f32 %v1171_v43, %v1170_v54  ;;  %v1179_v54 = vsel %vm4220_vm0, %v1073_v8, 0.0  ;;  %v1079_v8 = vmul.f32 %v2720_v24, %v2720_v24 }
 0x22c   :  { %v1174_v7 = vadd.f32 %v1173_v26, %v1172_v25  ;;  %v1181_v25 = vsel %vm4220_vm0, %v1074_v2, 0.0  ;;  %v1080_v2 = vmul.f32 %v2724_v32, %v2724_v32 }
 0x22e   :  { %v1176_v55 = vadd.f32 %v1175_v48, %v1174_v7  ;;  %v1183_v7 = vsel %vm4220_vm0, %v1075_v41, 0.0  ;;  %v1081_v41 = vmul.f32 %v2728_v42, %v2728_v42 }
 0x230   :  { %v1178_v50 = vadd.f32 %v1177_v4, %v1176_v55  ;;  %v1185_v55 = vsel %vm4220_vm0, %v1076_v49, 0.0  ;;  %v4305_v49 = vld [vmem:[#allocation29_spill] sm:$0xff] }
 0x232   :  { %v1180_v43 = vadd.f32 %v1179_v54, %v1178_v50  ;;  %v1187_v50 = vsel %vm4220_vm0, %v1077_v59, 0.0  ;;  %v4306_v59 = vld [vmem:[#allocation30_spill] sm:$0xff] }
 0x234   :  { %v1182_v26 = vadd.f32 %v1181_v25, %v1180_v43  ;;  %v1189_v43 = vsel %vm4220_vm0, %v1078_v60, 0.0  ;;  %v4307_v60 = vld [vmem:[#allocation31_spill] sm:$0xff] }
 0x236   :  { %v1184_v48 = vadd.f32 %v1183_v7, %v1182_v26  ;;  %v1191_v26 = vsel %vm4220_vm0, %v1079_v8, 0.0  ;;  %v1085_v8 = vmul.f32 %v2744_v18, %v2744_v18 }
 0x238   :  { %v1186_v4 = vadd.f32 %v1185_v55, %v1184_v48  ;;  %v1082_v48 = vmul.f32 %v4305_v49, %v4305_v49  ;;  %v1193_v55 = vsel %vm4220_vm0, %v1080_v2, 0.0  ;;  %v1086_v2 = vmul.f32 %v2748_v30, %v2748_v30 }
 0x23a   :  { %v1188_v54 = vadd.f32 %v1187_v50, %v1186_v4  ;;  %v1083_v4 = vmul.f32 %v4306_v59, %v4306_v59  ;;  %v1195_v50 = vsel %vm4220_vm0, %v1081_v41, 0.0  ;;  %v1203_v41 = vsel %vm4220_vm0, %v1085_v8, 0.0  ;;  %v4310_v8 = vld [vmem:[#allocation15_spill] sm:$0xff] }
 0x23c   :  { %v1190_v25 = vadd.f32 %v1189_v43, %v1188_v54  ;;  %v1084_v54 = vmul.f32 %v4307_v60, %v4307_v60  ;;  %v1197_v43 = vsel %vm4220_vm0, %v1082_v48, 0.0  ;;  %v1205_v48 = vsel %vm4220_vm0, %v1086_v2, 0.0  ;;  %v4311_v2 = vld [vmem:[#allocation32_spill] sm:$0xff] }
 0x23e   :  { %v1192_v7 = vadd.f32 %v1191_v26, %v1190_v25  ;;  %v1199_v25 = vsel %vm4220_vm0, %v1083_v4, 0.0  ;;  %v4308_v4 = vld [vmem:[#allocation11_spill] sm:$0xff] }
 0x240   :  { %v1194_v24 = vadd.f32 %v1193_v55, %v1192_v7  ;;  %v1201_v7 = vsel %vm4220_vm0, %v1084_v54, 0.0  ;;  %v4309_v54 = vld [vmem:[#allocation13_spill] sm:$0xff] }
 0x242   :  { %v1196_v32 = vadd.f32 %v1195_v50, %v1194_v24  ;;  %v1087_v24 = vmul.f32 %v2752_v44, %v2752_v44 }
 0x244   :  { %v1198_v42 = vadd.f32 %v1197_v43, %v1196_v32  ;;  %v1088_v32 = vmul.f32 %v2756_v56, %v2756_v56 }
 0x246   :  { %v1200_v26 = vadd.f32 %v1199_v25, %v1198_v42  ;;  %v1089_v42 = vmul.f32 %v4308_v4, %v4308_v4  ;;  %v1207_v25 = vsel %vm4220_vm0, %v1087_v24, 0.0  ;;  %v4312_v24 = vld [vmem:[#allocation33_spill] sm:$0xff] }
 0x248   :  { %v1202_v55 = vadd.f32 %v1201_v7, %v1200_v26  ;;  %v1090_v26 = vmul.f32 %v4309_v54, %v4309_v54  ;;  %v1209_v7 = vsel %vm4220_vm0, %v1088_v32, 0.0 }
 0x24a   :  { %v1204_v50 = vadd.f32 %v1203_v41, %v1202_v55  ;;  %v1091_v55 = vmul.f32 %v4310_v8, %v4310_v8  ;;  %v1211_v41 = vsel %vm4220_vm0, %v1089_v42, 0.0 }
 0x24c   :  { %v1206_v43 = vadd.f32 %v1205_v48, %v1204_v50  ;;  %v1092_v50 = vmul.f32 %v4311_v2, %v4311_v2  ;;  %v1213_v48 = vsel %vm4220_vm0, %v1090_v26, 0.0 }
 0x24e   :  { %v1208_v16 = vadd.f32 %v1207_v25, %v1206_v43  ;;  %v1093_v43 = vmul.f32 %v4312_v24, %v4312_v24  ;;  %v1215_v25 = vsel %vm4220_vm0, %v1091_v55, 0.0 }
 0x250   :  { %v1210_v6 = vadd.f32 %v1209_v7, %v1208_v16  ;;  %v1217_v16 = vsel %vm4220_vm0, %v1092_v50, 0.0  ;;  %v1219_v7 = vsel %vm4220_vm0, %v1093_v43, 0.0  ;;  %v1689_v50 = vunpack.c.0.s8 %v1688_v15 }
 0x252   :  { %v1212_v0 = vadd.f32 %v1211_v41, %v1210_v6 }
 0x254   :  { %v1214_v58 = vadd.f32 %v1213_v48, %v1212_v0  ;;  %v1233_v48 = vlaneseq }
 0x256   :  { %v1216_v52 = vadd.f32 %v1215_v25, %v1214_v58  ;;  %v1234_v55 = vshrl.u32 %v1233_v48, 7  ;;  %v4325_v48 = vld [vmem:[#allocation20_spill] sm:$0xff] }
 0x258   :  { %v1218_v32 = vadd.f32 %v1217_v16, %v1216_v52  ;;  %v1228_v52 = vld [vmem:[%s4151_s2] sm:$0x1]  ;;  %v1235_v25 = vsub.s32 0, %v1234_v55 }
 0x25a   :  { %v1220_v46 = vadd.f32 %v1219_v7, %v1218_v32 }
 0x25c   :  { %v1221_v42 = vrot.slane %v1220_v46, 4 }
 0x25e   :  { %v1222_v6 = vadd.f32 %v1221_v42, %v1220_v46  ;;  %v1853_v46 = vld.sshfl [vmem:[%s4152_s4] sm:$0x11 pattern:$0x75316420] }
 0x260   :  { %v1223_v41 = vrot.slane %v1222_v6, 2 }
 0x262   :  { %v1224_v40 = vadd.f32 %v1223_v41, %v1222_v6 }
 0x264   :  { %v1225_v34 = vrot.slane %v1224_v40, 1 }
 0x266   :  { %v1226_v28 = vadd.f32 %v1225_v34, %v1224_v40  ;;  %v1686_v34 = vcombine.high %v1853_v46, %v1853_v46 }
 0x268   :  { %v1227_v26 = vmul.f32 0.001953125, %v1226_v28  ;;  %v1692_v28 = vsub.s32 %v1689_v50, %v1234_v55 }
 0x26a   :  { %v1229_v0 = vadd.f32 1e-05, %v1227_v26  ;;  %v1693_v16 = vrot.slane %v1853_v46, %v1692_v28  ;;  %v1700_v32 = vrot.slane %v1686_v34, %v1692_v28  ;;  %v4328_v28 = vld [vmem:[#allocation2_spill] sm:$0xff] }
 0x26c   :  { %1979 = vrsqrt.f32 %v1229_v0  ;;  %v3026_v41 = vrot.slane %v1693_v16, %v1235_v25  ;;  %v4324_v0 = vld [vmem:[#allocation19_spill] sm:$0xff]  ;;  %v3034_v55 = vrot.slane %v1700_v32, %v1235_v25  ;;  %v4330_v32 = vld [vmem:[#allocation4_spill] sm:$0xff] }
 0x26d   :  { %v4329_v16 = vld [vmem:[#allocation3_spill] sm:$0xff] }
 0x26e   :  { %4322 = vst [vmem:[#allocation32_spill] sm:$0xff] %v3026_v41  ;;  %4326 = vst [vmem:[#allocation33_spill] sm:$0xff] %v3034_v55  ;;  %v4335_v55 = vld [vmem:[#allocation14_spill] sm:$0xff]  ;;  %v4337_v41 = vld [vmem:[#allocation17_spill] sm:$0xff] }
 0x276   :  { %v1980_v58 = vpop.eup %1979 }
 0x277   :  { %v1231_v43 = vmul.f32 %v1980_v58, %v1228_v52  ;;  %v4327_v58 = vld [vmem:[#allocation21_spill] sm:$0xff] }
 0x279   :  { %v2976_v40 = vrot.slane %v1231_v43, %v1235_v25 }
 0x27b   :  { %v2980_v22 = vmul.f32 %v2976_v40, %v4305_v49  ;;  %v2984_v7 = vmul.f32 %v2976_v40, %v4306_v59  ;;  %v2988_v15 = vmul.f32 %v2976_v40, %v4307_v60  ;;  %v2992_v42 = vmul.f32 %v2976_v40, %v2744_v18 }
 0x27c   :  { %v2996_v6 = vmul.f32 %v2976_v40, %v2748_v30  ;;  %v3000_v49 = vmul.f32 %v2976_v40, %v2752_v44  ;;  %v3004_v59 = vmul.f32 %v2976_v40, %v2756_v56  ;;  %v3008_v60 = vmul.f32 %v2976_v40, %v4308_v4  ;;  %v4323_v4 = vld [vmem:[#allocation18_spill] sm:$0xff] }
 0x27d   :  { %4313 = vst [vmem:[#allocation5_spill] sm:$0xff] %v2992_v42  ;;  %v3012_v18 = vmul.f32 %v2976_v40, %v4309_v54  ;;  %v3016_v30 = vmul.f32 %v2976_v40, %v4310_v8  ;;  %v3020_v44 = vmul.f32 %v2976_v40, %v4311_v2  ;;  %v3024_v56 = vmul.f32 %v2976_v40, %v4312_v24  ;;  %v4344_v42 = vld [vmem:[#allocation28_spill] sm:$0xff] }
 0x27e   :  { %4314 = vst [vmem:[#allocation6_spill] sm:$0xff] %v2996_v6  ;;  %4315 = vst [vmem:[#allocation7_spill] sm:$0xff] %v3000_v49  ;;  %v1238_v26 = vmul.f32 %v2976_v40, %v4323_v4  ;;  %v1239_v54 = vmul.f32 %v2976_v40, %v4324_v0  ;;  %v1240_v8 = vmul.f32 %v2976_v40, %v4325_v48  ;;  %v4343_v6 = vld [vmem:[#allocation27_spill] sm:$0xff] }
 0x27f   :  { %4316 = vst [vmem:[#allocation29_spill] sm:$0xff] %v3004_v59  ;;  %4317 = vst [vmem:[#allocation30_spill] sm:$0xff] %v3008_v60  ;;  %v1241_v2 = vmul.f32 %v2976_v40, %v4327_v58  ;;  %v1242_v24 = vmul.f32 %v2976_v40, %v2540_v47  ;;  %v1243_v52 = vmul.f32 %v2976_v40, %v2544_v10  ;;  %v4331_v58 = vld [vmem:[#allocation8_spill] sm:$0xff]  ;;  %v4342_v59 = vld [vmem:[#allocation26_spill] sm:$0xff] }
 0x280   :  { %4318 = vst [vmem:[#allocation31_spill] sm:$0xff] %v3012_v18  ;;  %4319 = vst [vmem:[#allocation11_spill] sm:$0xff] %v3016_v30  ;;  %v1244_v50 = vmul.f32 %v2976_v40, %v2548_v14  ;;  %v1245_v43 = vmul.f32 %v2976_v40, %v2552_v21  ;;  %v1246_v46 = vmul.f32 %v2976_v40, %v2556_v27  ;;  %v4340_v30 = vld [vmem:[#allocation24_spill] sm:$0xff]  ;;  %v4341_v18 = vld [vmem:[#allocation25_spill] sm:$0xff] }
 0x281   :  { %4320 = vst [vmem:[#allocation13_spill] sm:$0xff] %v3020_v44  ;;  %4321 = vst [vmem:[#allocation15_spill] sm:$0xff] %v3024_v56  ;;  %v1247_v25 = vmul.f32 %v2976_v40, %v2560_v33  ;;  %v1248_v34 = vmul.f32 %v2976_v40, %v2564_v39  ;;  %v1249_v47 = vmul.f32 %v2976_v40, %v2568_v45  ;;  %v4338_v56 = vld [vmem:[#allocation22_spill] sm:$0xff]  ;;  %v4339_v44 = vld [vmem:[#allocation23_spill] sm:$0xff] }
 0x282   :  { %v1250_v10 = vmul.f32 %v2976_v40, %v2572_v51  ;;  %v1251_v14 = vmul.f32 %v2976_v40, %v2576_v57  ;;  %v1252_v21 = vmul.f32 %v2976_v40, %v2580_v63  ;;  %v1253_v27 = vmul.f32 %v2976_v40, %v2584_v5 }
 0x283   :  { %v1254_v33 = vmul.f32 %v2976_v40, %v2588_v13  ;;  %v1255_v39 = vmul.f32 %v2976_v40, %v2592_v23  ;;  %v1256_v45 = vmul.f32 %v2976_v40, %v2596_v31  ;;  %v1257_v51 = vmul.f32 %v2976_v40, %v4328_v28  ;;  %v4332_v28 = vld [vmem:[#allocation9_spill] sm:$0xff] }
 0x284   :  { %v1258_v57 = vmul.f32 %v2976_v40, %v4329_v16  ;;  %v1259_v63 = vmul.f32 %v2976_v40, %v4330_v32  ;;  %v1260_v5 = vmul.f32 %v2976_v40, %v4302_v1  ;;  %v1261_v13 = vmul.f32 %v2976_v40, %v4303_v9  ;;  %v4333_v16 = vld [vmem:[#allocation10_spill] sm:$0xff]  ;;  %v4334_v32 = vld [vmem:[#allocation12_spill] sm:$0xff] }
 0x285   :  { %v1262_v23 = vmul.f32 %v2976_v40, %v4304_v17  ;;  %v1263_v31 = vmul.f32 %v2976_v40, %v2624_v36  ;;  %v1264_v4 = vmul.f32 %v2976_v40, %v2628_v12  ;;  %v1265_v0 = vmul.f32 %v2976_v40, %v2632_v35 }
 0x286   :  { %v1266_v48 = vmul.f32 %v2976_v40, %v2636_v19  ;;  %v1267_v1 = vmul.f32 %v2976_v40, %v2640_v29  ;;  %v1268_v9 = vmul.f32 %v2976_v40, %v2644_v20  ;;  %v1269_v17 = vmul.f32 %v2976_v40, %v2648_v61 }
 0x287   :  { %v1270_v36 = vmul.f32 %v2976_v40, %v2652_v37  ;;  %v1271_v12 = vmul.f32 %v2976_v40, %v2656_v3  ;;  %v1272_v35 = vmul.f32 %v2976_v40, %v2660_v53  ;;  %v1273_v19 = vmul.f32 %v2976_v40, %v2664_v38 }
 0x288   :  { %v1274_v29 = vmul.f32 %v2976_v40, %v2668_v62  ;;  %v1275_v20 = vmul.f32 %v2976_v40, %v2672_v11  ;;  %v1276_v61 = vmul.f32 %v2976_v40, %v4331_v58  ;;  %v1277_v37 = vmul.f32 %v2976_v40, %v4332_v28  ;;  %v3119_v62 = vld [vmem:[%s4153_s3] ss:$0 sm:$0xff]  ;;  %v4336_v11 = vld [vmem:[#allocation16_spill] sm:$0xff] }
 0x289   :  { %v1278_v3 = vmul.f32 %v2976_v40, %v4333_v16  ;;  %v1279_v53 = vmul.f32 %v2976_v40, %v4334_v32  ;;  %v1280_v38 = vmul.f32 %v2976_v40, %v4335_v55  ;;  %v1281_v58 = vmul.f32 %v2976_v40, %v4336_v11 }
 0x28a   :  { %v1282_v28 = vmul.f32 %v2976_v40, %v4337_v41  ;;  %v1283_v16 = vmul.f32 %v2976_v40, %v4338_v56  ;;  %v1284_v32 = vmul.f32 %v2976_v40, %v4339_v44  ;;  %v1285_v55 = vmul.f32 %v2976_v40, %v4340_v30 }
 0x28b   :  { %v1286_v60 = vmul.f32 %v2976_v40, %v4341_v18  ;;  %v1287_v49 = vmul.f32 %v2976_v40, %v4342_v59  ;;  %v1288_v11 = vmul.f32 %v2976_v40, %v4343_v6  ;;  %v1289_v41 = vmul.f32 %v2976_v40, %v4344_v42 }
 0x28c   :  { %v3140_v56 = vadd.f32 %v3119_v62, %v1238_v26  ;;  %v3143_v44 = vadd.f32 %v3119_v62, %v1239_v54  ;;  %v3146_v30 = vadd.f32 %v3119_v62, %v1240_v8  ;;  %v3149_v18 = vadd.f32 %v3119_v62, %v1241_v2 }
 0x28d   :  { %v3152_v59 = vadd.f32 %v3119_v62, %v1242_v24  ;;  %v3155_v6 = vadd.f32 %v3119_v62, %v1243_v52  ;;  %v3158_v40 = vadd.f32 %v3119_v62, %v1244_v50  ;;  %v3161_v42 = vadd.f32 %v3119_v62, %v1245_v43 }
 0x28e   :  { %v3164_v26 = vadd.f32 %v3119_v62, %v1246_v46  ;;  %v3167_v54 = vadd.f32 %v3119_v62, %v1247_v25  ;;  %v3170_v8 = vadd.f32 %v3119_v62, %v1248_v34  ;;  %v3173_v2 = vadd.f32 %v3119_v62, %v1249_v47 }
 0x28f   :  { %v3176_v24 = vadd.f32 %v3119_v62, %v1250_v10  ;;  %v3179_v52 = vadd.f32 %v3119_v62, %v1251_v14  ;;  %v3182_v50 = vadd.f32 %v3119_v62, %v1252_v21  ;;  %v3185_v43 = vadd.f32 %v3119_v62, %v1253_v27 }
 0x290   :  { %v3188_v46 = vadd.f32 %v3119_v62, %v1254_v33  ;;  %v3191_v25 = vadd.f32 %v3119_v62, %v1255_v39  ;;  %v3194_v34 = vadd.f32 %v3119_v62, %v1256_v45  ;;  %v3197_v47 = vadd.f32 %v3119_v62, %v1257_v51 }
 0x291   :  { %v3200_v10 = vadd.f32 %v3119_v62, %v1258_v57  ;;  %v3203_v14 = vadd.f32 %v3119_v62, %v1259_v63  ;;  %v3206_v21 = vadd.f32 %v3119_v62, %v1260_v5  ;;  %v3209_v27 = vadd.f32 %v3119_v62, %v1261_v13 }
 0x292   :  { %v3212_v33 = vadd.f32 %v3119_v62, %v1262_v23  ;;  %v3215_v39 = vadd.f32 %v3119_v62, %v1263_v31  ;;  %v3218_v45 = vadd.f32 %v3119_v62, %v1264_v4  ;;  %v3221_v51 = vadd.f32 %v3119_v62, %v1265_v0 }
 0x293   :  { %v3224_v57 = vadd.f32 %v3119_v62, %v1266_v48  ;;  %v3227_v63 = vadd.f32 %v3119_v62, %v1267_v1  ;;  %v3230_v5 = vadd.f32 %v3119_v62, %v1268_v9  ;;  %v3233_v13 = vadd.f32 %v3119_v62, %v1269_v17 }
 0x294   :  { %v3236_v23 = vadd.f32 %v3119_v62, %v1270_v36  ;;  %v3239_v31 = vadd.f32 %v3119_v62, %v1271_v12  ;;  %v3242_v4 = vadd.f32 %v3119_v62, %v1272_v35  ;;  %v3245_v0 = vadd.f32 %v3119_v62, %v1273_v19 }
 0x295   :  { %v3248_v48 = vadd.f32 %v3119_v62, %v1274_v29  ;;  %v3251_v1 = vadd.f32 %v3119_v62, %v1275_v20  ;;  %v3254_v9 = vadd.f32 %v3119_v62, %v1276_v61  ;;  %v3257_v17 = vadd.f32 %v3119_v62, %v1277_v37 }
 0x296   :  { %v3260_v36 = vadd.f32 %v3119_v62, %v1278_v3  ;;  %v3263_v12 = vadd.f32 %v3119_v62, %v1279_v53  ;;  %v3266_v35 = vadd.f32 %v3119_v62, %v1280_v38  ;;  %v3269_v19 = vadd.f32 %v3119_v62, %v1281_v58 }
 0x297   :  { %v3272_v29 = vadd.f32 %v3119_v62, %v1282_v28  ;;  %v3275_v20 = vadd.f32 %v3119_v62, %v1283_v16  ;;  %v3278_v61 = vadd.f32 %v3119_v62, %v1284_v32  ;;  %v3281_v37 = vadd.f32 %v3119_v62, %v1285_v55  ;;  %v4355_v55 = vld [vmem:[#allocation6_spill] sm:$0xff] }
 0x298   :  { %v3284_v3 = vadd.f32 %v3119_v62, %v1286_v60  ;;  %v3287_v53 = vadd.f32 %v3119_v62, %v1287_v49  ;;  %v3290_v38 = vadd.f32 %v3119_v62, %v1288_v11  ;;  %v3293_v58 = vadd.f32 %v3119_v62, %v1289_v41  ;;  %v4353_v49 = vld [vmem:[#allocation5_spill] sm:$0xff]  ;;  %v4357_v41 = vld [vmem:[#allocation7_spill] sm:$0xff] }
 0x299   :  { %4345 = vst [vmem:[#allocation18_spill] sm:$0xff] %v3275_v20  ;;  %v3297_v28 = vadd.f32 %v3119_v62, %v2980_v22  ;;  %v3301_v16 = vadd.f32 %v3119_v62, %v2984_v7  ;;  %v3305_v60 = vadd.f32 %v3119_v62, %v2988_v15  ;;  %v3309_v32 = vadd.f32 %v3119_v62, %v4353_v49 }
 0x29a   :  { %4346 = vst [vmem:[#allocation19_spill] sm:$0xff] %v3284_v3  ;;  %4347 = vst [vmem:[#allocation20_spill] sm:$0xff] %v3287_v53  ;;  %v3313_v11 = vadd.f32 %v3119_v62, %v4355_v55  ;;  %v3317_v22 = vadd.f32 %v3119_v62, %v4357_v41  ;;  %vm1373_vm1 = vcmp.gt.f32.partialorder %v3140_v56, 0.0  ;;  %vm1374_vm2 = vcmp.gt.f32.partialorder %v3143_v44, 0.0 }
 0x29b   :  { %4348 = vst [vmem:[#allocation21_spill] sm:$0xff] %v3290_v38  ;;  %4349 = vst [vmem:[#allocation2_spill] sm:$0xff] %v3293_v58  ;;  %vm1375_vm3 = vcmp.gt.f32.partialorder %v3146_v30, 0.0  ;;  %vm1376_vm4 = vcmp.gt.f32.partialorder %v3149_v18, 0.0  ;;  %vm1377_vm5 = vcmp.gt.f32.partialorder %v3152_v59, 0.0  ;;  %vm1378_vm6 = vcmp.gt.f32.partialorder %v3155_v6, 0.0 }
 0x29c   :  { %4350 = vst [vmem:[#allocation3_spill] sm:$0xff] %v3297_v28  ;;  %4351 = vst [vmem:[#allocation4_spill] sm:$0xff] %v3301_v16  ;;  %v4359_v28 = vld [vmem:[#allocation29_spill] sm:$0xff]  ;;  %v4361_v16 = vld [vmem:[#allocation30_spill] sm:$0xff]  ;;  %vm1379_vm7 = vcmp.gt.f32.partialorder %v3158_v40, 0.0  ;;  %vm1380_vm8 = vcmp.gt.f32.partialorder %v3161_v42, 0.0 }
 0x29d   :  { %4352 = vst [vmem:[#allocation8_spill] sm:$0xff] %v3305_v60  ;;  %4354 = vst [vmem:[#allocation9_spill] sm:$0xff] %v3309_v32  ;;  %v3321_v7 = vadd.f32 %v3119_v62, %v4359_v28  ;;  %v3325_v15 = vadd.f32 %v3119_v62, %v4361_v16  ;;  %v4363_v60 = vld [vmem:[#allocation31_spill] sm:$0xff]  ;;  %vm1381_vm9 = vcmp.gt.f32.partialorder %v3164_v26, 0.0  ;;  %v4367_v28 = vld [vmem:[#allocation13_spill] sm:$0xff]  ;;  %vm1382_vm10 = vcmp.gt.f32.partialorder %v3167_v54, 0.0 }
 0x29e   :  { %4356 = vst [vmem:[#allocation10_spill] sm:$0xff] %v3313_v11  ;;  %4358 = vst [vmem:[#allocation12_spill] sm:$0xff] %v3317_v22  ;;  %v3329_v49 = vadd.f32 %v3119_v62, %v4363_v60  ;;  %v4365_v32 = vld [vmem:[#allocation11_spill] sm:$0xff]  ;;  %v3346_v16 = vadd.f32 %v3119_v62, %v4367_v28  ;;  %v1437_v60 = vmul.f32 0.01, %v3140_v56  ;;  %vm1383_vm11 = vcmp.gt.f32.partialorder %v3170_v8, 0.0 }
 0x29f   :  { %4360 = vst [vmem:[#allocation14_spill] sm:$0xff] %v3321_v7  ;;  %4362 = vst [vmem:[#allocation16_spill] sm:$0xff] %v3325_v15  ;;  %v3333_v55 = vadd.f32 %v3119_v62, %v4365_v32  ;;  %v1438_v32 = vmul.f32 0.01, %v3143_v44  ;;  %v1439_v41 = vmul.f32 0.01, %v3146_v30 }
 0x2a0   :  { %4364 = vst [vmem:[#allocation17_spill] sm:$0xff] %v3329_v49  ;;  %4368 = vst [vmem:[#allocation23_spill] sm:$0xff] %v3346_v16  ;;  %v1440_v15 = vmul.f32 0.01, %v3149_v18  ;;  %v1441_v7 = vmul.f32 0.01, %v3152_v59 }
 0x2a1   :  { %4366 = vst [vmem:[#allocation22_spill] sm:$0xff] %v3333_v55  ;;  %v4369_v55 = vld [vmem:[#allocation15_spill] sm:$0xff]  ;;  %v1442_v28 = vmul.f32 0.01, %v3155_v6  ;;  %vm1384_vm12 = vcmp.gt.f32.partialorder %v3173_v2, 0.0  ;;  %vm1385_vm13 = vcmp.gt.f32.partialorder %v3176_v24, 0.0  ;;  %v3378_v38 = vsel %vm1374_vm2, %v3143_v44, %v1438_v32 }
 0x2a2   :  { %v3354_v49 = vadd.f32 %v3119_v62, %v4369_v55  ;;  %v1443_v16 = vmul.f32 0.01, %v3158_v40  ;;  %v1444_v22 = vmul.f32 0.01, %v3161_v42  ;;  %v1445_v11 = vmul.f32 0.01, %v3164_v26 }
 0x2a3   :  { %v3367_v62 = vsel %vm1373_vm1, %v3140_v56, %v1437_v60  ;;  %v1446_v55 = vmul.f32 0.01, %v3167_v54  ;;  %v3373_v58 = vmul.f32 0.01, %v3173_v2  ;;  %4372 = vst [vmem:[#allocation26_spill] sm:$0xff] %v3378_v38  ;;  %vm1386_vm14 = vcmp.gt.f32.partialorder %v3179_v52, 0.0 }
 0x2a4   :  { %4370 = vst [vmem:[#allocation24_spill] sm:$0xff] %v3354_v49  ;;  %4371 = vst [vmem:[#allocation25_spill] sm:$0xff] %v3367_v62  ;;  %v1447_v49 = vmul.f32 0.01, %v3170_v8  ;;  %v3382_v53 = vmul.f32 0.01, %v3176_v24  ;;  %v3393_v62 = vsel %vm1375_vm3, %v3146_v30, %v1439_v41 }
 0x2a5   :  { %v3385_v56 = vmul.f32 0.01, %v3179_v52  ;;  %v3388_v60 = vmul.f32 0.01, %v3182_v50  ;;  %4374 = vst [vmem:[#allocation28_spill] sm:$0xff] %v3393_v62  ;;  %vm1387_vm15 = vcmp.gt.f32.partialorder %v3182_v50, 0.0 }
 0x2a6   :  { %v3397_v44 = vmul.f32 0.01, %v3185_v43  ;;  %v3400_v32 = vmul.f32 0.01, %v3188_v46  ;;  %v3403_v38 = vmul.f32 0.01, %v3191_v25 }
 0x2a7   :  { %4373 = vst [vmem:[#allocation27_spill] sm:$0xff] %v3388_v60  ;;  %v3408_v60 = vsel %vm1376_vm4, %v3149_v18, %v1440_v15  ;;  %vm1388_vm1 = vcmp.gt.f32.partialorder %v3185_v43, 0.0  ;;  %v3412_v30 = vmul.f32 0.01, %v3194_v34  ;;  %v3415_v41 = vmul.f32 0.01, %v3197_v47 }
 0x2a8   :  { %4375 = vst [vmem:[#allocation5_spill] sm:$0xff] %v3403_v38  ;;  %4376 = vst [vmem:[#allocation6_spill] sm:$0xff] %v3408_v60  ;;  %v3418_v62 = vmul.f32 0.01, %v3200_v10  ;;  %v3423_v38 = vsel %vm1377_vm5, %v3152_v59, %v1441_v7  ;;  %vm1389_vm2 = vcmp.gt.f32.partialorder %v3188_v46, 0.0  ;;  %vm1390_vm3 = vcmp.gt.f32.partialorder %v3191_v25, 0.0 }
 0x2a9   :  { %4378 = vst [vmem:[#allocation29_spill] sm:$0xff] %v3423_v38  ;;  %v3427_v18 = vmul.f32 0.01, %v3203_v14  ;;  %v3430_v15 = vmul.f32 0.01, %v3206_v21  ;;  %vm1391_vm4 = vcmp.gt.f32.partialorder %v3194_v34, 0.0 }
 0x2aa   :  { %4377 = vst [vmem:[#allocation7_spill] sm:$0xff] %v3418_v62  ;;  %v3433_v60 = vmul.f32 0.01, %v3209_v27  ;;  %v3438_v62 = vsel %vm1378_vm6, %v3155_v6, %v1442_v28  ;;  %v3442_v59 = vmul.f32 0.01, %v3212_v33  ;;  %vm1392_vm5 = vcmp.gt.f32.partialorder %v3197_v47, 0.0 }
 0x2ab   :  { %4380 = vst [vmem:[#allocation31_spill] sm:$0xff] %v3438_v62  ;;  %v3445_v7 = vmul.f32 0.01, %v3215_v39  ;;  %v3448_v38 = vmul.f32 0.01, %v3218_v45  ;;  %vm4427_vm0 = vcmp.gt.f32.partialorder %v3200_v10, 0.0 }
 0x2ac   :  { %4379 = vst [vmem:[#allocation30_spill] sm:$0xff] %v3433_v60  ;;  %v3453_v60 = vsel %vm1379_vm7, %v3158_v40, %v1443_v16  ;;  %v3457_v6 = vmul.f32 0.01, %v3221_v51  ;;  %v3460_v28 = vmul.f32 0.01, %v3224_v57 }
 0x2ad   :  { %4381 = vst [vmem:[#allocation11_spill] sm:$0xff] %v3448_v38  ;;  %4382 = vst [vmem:[#allocation13_spill] sm:$0xff] %v3453_v60  ;;  %v3463_v62 = vmul.f32 0.01, %v3227_v63  ;;  %v3468_v38 = vsel %vm1380_vm8, %v3161_v42, %v1444_v22  ;;  %v3474_v40 = vmul.f32 0.01, %v3230_v5  ;;  %v3485_v42 = vsel %vm1381_vm9, %v3164_v26, %v1445_v11 }
 0x2ae   :  { %4383 = vst [vmem:[#allocation15_spill] sm:$0xff] %v3468_v38  ;;  %v3477_v16 = vmul.f32 0.01, %v3233_v13  ;;  %v3480_v60 = vmul.f32 0.01, %v3236_v23  ;;  %4385 = vst [vmem:[#allocation35_spill] sm:$0xff] %v3485_v42  ;;  %v3503_v26 = vsel %vm1382_vm10, %v3167_v54, %v1446_v55  ;;  %v3521_v54 = vsel %vm1383_vm11, %v3170_v8, %v1447_v49 }
 0x2af   :  { %vm1395_vm8 = vcmp.gt.f32.partialorder %v3206_v21, 0.0  ;;  %v3492_v22 = vmul.f32 0.01, %v3239_v31  ;;  %v3495_v38 = vmul.f32 0.01, %v3242_v4  ;;  %4387 = vst [vmem:[#allocation37_spill] sm:$0xff] %v3503_v26  ;;  %v3540_v8 = vsel %vm1384_vm12, %v3173_v2, %v3373_v58 }
 0x2b0   :  { %4384 = vst [vmem:[#allocation34_spill] sm:$0xff] %v3480_v60  ;;  %v3498_v60 = vmul.f32 0.01, %v3245_v0  ;;  %vm1399_vm9 = vcmp.gt.f32.partialorder %v3218_v45, 0.0  ;;  %v3510_v11 = vmul.f32 0.01, %v3248_v48  ;;  %v3559_v2 = vsel %vm1385_vm13, %v3176_v24, %v3382_v53 }
 0x2b1   :  { %v3513_v42 = vmul.f32 0.01, %v3251_v1  ;;  %4389 = vst [vmem:[#allocation39_spill] sm:$0xff] %v3521_v54  ;;  %vm1403_vm10 = vcmp.gt.f32.partialorder %v3230_v5, 0.0  ;;  %v3528_v55 = vmul.f32 0.01, %v3257_v17  ;;  %v3578_v24 = vsel %vm1386_vm14, %v3179_v52, %v3385_v56 }
 0x2b2   :  { %4386 = vst [vmem:[#allocation36_spill] sm:$0xff] %v3498_v60  ;;  %v3516_v60 = vmul.f32 0.01, %v3254_v9  ;;  %v3531_v26 = vmul.f32 0.01, %v3260_v36  ;;  %4391 = vst [vmem:[#allocation41_spill] sm:$0xff] %v3540_v8 }
 0x2b3   :  { %vm1407_vm11 = vcmp.gt.f32.partialorder %v3242_v4, 0.0  ;;  %v3547_v49 = vmul.f32 0.01, %v3266_v35  ;;  %v3550_v54 = vmul.f32 0.01, %v3269_v19  ;;  %4394 = vst [vmem:[#allocation44_spill] sm:$0xff] %v3559_v2 }
 0x2b4   :  { %4388 = vst [vmem:[#allocation38_spill] sm:$0xff] %v3516_v60  ;;  %v3534_v60 = vmul.f32 0.01, %v3263_v12  ;;  %vm1411_vm12 = vcmp.gt.f32.partialorder %v3254_v9, 0.0  ;;  %v3566_v58 = vmul.f32 0.01, %v3275_v20 }
 0x2b5   :  { %4392 = vst [vmem:[#allocation42_spill] sm:$0xff] %v3550_v54  ;;  %v3569_v8 = vmul.f32 0.01, %v3278_v61  ;;  %4398 = vst [vmem:[#allocation48_spill] sm:$0xff] %v3578_v24  ;;  %vm1415_vm13 = vcmp.gt.f32.partialorder %v3266_v35, 0.0  ;;  %v4400_v2 = vld [vmem:[#allocation20_spill] sm:$0xff] }
 0x2b6   :  { %4390 = vst [vmem:[#allocation40_spill] sm:$0xff] %v3534_v60  ;;  %v3553_v60 = vmul.f32 0.01, %v3272_v29  ;;  %4395 = vst [vmem:[#allocation45_spill] sm:$0xff] %v3566_v58  ;;  %v3585_v53 = vmul.f32 0.01, %v3284_v3 }
 0x2b7   :  { %4396 = vst [vmem:[#allocation46_spill] sm:$0xff] %v3569_v8  ;;  %v3588_v8 = vmul.f32 0.01, %v4400_v2  ;;  %v4404_v54 = vld [vmem:[#allocation27_spill] sm:$0xff]  ;;  %vm1419_vm14 = vcmp.gt.f32.partialorder %v3278_v61, 0.0  ;;  %v4406_v56 = vld [vmem:[#allocation2_spill] sm:$0xff] }
 0x2b8   :  { %4393 = vst [vmem:[#allocation43_spill] sm:$0xff] %v3553_v60  ;;  %v3572_v60 = vmul.f32 0.01, %v3281_v37  ;;  %4399 = vst [vmem:[#allocation49_spill] sm:$0xff] %v3585_v53  ;;  %v3597_v52 = vsel %vm1387_vm15, %v3182_v50, %v4404_v54  ;;  %v3604_v24 = vmul.f32 0.01, %v4406_v56  ;;  %v3616_v50 = vsel %vm1388_vm1, %v3185_v43, %v3397_v44 }
 0x2b9   :  { %4401 = vst [vmem:[#allocation50_spill] sm:$0xff] %v3588_v8  ;;  %4405 = vst [vmem:[#allocation27_spill] sm:$0xff] %v3597_v52  ;;  %v4408_v8 = vld [vmem:[#allocation3_spill] sm:$0xff]  ;;  %v4413_v54 = vld [vmem:[#allocation8_spill] sm:$0xff]  ;;  %v3629_v43 = vsel %vm1389_vm2, %v3188_v46, %v3400_v32 }
 0x2ba   :  { %4397 = vst [vmem:[#allocation47_spill] sm:$0xff] %v3572_v60  ;;  %v4402_v60 = vld [vmem:[#allocation21_spill] sm:$0xff]  ;;  %4407 = vst [vmem:[#allocation52_spill] sm:$0xff] %v3604_v24  ;;  %v3607_v53 = vmul.f32 0.01, %v4408_v8  ;;  %v4415_v2 = vld [vmem:[#allocation10_spill] sm:$0xff] }
 0x2bb   :  { %v3591_v58 = vmul.f32 0.01, %v4402_v60  ;;  %4412 = vst [vmem:[#allocation55_spill] sm:$0xff] %v3616_v50  ;;  %vm1423_vm15 = vcmp.gt.f32.partialorder %v4402_v60, 0.0  ;;  %v1491_v52 = vmul.f32 0.01, %v4413_v54 }
 0x2bc   :  { %4409 = vst [vmem:[#allocation53_spill] sm:$0xff] %v3607_v53  ;;  %v4414_v53 = vld [vmem:[#allocation9_spill] sm:$0xff]  ;;  %4416 = vst [vmem:[#allocation56_spill] sm:$0xff] %v3629_v43  ;;  %vm1427_vm1 = vcmp.gt.f32.partialorder %v4413_v54, 0.0  ;;  %v4417_v44 = vld [vmem:[#allocation12_spill] sm:$0xff] }
 0x2bd   :  { %4403 = vst [vmem:[#allocation51_spill] sm:$0xff] %v3591_v58  ;;  %v4410_v58 = vld [vmem:[#allocation4_spill] sm:$0xff]  ;;  %v1492_v24 = vmul.f32 0.01, %v4414_v53  ;;  %v1494_v50 = vmul.f32 0.01, %v4417_v44 }
 0x2be   :  { %v3610_v20 = vmul.f32 0.01, %v4410_v58  ;;  %v4418_v58 = vld [vmem:[#allocation14_spill] sm:$0xff]  ;;  %v4419_v56 = vld [vmem:[#allocation16_spill] sm:$0xff]  ;;  %v4420_v3 = vld [vmem:[#allocation5_spill] sm:$0xff] }
 0x2bf   :  { %v1495_v8 = vmul.f32 0.01, %v4418_v58  ;;  %v1496_v60 = vmul.f32 0.01, %v4419_v56  ;;  %v3642_v46 = vsel %vm1390_vm3, %v3191_v25, %v4420_v3  ;;  %vm1432_vm7 = vcmp.gt.f32.partialorder %v4419_v56, 0.0  ;;  %v4422_v32 = vld [vmem:[#allocation17_spill] sm:$0xff] }
 0x2c0   :  { %4411 = vst [vmem:[#allocation54_spill] sm:$0xff] %v3610_v20  ;;  %v1493_v20 = vmul.f32 0.01, %v4415_v2  ;;  %4421 = vst [vmem:[#allocation14_spill] sm:$0xff] %v3642_v46  ;;  %vm1433_vm6 = vcmp.gt.f32.partialorder %v4422_v32, 0.0  ;;  %v4423_v43 = vld [vmem:[#allocation22_spill] sm:$0xff]  ;;  %v1519_v25 = vsel %vm1391_vm4, %v3194_v34, %v3412_v30  ;;  %v3678_v30 = vsel %vm1395_vm8, %v3206_v21, %v3430_v15 }
 0x2c1   :  { %v1497_v44 = vmul.f32 0.01, %v4422_v32  ;;  %v1498_v2 = vmul.f32 0.01, %v4423_v43  ;;  %v4424_v53 = vld [vmem:[#allocation23_spill] sm:$0xff]  ;;  %v4425_v3 = vld [vmem:[#allocation24_spill] sm:$0xff]  ;;  %v1520_v32 = vsel %vm1392_vm5, %v3197_v47, %v3415_v41 }
 0x2c2   :  { %v1499_v54 = vmul.f32 0.01, %v4424_v53  ;;  %vm1435_vm3 = vcmp.gt.f32.partialorder %v4424_v53, 0.0  ;;  %vm1436_vm2 = vcmp.gt.f32.partialorder %v4425_v3, 0.0  ;;  %v1500_v46 = vmul.f32 0.01, %v4425_v3 }
 0x2c3   :  { %v4426_v56 = vld [vmem:[#allocation7_spill] sm:$0xff]  ;;  %vm4428_vm4 = vcmp.gt.f32.partialorder %v3203_v14, 0.0  ;;  %v4429_v3 = vld [vmem:[#allocation30_spill] sm:$0xff]  ;;  %vm4430_vm5 = vcmp.gt.f32.partialorder %v3209_v27, 0.0  ;;  %vm4434_vm8 = vcmp.gt.f32.partialorder %v3221_v51, 0.0 }
 0x2c4   :  { %v3666_v43 = vsel %vm4427_vm0, %v3200_v10, %v4426_v56  ;;  %v3672_v34 = vsel %vm4428_vm4, %v3203_v14, %v3427_v18  ;;  %v3684_v47 = vsel %vm4430_vm5, %v3209_v27, %v4429_v3  ;;  %vm4431_vm0 = vcmp.gt.f32.partialorder %v3212_v33, 0.0  ;;  %v4433_v21 = vld [vmem:[#allocation11_spill] sm:$0xff]  ;;  %v4445_v15 = vld [vmem:[#allocation38_spill] sm:$0xff]  ;;  %v4467_v56 = vld [vmem:[#allocation21_spill] sm:$0xff] }
 0x2c5   :  { %v3690_v10 = vsel %vm4431_vm0, %v3212_v33, %v3442_v59  ;;  %vm4432_vm4 = vcmp.gt.f32.partialorder %v3215_v39, 0.0  ;;  %v3702_v41 = vsel %vm1399_vm9, %v3218_v45, %v4433_v21  ;;  %v3708_v27 = vsel %vm4434_vm8, %v3221_v51, %v3457_v6  ;;  %v4455_v6 = vld [vmem:[#allocation18_spill] sm:$0xff]  ;;  %v4468_v3 = vld [vmem:[#allocation52_spill] sm:$0xff] }
 0x2c6   :  { %v3696_v14 = vsel %vm4432_vm4, %v3215_v39, %v3445_v7  ;;  %vm4435_vm5 = vcmp.gt.f32.partialorder %v3224_v57, 0.0  ;;  %vm4436_vm0 = vcmp.gt.f32.partialorder %v3227_v63, 0.0  ;;  %v3726_v45 = vsel %vm1403_vm10, %v3230_v5, %v3474_v40  ;;  %v4469_v21 = vld [vmem:[#allocation2_spill] sm:$0xff] }
 0x2c7   :  { %v3714_v33 = vsel %vm4435_vm5, %v3224_v57, %v3460_v28  ;;  %v3720_v39 = vsel %vm4436_vm0, %v3227_v63, %v3463_v62  ;;  %vm4437_vm9 = vcmp.gt.f32.partialorder %v3233_v13, 0.0  ;;  %v4438_v57 = vld [vmem:[#allocation34_spill] sm:$0xff]  ;;  %vm4439_vm4 = vcmp.gt.f32.partialorder %v3236_v23, 0.0  ;;  %v4441_v62 = vld [vmem:[#allocation36_spill] sm:$0xff] }
 0x2c8   :  { %v3732_v51 = vsel %vm4437_vm9, %v3233_v13, %v3477_v16  ;;  %v1533_v18 = vsel %vm4439_vm4, %v3236_v23, %v4438_v57  ;;  %vm4440_vm8 = vcmp.gt.f32.partialorder %v3239_v31, 0.0  ;;  %v1535_v5 = vsel %vm1407_vm11, %v3242_v4, %v3495_v38  ;;  %v4471_v57 = vld [vmem:[#allocation53_spill] sm:$0xff] }
 0x2c9   :  { %v1534_v63 = vsel %vm4440_vm8, %v3239_v31, %v3492_v22  ;;  %vm4442_vm10 = vcmp.gt.f32.partialorder %v3245_v0, 0.0  ;;  %vm4443_vm5 = vcmp.gt.f32.partialorder %v3248_v48, 0.0  ;;  %vm4444_vm0 = vcmp.gt.f32.partialorder %v3251_v1, 0.0 }
 0x2ca   :  { %v1536_v13 = vsel %vm4442_vm10, %v3245_v0, %v4441_v62  ;;  %v1537_v23 = vsel %vm4443_vm5, %v3248_v48, %v3510_v11  ;;  %v3758_v31 = vsel %vm4444_vm0, %v3251_v1, %v3513_v42  ;;  %v3764_v4 = vsel %vm1411_vm12, %v3254_v9, %v4445_v15  ;;  %v4448_v1 = vld [vmem:[#allocation40_spill] sm:$0xff]  ;;  %v4461_v42 = vld [vmem:[#allocation19_spill] sm:$0xff] }
 0x2cb   :  { %vm4446_vm11 = vcmp.gt.f32.partialorder %v3257_v17, 0.0  ;;  %vm4447_vm9 = vcmp.gt.f32.partialorder %v3260_v36, 0.0  ;;  %vm4449_vm4 = vcmp.gt.f32.partialorder %v3263_v12, 0.0  ;;  %v3788_v9 = vsel %vm1415_vm13, %v3266_v35, %v3547_v49  ;;  %v4457_v35 = vld [vmem:[#allocation46_spill] sm:$0xff]  ;;  %v4464_v11 = vld [vmem:[#allocation20_spill] sm:$0xff]  ;;  %v4466_v49 = vld [vmem:[#allocation51_spill] sm:$0xff] }
 0x2cc   :  { %v3770_v0 = vsel %vm4446_vm11, %v3257_v17, %v3528_v55  ;;  %v3776_v48 = vsel %vm4447_vm9, %v3260_v36, %v3531_v26  ;;  %v3782_v38 = vsel %vm4449_vm4, %v3263_v12, %v4448_v1  ;;  %v4450_v17 = vld [vmem:[#allocation42_spill] sm:$0xff]  ;;  %vm4451_vm12 = vcmp.gt.f32.partialorder %v3269_v19, 0.0  ;;  %v4452_v36 = vld [vmem:[#allocation43_spill] sm:$0xff]  ;;  %v4454_v12 = vld [vmem:[#allocation45_spill] sm:$0xff] }
 0x2cd   :  { %v3794_v59 = vsel %vm4451_vm12, %v3269_v19, %v4450_v17  ;;  %vm4453_vm8 = vcmp.gt.f32.partialorder %v3272_v29, 0.0  ;;  %vm4456_vm10 = vcmp.gt.f32.partialorder %v4455_v6, 0.0  ;;  %v3812_v40 = vsel %vm1419_vm14, %v3278_v61, %v4457_v35  ;;  %v4458_v19 = vld [vmem:[#allocation47_spill] sm:$0xff]  ;;  %v4463_v26 = vld [vmem:[#allocation50_spill] sm:$0xff]  ;;  %v4475_v17 = vld [vmem:[#allocation4_spill] sm:$0xff] }
 0x2ce   :  { %v3800_v7 = vsel %vm4453_vm8, %v3272_v29, %v4452_v36  ;;  %v3806_v28 = vsel %vm4456_vm10, %v4455_v6, %v4454_v12  ;;  %vm4459_vm13 = vcmp.gt.f32.partialorder %v3281_v37, 0.0  ;;  %v4460_v29 = vld [vmem:[#allocation49_spill] sm:$0xff]  ;;  %vm4462_vm5 = vcmp.gt.f32.partialorder %v4461_v42, 0.0  ;;  %v4472_v62 = vld [vmem:[#allocation3_spill] sm:$0xff]  ;;  %v4474_v1 = vld [vmem:[#allocation54_spill] sm:$0xff] }
 0x2cf   :  { %v3818_v16 = vsel %vm4459_vm13, %v3281_v37, %v4458_v19  ;;  %v1549_v22 = vsel %vm4462_vm5, %v4461_v42, %v4460_v29  ;;  %vm4465_vm0 = vcmp.gt.f32.partialorder %v4464_v11, 0.0  ;;  %v1551_v61 = vsel %vm1423_vm15, %v4467_v56, %v4466_v49  ;;  %v4477_v12 = vld [vmem:[#allocation8_spill] sm:$0xff]  ;;  %v4478_v35 = vld [vmem:[#allocation9_spill] sm:$0xff]  ;;  %v4480_v29 = vld [vmem:[#allocation10_spill] sm:$0xff] }
 0x2d0   :  { %v1550_v55 = vsel %vm4465_vm0, %v4464_v11, %v4463_v26  ;;  %vm4470_vm14 = vcmp.gt.f32.partialorder %v4469_v21, 0.0  ;;  %vm4473_vm11 = vcmp.gt.f32.partialorder %v4472_v62, 0.0  ;;  %vm4476_vm9 = vcmp.gt.f32.partialorder %v4475_v17, 0.0  ;;  %v4482_v26 = vld [vmem:[#allocation12_spill] sm:$0xff] }
 0x2d1   :  { %v1552_v37 = vsel %vm4470_vm14, %v4469_v21, %v4468_v3  ;;  %v1553_v15 = vsel %vm4473_vm11, %v4472_v62, %v4471_v57  ;;  %v1554_v36 = vsel %vm4476_vm9, %v4475_v17, %v4474_v1  ;;  %v1555_v6 = vsel %vm1427_vm1, %v4477_v12, %v1491_v52  ;;  %v4485_v52 = vld [vmem:[#allocation16_spill] sm:$0xff]  ;;  %v4487_v3 = vld [vmem:[#allocation22_spill] sm:$0xff]  ;;  %v4490_v21 = vld [vmem:[#allocation25_spill] sm:$0xff] }
 0x2d2   :  { %vm4479_vm15 = vcmp.gt.f32.partialorder %v4478_v35, 0.0  ;;  %vm4481_vm4 = vcmp.gt.f32.partialorder %v4480_v29, 0.0  ;;  %vm4483_vm12 = vcmp.gt.f32.partialorder %v4482_v26, 0.0  ;;  %vm4484_vm8 = vcmp.gt.f32.partialorder %v4418_v58, 0.0  ;;  %v4496_v12 = vld [vmem:[#allocation26_spill] sm:$0xff] }
 0x2d3   :  { %v1556_v19 = vsel %vm4479_vm15, %v4478_v35, %v1492_v24  ;;  %v3853_v42 = vsel %vm4481_vm4, %v4480_v29, %v1493_v20  ;;  %v3858_v11 = vsel %vm4483_vm12, %v4482_v26, %v1494_v50  ;;  %v3863_v49 = vsel %vm4484_vm8, %v4418_v58, %v1495_v8  ;;  %v4486_v24 = vld [vmem:[#allocation17_spill] sm:$0xff]  ;;  %v4489_v58 = vld [vmem:[#allocation24_spill] sm:$0xff] }
 0x2d4   :  { %v3868_v56 = vsel %vm1432_vm7, %v4485_v52, %v1496_v60  ;;  %v3873_v20 = vsel %vm1433_vm6, %v4486_v24, %v1497_v44  ;;  %vm4488_vm1 = vcmp.gt.f32.partialorder %v4487_v3, 0.0  ;;  %v3883_v8 = vsel %vm1435_vm3, %v4424_v53, %v1499_v54  ;;  %v4492_v44 = vld [vmem:[#allocation56_spill] sm:$0xff]  ;;  %v4498_v54 = vld [vmem:[#allocation14_spill] sm:$0xff] }
 0x2d5   :  { %v3878_v50 = vsel %vm4488_vm1, %v4487_v3, %v1498_v2  ;;  %v3888_v60 = vsel %vm1436_vm2, %v4489_v58, %v1500_v46  ;;  %vm4491_vm7 = vcmask 130048   ;;  %v4502_v26 = vld [vmem:[#allocation28_spill] sm:$0xff] }
 0x2d6   :  { %v1565_v57 = vsel %vm4491_vm7, %v4490_v21, -inf  ;;  %vm4493_vm6 = vmmov %vm4491_vm7 }
 0x2d7   :  { %v1566_v62 = vsel %vm4493_vm6, %v4492_v44, -inf  ;;  %vm4494_vm10 = vmmov %vm4493_vm6 }
 0x2d8   :  { %v1567_v1 = vmax.f32 %v1565_v57, %v1566_v62  ;;  %v1568_v2 = vsel %vm4494_vm10, %v1533_v18, -inf  ;;  %vm4495_vm13 = vmmov %vm4493_vm6  ;;  %v4507_v57 = vld [vmem:[#allocation6_spill] sm:$0xff] }
 0x2d9   :  { %v3896_v17 = vsel %vm4495_vm13, %v1549_v22, -inf  ;;  %vm4497_vm3 = vmmov %vm4493_vm6 }
 0x2da   :  { %v1572_v53 = vsel %vm4497_vm3, %v4496_v12, -inf  ;;  %vm4499_vm5 = vmmov %vm4497_vm3  ;;  %v3908_v24 = vmax.f32 %v1567_v1, %v1568_v2 }
 0x2db   :  { %v1573_v35 = vsel %vm4499_vm5, %v4498_v54, -inf  ;;  %vm4500_vm2 = vmmov %vm4497_vm3 }
 0x2dc   :  { %v1575_v46 = vsel %vm4500_vm2, %v1534_v63, -inf  ;;  %vm4501_vm0 = vmmov %vm4500_vm2  ;;  %v1574_v18 = vmax.f32 %v1572_v53, %v1573_v35  ;;  %v1571_v44 = vmax.f32 %v3908_v24, %v3896_v17 }
 0x2dd   :  { %v3904_v29 = vsel %vm4501_vm0, %v1550_v55, -inf  ;;  %vm4503_vm14 = vmmov %vm4501_vm0 }
 0x2de   :  { %v1579_v52 = vsel %vm4503_vm14, %v4502_v26, -inf  ;;  %vm4504_vm11 = vmmov %vm4501_vm0  ;;  %v3920_v62 = vmax.f32 %v1574_v18, %v1575_v46  ;;  %v4517_v26 = vld [vmem:[#allocation31_spill] sm:$0xff] }
 0x2df   :  { %v1580_v22 = vsel %vm4504_vm11, %v1519_v25, -inf  ;;  %vm4505_vm9 = vmmov %vm4501_vm0 }
 0x2e0   :  { %v1582_v3 = vsel %vm4505_vm9, %v1535_v5, -inf  ;;  %v1581_v58 = vmax.f32 %v1579_v52, %v1580_v22  ;;  %vm4506_vm15 = vmmov %vm4501_vm0 }
 0x2e1   :  { %v3913_v21 = vsel %vm4506_vm15, %v1551_v61, -inf  ;;  %vm4508_vm4 = vmmov %vm4501_vm0  ;;  %v4512_v61 = vld [vmem:[#allocation29_spill] sm:$0xff] }
 0x2e2   :  { %v1586_v63 = vsel %vm4508_vm4, %v4507_v57, -inf  ;;  %vm4509_vm12 = vmmov %vm4501_vm0  ;;  %v3923_v25 = vmax.f32 %v1581_v58, %v1582_v3  ;;  %v3953_v58 = vsel %vm4501_vm0, %v1554_v36, -inf  ;;  %v4526_v36 = vld [vmem:[#allocation15_spill] sm:$0xff] }
 0x2e3   :  { %v1587_v55 = vsel %vm4509_vm12, %v1520_v32, -inf  ;;  %vm4510_vm8 = vmmov %vm4501_vm0  ;;  %v1578_v32 = vmax.f32 %v3920_v62, %v3904_v29  ;;  %v4571_v62 = vld [vmem:[#allocation33_spill] sm:$0xff] }
 0x2e4   :  { %v1588_v1 = vmax.f32 %v1586_v63, %v1587_v55  ;;  %v1589_v2 = vsel %vm4510_vm8, %v1536_v13, -inf  ;;  %vm4511_vm1 = vmmov %vm4501_vm0  ;;  %v1585_v13 = vmax.f32 %v3923_v25, %v3913_v21 }
 0x2e5   :  { %v3926_v5 = vsel %vm4511_vm1, %v1552_v37, -inf  ;;  %vm4513_vm7 = vmmov %vm4501_vm0 }
 0x2e6   :  { %v1593_v12 = vsel %vm4513_vm7, %v4512_v61, -inf  ;;  %vm4514_vm6 = vmmov %vm4501_vm0  ;;  %v3934_v54 = vmax.f32 %v1588_v1, %v1589_v2 }
 0x2e7   :  { %v1594_v53 = vsel %vm4514_vm6, %v3666_v43, -inf  ;;  %vm4515_vm10 = vmmov %vm4501_vm0 }
 0x2e8   :  { %v1595_v35 = vmax.f32 %v1593_v12, %v1594_v53  ;;  %v1596_v46 = vsel %vm4515_vm10, %v1537_v23, -inf  ;;  %vm4516_vm13 = vmmov %vm4501_vm0  ;;  %v1592_v18 = vmax.f32 %v3934_v54, %v3926_v5 }
 0x2e9   :  { %v3940_v37 = vsel %vm4516_vm13, %v1553_v15, -inf  ;;  %vm4518_vm3 = vmmov %vm4501_vm0  ;;  %v4521_v15 = vld [vmem:[#allocation13_spill] sm:$0xff] }
 0x2ea   :  { %v1600_v52 = vsel %vm4518_vm3, %v4517_v26, -inf  ;;  %vm4519_vm5 = vmmov %vm4501_vm0  ;;  %v3948_v22 = vmax.f32 %v1595_v35, %v1596_v46 }
 0x2eb   :  { %v1601_v43 = vsel %vm4519_vm5, %v3672_v34, -inf  ;;  %vm4520_vm2 = vmmov %vm4501_vm0 }
 0x2ec   :  { %v1602_v3 = vmax.f32 %v1600_v52, %v1601_v43  ;;  %v1603_v23 = vsel %vm4520_vm2, %v3758_v31, -inf  ;;  %vm4522_vm14 = vmmov %vm4501_vm0  ;;  %v1599_v55 = vmax.f32 %v3948_v22, %v3940_v37 }
 0x2ed   :  { %v1607_v57 = vsel %vm4522_vm14, %v4521_v15, -inf  ;;  %vm4523_vm11 = vmmov %vm4501_vm0 }
 0x2ee   :  { %v1608_v63 = vsel %vm4523_vm11, %v3678_v30, -inf  ;;  %vm4524_vm9 = vmmov %vm4501_vm0  ;;  %v3963_v1 = vmax.f32 %v1602_v3, %v1603_v23 }
 0x2ef   :  { %v1610_v34 = vsel %vm4524_vm9, %v3764_v4, -inf  ;;  %v1609_v2 = vmax.f32 %v1607_v57, %v1608_v63  ;;  %vm4525_vm15 = vmmov %vm4501_vm0 }
 0x2f0   :  { %v3966_v31 = vsel %vm4525_vm15, %v1555_v6, -inf  ;;  %vm4527_vm4 = vmmov %vm4501_vm0  ;;  %v1606_v53 = vmax.f32 %v3963_v1, %v3953_v58  ;;  %v4531_v6 = vld [vmem:[#allocation35_spill] sm:$0xff] }
 0x2f1   :  { %v1614_v61 = vsel %vm4527_vm4, %v4526_v36, -inf  ;;  %vm4528_vm12 = vmmov %vm4501_vm0  ;;  %v3979_v35 = vmax.f32 %v1609_v2, %v1610_v34 }
 0x2f2   :  { %v1615_v12 = vsel %vm4528_vm12, %v3684_v47, -inf  ;;  %vm4529_vm8 = vmmov %vm4501_vm0 }
 0x2f3   :  { %v1617_v30 = vsel %vm4529_vm8, %v3770_v0, -inf  ;;  %vm4530_vm1 = vmmov %vm4501_vm0  ;;  %v1616_v46 = vmax.f32 %v1614_v61, %v1615_v12  ;;  %v1613_v3 = vmax.f32 %v3979_v35, %v3966_v31 }
 0x2f4   :  { %v3975_v4 = vsel %vm4530_vm1, %v1556_v19, -inf  ;;  %vm4532_vm7 = vmmov %vm4501_vm0  ;;  %v4536_v19 = vld [vmem:[#allocation37_spill] sm:$0xff] }
 0x2f5   :  { %v1621_v26 = vsel %vm4532_vm7, %v4531_v6, -inf  ;;  %vm4533_vm6 = vmmov %vm4501_vm0  ;;  %v1618_v23 = vmax.f32 %v1616_v46, %v1617_v30  ;;  %v4545_v30 = vld [vmem:[#allocation41_spill] sm:$0xff] }
 0x2f6   :  { %v1622_v52 = vsel %vm4533_vm6, %v3690_v10, -inf  ;;  %vm4534_vm10 = vmmov %vm4501_vm0 }
 0x2f7   :  { %v1624_v47 = vsel %vm4534_vm10, %v3776_v48, -inf  ;;  %vm4535_vm13 = vmmov %vm4501_vm0  ;;  %v1623_v15 = vmax.f32 %v1621_v26, %v1622_v52  ;;  %v1633_v48 = vsel %vm4501_vm0, %v3858_v11, -inf  ;;  %v1620_v2 = vmax.f32 %v1618_v23, %v3975_v4  ;;  %v4550_v52 = vld [vmem:[#allocation44_spill] sm:$0xff] }
 0x2f8   :  { %v3989_v0 = vsel %vm4535_vm13, %v3853_v42, -inf  ;;  %vm4537_vm3 = vmmov %vm4501_vm0  ;;  %v4540_v42 = vld [vmem:[#allocation39_spill] sm:$0xff] }
 0x2f9   :  { %v1628_v43 = vsel %vm4537_vm3, %v4536_v19, -inf  ;;  %vm4538_vm5 = vmmov %vm4501_vm0  ;;  %v1625_v36 = vmax.f32 %v1623_v15, %v1624_v47  ;;  %v4555_v19 = vld [vmem:[#allocation48_spill] sm:$0xff] }
 0x2fa   :  { %v1629_v57 = vsel %vm4538_vm5, %v3696_v14, -inf  ;;  %vm4539_vm2 = vmmov %vm4501_vm0 }
 0x2fb   :  { %v1630_v63 = vmax.f32 %v1628_v43, %v1629_v57  ;;  %v1631_v10 = vsel %vm4539_vm2, %v3782_v38, -inf  ;;  %vm4541_vm14 = vmmov %vm4501_vm0  ;;  %v1627_v35 = vmax.f32 %v1625_v36, %v3989_v0 }
 0x2fc   :  { %v1635_v34 = vsel %vm4541_vm14, %v4540_v42, -inf  ;;  %vm4542_vm11 = vmmov %vm4501_vm0 }
 0x2fd   :  { %v1636_v31 = vsel %vm4542_vm11, %v3702_v41, -inf  ;;  %vm4543_vm9 = vmmov %vm4501_vm0  ;;  %v1632_v14 = vmax.f32 %v1630_v63, %v1631_v10  ;;  %v1719_v25 = vadd.f32 %v4571_v62, %v1627_v35 }
 0x2fe   :  { %v1638_v61 = vsel %vm4543_vm9, %v3788_v9, -inf  ;;  %v1637_v12 = vmax.f32 %v1635_v34, %v1636_v31  ;;  %vm4544_vm15 = vmmov %vm4501_vm0 }
 0x2ff   :  { %v1640_v38 = vsel %vm4544_vm15, %v3863_v49, -inf  ;;  %vm4546_vm4 = vmmov %vm4501_vm0  ;;  %v1634_v9 = vmax.f32 %v1632_v14, %v1633_v48 }
 0x300   :  { %v1642_v11 = vsel %vm4546_vm4, %v4545_v30, -inf  ;;  %vm4547_vm12 = vmmov %vm4501_vm0  ;;  %v1639_v6 = vmax.f32 %v1637_v12, %v1638_v61 }
 0x301   :  { %v1643_v4 = vsel %vm4547_vm12, %v3708_v27, -inf  ;;  %vm4548_vm8 = vmmov %vm4501_vm0  ;;  %v1720_v5 = vadd.f32 %v4571_v62, %v1634_v9 }
 0x302   :  { %v1645_v46 = vsel %vm4548_vm8, %v3794_v59, -inf  ;;  %vm4549_vm1 = vmmov %vm4501_vm0  ;;  %v1644_v26 = vmax.f32 %v1642_v11, %v1643_v4  ;;  %v1641_v43 = vmax.f32 %v1639_v6, %v1640_v38 }
 0x303   :  { %v1647_v41 = vsel %vm4549_vm1, %v3868_v56, -inf  ;;  %vm4551_vm7 = vmmov %vm4501_vm0 }
 0x304   :  { %v1649_v49 = vsel %vm4551_vm7, %v4550_v52, -inf  ;;  %vm4552_vm6 = vmmov %vm4501_vm0  ;;  %v1646_v56 = vmax.f32 %v1644_v26, %v1645_v46 }
 0x305   :  { %v1650_v47 = vsel %vm4552_vm6, %v3714_v33, -inf  ;;  %vm4553_vm10 = vmmov %vm4501_vm0  ;;  %v1661_v33 = vsel %vm4501_vm0, %v3878_v50, -inf }
 0x306   :  { %v1652_v0 = vsel %vm4553_vm10, %v3800_v7, -inf  ;;  %vm4554_vm13 = vmmov %vm4501_vm0  ;;  %v1651_v23 = vmax.f32 %v1649_v49, %v1650_v47  ;;  %v4559_v7 = vld [vmem:[#allocation27_spill] sm:$0xff] }
 0x307   :  { %v1654_v27 = vsel %vm4554_vm13, %v3873_v20, -inf  ;;  %vm4556_vm3 = vmmov %vm4501_vm0  ;;  %v1648_v20 = vmax.f32 %v1646_v56, %v1647_v41 }
 0x308   :  { %v1656_v59 = vsel %vm4556_vm3, %v4555_v19, -inf  ;;  %vm4557_vm5 = vmmov %vm4501_vm0  ;;  %v1653_v48 = vmax.f32 %v1651_v23, %v1652_v0 }
 0x309   :  { %v1657_v15 = vsel %vm4557_vm5, %v3720_v39, -inf  ;;  %vm4558_vm2 = vmmov %vm4501_vm0 }
 0x30a   :  { %v1658_v57 = vmax.f32 %v1656_v59, %v1657_v15  ;;  %v1659_v63 = vsel %vm4558_vm2, %v3806_v28, -inf  ;;  %vm4560_vm14 = vmmov %vm4501_vm0  ;;  %v4564_v28 = vld [vmem:[#allocation55_spill] sm:$0xff]  ;;  %v1655_v50 = vmax.f32 %v1653_v48, %v1654_v27 }
 0x30b   :  { %v1663_v10 = vsel %vm4560_vm14, %v4559_v7, -inf  ;;  %vm4561_vm11 = vmmov %vm4501_vm0 }
 0x30c   :  { %v1664_v42 = vsel %vm4561_vm11, %v3726_v45, -inf  ;;  %vm4562_vm9 = vmmov %vm4501_vm0  ;;  %v1660_v36 = vmax.f32 %v1658_v57, %v1659_v63  ;;  %v1723_v37 = vadd.f32 %v4571_v62, %v1655_v50 }
 0x30d   :  { %v1666_v34 = vsel %vm4562_vm9, %v3812_v40, -inf  ;;  %v1665_v39 = vmax.f32 %v1663_v10, %v1664_v42  ;;  %vm4563_vm15 = vmmov %vm4501_vm0 }
 0x30e   :  { %v1668_v31 = vsel %vm4563_vm15, %v3883_v8, -inf  ;;  %vm4565_vm4 = vmmov %vm4501_vm0  ;;  %v1662_v38 = vmax.f32 %v1660_v36, %v1661_v33  ;;  %v4569_v8 = vld [vmem:[#allocation32_spill] sm:$0xff] }
 0x30f   :  { %v1670_v61 = vsel %vm4565_vm4, %v4564_v28, -inf  ;;  %vm4566_vm12 = vmmov %vm4501_vm0  ;;  %v1667_v40 = vmax.f32 %v1665_v39, %v1666_v34  ;;  %v1711_v11 = vadd.f32 %v4569_v8, %v1571_v44  ;;  %v1712_v4 = vadd.f32 %v4569_v8, %v1578_v32 }
 0x310   :  { %v1671_v14 = vsel %vm4566_vm12, %v3732_v51, -inf  ;;  %vm4567_vm8 = vmmov %vm4501_vm0  ;;  %v1713_v51 = vadd.f32 %v4569_v8, %v1585_v13  ;;  %v1716_v29 = vadd.f32 %v4569_v8, %v1606_v53  ;;  %v1717_v21 = vadd.f32 %v4569_v8, %v1613_v3 }
 0x311   :  { %v1673_v12 = vsel %vm4567_vm8, %v3818_v16, -inf  ;;  %vm4568_vm1 = vmmov %vm4501_vm0  ;;  %v1672_v30 = vmax.f32 %v1670_v61, %v1671_v14  ;;  %v1714_v16 = vadd.f32 %v4569_v8, %v1592_v18  ;;  %v1669_v17 = vmax.f32 %v1667_v40, %v1668_v31 }
 0x312   :  { %v1675_v45 = vsel %vm4568_vm1, %v3888_v60, -inf  ;;  %v1715_v60 = vadd.f32 %v4569_v8, %v1599_v55  ;;  %vm4570_vm7 = vmmov %vm4501_vm0  ;;  %v1718_v44 = vadd.f32 %v4569_v8, %v1620_v2  ;;  %v1721_v32 = vadd.f32 %v4571_v62, %v1641_v43 }
 0x313   :  { %v1674_v24 = vmax.f32 %v1672_v30, %v1673_v12  ;;  %1727 = vst.msk [vmem:[%s4154_s5] sm:$0xff] %vm4570_vm7, %v1711_v11  ;;  %vm4572_vm6 = vmmov %vm4501_vm0  ;;  %v1722_v13 = vadd.f32 %v4571_v62, %v1648_v20  ;;  %v1724_v18 = vadd.f32 %v4571_v62, %v1662_v38  ;;  %v1725_v22 = vadd.f32 %v4571_v62, %v1669_v17 }
 0x314   :  { %1728 = vst.msk [vmem:[%s4154_s5 + $0x8] sm:$0xff] %vm4572_vm6, %v1712_v4  ;;  %vm4573_vm10 = vmmov %vm4501_vm0 }
 0x315   :  { %1729 = vst.msk [vmem:[%s4154_s5 + $0x10] sm:$0xff] %vm4573_vm10, %v1713_v51  ;;  %vm4574_vm13 = vmmov %vm4501_vm0  ;;  %v1676_v54 = vmax.f32 %v1674_v24, %v1675_v45 }
 0x316   :  { %1730 = vst.msk [vmem:[%s4154_s5 + $0x18] sm:$0xff] %vm4574_vm13, %v1714_v16  ;;  %vm4575_vm3 = vmmov %vm4501_vm0 }
 0x317   :  { %1731 = vst.msk [vmem:[%s4154_s5 + $0x20] sm:$0xff] %vm4575_vm3, %v1715_v60  ;;  %vm4576_vm5 = vmmov %vm4501_vm0  ;;  %v1726_v58 = vadd.f32 %v4571_v62, %v1676_v54 }
 0x318   :  { %1732 = vst.msk [vmem:[%s4154_s5 + $0x28] sm:$0xff] %vm4576_vm5, %v1716_v29  ;;  %vm4577_vm2 = vmmov %vm4501_vm0 }
 0x319   :  { %1733 = vst.msk [vmem:[%s4154_s5 + $0x30] sm:$0xff] %vm4577_vm2, %v1717_v21  ;;  %vm4578_vm14 = vmmov %vm4501_vm0 }
 0x31a   :  { %1734 = vst.msk [vmem:[%s4154_s5 + $0x38] sm:$0xff] %vm4501_vm0, %v1718_v44  ;;  %vm4579_vm11 = vmmov %vm4501_vm0 }
 0x31b   :  { %1735 = vst.msk [vmem:[%s4154_s5 + $0x40] sm:$0xff] %vm4578_vm14, %v1719_v25  ;;  %vm4580_vm9 = vmmov %vm4501_vm0 }
 0x31c   :  { %1736 = vst.msk [vmem:[%s4154_s5 + $0x48] sm:$0xff] %vm4579_vm11, %v1720_v5  ;;  %vm4581_vm15 = vmmov %vm4501_vm0 }
 0x31d   :  { %1737 = vst.msk [vmem:[%s4154_s5 + $0x50] sm:$0xff] %vm4580_vm9, %v1721_v32  ;;  %vm4582_vm4 = vmmov %vm4501_vm0 }
 0x31e   :  { %1738 = vst.msk [vmem:[%s4154_s5 + $0x58] sm:$0xff] %vm4581_vm15, %v1722_v13  ;;  %vm4583_vm12 = vmmov %vm4501_vm0 }
 0x31f   :  { %1739 = vst.msk [vmem:[%s4154_s5 + $0x60] sm:$0xff] %vm4582_vm4, %v1723_v37  ;;  %vm4584_vm8 = vmmov %vm4501_vm0 }
 0x320   :  { %1740 = vst.msk [vmem:[%s4154_s5 + $0x68] sm:$0xff] %vm4583_vm12, %v1724_v18  ;;  %vm4585_vm1 = vmmov %vm4501_vm0 }
 0x321   :  { %1741 = vst.msk [vmem:[%s4154_s5 + $0x70] sm:$0xff] %vm4584_vm8, %v1725_v22 }
 0x322   :  { %1742 = vst.msk [vmem:[%s4154_s5 + $0x78] sm:$0xff] %vm4585_vm1, %v1726_v58 }

// kernel: simple_unet_forward.12
= control target key start
LH: loop header
LB: loop body
LE: loop exit
PB: predicated region body
PF: predicated region fallthrough
CT: control target
= control target key end

     0   :  { %vm314_vm0 = vcmask 261120   ;;  %vm1379_vm1 = vcmask 130048   ;;  %vm1380_vm14 = vcmask 130048   ;;  %s1374_s1 = inlined_call_operand.vmem [shape: bf16[288,16], index: 1, kind: input, shape index: {}]   ;;  %s1375_s0 = inlined_call_operand.vmem [shape: bf16[128,288], index: 0, kind: input, shape index: {}]   ;;  %s1376_s2 = inlined_call_operand.vmem [shape: f32[1,16], index: 2, kind: input, shape index: {}]   ;;  %s1377_s3 = inlined_call_operand.vmem [shape: f32[1,16], index: 3, kind: input, shape index: {}]   ;;  %s1378_s4 = inlined_call_operand.vmem [shape: f32[128,16], index: 4, kind: output, shape index: {}]  }
   0x1   :  { %v921_v0 = vld [vmem:[%s1374_s1 + $0x40] sm:$0xff]   ;;  %v923_v2 = vld [vmem:[%s1374_s1 + $0x48] sm:$0xff]   ;;  %v925_v4 = vld [vmem:[%s1374_s1 + $0x50] sm:$0xff]  }
   0x2   :  { %v922_v1 = vld [vmem:[%s1374_s1] sm:$0xff]   ;;  %811 = vmatprep.subr.bf16.mxu0 %v921_v0  ;;  %905 = vmatprep.subr.bf16.mxu1 %v921_v0  ;;  %v924_v3 = vld [vmem:[%s1374_s1 + $0x8] sm:$0xff]   ;;  %v926_v5 = vld [vmem:[%s1374_s1 + $0x10] sm:$0xff]  }
   0x3   :  { %812 = vmatpush3.bf16.msra.mxu0 %v922_v1  ;;  %913 = vmatpush3.bf16.msra.mxu1 %v922_v1  ;;  %v927_v6 = vld [vmem:[%s1374_s1 + $0x58] sm:$0xff]   ;;  %v929_v8 = vld [vmem:[%s1374_s1 + $0x60] sm:$0xff]   ;;  %v931_v10 = vld [vmem:[%s1374_s1 + $0x68] sm:$0xff]  }
   0x4   :  { %813 = vmatprep.subr.bf16.mxu0 %v923_v2  ;;  %906 = vmatprep.subr.bf16.mxu1 %v923_v2  ;;  %v928_v7 = vld [vmem:[%s1374_s1 + $0x18] sm:$0xff]   ;;  %v930_v9 = vld [vmem:[%s1374_s1 + $0x20] sm:$0xff]   ;;  %v932_v13 = vld [vmem:[%s1374_s1 + $0x28] sm:$0xff]  }
   0x5   :  { %v939_v11 = vld [vmem:[%s1375_s0 + $0x4] ss:$12 sps:$4 sm:$0xff]   ;;  %v942_v12 = vld [vmem:[%s1375_s0 + $0x94] ss:$12 sps:$4 sm:$0xff]   ;;  %v935_v16 = vld [vmem:[%s1374_s1 + $0x78] sm:$0xff]  }
   0x6   :  { %v933_v14 = vld [vmem:[%s1374_s1 + $0x70] sm:$0xff]   ;;  %371 = vmatprep.mubr.bf16.mxu0 %v939_v11  ;;  %419 = vmatprep.mubr.bf16.mxu1 %v942_v12  ;;  %v936_v17 = vld [vmem:[%s1374_s1 + $0x38] sm:$0xff]   ;;  %v937_v18 = vld [vmem:[%s1375_s0] ss:$12 sps:$4 sm:$0xff]  }
   0x7   :  { %814 = vmatpush3.bf16.msra.mxu0 %v924_v3  ;;  %914 = vmatpush3.bf16.msra.mxu1 %v924_v3  ;;  %v934_v15 = vld [vmem:[%s1374_s1 + $0x30] sm:$0xff]   ;;  %v943_v19 = vld [vmem:[%s1374_s1 + $0x80] sm:$0xff]   ;;  %v944_v21 = vld [vmem:[%s1375_s0 + $0x1c] ss:$12 sps:$4 sm:$0xff]  }
   0x8   :  { %815 = vmatprep.subr.bf16.mxu0 %v925_v4  ;;  %907 = vmatprep.subr.bf16.mxu1 %v925_v4  ;;  %v940_v20 = vld [vmem:[%s1375_s0 + $0x90] ss:$12 sps:$4 sm:$0xff]   ;;  %v946_v22 = vld [vmem:[%s1375_s0 + $0xac] ss:$12 sps:$4 sm:$0xff]   ;;  %v949_v25 = vld [vmem:[%s1375_s0 + $0xa8] ss:$12 sps:$4 sm:$0xff]  }
   0x9   :  { %v950_v23 = vld [vmem:[%s1374_s1 + $0x88] sm:$0xff]   ;;  %v948_v24 = vld [vmem:[%s1375_s0 + $0x18] ss:$12 sps:$4 sm:$0xff]   ;;  %v951_v26 = vld [vmem:[%s1375_s0 + $0x34] ss:$12 sps:$4 sm:$0xff]  }
   0xa   :  { %v953_v27 = vld [vmem:[%s1375_s0 + $0x8] ss:$12 sps:$4 sm:$0xff]   ;;  %v954_v28 = vld [vmem:[%s1375_s0 + $0x30] ss:$12 sps:$4 sm:$0xff]   ;;  %v955_v29 = vld [vmem:[%s1375_s0 + $0x20] ss:$12 sps:$4 sm:$0xff]  }
   0xb   :  { %816 = vmatpush3.bf16.msra.mxu0 %v926_v5  ;;  %915 = vmatpush3.bf16.msra.mxu1 %v926_v5  ;;  %v956_v30 = vld [vmem:[%s1375_s0 + $0x4c] ss:$12 sps:$4 sm:$0xff]   ;;  %v959_v32 = vld [vmem:[%s1375_s0 + $0x48] ss:$12 sps:$4 sm:$0xff]   ;;  %v960_v33 = vld [vmem:[%s1375_s0 + $0x50] ss:$12 sps:$4 sm:$0xff]  }
   0xc   :  { %817 = vmatprep.subr.bf16.mxu0 %v927_v6  ;;  %908 = vmatprep.subr.bf16.mxu1 %v927_v6  ;;  %v958_v31 = vld [vmem:[%s1375_s0 + $0x38] ss:$12 sps:$4 sm:$0xff]   ;;  %v963_v35 = vld [vmem:[%s1375_s0 + $0x68] ss:$12 sps:$4 sm:$0xff]   ;;  %v964_v36 = vld [vmem:[%s1375_s0 + $0x60] ss:$12 sps:$4 sm:$0xff]  }
   0xd   :  { %v961_v34 = vld [vmem:[%s1375_s0 + $0x64] ss:$12 sps:$4 sm:$0xff]   ;;  %v965_v37 = vld [vmem:[%s1375_s0 + $0x80] ss:$12 sps:$4 sm:$0xff]   ;;  %v966_v38 = vld [vmem:[%s1375_s0 + $0x7c] ss:$12 sps:$4 sm:$0xff]  }
   0xe   :  { %v968_v39 = vld [vmem:[%s1375_s0 + $0x98] ss:$12 sps:$4 sm:$0xff]   ;;  %v970_v41 = vld [vmem:[%s1375_s0 + $0xb0] ss:$12 sps:$4 sm:$0xff]  }
   0xf   :  { %818 = vmatpush3.bf16.msra.mxu0 %v928_v7  ;;  %916 = vmatpush3.bf16.msra.mxu1 %v928_v7  ;;  %v969_v40 = vld [vmem:[%s1375_s0 + $0x78] ss:$12 sps:$4 sm:$0xff]  }
  0x10   :  { %819 = vmatprep.subr.bf16.mxu0 %v929_v8  ;;  %909 = vmatprep.subr.bf16.mxu1 %v929_v8 }
  0x13   :  { %820 = vmatpush3.bf16.msra.mxu0 %v930_v9  ;;  %917 = vmatpush3.bf16.msra.mxu1 %v930_v9 }
  0x14   :  { %821 = vmatprep.subr.bf16.mxu0 %v931_v10  ;;  %910 = vmatprep.subr.bf16.mxu1 %v931_v10 }
  0x17   :  { %822 = vmatpush3.bf16.msra.mxu0 %v932_v13  ;;  %918 = vmatpush3.bf16.msra.mxu1 %v932_v13 }
  0x18   :  { %823 = vmatprep.subr.bf16.mxu0 %v933_v14  ;;  %911 = vmatprep.subr.bf16.mxu1 %v933_v14 }
  0x1b   :  { %824 = vmatpush3.bf16.msra.mxu0 %v934_v15  ;;  %919 = vmatpush3.bf16.msra.mxu1 %v934_v15 }
  0x1c   :  { %825 = vmatprep.subr.bf16.mxu0 %v935_v16  ;;  %912 = vmatprep.subr.bf16.mxu1 %v935_v16 }
  0x1f   :  { %826 = vmatpush3.bf16.msra.mxu0 %v936_v17  ;;  %920 = vmatpush3.bf16.msra.mxu1 %v936_v17 }
  0x20   :  { %885 = vmatprep.subr.bf16.mxu1 %v943_v19 }
  0x22   :  { %372 = vmatmul.mubr.bf16.vlgmr.msra.gmra.mrb[0].mxu0 %v937_v18  ;;  %420 = vmatmul.mubr.bf16.vlgmr.msra.gmra.mrb[0].mxu1 %v940_v20 }
  0x23   :  { %886 = vmatpush3.bf16.msra.mxu1 %v943_v19  ;;  %379 = vmatprep.mubr.bf16.mxu0 %v944_v21 }
  0x24   :  { %427 = vmatprep.mubr.bf16.mxu1 %v946_v22  ;;  %887 = vmatprep.subr.bf16.mxu1 %v950_v23 }
  0x27   :  { %888 = vmatpush3.bf16.msra.mxu1 %v950_v23 }
  0x2a   :  { %380 = vmatmul.mubr.bf16.gmra.mrb[4].mxu0 %v948_v24  ;;  %428 = vmatmul.mubr.bf16.gmra.mrb[4].mxu1 %v949_v25 }
  0x2b   :  { %387 = vmatprep.mubr.bf16.mxu0 %v951_v26  ;;  %889 = vmatprep.mubr.msk.bf16.mxu1 %vm314_vm0, %v953_v27 }
  0x32   :  { %388 = vmatmul.mubr.bf16.gmra.mrb[8].mxu0 %v954_v28  ;;  %890 = vmatmul.mubr.msk.bf16.vlgmr.msra.gmra.mrb[8].mxu1 %vm314_vm0, %v955_v29 }
  0x33   :  { %395 = vmatprep.mubr.bf16.mxu0 %v956_v30  ;;  %893 = vmatprep.mubr.msk.bf16.mxu1 %vm314_vm0, %v958_v31 }
  0x3a   :  { %396 = vmatmul.mubr.bf16.gmra.mrb[12].mxu0 %v959_v32  ;;  %894 = vmatmul.mubr.msk.bf16.gmra.mrb[12].mxu1 %vm314_vm0, %v960_v33 }
  0x3b   :  { %403 = vmatprep.mubr.bf16.mxu0 %v961_v34  ;;  %897 = vmatprep.mubr.msk.bf16.mxu1 %vm314_vm0, %v963_v35 }
  0x42   :  { %404 = vmatmul.mubr.bf16.gmra.mrb[16].mxu0 %v964_v36  ;;  %898 = vmatmul.mubr.msk.bf16.gmra.mrb[16].mxu1 %vm314_vm0, %v965_v37 }
  0x43   :  { %411 = vmatprep.mubr.bf16.mxu0 %v966_v38  ;;  %901 = vmatprep.mubr.msk.bf16.mxu1 %vm314_vm0, %v968_v39 }
  0x4a   :  { %412 = vmatmul.mubr.bf16.gmra.mrb[20].mxu0 %v969_v40  ;;  %902 = vmatmul.mubr.msk.bf16.gmra.mrb[20].mxu1 %vm314_vm0, %v970_v41 }
  0xf5   :  { %v827_v42 = vpop.f32.mrb[0].mxu0  ;;  %v863_v43 = vpop.f32.mrb[0].mxu1 }
  0xf6   :  { %v828_v44 = vpop.f32.mrb[1].mxu0  ;;  %v864_v45 = vpop.f32.mrb[1].mxu1 }
  0xf7   :  { %v829_v46 = vadd.f32 %v828_v44, %v827_v42  ;;  %v830_v47 = vpop.f32.mrb[2].mxu0  ;;  %v1132_v48 = vadd.f32 %v864_v45, %v863_v43  ;;  %v866_v49 = vpop.f32.mrb[2].mxu1 }
  0xf8   :  { %v831_v50 = vpop.f32.mrb[3].mxu0  ;;  %v867_v51 = vpop.f32.mrb[3].mxu1 }
  0xf9   :  { %v832_v52 = vadd.f32 %v831_v50, %v830_v47  ;;  %v1134_v53 = vadd.f32 %v867_v51, %v866_v49 }
  0xfd   :  { %v833_v54 = vpop.f32.mrb[4].mxu0  ;;  %v869_v55 = vpop.f32.mrb[4].mxu1 }
  0xfe   :  { %v834_v56 = vpop.f32.mrb[5].mxu0  ;;  %v870_v57 = vpop.f32.mrb[5].mxu1 }
  0xff   :  { %v835_v58 = vadd.f32 %v834_v56, %v833_v54  ;;  %v836_v59 = vpop.f32.mrb[6].mxu0  ;;  %v1136_v60 = vadd.f32 %v870_v57, %v869_v55  ;;  %v872_v61 = vpop.f32.mrb[6].mxu1 }
 0x100   :  { %v837_v62 = vpop.f32.mrb[7].mxu0  ;;  %v873_v63 = vpop.f32.mrb[7].mxu1 }
 0x101   :  { %v838_v0 = vadd.f32 %v837_v62, %v836_v59  ;;  %v1138_v1 = vadd.f32 %v873_v63, %v872_v61 }
 0x105   :  { %v839_v2 = vpop.f32.mrb[8].mxu0  ;;  %v891_v3 = vpop.f32.mrb[8].mxu1 }
 0x106   :  { %v1140_v4 = vadd.f32 %v891_v3, %v835_v58  ;;  %v840_v5 = vpop.f32.mrb[9].mxu0  ;;  %v470_v6 = vpop.f32.mrb[9].mxu1 }
 0x107   :  { %v841_v7 = vadd.f32 %v840_v5, %v839_v2  ;;  %v1142_v8 = vadd.f32 %v829_v46, %v470_v6  ;;  %v842_v9 = vpop.f32.mrb[10].mxu0  ;;  %v892_v10 = vpop.f32.mrb[10].mxu1 }
 0x108   :  { %v1144_v11 = vadd.f32 %v892_v10, %v838_v0  ;;  %v843_v12 = vpop.f32.mrb[11].mxu0  ;;  %v473_v13 = vpop.f32.mrb[11].mxu1  ;;  %v537_v19 = vsel %vm1379_vm1, %v1140_v4, 0.0 }
 0x109   :  { %v844_v14 = vadd.f32 %v843_v12, %v842_v9  ;;  %v1146_v15 = vadd.f32 %v832_v52, %v473_v13  ;;  %v534_v16 = vsel %vm1379_vm1, %v1142_v8, 0.0 }
 0x10a   :  { %v539_v25 = vsel %vm1379_vm1, %v1144_v11, 0.0 }
 0x10b   :  { %v535_v17 = vsel %vm1379_vm1, %v1146_v15, 0.0 }
 0x10c   :  { %v536_v18 = vadd.f32 %v535_v17, %v534_v16 }
 0x10d   :  { %v845_v20 = vpop.f32.mrb[12].mxu0  ;;  %v895_v21 = vpop.f32.mrb[12].mxu1 }
 0x10e   :  { %v538_v22 = vadd.f32 %v537_v19, %v536_v18  ;;  %v846_v23 = vpop.f32.mrb[13].mxu0  ;;  %v486_v24 = vpop.f32.mrb[13].mxu1 }
 0x10f   :  { %v847_v26 = vadd.f32 %v846_v23, %v845_v20  ;;  %v1156_v27 = vadd.f32 %v841_v7, %v486_v24  ;;  %v848_v28 = vpop.f32.mrb[14].mxu0  ;;  %v896_v29 = vpop.f32.mrb[14].mxu1 }
 0x110   :  { %v540_v30 = vadd.f32 %v539_v25, %v538_v22  ;;  %v849_v31 = vpop.f32.mrb[15].mxu0  ;;  %v489_v32 = vpop.f32.mrb[15].mxu1 }
 0x111   :  { %v1158_v33 = vadd.f32 %v895_v21, %v847_v26  ;;  %v541_v34 = vsel %vm1379_vm1, %v1156_v27, 0.0  ;;  %v850_v35 = vadd.f32 %v849_v31, %v848_v28  ;;  %v1162_v36 = vadd.f32 %v844_v14, %v489_v32 }
 0x112   :  { %v542_v37 = vadd.f32 %v541_v34, %v540_v30 }
 0x113   :  { %v1164_v38 = vadd.f32 %v896_v29, %v850_v35  ;;  %v543_v39 = vsel %vm1379_vm1, %v1162_v36, 0.0  ;;  %v545_v41 = vsel %vm1379_vm1, %v1158_v33, 0.0 }
 0x114   :  { %v544_v40 = vadd.f32 %v543_v39, %v542_v37 }
 0x115   :  { %v851_v42 = vpop.f32.mrb[16].mxu0  ;;  %v899_v43 = vpop.f32.mrb[16].mxu1  ;;  %v547_v47 = vsel %vm1379_vm1, %v1164_v38, 0.0 }
 0x116   :  { %v546_v44 = vadd.f32 %v545_v41, %v544_v40  ;;  %v852_v45 = vpop.f32.mrb[17].mxu0  ;;  %v502_v46 = vpop.f32.mrb[17].mxu1 }
 0x117   :  { %v853_v49 = vadd.f32 %v852_v45, %v851_v42  ;;  %v854_v50 = vpop.f32.mrb[18].mxu0  ;;  %v900_v51 = vpop.f32.mrb[18].mxu1 }
 0x118   :  { %v855_v52 = vpop.f32.mrb[19].mxu0  ;;  %v548_v54 = vadd.f32 %v547_v47, %v546_v44  ;;  %v505_v55 = vpop.f32.mrb[19].mxu1 }
 0x119   :  { %v856_v56 = vadd.f32 %v855_v52, %v854_v50  ;;  %v503_v57 = vadd.f32 %v853_v49, %v502_v46 }
 0x11b   :  { %v549_v58 = vsel %vm1379_vm1, %v503_v57, 0.0  ;;  %v506_v59 = vadd.f32 %v856_v56, %v505_v55 }
 0x11c   :  { %v550_v61 = vadd.f32 %v549_v58, %v548_v54 }
 0x11d   :  { %v551_v62 = vsel %vm1379_vm1, %v506_v59, 0.0  ;;  %v857_v63 = vpop.f32.mrb[20].mxu0  ;;  %v903_v0 = vpop.f32.mrb[20].mxu1 }
 0x11e   :  { %v552_v2 = vadd.f32 %v551_v62, %v550_v61  ;;  %v527_v3 = vadd.f32 %v903_v0, %v1136_v60  ;;  %v858_v5 = vpop.f32.mrb[21].mxu0  ;;  %v518_v6 = vpop.f32.mrb[21].mxu1 }
 0x11f   :  { %v859_v7 = vadd.f32 %v858_v5, %v857_v63  ;;  %v519_v9 = vadd.f32 %v1132_v48, %v518_v6  ;;  %v860_v10 = vpop.f32.mrb[22].mxu0  ;;  %v904_v12 = vpop.f32.mrb[22].mxu1 }
 0x120   :  { %v530_v13 = vadd.f32 %v904_v12, %v1138_v1  ;;  %v861_v14 = vpop.f32.mrb[23].mxu0  ;;  %v521_v16 = vpop.f32.mrb[23].mxu1  ;;  %v561_v1 = vsel %vm1379_vm1, %v527_v3, 0.0 }
 0x121   :  { %v511_v17 = vadd.f32 %v899_v43, %v859_v7  ;;  %v862_v18 = vadd.f32 %v861_v14, %v860_v10  ;;  %v522_v19 = vadd.f32 %v1134_v53, %v521_v16  ;;  %v557_v24 = vsel %vm1379_vm1, %v519_v9, 0.0 }
 0x122   :  { %v563_v29 = vsel %vm1379_vm1, %v530_v13, 0.0 }
 0x123   :  { %v553_v20 = vsel %vm1379_vm1, %v511_v17, 0.0  ;;  %v514_v21 = vadd.f32 %v900_v51, %v862_v18  ;;  %v559_v25 = vsel %vm1379_vm1, %v522_v19, 0.0 }
 0x124   :  { %v554_v22 = vadd.f32 %v553_v20, %v552_v2 }
 0x125   :  { %v555_v60 = vsel %vm1379_vm1, %v514_v21, 0.0 }
 0x126   :  { %v556_v23 = vadd.f32 %v555_v60, %v554_v22 }
 0x128   :  { %v558_v48 = vadd.f32 %v557_v24, %v556_v23 }
 0x12a   :  { %v560_v26 = vadd.f32 %v559_v25, %v558_v48 }
 0x12c   :  { %v562_v28 = vadd.f32 %v561_v1, %v560_v26 }
 0x12e   :  { %v564_v30 = vadd.f32 %v563_v29, %v562_v28 }
 0x130   :  { %v565_v53 = vrot.slane %v564_v30, 4 }
 0x132   :  { %v566_v31 = vadd.f32 %v565_v53, %v564_v30 }
 0x134   :  { %v567_v32 = vrot.slane %v566_v31, 2 }
 0x136   :  { %v568_v34 = vadd.f32 %v567_v32, %v566_v31 }
 0x138   :  { %v569_v35 = vrot.slane %v568_v34, 1 }
 0x13a   :  { %v570_v37 = vadd.f32 %v569_v35, %v568_v34 }
 0x13c   :  { %v572_v39 = vmul.f32 0.0078125, %v570_v37 }
 0x13e   :  { %v1185_v40 = vsub.f32 %v1142_v8, %v572_v39  ;;  %v1188_v41 = vsub.f32 %v1146_v15, %v572_v39  ;;  %v1191_v42 = vsub.f32 %v1140_v4, %v572_v39  ;;  %v1194_v43 = vsub.f32 %v1144_v11, %v572_v39 }
 0x13f   :  { %v1197_v44 = vsub.f32 %v1156_v27, %v572_v39  ;;  %v1200_v45 = vsub.f32 %v1162_v36, %v572_v39  ;;  %v1203_v46 = vsub.f32 %v1158_v33, %v572_v39  ;;  %v1206_v8 = vsub.f32 %v1164_v38, %v572_v39 }
 0x140   :  { %v1208_v15 = vsub.f32 %v503_v57, %v572_v39  ;;  %v1210_v47 = vsub.f32 %v506_v59, %v572_v39  ;;  %v1212_v4 = vsub.f32 %v511_v17, %v572_v39  ;;  %v1214_v11 = vsub.f32 %v514_v21, %v572_v39 }
 0x141   :  { %v1216_v49 = vsub.f32 %v519_v9, %v572_v39  ;;  %v1218_v27 = vsub.f32 %v522_v19, %v572_v39  ;;  %v1220_v36 = vsub.f32 %v527_v3, %v572_v39  ;;  %v1222_v50 = vsub.f32 %v530_v13, %v572_v39 }
 0x142   :  { %v589_v33 = vmul.f32 %v1185_v40, %v1185_v40  ;;  %v590_v38 = vmul.f32 %v1188_v41, %v1188_v41  ;;  %v591_v51 = vmul.f32 %v1191_v42, %v1191_v42  ;;  %v592_v52 = vmul.f32 %v1194_v43, %v1194_v43 }
 0x143   :  { %v593_v57 = vmul.f32 %v1197_v44, %v1197_v44  ;;  %v594_v61 = vmul.f32 %v1200_v45, %v1200_v45  ;;  %v595_v0 = vmul.f32 %v1203_v46, %v1203_v46  ;;  %v596_v5 = vmul.f32 %v1206_v8, %v1206_v8 }
 0x144   :  { %v605_v54 = vsel %vm1379_vm1, %v589_v33, 0.0  ;;  %v606_v55 = vsel %vm1379_vm1, %v590_v38, 0.0  ;;  %v608_v58 = vsel %vm1379_vm1, %v591_v51, 0.0  ;;  %v610_v62 = vsel %vm1379_vm1, %v592_v52, 0.0 }
 0x145   :  { %v607_v56 = vadd.f32 %v606_v55, %v605_v54  ;;  %v612_v2 = vsel %vm1379_vm1, %v593_v57, 0.0  ;;  %v614_v6 = vsel %vm1379_vm1, %v594_v61, 0.0  ;;  %v597_v9 = vmul.f32 %v1208_v15, %v1208_v15 }
 0x146   :  { %v616_v10 = vsel %vm1379_vm1, %v595_v0, 0.0  ;;  %v598_v13 = vmul.f32 %v1210_v47, %v1210_v47  ;;  %v618_v14 = vsel %vm1379_vm1, %v596_v5, 0.0  ;;  %v599_v17 = vmul.f32 %v1212_v4, %v1212_v4 }
 0x147   :  { %v609_v59 = vadd.f32 %v608_v58, %v607_v56  ;;  %v620_v18 = vsel %vm1379_vm1, %v597_v9, 0.0  ;;  %v600_v20 = vmul.f32 %v1214_v11, %v1214_v11  ;;  %v601_v60 = vmul.f32 %v1216_v49, %v1216_v49 }
 0x148   :  { %v622_v21 = vsel %vm1379_vm1, %v598_v13, 0.0  ;;  %v624_v23 = vsel %vm1379_vm1, %v599_v17, 0.0  ;;  %v602_v48 = vmul.f32 %v1218_v27, %v1218_v27  ;;  %v603_v1 = vmul.f32 %v1220_v36, %v1220_v36  ;;  %v810_v13 = vld [vmem:[%s1377_s3] ss:$0 sm:$0xff] }
 0x149   :  { %v611_v63 = vadd.f32 %v610_v62, %v609_v59  ;;  %v626_v25 = vsel %vm1379_vm1, %v600_v20, 0.0  ;;  %v628_v28 = vsel %vm1379_vm1, %v601_v60, 0.0  ;;  %v604_v30 = vmul.f32 %v1222_v50, %v1222_v50  ;;  %v643_v59 = vld [vmem:[%s1376_s2] sm:$0x1] }
 0x14a   :  { %v630_v53 = vsel %vm1379_vm1, %v602_v48, 0.0  ;;  %v632_v32 = vsel %vm1379_vm1, %v603_v1, 0.0  ;;  %v648_v57 = vlaneseq }
 0x14b   :  { %v613_v3 = vadd.f32 %v612_v2, %v611_v63  ;;  %v634_v35 = vsel %vm1379_vm1, %v604_v30, 0.0  ;;  %vm1381_vm1 = vmmov %vm1380_vm14 }
 0x14c   :  { %v649_v58 = vshrl.u32 %v648_v57, 7 }
 0x14d   :  { %v615_v7 = vadd.f32 %v614_v6, %v613_v3 }
 0x14e   :  { %v650_v61 = vsub.s32 0, %v649_v58 }
 0x14f   :  { %v617_v12 = vadd.f32 %v616_v10, %v615_v7 }
 0x151   :  { %v619_v16 = vadd.f32 %v618_v14, %v617_v12 }
 0x153   :  { %v621_v19 = vadd.f32 %v620_v18, %v619_v16 }
 0x155   :  { %v623_v22 = vadd.f32 %v622_v21, %v621_v19 }
 0x157   :  { %v625_v24 = vadd.f32 %v624_v23, %v623_v22 }
 0x159   :  { %v627_v26 = vadd.f32 %v626_v25, %v625_v24 }
 0x15b   :  { %v629_v29 = vadd.f32 %v628_v28, %v627_v26 }
 0x15d   :  { %v631_v31 = vadd.f32 %v630_v53, %v629_v29 }
 0x15f   :  { %v633_v34 = vadd.f32 %v632_v32, %v631_v31 }
 0x161   :  { %v635_v37 = vadd.f32 %v634_v35, %v633_v34 }
 0x163   :  { %v636_v39 = vrot.slane %v635_v37, 4 }
 0x165   :  { %v637_v33 = vadd.f32 %v636_v39, %v635_v37 }
 0x167   :  { %v638_v38 = vrot.slane %v637_v33, 2 }
 0x169   :  { %v639_v51 = vadd.f32 %v638_v38, %v637_v33 }
 0x16b   :  { %v640_v52 = vrot.slane %v639_v51, 1 }
 0x16d   :  { %v641_v54 = vadd.f32 %v640_v52, %v639_v51 }
 0x16f   :  { %v642_v55 = vmul.f32 0.0078125, %v641_v54 }
 0x171   :  { %v644_v56 = vadd.f32 1e-05, %v642_v55 }
 0x173   :  { %971 = vrsqrt.f32 %v644_v56 }
 0x17d   :  { %v972_v62 = vpop.eup %971 }
 0x17e   :  { %v646_v63 = vmul.f32 %v972_v62, %v643_v59 }
 0x180   :  { %v651_v0 = vrot.slane %v646_v63, %v650_v61 }
 0x182   :  { %v653_v2 = vmul.f32 %v651_v0, %v1185_v40  ;;  %v654_v3 = vmul.f32 %v651_v0, %v1188_v41  ;;  %v655_v5 = vmul.f32 %v651_v0, %v1191_v42  ;;  %v656_v6 = vmul.f32 %v651_v0, %v1194_v43 }
 0x183   :  { %v657_v7 = vmul.f32 %v651_v0, %v1197_v44  ;;  %v658_v9 = vmul.f32 %v651_v0, %v1200_v45  ;;  %v659_v10 = vmul.f32 %v651_v0, %v1203_v46  ;;  %v660_v12 = vmul.f32 %v651_v0, %v1206_v8 }
 0x184   :  { %v661_v40 = vmul.f32 %v651_v0, %v1208_v15  ;;  %v662_v41 = vmul.f32 %v651_v0, %v1210_v47  ;;  %v663_v42 = vmul.f32 %v651_v0, %v1212_v4  ;;  %v664_v43 = vmul.f32 %v651_v0, %v1214_v11 }
 0x185   :  { %v665_v44 = vmul.f32 %v651_v0, %v1216_v49  ;;  %v666_v45 = vmul.f32 %v651_v0, %v1218_v27  ;;  %v667_v46 = vmul.f32 %v651_v0, %v1220_v36  ;;  %v668_v8 = vmul.f32 %v651_v0, %v1222_v50 }
 0x186   :  { %v676_v14 = vadd.f32 %v810_v13, %v653_v2  ;;  %v677_v16 = vadd.f32 %v810_v13, %v654_v3  ;;  %v678_v17 = vadd.f32 %v810_v13, %v655_v5  ;;  %v679_v18 = vadd.f32 %v810_v13, %v656_v6 }
 0x187   :  { %v680_v19 = vadd.f32 %v810_v13, %v657_v7  ;;  %v681_v15 = vadd.f32 %v810_v13, %v658_v9  ;;  %v682_v20 = vadd.f32 %v810_v13, %v659_v10  ;;  %v683_v47 = vadd.f32 %v810_v13, %v660_v12 }
 0x188   :  { %v684_v21 = vadd.f32 %v810_v13, %v661_v40  ;;  %v685_v4 = vadd.f32 %v810_v13, %v662_v41  ;;  %v686_v22 = vadd.f32 %v810_v13, %v663_v42  ;;  %v687_v11 = vadd.f32 %v810_v13, %v664_v43 }
 0x189   :  { %v688_v60 = vadd.f32 %v810_v13, %v665_v44  ;;  %v689_v49 = vadd.f32 %v810_v13, %v666_v45  ;;  %v690_v23 = vadd.f32 %v810_v13, %v667_v46  ;;  %v691_v27 = vadd.f32 %v810_v13, %v668_v8 }
 0x18a   :  { %vm692_vm2 = vcmp.gt.f32.partialorder %v676_v14, 0.0  ;;  %vm693_vm3 = vcmp.gt.f32.partialorder %v677_v16, 0.0  ;;  %vm694_vm4 = vcmp.gt.f32.partialorder %v678_v17, 0.0  ;;  %vm695_vm5 = vcmp.gt.f32.partialorder %v679_v18, 0.0 }
 0x18b   :  { %vm696_vm6 = vcmp.gt.f32.partialorder %v680_v19, 0.0  ;;  %vm697_vm7 = vcmp.gt.f32.partialorder %v681_v15, 0.0  ;;  %vm698_vm8 = vcmp.gt.f32.partialorder %v682_v20, 0.0  ;;  %vm699_vm9 = vcmp.gt.f32.partialorder %v683_v47, 0.0 }
 0x18c   :  { %vm700_vm10 = vcmp.gt.f32.partialorder %v684_v21, 0.0  ;;  %vm701_vm11 = vcmp.gt.f32.partialorder %v685_v4, 0.0  ;;  %vm702_vm12 = vcmp.gt.f32.partialorder %v686_v22, 0.0  ;;  %vm703_vm13 = vcmp.gt.f32.partialorder %v687_v11, 0.0 }
 0x18d   :  { %vm705_vm15 = vcmp.gt.f32.partialorder %v689_v49, 0.0  ;;  %vm706_vm0 = vcmp.gt.f32.partialorder %v690_v23, 0.0  ;;  %v708_v36 = vmul.f32 0.01, %v676_v14  ;;  %v709_v50 = vmul.f32 0.01, %v677_v16 }
 0x18e   :  { %v710_v24 = vmul.f32 0.01, %v678_v17  ;;  %v711_v48 = vmul.f32 0.01, %v679_v18  ;;  %v712_v25 = vmul.f32 0.01, %v680_v19 }
 0x18f   :  { %v713_v26 = vmul.f32 0.01, %v681_v15  ;;  %v714_v1 = vmul.f32 0.01, %v682_v20  ;;  %v715_v28 = vmul.f32 0.01, %v683_v47  ;;  %v724_v30 = vsel %vm692_vm2, %v676_v14, %v708_v36  ;;  %vm1382_vm2 = vmmov %vm1381_vm1 }
 0x190   :  { %v716_v29 = vmul.f32 0.01, %v684_v21  ;;  %v717_v53 = vmul.f32 0.01, %v685_v4  ;;  %v718_v31 = vmul.f32 0.01, %v686_v22  ;;  %v725_v34 = vsel %vm693_vm3, %v677_v16, %v709_v50  ;;  %vm1383_vm3 = vmmov %vm1381_vm1 }
 0x191   :  { %v719_v32 = vmul.f32 0.01, %v687_v11  ;;  %740 = vst.msk [vmem:[%s1378_s4] sm:$0xff] %vm1380_vm14, %v724_v30  ;;  %v720_v35 = vmul.f32 0.01, %v688_v60  ;;  %v726_v33 = vsel %vm694_vm4, %v678_v17, %v710_v24  ;;  %v727_v51 = vsel %vm695_vm5, %v679_v18, %v711_v48  ;;  %vm1384_vm4 = vmmov %vm1381_vm1 }
 0x192   :  { %v721_v37 = vmul.f32 0.01, %v689_v49  ;;  %v722_v39 = vmul.f32 0.01, %v690_v23  ;;  %741 = vst.msk [vmem:[%s1378_s4 + $0x8] sm:$0xff] %vm1381_vm1, %v725_v34  ;;  %v728_v52 = vsel %vm696_vm6, %v680_v19, %v712_v25  ;;  %v729_v54 = vsel %vm697_vm7, %v681_v15, %v713_v26  ;;  %743 = vst.msk [vmem:[%s1378_s4 + $0x18] sm:$0xff] %vm1381_vm1, %v727_v51 }
 0x193   :  { %v723_v38 = vmul.f32 0.01, %v691_v27  ;;  %742 = vst.msk [vmem:[%s1378_s4 + $0x10] sm:$0xff] %vm1382_vm2, %v726_v33  ;;  %v730_v55 = vsel %vm698_vm8, %v682_v20, %v714_v1  ;;  %v731_v56 = vsel %vm699_vm9, %v683_v47, %v715_v28  ;;  %v732_v57 = vsel %vm700_vm10, %v684_v21, %v716_v29  ;;  %vm1386_vm6 = vmmov %vm1381_vm1 }
 0x194   :  { %v733_v58 = vsel %vm701_vm11, %v685_v4, %v717_v53  ;;  %744 = vst.msk [vmem:[%s1378_s4 + $0x20] sm:$0xff] %vm1383_vm3, %v728_v52  ;;  %v734_v59 = vsel %vm702_vm12, %v686_v22, %v718_v31  ;;  %v735_v61 = vsel %vm703_vm13, %v687_v11, %v719_v32  ;;  %vm1385_vm5 = vcmp.gt.f32.partialorder %v688_v60, 0.0  ;;  %vm1387_vm7 = vmmov %vm1381_vm1 }
 0x195   :  { %745 = vst.msk [vmem:[%s1378_s4 + $0x28] sm:$0xff] %vm1384_vm4, %v729_v54  ;;  %v736_v62 = vsel %vm1385_vm5, %v688_v60, %v720_v35  ;;  %v737_v63 = vsel %vm705_vm15, %v689_v49, %v721_v37  ;;  %vm1388_vm8 = vmmov %vm1381_vm1  ;;  %v738_v0 = vsel %vm706_vm0, %v690_v23, %v722_v39  ;;  %vm1390_vm10 = vcmp.gt.f32.partialorder %v691_v27, 0.0 }
 0x196   :  { %746 = vst.msk [vmem:[%s1378_s4 + $0x30] sm:$0xff] %vm1386_vm6, %v730_v55  ;;  %vm1389_vm9 = vmmov %vm1381_vm1  ;;  %v739_v2 = vsel %vm1390_vm10, %v691_v27, %v723_v38 }
 0x197   :  { %747 = vst.msk [vmem:[%s1378_s4 + $0x38] sm:$0xff] %vm1387_vm7, %v731_v56  ;;  %vm1391_vm11 = vmmov %vm1381_vm1 }
 0x198   :  { %748 = vst.msk [vmem:[%s1378_s4 + $0x40] sm:$0xff] %vm1388_vm8, %v732_v57  ;;  %vm1392_vm12 = vmmov %vm1381_vm1 }
 0x199   :  { %749 = vst.msk [vmem:[%s1378_s4 + $0x48] sm:$0xff] %vm1389_vm9, %v733_v58  ;;  %vm1393_vm13 = vmmov %vm1381_vm1 }
 0x19a   :  { %750 = vst.msk [vmem:[%s1378_s4 + $0x50] sm:$0xff] %vm1391_vm11, %v734_v59  ;;  %vm1394_vm14 = vmmov %vm1381_vm1 }
 0x19b   :  { %751 = vst.msk [vmem:[%s1378_s4 + $0x58] sm:$0xff] %vm1392_vm12, %v735_v61  ;;  %vm1395_vm15 = vmmov %vm1381_vm1 }
 0x19c   :  { %752 = vst.msk [vmem:[%s1378_s4 + $0x60] sm:$0xff] %vm1393_vm13, %v736_v62  ;;  %vm1396_vm0 = vmmov %vm1381_vm1 }
 0x19d   :  { %753 = vst.msk [vmem:[%s1378_s4 + $0x68] sm:$0xff] %vm1394_vm14, %v737_v63 }
 0x19e   :  { %754 = vst.msk [vmem:[%s1378_s4 + $0x70] sm:$0xff] %vm1395_vm15, %v738_v0 }
 0x19f   :  { %755 = vst.msk [vmem:[%s1378_s4 + $0x78] sm:$0xff] %vm1396_vm0, %v739_v2 }

// kernel: simple_unet_forward.13
= control target key start
LH: loop header
LB: loop body
LE: loop exit
PB: predicated region body
PF: predicated region fallthrough
CT: control target
= control target key end

     0   :  { %v1296_v0 = vmov 0   ;;  %vm2475_vm0 = vcmask 130048   ;;  %vm2476_vm1 = vcmask 64512   ;;  %vm339_vm2 = vcmask 130112   ;;  %s1298_s12 = smov 120   ;;  %s1299_s13 = smov 112   ;;  %s2446_s1 = inlined_call_operand.vmem [shape: bf16[144,32], index: 1, kind: input, shape index: {}]   ;;  %s2447_s0 = inlined_call_operand.vmem [shape: bf16[128,144], index: 0, kind: input, shape index: {}]   ;;  %s2448_s3 = inlined_call_operand.vmem [shape: f32[1,8], index: 3, kind: input, shape index: {}]   ;;  %s2449_s2 = inlined_call_operand.vmem [shape: f32[1,8], index: 2, kind: input, shape index: {}]   ;;  %s2450_s4 = inlined_call_operand.vmem [shape: f32[128,32], index: 4, kind: output, shape index: {}]  }
   0x1   :  { %203 = vmatprep.subr.bf16.mxu0 %v1296_v0  ;;  %v1261_v1 = vld [vmem:[%s2446_s1] sm:$0xff]   ;;  %1236 = vmatprep.subr.bf16.mxu1 %v1296_v0  ;;  %v1262_v2 = vld [vmem:[%s2446_s1 + $0x8] sm:$0xff]   ;;  %v1263_v3 = vld [vmem:[%s2446_s1 + $0x10] sm:$0xff]   ;;  %vm382_vm3 = vcmask 195712   ;;  %vm425_vm4 = vcmask 261312   ;;  %s1300_s14 = smov 16  }
   0x2   :  { %204 = vmatpush1.bf16.msra.mxu0 %v1261_v1  ;;  %1245 = vmatpush1.bf16.msra.mxu1 %v1261_v1  ;;  %v1264_v4 = vld [vmem:[%s2446_s1 + $0x18] sm:$0xff]   ;;  %v1272_v5 = vld [vmem:[%s2447_s0 + $0x4] ss:$8 sps:$4 sm:$0xff]   ;;  %v1267_v9 = vld [vmem:[%s2446_s1 + $0x30] sm:$0xff]   ;;  %s1301_s15 = smov 8   ;;  %s1302_s16 = smov 24  }
   0x3   :  { %205 = vmatprep.subr.bf16.mxu0 %v1296_v0  ;;  %1237 = vmatprep.subr.bf16.mxu1 %v1296_v0  ;;  %v1278_v6 = vld [vmem:[%s2447_s0 + $0x44] ss:$8 sps:$4 sm:$0xff]   ;;  %v1268_v10 = vld [vmem:[%s2446_s1 + $0x38] sm:$0xff]   ;;  %v1270_v12 = vld [vmem:[%s2447_s0] ss:$8 sps:$4 sm:$0xff]  }
   0x4   :  { %1227 = vmatprep.mubr.msk.bf16.mxu0 %vm2475_vm0, %v1272_v5  ;;  %v1265_v7 = vld [vmem:[%s2446_s1 + $0x20] sm:$0xff]   ;;  %1231 = vmatprep.mubr.msk.bf16.mxu1 %vm2475_vm0, %v1278_v6  ;;  %v1266_v8 = vld [vmem:[%s2446_s1 + $0x28] sm:$0xff]   ;;  %v1273_v14 = vld [vmem:[%s2447_s0 + $0x14] ss:$8 sps:$4 sm:$0xff]  }
   0x5   :  { %v1269_v11 = vld [vmem:[%s2446_s1 + $0x40] sm:$0xff]   ;;  %v1282_v15 = vld [vmem:[%s2447_s0 + $0x54] ss:$8 sps:$4 sm:$0xff]   ;;  %v1275_v16 = vld [vmem:[%s2447_s0 + $0x10] ss:$8 sps:$4 sm:$0xff]  }
   0x6   :  { %206 = vmatpush1.bf16.msra.mxu0 %v1262_v2  ;;  %1246 = vmatpush1.bf16.msra.mxu1 %v1262_v2  ;;  %v1276_v13 = vld [vmem:[%s2447_s0 + $0x40] ss:$8 sps:$4 sm:$0xff]   ;;  %v1284_v17 = vld [vmem:[%s2447_s0 + $0x50] ss:$8 sps:$4 sm:$0xff]   ;;  %v1279_v18 = vld [vmem:[%s2447_s0 + $0x24] ss:$8 sps:$4 sm:$0xff]  }
   0x7   :  { %207 = vmatprep.subr.bf16.mxu0 %v1296_v0  ;;  %1238 = vmatprep.subr.bf16.mxu1 %v1296_v0  ;;  %v1288_v19 = vld [vmem:[%s2447_s0 + $0x64] ss:$8 sps:$4 sm:$0xff]   ;;  %v1281_v20 = vld [vmem:[%s2447_s0 + $0x20] ss:$8 sps:$4 sm:$0xff]   ;;  %v1285_v22 = vld [vmem:[%s2447_s0 + $0x34] ss:$8 sps:$4 sm:$0xff]  }
   0x8   :  { %v1290_v21 = vld [vmem:[%s2447_s0 + $0x60] ss:$8 sps:$4 sm:$0xff]   ;;  %v1291_v23 = vld [vmem:[%s2447_s0 + $0x74] ss:$8 sps:$4 sm:$0xff]   ;;  %v1287_v24 = vld [vmem:[%s2447_s0 + $0x30] ss:$8 sps:$4 sm:$0xff]  }
   0x9   :  { %v1293_v25 = vld [vmem:[%s2447_s0 + $0x70] ss:$8 sps:$4 sm:$0xff]   ;;  %s1297_s0 = smov 104  }
   0xa   :  { %208 = vmatpush1.bf16.msra.mxu0 %v1263_v3  ;;  %1247 = vmatpush1.bf16.msra.mxu1 %v1263_v3 }
   0xb   :  { %209 = vmatprep.subr.bf16.mxu0 %v1296_v0  ;;  %1239 = vmatprep.subr.bf16.mxu1 %v1296_v0 }
   0xe   :  { %210 = vmatpush1.bf16.msra.mxu0 %v1264_v4  ;;  %1248 = vmatpush1.bf16.msra.mxu1 %v1264_v4 }
   0xf   :  { %211 = vmatprep.subr.bf16.mxu0 %v1296_v0  ;;  %1240 = vmatprep.subr.bf16.mxu1 %v1296_v0 }
  0x12   :  { %212 = vmatpush1.bf16.msra.mxu0 %v1265_v7  ;;  %1249 = vmatpush1.bf16.msra.mxu1 %v1265_v7 }
  0x13   :  { %213 = vmatprep.subr.bf16.mxu0 %v1296_v0  ;;  %1241 = vmatprep.subr.bf16.mxu1 %v1296_v0 }
  0x16   :  { %214 = vmatpush1.bf16.msra.mxu0 %v1266_v8  ;;  %1250 = vmatpush1.bf16.msra.mxu1 %v1266_v8 }
  0x17   :  { %215 = vmatprep.subr.bf16.mxu0 %v1296_v0  ;;  %1242 = vmatprep.subr.bf16.mxu1 %v1296_v0 }
  0x1a   :  { %216 = vmatpush1.bf16.msra.mxu0 %v1267_v9  ;;  %1251 = vmatpush1.bf16.msra.mxu1 %v1267_v9 }
  0x1b   :  { %217 = vmatprep.subr.bf16.mxu0 %v1296_v0  ;;  %1243 = vmatprep.subr.bf16.mxu1 %v1296_v0 }
  0x1e   :  { %218 = vmatpush1.bf16.msra.mxu0 %v1268_v10  ;;  %1252 = vmatpush1.bf16.msra.mxu1 %v1268_v10 }
  0x1f   :  { %219 = vmatprep.subr.bf16.mxu0 %v1296_v0  ;;  %1244 = vmatprep.subr.bf16.mxu1 %v1296_v0 }
  0x22   :  { %220 = vmatpush1.bf16.msra.mxu0 %v1269_v11  ;;  %1253 = vmatpush1.bf16.msra.mxu1 %v1269_v11 }
  0x25   :  { %236 = vmatmul.mubr.bf16.vlgmr.msra.gmra.mrb[0].mxu0 %v1270_v12  ;;  %268 = vmatmul.mubr.bf16.vlgmr.msra.gmra.mrb[0].mxu1 %v1276_v13 }
  0x26   :  { %1228 = vmatprep.mubr.msk.bf16.mxu0 %vm2475_vm0, %v1273_v14  ;;  %1232 = vmatprep.mubr.msk.bf16.mxu1 %vm2475_vm0, %v1282_v15 }
  0x2d   :  { %244 = vmatmul.mubr.bf16.gmra.mrb[4].mxu0 %v1275_v16  ;;  %276 = vmatmul.mubr.bf16.gmra.mrb[4].mxu1 %v1284_v17 }
  0x2e   :  { %1229 = vmatprep.mubr.msk.bf16.mxu0 %vm2475_vm0, %v1279_v18  ;;  %1233 = vmatprep.mubr.msk.bf16.mxu1 %vm2475_vm0, %v1288_v19 }
  0x35   :  { %252 = vmatmul.mubr.bf16.gmra.mrb[8].mxu0 %v1281_v20  ;;  %284 = vmatmul.mubr.bf16.gmra.mrb[8].mxu1 %v1290_v21 }
  0x36   :  { %1230 = vmatprep.mubr.msk.bf16.mxu0 %vm2475_vm0, %v1285_v22  ;;  %1234 = vmatprep.mubr.msk.bf16.mxu1 %vm2475_vm0, %v1291_v23 }
  0x3d   :  { %260 = vmatmul.mubr.bf16.gmra.mrb[12].mxu0 %v1287_v24  ;;  %292 = vmatmul.mubr.bf16.gmra.mrb[12].mxu1 %v1293_v25 }
  0xf8   :  { %v1411_v26 = vpop.f32.mrb[0].mxu0  ;;  %v1413_v27 = vpop.f32.mrb[0].mxu1 }
  0xf9   :  { %v239_v28 = vpop.f32.mrb[1].mxu0  ;;  %v271_v29 = vpop.f32.mrb[1].mxu1  ;;  %v301_v30 = vsel %vm2476_vm1, %v1411_v26, 0.0  ;;  %v340_v31 = vsel %vm339_vm2, %v1411_v26, 0.0  ;;  %v383_v32 = vsel %vm382_vm3, %v1411_v26, 0.0  ;;  %v426_v33 = vsel %vm425_vm4, %v1411_v26, 0.0 }
  0xfa   :  { %v1423_v34 = vpop.f32.mrb[2].mxu0  ;;  %v1425_v35 = vpop.f32.mrb[2].mxu1 }
  0xfb   :  { %v302_v36 = vsel %vm2476_vm1, %v1423_v34, 0.0  ;;  %v341_v37 = vsel %vm339_vm2, %v1423_v34, 0.0  ;;  %v384_v38 = vsel %vm382_vm3, %v1423_v34, 0.0  ;;  %v427_v39 = vsel %vm425_vm4, %v1423_v34, 0.0  ;;  %v242_v40 = vpop.f32.mrb[3].mxu0  ;;  %v274_v41 = vpop.f32.mrb[3].mxu1 }
  0xfc   :  { %v303_v42 = vadd.f32 %v302_v36, %v301_v30  ;;  %v342_v43 = vadd.f32 %v341_v37, %v340_v31  ;;  %v385_v44 = vadd.f32 %v384_v38, %v383_v32  ;;  %v428_v45 = vadd.f32 %v427_v39, %v426_v33 }
  0xfd   :  { %v316_v32 = vsel %vm2476_vm1, %v1413_v27, 0.0  ;;  %v355_v33 = vsel %vm339_vm2, %v1413_v27, 0.0  ;;  %v398_v36 = vsel %vm382_vm3, %v1413_v27, 0.0 }
 0x100   :  { %v1435_v46 = vpop.f32.mrb[4].mxu0  ;;  %v1437_v47 = vpop.f32.mrb[4].mxu1 }
 0x101   :  { %v304_v48 = vsel %vm2476_vm1, %v1435_v46, 0.0  ;;  %v343_v49 = vsel %vm339_vm2, %v1435_v46, 0.0  ;;  %v386_v50 = vsel %vm382_vm3, %v1435_v46, 0.0  ;;  %v429_v51 = vsel %vm425_vm4, %v1435_v46, 0.0  ;;  %v247_v52 = vpop.f32.mrb[5].mxu0  ;;  %v279_v53 = vpop.f32.mrb[5].mxu1 }
 0x102   :  { %v305_v54 = vadd.f32 %v304_v48, %v303_v42  ;;  %v344_v55 = vadd.f32 %v343_v49, %v342_v43  ;;  %v387_v56 = vadd.f32 %v386_v50, %v385_v44  ;;  %v430_v57 = vadd.f32 %v429_v51, %v428_v45  ;;  %v1447_v58 = vpop.f32.mrb[6].mxu0  ;;  %v1449_v59 = vpop.f32.mrb[6].mxu1 }
 0x103   :  { %v306_v60 = vsel %vm2476_vm1, %v1447_v58, 0.0  ;;  %v345_v61 = vsel %vm339_vm2, %v1447_v58, 0.0  ;;  %v388_v62 = vsel %vm382_vm3, %v1447_v58, 0.0  ;;  %v431_v63 = vsel %vm425_vm4, %v1447_v58, 0.0  ;;  %v250_v0 = vpop.f32.mrb[7].mxu0  ;;  %v282_v1 = vpop.f32.mrb[7].mxu1 }
 0x104   :  { %v307_v2 = vadd.f32 %v306_v60, %v305_v54  ;;  %v346_v3 = vadd.f32 %v345_v61, %v344_v55  ;;  %v389_v4 = vadd.f32 %v388_v62, %v387_v56  ;;  %v432_v5 = vadd.f32 %v431_v63, %v430_v57 }
 0x105   :  { %v441_v1 = vsel %vm425_vm4, %v1413_v27, 0.0 }
 0x108   :  { %v1459_v6 = vpop.f32.mrb[8].mxu0  ;;  %v1461_v7 = vpop.f32.mrb[8].mxu1 }
 0x109   :  { %v308_v8 = vsel %vm2476_vm1, %v1459_v6, 0.0  ;;  %v347_v9 = vsel %vm339_vm2, %v1459_v6, 0.0  ;;  %v390_v10 = vsel %vm382_vm3, %v1459_v6, 0.0  ;;  %v433_v11 = vsel %vm425_vm4, %v1459_v6, 0.0  ;;  %v255_v12 = vpop.f32.mrb[9].mxu0  ;;  %v287_v13 = vpop.f32.mrb[9].mxu1 }
 0x10a   :  { %v309_v14 = vadd.f32 %v308_v8, %v307_v2  ;;  %v348_v15 = vadd.f32 %v347_v9, %v346_v3  ;;  %v391_v16 = vadd.f32 %v390_v10, %v389_v4  ;;  %v434_v17 = vadd.f32 %v433_v11, %v432_v5  ;;  %v1471_v18 = vpop.f32.mrb[10].mxu0  ;;  %v1473_v19 = vpop.f32.mrb[10].mxu1 }
 0x10b   :  { %v310_v20 = vsel %vm2476_vm1, %v1471_v18, 0.0  ;;  %v349_v21 = vsel %vm339_vm2, %v1471_v18, 0.0  ;;  %v392_v22 = vsel %vm382_vm3, %v1471_v18, 0.0  ;;  %v435_v23 = vsel %vm425_vm4, %v1471_v18, 0.0  ;;  %v258_v24 = vpop.f32.mrb[11].mxu0  ;;  %v290_v25 = vpop.f32.mrb[11].mxu1 }
 0x10c   :  { %v311_v28 = vadd.f32 %v310_v20, %v309_v14  ;;  %v350_v29 = vadd.f32 %v349_v21, %v348_v15  ;;  %v393_v30 = vadd.f32 %v392_v22, %v391_v16  ;;  %v436_v31 = vadd.f32 %v435_v23, %v434_v17 }
 0x10d   :  { %v318_v2 = vsel %vm2476_vm1, %v1425_v35, 0.0  ;;  %v357_v3 = vsel %vm339_vm2, %v1425_v35, 0.0  ;;  %v400_v4 = vsel %vm382_vm3, %v1425_v35, 0.0  ;;  %v443_v5 = vsel %vm425_vm4, %v1425_v35, 0.0 }
 0x10e   :  { %v402_v11 = vsel %vm382_vm3, %v1437_v47, 0.0  ;;  %v445_v12 = vsel %vm425_vm4, %v1437_v47, 0.0  ;;  %v447_v13 = vsel %vm425_vm4, %v1449_v59, 0.0  ;;  %v359_v17 = vsel %vm339_vm2, %v1437_v47, 0.0 }
 0x10f   :  { %v361_v21 = vsel %vm339_vm2, %v1449_v59, 0.0  ;;  %v404_v22 = vsel %vm382_vm3, %v1449_v59, 0.0  ;;  %v320_v23 = vsel %vm2476_vm1, %v1437_v47, 0.0 }
 0x110   :  { %v1489_v37 = vpop.f32.mrb[12].mxu0  ;;  %v1491_v38 = vpop.f32.mrb[12].mxu1 }
 0x111   :  { %v312_v39 = vsel %vm2476_vm1, %v1489_v37, 0.0  ;;  %v351_v40 = vsel %vm339_vm2, %v1489_v37, 0.0  ;;  %v394_v41 = vsel %vm382_vm3, %v1489_v37, 0.0  ;;  %v437_v42 = vsel %vm425_vm4, %v1489_v37, 0.0  ;;  %v263_v43 = vpop.f32.mrb[13].mxu0  ;;  %v295_v44 = vpop.f32.mrb[13].mxu1 }
 0x112   :  { %v313_v45 = vadd.f32 %v312_v39, %v311_v28  ;;  %v352_v48 = vadd.f32 %v351_v40, %v350_v29  ;;  %v395_v49 = vadd.f32 %v394_v41, %v393_v30  ;;  %v438_v50 = vadd.f32 %v437_v42, %v436_v31  ;;  %v1501_v51 = vpop.f32.mrb[14].mxu0  ;;  %v1503_v52 = vpop.f32.mrb[14].mxu1 }
 0x113   :  { %v314_v53 = vsel %vm2476_vm1, %v1501_v51, 0.0  ;;  %v353_v54 = vsel %vm339_vm2, %v1501_v51, 0.0  ;;  %v396_v55 = vsel %vm382_vm3, %v1501_v51, 0.0  ;;  %v439_v56 = vsel %vm425_vm4, %v1501_v51, 0.0  ;;  %v266_v57 = vpop.f32.mrb[15].mxu0  ;;  %v298_v60 = vpop.f32.mrb[15].mxu1 }
 0x114   :  { %v315_v61 = vadd.f32 %v314_v53, %v313_v45  ;;  %v354_v62 = vadd.f32 %v353_v54, %v352_v48  ;;  %v397_v63 = vadd.f32 %v396_v55, %v395_v49  ;;  %v440_v0 = vadd.f32 %v439_v56, %v438_v50 }
 0x115   :  { %v322_v30 = vsel %vm2476_vm1, %v1449_v59, 0.0  ;;  %v449_v31 = vsel %vm425_vm4, %v1461_v7, 0.0  ;;  %v365_v41 = vsel %vm339_vm2, %v1473_v19, 0.0  ;;  %v406_v43 = vsel %vm382_vm3, %v1461_v7, 0.0 }
 0x116   :  { %v399_v8 = vadd.f32 %v398_v36, %v397_v63  ;;  %v442_v9 = vadd.f32 %v441_v1, %v440_v0  ;;  %v356_v10 = vadd.f32 %v355_v33, %v354_v62  ;;  %v317_v14 = vadd.f32 %v316_v32, %v315_v61 }
 0x117   :  { %v451_v32 = vsel %vm425_vm4, %v1473_v19, 0.0  ;;  %v363_v33 = vsel %vm339_vm2, %v1461_v7, 0.0  ;;  %v408_v44 = vsel %vm382_vm3, %v1473_v19, 0.0  ;;  %v324_v45 = vsel %vm2476_vm1, %v1461_v7, 0.0 }
 0x118   :  { %v444_v15 = vadd.f32 %v443_v5, %v442_v9  ;;  %v358_v16 = vadd.f32 %v357_v3, %v356_v10  ;;  %v401_v20 = vadd.f32 %v400_v4, %v399_v8  ;;  %v319_v24 = vadd.f32 %v318_v2, %v317_v14 }
 0x119   :  { %v326_v54 = vsel %vm2476_vm1, %v1473_v19, 0.0  ;;  %v453_v55 = vsel %vm425_vm4, %v1491_v38, 0.0  ;;  %v367_v56 = vsel %vm339_vm2, %v1491_v38, 0.0  ;;  %v410_v57 = vsel %vm382_vm3, %v1491_v38, 0.0 }
 0x11a   :  { %v446_v25 = vadd.f32 %v445_v12, %v444_v15  ;;  %v360_v28 = vadd.f32 %v359_v17, %v358_v16  ;;  %v403_v29 = vadd.f32 %v402_v11, %v401_v20  ;;  %v321_v36 = vadd.f32 %v320_v23, %v319_v24 }
 0x11b   :  { %v328_v0 = vsel %vm2476_vm1, %v1491_v38, 0.0  ;;  %v455_v5 = vsel %vm425_vm4, %v1503_v52, 0.0  ;;  %v369_v8 = vsel %vm339_vm2, %v1503_v52, 0.0  ;;  %v412_v9 = vsel %vm382_vm3, %v1503_v52, 0.0 }
 0x11c   :  { %v448_v39 = vadd.f32 %v447_v13, %v446_v25  ;;  %v362_v40 = vadd.f32 %v361_v21, %v360_v28  ;;  %v405_v42 = vadd.f32 %v404_v22, %v403_v29  ;;  %v323_v48 = vadd.f32 %v322_v30, %v321_v36 }
 0x11d   :  { %v330_v14 = vsel %vm2476_vm1, %v1503_v52, 0.0 }
 0x11e   :  { %v450_v49 = vadd.f32 %v449_v31, %v448_v39  ;;  %v364_v50 = vadd.f32 %v363_v33, %v362_v40  ;;  %v407_v53 = vadd.f32 %v406_v43, %v405_v42  ;;  %v325_v60 = vadd.f32 %v324_v45, %v323_v48 }
 0x120   :  { %v452_v61 = vadd.f32 %v451_v32, %v450_v49  ;;  %v366_v62 = vadd.f32 %v365_v41, %v364_v50  ;;  %v409_v63 = vadd.f32 %v408_v44, %v407_v53  ;;  %v327_v1 = vadd.f32 %v326_v54, %v325_v60 }
 0x121   :  { %v470_v49 = vlaneseq }
 0x122   :  { %v454_v2 = vadd.f32 %v453_v55, %v452_v61  ;;  %v368_v3 = vadd.f32 %v367_v56, %v366_v62  ;;  %v411_v4 = vadd.f32 %v410_v57, %v409_v63  ;;  %v329_v10 = vadd.f32 %v328_v0, %v327_v1 }
 0x123   :  { %v1574_v55 = vshrl.u32 %v470_v49, 7 }
 0x124   :  { %v456_v11 = vadd.f32 %v455_v5, %v454_v2  ;;  %v370_v12 = vadd.f32 %v369_v8, %v368_v3  ;;  %v413_v13 = vadd.f32 %v412_v9, %v411_v4  ;;  %v331_v15 = vadd.f32 %v330_v14, %v329_v10 }
 0x125   :  { %v2451_v61 = vsub.s32 0, %v1574_v55 }
 0x126   :  { %v457_v16 = vrot.slane %v456_v11, 4  ;;  %v371_v17 = vrot.slane %v370_v12, 4  ;;  %v414_v20 = vrot.slane %v413_v13, 4  ;;  %v332_v42 = vrot.slane %v331_v15, 4 }
 0x128   :  { %v458_v21 = vadd.f32 %v457_v16, %v456_v11  ;;  %v372_v22 = vadd.f32 %v371_v17, %v370_v12  ;;  %v415_v23 = vadd.f32 %v414_v20, %v413_v13  ;;  %v333_v43 = vadd.f32 %v332_v42, %v331_v15 }
 0x12a   :  { %v459_v24 = vrot.slane %v458_v21, 2  ;;  %v373_v25 = vrot.slane %v372_v22, 2  ;;  %v416_v28 = vrot.slane %v415_v23, 2  ;;  %v334_v44 = vrot.slane %v333_v43, 2 }
 0x12c   :  { %v460_v29 = vadd.f32 %v459_v24, %v458_v21  ;;  %v374_v30 = vadd.f32 %v373_v25, %v372_v22  ;;  %v417_v31 = vadd.f32 %v416_v28, %v415_v23  ;;  %v335_v45 = vadd.f32 %v334_v44, %v333_v43 }
 0x12e   :  { %v461_v32 = vrot.slane %v460_v29, 1  ;;  %v375_v33 = vrot.slane %v374_v30, 1  ;;  %v418_v40 = vrot.slane %v417_v31, 1  ;;  %v336_v48 = vrot.slane %v335_v45, 1 }
 0x130   :  { %v462_v36 = vadd.f32 %v461_v32, %v460_v29  ;;  %v376_v39 = vadd.f32 %v375_v33, %v374_v30  ;;  %v419_v41 = vadd.f32 %v418_v40, %v417_v31  ;;  %v337_v53 = vadd.f32 %v336_v48, %v335_v45 }
 0x132   :  { %464 = vrot.lane.b32.xlu1 %v462_v36, %s1297_s0  ;;  %378 = vrot.lane.b32.xlu0 %v376_v39, %s1298_s12 }
 0x136   :  { %421 = vrot.lane.b32.xlu0 %v419_v41, %s1299_s13 }
 0x1a4   :  { %v379_v50 = vpop.permute.xlu0 %378  ;;  %v465_v60 = vpop.permute.xlu1 %464 }
 0x1a5   :  { %v381_v54 = vadd.f32 %v379_v50, %v337_v53 }
 0x1a8   :  { %v422_v56 = vpop.permute.xlu0 %421 }
 0x1a9   :  { %v424_v57 = vadd.f32 %v422_v56, %v381_v54 }
 0x1ab   :  { %v467_v62 = vadd.f32 %v465_v60, %v424_v57 }
 0x1ad   :  { %v469_v63 = vmul.f32 0.001953125, %v467_v62 }
 0x1af   :  { %v473_v0 = vrot.slane %v469_v63, %v2451_v61 }
 0x1b1   :  { %510 = vrot.lane.b32.xlu0 %v473_v0, %s1300_s14  ;;  %491 = vrot.lane.b32.xlu1 %v473_v0, %s1301_s15  ;;  %v1582_v1 = vsub.f32 %v1411_v26, %v473_v0  ;;  %v1585_v2 = vsub.f32 %v1423_v34, %v473_v0  ;;  %v1588_v3 = vsub.f32 %v1435_v46, %v473_v0 }
 0x1b2   :  { %v1591_v4 = vsub.f32 %v1447_v58, %v473_v0  ;;  %v1594_v5 = vsub.f32 %v1459_v6, %v473_v0  ;;  %v1597_v8 = vsub.f32 %v1471_v18, %v473_v0  ;;  %v1600_v9 = vsub.f32 %v1489_v37, %v473_v0 }
 0x1b3   :  { %v1603_v10 = vsub.f32 %v1501_v51, %v473_v0  ;;  %v1606_v11 = vsub.f32 %v1413_v27, %v473_v0  ;;  %v1609_v12 = vsub.f32 %v1425_v35, %v473_v0  ;;  %v1612_v13 = vsub.f32 %v1437_v47, %v473_v0 }
 0x1b4   :  { %v1615_v14 = vsub.f32 %v1449_v59, %v473_v0  ;;  %v1618_v15 = vsub.f32 %v1461_v7, %v473_v0  ;;  %v1621_v16 = vsub.f32 %v1473_v19, %v473_v0  ;;  %v1624_v17 = vsub.f32 %v1491_v38, %v473_v0 }
 0x1b5   :  { %529 = vrot.lane.b32.xlu1 %v473_v0, %s1302_s16  ;;  %v1628_v20 = vsub.f32 %v1503_v52, %v473_v0 }
 0x223   :  { %v511_v21 = vpop.permute.xlu0 %510  ;;  %v1658_v41 = vpop.permute.xlu1 %491 }
 0x224   :  { %v1631_v22 = vsub.f32 %v1411_v26, %v511_v21  ;;  %v1634_v23 = vsub.f32 %v1423_v34, %v511_v21  ;;  %v1637_v24 = vsub.f32 %v1435_v46, %v511_v21  ;;  %v1640_v25 = vsub.f32 %v1447_v58, %v511_v21 }
 0x225   :  { %v1647_v30 = vsub.f32 %v1459_v6, %v511_v21  ;;  %v1652_v32 = vsub.f32 %v1471_v18, %v511_v21  ;;  %v1661_v42 = vsub.f32 %v1489_v37, %v511_v21  ;;  %v1667_v48 = vsub.f32 %v1501_v51, %v511_v21 }
 0x226   :  { %2489 = vst [vmem:[#allocation2_spill] sm:$0xff] %v1631_v22  ;;  %2490 = vst [vmem:[#allocation3_spill] sm:$0xff] %v1634_v23  ;;  %v660_v28 = vmul.f32 %v1631_v22, %v1631_v22  ;;  %v661_v29 = vmul.f32 %v1634_v23, %v1634_v23  ;;  %v662_v31 = vmul.f32 %v1637_v24, %v1637_v24 }
 0x227   :  { %2491 = vst [vmem:[#allocation4_spill] sm:$0xff] %v1637_v24  ;;  %2492 = vst [vmem:[#allocation5_spill] sm:$0xff] %v1640_v25  ;;  %v663_v33 = vmul.f32 %v1640_v25, %v1640_v25  ;;  %v664_v43 = vmul.f32 %v1647_v30, %v1647_v30  ;;  %v665_v49 = vmul.f32 %v1652_v32, %v1652_v32 }
 0x228   :  { %2493 = vst [vmem:[#allocation6_spill] sm:$0xff] %v1647_v30  ;;  %2494 = vst [vmem:[#allocation7_spill] sm:$0xff] %v1652_v32  ;;  %v676_v36 = vsel %vm382_vm3, %v660_v28, 0.0  ;;  %v677_v39 = vsel %vm382_vm3, %v661_v29, 0.0  ;;  %v679_v44 = vsel %vm382_vm3, %v662_v31, 0.0  ;;  %v1674_v54 = vsub.f32 %v1411_v26, %v1658_v41 }
 0x229   :  { %v678_v40 = vadd.f32 %v677_v39, %v676_v36  ;;  %2495 = vst [vmem:[#allocation8_spill] sm:$0xff] %v1661_v42  ;;  %2496 = vst [vmem:[#allocation9_spill] sm:$0xff] %v1667_v48  ;;  %v681_v50 = vsel %vm382_vm3, %v663_v33, 0.0  ;;  %v1677_v56 = vsub.f32 %v1413_v27, %v511_v21  ;;  %v666_v57 = vmul.f32 %v1661_v42, %v1661_v42 }
 0x22a   :  { %v683_v60 = vsel %vm382_vm3, %v664_v43, 0.0  ;;  %v1684_v62 = vsub.f32 %v1423_v34, %v1658_v41  ;;  %v1687_v63 = vsub.f32 %v1425_v35, %v511_v21  ;;  %v1690_v0 = vsub.f32 %v1437_v47, %v511_v21 }
 0x22b   :  { %v680_v45 = vadd.f32 %v679_v44, %v678_v40  ;;  %2497 = vst [vmem:[#allocation10_spill] sm:$0xff] %v1677_v56  ;;  %v1693_v29 = vsub.f32 %v1449_v59, %v511_v21  ;;  %v667_v31 = vmul.f32 %v1667_v48, %v1667_v48  ;;  %v685_v33 = vsel %vm382_vm3, %v665_v49, 0.0 }
 0x22c   :  { %2498 = vst [vmem:[#allocation11_spill] sm:$0xff] %v1687_v63  ;;  %2499 = vst [vmem:[#allocation12_spill] sm:$0xff] %v1690_v0  ;;  %v1700_v36 = vsub.f32 %v1435_v46, %v1658_v41  ;;  %v1703_v39 = vsub.f32 %v1461_v7, %v511_v21  ;;  %v1706_v40 = vsub.f32 %v1473_v19, %v511_v21 }
 0x22d   :  { %v682_v53 = vadd.f32 %v681_v50, %v680_v45  ;;  %2500 = vst [vmem:[#allocation13_spill] sm:$0xff] %v1693_v29  ;;  %v602_v44 = vmul.f32 %v1674_v54, %v1674_v54  ;;  %v668_v45 = vmul.f32 %v1677_v56, %v1677_v56  ;;  %v687_v50 = vsel %vm382_vm3, %v666_v57, 0.0 }
 0x22e   :  { %2501 = vst [vmem:[#allocation14_spill] sm:$0xff] %v1703_v39  ;;  %2502 = vst [vmem:[#allocation15_spill] sm:$0xff] %v1706_v40  ;;  %v1715_v49 = vsub.f32 %v1447_v58, %v1658_v41  ;;  %v670_v57 = vmul.f32 %v1690_v0, %v1690_v0  ;;  %v689_v56 = vsel %vm382_vm3, %v667_v31, 0.0  ;;  %v1732_v48 = vsub.f32 %v1459_v6, %v1658_v41 }
 0x22f   :  { %v684_v28 = vadd.f32 %v683_v60, %v682_v53  ;;  %v603_v53 = vmul.f32 %v1684_v62, %v1684_v62  ;;  %v1720_v60 = vsub.f32 %v1491_v38, %v511_v21  ;;  %v604_v42 = vmul.f32 %v1700_v36, %v1700_v36 }
 0x230   :  { %v672_v32 = vmul.f32 %v1703_v39, %v1703_v39  ;;  %v1744_v31 = vsub.f32 %v1471_v18, %v1658_v41  ;;  %v605_v0 = vmul.f32 %v1715_v49, %v1715_v49  ;;  %v606_v25 = vmul.f32 %v1732_v48, %v1732_v48 }
 0x231   :  { %v686_v43 = vadd.f32 %v685_v33, %v684_v28  ;;  %2503 = vst [vmem:[#allocation16_spill] sm:$0xff] %v1720_v60  ;;  %v1723_v28 = vsub.f32 %v1503_v52, %v511_v21  ;;  %v669_v33 = vmul.f32 %v1687_v63, %v1687_v63  ;;  %v671_v21 = vmul.f32 %v1693_v29, %v1693_v29 }
 0x232   :  { %v619_v30 = vsel %vm339_vm2, %v603_v53, 0.0  ;;  %v673_v29 = vmul.f32 %v1706_v40, %v1706_v40  ;;  %v674_v39 = vmul.f32 %v1720_v60, %v1720_v60  ;;  %v621_v24 = vsel %vm339_vm2, %v604_v42, 0.0 }
 0x233   :  { %2504 = vst [vmem:[#allocation17_spill] sm:$0xff] %v1723_v28  ;;  %v688_v61 = vadd.f32 %v687_v50, %v686_v43  ;;  %v618_v43 = vsel %vm339_vm2, %v602_v44, 0.0  ;;  %v691_v50 = vsel %vm382_vm3, %v668_v45, 0.0  ;;  %v693_v44 = vsel %vm382_vm3, %v669_v33, 0.0 }
 0x234   :  { %v1756_v45 = vsub.f32 %v1489_v37, %v1658_v41  ;;  %v675_v53 = vmul.f32 %v1723_v28, %v1723_v28  ;;  %v695_v23 = vsel %vm382_vm3, %v670_v57, 0.0  ;;  %v1769_v33 = vsub.f32 %v1501_v51, %v1658_v41 }
 0x235   :  { %v690_v63 = vadd.f32 %v689_v56, %v688_v61  ;;  %v620_v56 = vadd.f32 %v619_v30, %v618_v43  ;;  %v697_v30 = vsel %vm382_vm3, %v671_v21, 0.0  ;;  %v607_v43 = vmul.f32 %v1744_v31, %v1744_v31 }
 0x236   :  { %v623_v42 = vsel %vm339_vm2, %v605_v0, 0.0  ;;  %v699_v28 = vsel %vm382_vm3, %v672_v32, 0.0  ;;  %v1779_v21 = vsub.f32 %v1413_v27, %v1658_v41  ;;  %v705_v0 = vsel %vm382_vm3, %v675_v53, 0.0 }
 0x237   :  { %v692_v61 = vadd.f32 %v691_v50, %v690_v63  ;;  %v622_v60 = vadd.f32 %v621_v24, %v620_v56  ;;  %v1764_v63 = vpop.permute.xlu1 %529  ;;  %v703_v24 = vsel %vm382_vm3, %v674_v39, 0.0  ;;  %v608_v56 = vmul.f32 %v1756_v45, %v1756_v45 }
 0x238   :  { %v1787_v32 = vsub.f32 %v1411_v26, %v1764_v63  ;;  %v609_v39 = vmul.f32 %v1769_v33, %v1769_v33  ;;  %v1802_v53 = vsub.f32 %v1437_v47, %v1658_v41  ;;  %v1806_v26 = vsub.f32 %v1449_v59, %v1658_v41 }
 0x239   :  { %v694_v40 = vadd.f32 %v693_v44, %v692_v61  ;;  %v701_v61 = vsel %vm382_vm3, %v673_v29, 0.0  ;;  %v624_v57 = vadd.f32 %v623_v42, %v622_v60  ;;  %v625_v44 = vsel %vm339_vm2, %v606_v25, 0.0 }
 0x23a   :  { %2505 = vst [vmem:[#allocation18_spill] sm:$0xff] %v1787_v32  ;;  %v1791_v29 = vsub.f32 %v1425_v35, %v1658_v41  ;;  %v1798_v25 = vsub.f32 %v1423_v34, %v1764_v63  ;;  %2508 = vst [vmem:[#allocation21_spill] sm:$0xff] %v1802_v53  ;;  %v1810_v42 = vsub.f32 %v1461_v7, %v1658_v41  ;;  %v629_v34 = vsel %vm339_vm2, %v608_v56, 0.0 }
 0x23b   :  { %v696_v50 = vadd.f32 %v695_v23, %v694_v40  ;;  %v626_v23 = vadd.f32 %v625_v44, %v624_v57  ;;  %v627_v40 = vsel %vm339_vm2, %v607_v43, 0.0  ;;  %2509 = vst [vmem:[#allocation22_spill] sm:$0xff] %v1806_v26  ;;  %v610_v43 = vmul.f32 %v1779_v21, %v1779_v21 }
 0x23c   :  { %2506 = vst [vmem:[#allocation19_spill] sm:$0xff] %v1791_v29  ;;  %2507 = vst [vmem:[#allocation20_spill] sm:$0xff] %v1798_v25  ;;  %v718_v44 = vmul.f32 %v1787_v32, %v1787_v32  ;;  %v1830_v56 = vsub.f32 %v1447_v58, %v1764_v63  ;;  %v1847_v58 = vsub.f32 %v1459_v6, %v1764_v63 }
 0x23d   :  { %v698_v22 = vadd.f32 %v697_v30, %v696_v50  ;;  %v628_v30 = vadd.f32 %v627_v40, %v626_v23  ;;  %v1821_v50 = vsub.f32 %v1473_v19, %v1658_v41  ;;  %v611_v23 = vmul.f32 %v1791_v29, %v1791_v29 }
 0x23e   :  { %v631_v40 = vsel %vm339_vm2, %v609_v39, 0.0  ;;  %2511 = vst [vmem:[#allocation24_spill] sm:$0xff] %v1830_v56  ;;  %v612_v39 = vmul.f32 %v1802_v53, %v1802_v53  ;;  %v633_v32 = vsel %vm339_vm2, %v610_v43, 0.0  ;;  %2512 = vst [vmem:[#allocation25_spill] sm:$0xff] %v1847_v58  ;;  %v721_v6 = vmul.f32 %v1830_v56, %v1830_v56 }
 0x23f   :  { %v700_v60 = vadd.f32 %v699_v28, %v698_v22  ;;  %v1817_v22 = vsub.f32 %v1435_v46, %v1764_v63  ;;  %v630_v57 = vadd.f32 %v629_v34, %v628_v30  ;;  %v719_v46 = vmul.f32 %v1798_v25, %v1798_v25 }
 0x240   :  { %v1840_v30 = vsub.f32 %v1503_v52, %v1658_v41  ;;  %v613_v25 = vmul.f32 %v1806_v26, %v1806_v26 }
 0x241   :  { %2510 = vst [vmem:[#allocation23_spill] sm:$0xff] %v1817_v22  ;;  %v702_v28 = vadd.f32 %v701_v61, %v700_v60  ;;  %v1836_v60 = vsub.f32 %v1491_v38, %v1658_v41  ;;  %v632_v34 = vadd.f32 %v631_v40, %v630_v57  ;;  %v734_v41 = vsel %vm425_vm4, %v718_v44, 0.0 }
 0x242   :  { %v635_v57 = vsel %vm339_vm2, %v611_v23, 0.0  ;;  %v1857_v40 = vsub.f32 %v1471_v18, %v1764_v63  ;;  %v735_v43 = vsel %vm425_vm4, %v719_v46, 0.0  ;;  %v1867_v44 = vsub.f32 %v1489_v37, %v1764_v63 }
 0x243   :  { %v704_v61 = vadd.f32 %v703_v24, %v702_v28  ;;  %v720_v24 = vmul.f32 %v1817_v22, %v1817_v22  ;;  %v634_v29 = vadd.f32 %v633_v32, %v632_v34  ;;  %v736_v22 = vadd.f32 %v735_v43, %v734_v41 }
 0x244   :  { %2513 = vst [vmem:[#allocation26_spill] sm:$0xff] %v1857_v40  ;;  %v637_v32 = vsel %vm339_vm2, %v612_v39, 0.0  ;;  %2514 = vst [vmem:[#allocation27_spill] sm:$0xff] %v1867_v44  ;;  %v722_v18 = vmul.f32 %v1847_v58, %v1847_v58  ;;  %v615_v46 = vmul.f32 %v1821_v50, %v1821_v50  ;;  %v1877_v39 = vsub.f32 %v1501_v51, %v1764_v63 }
 0x245   :  { %v706_v28 = vadd.f32 %v705_v0, %v704_v61  ;;  %v614_v0 = vmul.f32 %v1810_v42, %v1810_v42  ;;  %v636_v61 = vadd.f32 %v635_v57, %v634_v29  ;;  %v737_v23 = vsel %vm425_vm4, %v720_v24, 0.0 }
 0x246   :  { %v738_v26 = vadd.f32 %v737_v23, %v736_v22  ;;  %v639_v29 = vsel %vm339_vm2, %v613_v25, 0.0  ;;  %2515 = vst [vmem:[#allocation28_spill] sm:$0xff] %v1877_v39  ;;  %v723_v37 = vmul.f32 %v1857_v40, %v1857_v40  ;;  %v739_v41 = vsel %vm425_vm4, %v721_v6, 0.0 }
 0x247   :  { %v707_v53 = vrot.slane %v706_v28, 4  ;;  %v638_v56 = vadd.f32 %v637_v32, %v636_v61  ;;  %v641_v43 = vsel %vm339_vm2, %v614_v0, 0.0  ;;  %v1887_v25 = vsub.f32 %v1413_v27, %v1764_v63 }
 0x248   :  { %v724_v51 = vmul.f32 %v1867_v44, %v1867_v44  ;;  %v741_v22 = vsel %vm425_vm4, %v722_v18, 0.0  ;;  %v617_v6 = vmul.f32 %v1840_v30, %v1840_v30  ;;  %v725_v27 = vmul.f32 %v1877_v39, %v1877_v39 }
 0x249   :  { %v708_v34 = vadd.f32 %v707_v53, %v706_v28  ;;  %v616_v53 = vmul.f32 %v1836_v60, %v1836_v60  ;;  %v640_v24 = vadd.f32 %v639_v29, %v638_v56  ;;  %v740_v28 = vadd.f32 %v739_v41, %v738_v26  ;;  %2516 = vst [vmem:[#allocation29_spill] sm:$0xff] %v1887_v25 }
 0x24a   :  { %v643_v56 = vsel %vm339_vm2, %v615_v46, 0.0  ;;  %v1897_v26 = vsub.f32 %v1425_v35, %v1764_v63  ;;  %v743_v0 = vsel %vm425_vm4, %v723_v37, 0.0  ;;  %v726_v46 = vmul.f32 %v1887_v25, %v1887_v25 }
 0x24b   :  { %v709_v57 = vrot.slane %v708_v34, 2  ;;  %v642_v32 = vadd.f32 %v641_v43, %v640_v24  ;;  %v742_v23 = vadd.f32 %v741_v22, %v740_v28  ;;  %v745_v35 = vsel %vm425_vm4, %v724_v51, 0.0 }
 0x24c   :  { %2517 = vst [vmem:[#allocation30_spill] sm:$0xff] %v1897_v26  ;;  %v647_v22 = vsel %vm339_vm2, %v617_v6, 0.0  ;;  %v1913_v37 = vsub.f32 %v1449_v59, %v1764_v63  ;;  %v1921_v51 = vsub.f32 %v1461_v7, %v1764_v63  ;;  %v749_v6 = vsel %vm425_vm4, %v726_v46, 0.0 }
 0x24d   :  { %v710_v61 = vadd.f32 %v709_v57, %v708_v34  ;;  %v644_v41 = vadd.f32 %v643_v56, %v642_v32  ;;  %v744_v18 = vadd.f32 %v743_v0, %v742_v23  ;;  %v645_v34 = vsel %vm339_vm2, %v616_v53, 0.0 }
 0x24e   :  { %v1905_v57 = vsub.f32 %v1437_v47, %v1764_v63  ;;  %2519 = vst [vmem:[#allocation32_spill] sm:$0xff] %v1913_v37  ;;  %v727_v53 = vmul.f32 %v1897_v26, %v1897_v26  ;;  %v747_v47 = vsel %vm425_vm4, %v725_v27, 0.0  ;;  %2520 = vst [vmem:[#allocation33_spill] sm:$0xff] %v1921_v51  ;;  %v1928_v0 = vsub.f32 %v1473_v19, %v1764_v63 }
 0x24f   :  { %v711_v29 = vrot.slane %v710_v61, 1  ;;  %v646_v28 = vadd.f32 %v645_v34, %v644_v41  ;;  %v746_v43 = vadd.f32 %v745_v35, %v744_v18  ;;  %v729_v27 = vmul.f32 %v1913_v37, %v1913_v37 }
 0x250   :  { %2518 = vst [vmem:[#allocation31_spill] sm:$0xff] %v1905_v57  ;;  %2521 = vst [vmem:[#allocation34_spill] sm:$0xff] %v1928_v0  ;;  %v1935_v7 = vsub.f32 %v1491_v38, %v1764_v63  ;;  %v730_v34 = vmul.f32 %v1921_v51, %v1921_v51  ;;  %v1942_v19 = vsub.f32 %v1503_v52, %v1764_v63  ;;  %v2537_v51 = vld [vmem:[#allocation6_spill] sm:$0xff] }
 0x251   :  { %v712_v24 = vadd.f32 %v711_v29, %v710_v61  ;;  %v648_v32 = vadd.f32 %v647_v22, %v646_v28  ;;  %v748_v23 = vadd.f32 %v747_v47, %v746_v43  ;;  %v728_v61 = vmul.f32 %v1905_v57, %v1905_v57 }
 0x252   :  { %v751_v29 = vsel %vm425_vm4, %v727_v53, 0.0  ;;  %2522 = vst [vmem:[#allocation35_spill] sm:$0xff] %v1935_v7  ;;  %2523 = vst [vmem:[#allocation36_spill] sm:$0xff] %v1942_v19  ;;  %v731_v28 = vmul.f32 %v1928_v0, %v1928_v0  ;;  %v755_v43 = vsel %vm425_vm4, %v729_v27, 0.0  ;;  %v732_v38 = vmul.f32 %v1935_v7, %v1935_v7 }
 0x253   :  { %714 = vrot.lane.b32.xlu1 %v712_v24, %s1299_s13  ;;  %v649_v59 = vrot.slane %v648_v32, 4  ;;  %v750_v56 = vadd.f32 %v749_v6, %v748_v23  ;;  %v753_v46 = vsel %vm425_vm4, %v728_v61, 0.0  ;;  %v757_v47 = vsel %vm425_vm4, %v730_v34, 0.0 }
 0x254   :  { %v733_v61 = vmul.f32 %v1942_v19, %v1942_v19  ;;  %v759_v52 = vsel %vm425_vm4, %v731_v28, 0.0  ;;  %v1960_v28 = vld [vmem:[%s2448_s3] ss:$0 sm:$0xff] }
 0x255   :  { %v650_v41 = vadd.f32 %v649_v59, %v648_v32  ;;  %v752_v18 = vadd.f32 %v751_v29, %v750_v56  ;;  %v761_v59 = vsel %vm425_vm4, %v732_v38, 0.0 }
 0x256   :  { %v763_v27 = vsel %vm425_vm4, %v733_v61, 0.0 }
 0x257   :  { %v651_v35 = vrot.slane %v650_v41, 2  ;;  %v754_v24 = vadd.f32 %v753_v46, %v752_v18  ;;  %893 = vrot.lane.b32.xlu1 %v1960_v28, %s1301_s15 }
 0x259   :  { %v652_v22 = vadd.f32 %v651_v35, %v650_v41  ;;  %v756_v53 = vadd.f32 %v755_v43, %v754_v24  ;;  %v548_v43 = vmul.f32 %v1582_v1, %v1582_v1 }
 0x25b   :  { %v653_v32 = vrot.slane %v652_v22, 1  ;;  %v758_v23 = vadd.f32 %v757_v47, %v756_v53  ;;  %v564_v53 = vsel %vm2476_vm1, %v548_v43, 0.0  ;;  %v550_v47 = vmul.f32 %v1588_v3, %v1588_v3 }
 0x25c   :  { %v556_v43 = vmul.f32 %v1606_v11, %v1606_v11 }
 0x25d   :  { %v654_v63 = vadd.f32 %v653_v32, %v652_v22  ;;  %v760_v6 = vadd.f32 %v759_v52, %v758_v23  ;;  %v549_v22 = vmul.f32 %v1585_v2, %v1585_v2  ;;  %v551_v23 = vmul.f32 %v1591_v4, %v1591_v4 }
 0x25e   :  { %v567_v61 = vsel %vm2476_vm1, %v550_v47, 0.0  ;;  %v579_v47 = vsel %vm2476_vm1, %v556_v43, 0.0  ;;  %v563_v43 = vmul.f32 %v1628_v20, %v1628_v20 }
 0x25f   :  { %656 = vrot.lane.b32.xlu0 %v654_v63, %s1298_s12  ;;  %v762_v56 = vadd.f32 %v761_v59, %v760_v6  ;;  %v565_v38 = vsel %vm2476_vm1, %v549_v22, 0.0  ;;  %v552_v63 = vmul.f32 %v1594_v5, %v1594_v5  ;;  %v569_v6 = vsel %vm2476_vm1, %v551_v23, 0.0 }
 0x260   :  { %v566_v32 = vadd.f32 %v565_v38, %v564_v53  ;;  %v557_v38 = vmul.f32 %v1609_v12, %v1609_v12  ;;  %v558_v23 = vmul.f32 %v1612_v13, %v1612_v13 }
 0x261   :  { %v764_v29 = vadd.f32 %v763_v27, %v762_v56  ;;  %v553_v56 = vmul.f32 %v1597_v8, %v1597_v8  ;;  %v571_v27 = vsel %vm2476_vm1, %v552_v63, 0.0  ;;  %v559_v63 = vmul.f32 %v1615_v14, %v1615_v14 }
 0x262   :  { %v568_v52 = vadd.f32 %v567_v61, %v566_v32  ;;  %v581_v61 = vsel %vm2476_vm1, %v557_v38, 0.0  ;;  %v593_v38 = vsel %vm2476_vm1, %v563_v43, 0.0 }
 0x263   :  { %v765_v41 = vrot.slane %v764_v29, 4 }
 0x264   :  { %v570_v59 = vadd.f32 %v569_v6, %v568_v52  ;;  %v583_v6 = vsel %vm2476_vm1, %v558_v23, 0.0 }
 0x265   :  { %v766_v18 = vadd.f32 %v765_v41, %v764_v29  ;;  %v554_v41 = vmul.f32 %v1600_v9, %v1600_v9 }
 0x266   :  { %v572_v29 = vadd.f32 %v571_v27, %v570_v59  ;;  %v585_v27 = vsel %vm2476_vm1, %v559_v63, 0.0 }
 0x267   :  { %v767_v34 = vrot.slane %v766_v18, 2 }
 0x269   :  { %v768_v46 = vadd.f32 %v767_v34, %v766_v18  ;;  %v573_v18 = vsel %vm2476_vm1, %v553_v56, 0.0  ;;  %v560_v56 = vmul.f32 %v1618_v15, %v1618_v15 }
 0x26a   :  { %v574_v34 = vadd.f32 %v573_v18, %v572_v29 }
 0x26b   :  { %v769_v35 = vrot.slane %v768_v46, 1  ;;  %v587_v18 = vsel %vm2476_vm1, %v560_v56, 0.0 }
 0x26d   :  { %v770_v24 = vadd.f32 %v769_v35, %v768_v46  ;;  %v555_v46 = vmul.f32 %v1603_v10, %v1603_v10  ;;  %v575_v35 = vsel %vm2476_vm1, %v554_v41, 0.0  ;;  %v561_v41 = vmul.f32 %v1621_v16, %v1621_v16 }
 0x26f   :  { %772 = vrot.lane.b32.xlu0 %v770_v24, %s1297_s0  ;;  %v576_v24 = vadd.f32 %v575_v35, %v574_v34  ;;  %v577_v22 = vsel %vm2476_vm1, %v555_v46, 0.0  ;;  %v562_v46 = vmul.f32 %v1624_v17, %v1624_v17  ;;  %v589_v35 = vsel %vm2476_vm1, %v561_v41, 0.0 }
 0x271   :  { %v578_v53 = vadd.f32 %v577_v22, %v576_v24  ;;  %v591_v22 = vsel %vm2476_vm1, %v562_v46, 0.0  ;;  %v777_v46 = vld [vmem:[%s2449_s2] sm:$0x1] }
 0x273   :  { %v580_v32 = vadd.f32 %v579_v47, %v578_v53 }
 0x275   :  { %v582_v52 = vadd.f32 %v581_v61, %v580_v32 }
 0x277   :  { %v584_v59 = vadd.f32 %v583_v6, %v582_v52 }
 0x279   :  { %v586_v29 = vadd.f32 %v585_v27, %v584_v59 }
 0x27b   :  { %v588_v34 = vadd.f32 %v587_v18, %v586_v29 }
 0x27d   :  { %v590_v24 = vadd.f32 %v589_v35, %v588_v34 }
 0x27f   :  { %v592_v53 = vadd.f32 %v591_v22, %v590_v24  ;;  %v2524_v22 = vsub.s32 0, %v1574_v55 }
 0x281   :  { %v594_v47 = vadd.f32 %v593_v38, %v592_v53 }
 0x283   :  { %v595_v32 = vrot.slane %v594_v47, 4 }
 0x285   :  { %v596_v23 = vadd.f32 %v595_v32, %v594_v47 }
 0x287   :  { %v597_v61 = vrot.slane %v596_v23, 2 }
 0x289   :  { %v598_v52 = vadd.f32 %v597_v61, %v596_v23 }
 0x28b   :  { %v599_v63 = vrot.slane %v598_v52, 1 }
 0x28d   :  { %v600_v59 = vadd.f32 %v599_v63, %v598_v52 }
 0x2c5   :  { %v715_v27 = vpop.permute.xlu1 %714 }
 0x2d1   :  { %v657_v6 = vpop.permute.xlu0 %656 }
 0x2d2   :  { %v659_v56 = vadd.f32 %v657_v6, %v600_v59 }
 0x2d4   :  { %v717_v29 = vadd.f32 %v715_v27, %v659_v56 }
 0x2e1   :  { %v773_v41 = vpop.permute.xlu0 %772 }
 0x2e2   :  { %v775_v18 = vadd.f32 %v773_v41, %v717_v29 }
 0x2e4   :  { %v776_v34 = vmul.f32 0.001953125, %v775_v18 }
 0x2e6   :  { %v778_v35 = vadd.f32 1e-05, %v776_v34 }
 0x2e8   :  { %1294 = vrsqrt.f32 %v778_v35 }
 0x2f2   :  { %v1295_v24 = vpop.eup %1294 }
 0x2f3   :  { %v780_v43 = vmul.f32 %v1295_v24, %v777_v46 }
 0x2f5   :  { %v786_v53 = vrot.slane %v780_v43, %v2524_v22  ;;  %v894_v43 = vpop.permute.xlu1 %893 }
 0x2f7   :  { %960 = vrot.lane.b32.xlu0 %v786_v53, %s1300_s14  ;;  %874 = vrot.lane.b32.xlu1 %v786_v53, %s1301_s15  ;;  %v788_v38 = vmul.f32 %v786_v53, %v1582_v1  ;;  %v789_v47 = vmul.f32 %v786_v53, %v1585_v2  ;;  %v790_v32 = vmul.f32 %v786_v53, %v1588_v3 }
 0x2f8   :  { %v791_v55 = vmul.f32 %v786_v53, %v1591_v4  ;;  %v792_v23 = vmul.f32 %v786_v53, %v1594_v5  ;;  %v793_v61 = vmul.f32 %v786_v53, %v1597_v8  ;;  %v794_v52 = vmul.f32 %v786_v53, %v1600_v9 }
 0x2f9   :  { %v795_v63 = vmul.f32 %v786_v53, %v1603_v10  ;;  %v796_v6 = vmul.f32 %v786_v53, %v1606_v11  ;;  %v797_v59 = vmul.f32 %v786_v53, %v1609_v12  ;;  %v798_v1 = vmul.f32 %v786_v53, %v1612_v13 }
 0x2fa   :  { %v799_v2 = vmul.f32 %v786_v53, %v1615_v14  ;;  %v800_v3 = vmul.f32 %v786_v53, %v1618_v15  ;;  %v801_v4 = vmul.f32 %v786_v53, %v1621_v16  ;;  %v802_v5 = vmul.f32 %v786_v53, %v1624_v17 }
 0x2fb   :  { %1046 = vrot.lane.b32.xlu0 %v786_v53, %s1302_s16  ;;  %979 = vrot.lane.b32.xlu1 %v1960_v28, %s1300_s14  ;;  %v803_v8 = vmul.f32 %v786_v53, %v1628_v20  ;;  %v810_v9 = vadd.f32 %v1960_v28, %v788_v38  ;;  %v811_v10 = vadd.f32 %v1960_v28, %v789_v47 }
 0x2fc   :  { %v812_v11 = vadd.f32 %v1960_v28, %v790_v32  ;;  %v813_v12 = vadd.f32 %v1960_v28, %v791_v55  ;;  %v814_v13 = vadd.f32 %v1960_v28, %v792_v23  ;;  %v815_v14 = vadd.f32 %v1960_v28, %v793_v61 }
 0x2fd   :  { %v816_v15 = vadd.f32 %v1960_v28, %v794_v52  ;;  %v817_v16 = vadd.f32 %v1960_v28, %v795_v63  ;;  %v818_v17 = vadd.f32 %v1960_v28, %v796_v6  ;;  %v819_v20 = vadd.f32 %v1960_v28, %v797_v59 }
 0x2fe   :  { %v820_v56 = vadd.f32 %v1960_v28, %v798_v1  ;;  %v821_v27 = vadd.f32 %v1960_v28, %v799_v2  ;;  %v822_v29 = vadd.f32 %v1960_v28, %v800_v3  ;;  %v823_v41 = vadd.f32 %v1960_v28, %v801_v4 }
 0x2ff   :  { %1065 = vrot.lane.b32.xlu0 %v1960_v28, %s1302_s16  ;;  %v824_v18 = vadd.f32 %v1960_v28, %v802_v5  ;;  %v825_v34 = vadd.f32 %v1960_v28, %v803_v8  ;;  %vm826_vm5 = vcmp.gt.f32.partialorder %v810_v9, 0.0  ;;  %vm827_vm6 = vcmp.gt.f32.partialorder %v811_v10, 0.0 }
 0x300   :  { %vm828_vm7 = vcmp.gt.f32.partialorder %v812_v11, 0.0  ;;  %vm829_vm8 = vcmp.gt.f32.partialorder %v813_v12, 0.0  ;;  %vm830_vm9 = vcmp.gt.f32.partialorder %v814_v13, 0.0  ;;  %vm831_vm10 = vcmp.gt.f32.partialorder %v815_v14, 0.0 }
 0x301   :  { %vm832_vm11 = vcmp.gt.f32.partialorder %v816_v15, 0.0  ;;  %vm833_vm12 = vcmp.gt.f32.partialorder %v817_v16, 0.0  ;;  %vm834_vm13 = vcmp.gt.f32.partialorder %v818_v17, 0.0  ;;  %vm835_vm14 = vcmp.gt.f32.partialorder %v819_v20, 0.0 }
 0x302   :  { %vm836_vm15 = vcmp.gt.f32.partialorder %v820_v56, 0.0  ;;  %vm837_vm2 = vcmp.gt.f32.partialorder %v821_v27, 0.0  ;;  %vm838_vm3 = vcmp.gt.f32.partialorder %v822_v29, 0.0  ;;  %vm839_vm4 = vcmp.gt.f32.partialorder %v823_v41, 0.0 }
 0x303   :  { %vm840_vm0 = vcmp.gt.f32.partialorder %v824_v18, 0.0  ;;  %vm841_vm1 = vcmp.gt.f32.partialorder %v825_v34, 0.0  ;;  %v842_v35 = vmul.f32 0.01, %v810_v9  ;;  %v843_v46 = vmul.f32 0.01, %v811_v10 }
 0x304   :  { %v844_v24 = vmul.f32 0.01, %v812_v11  ;;  %v845_v28 = vmul.f32 0.01, %v813_v12  ;;  %v846_v22 = vmul.f32 0.01, %v814_v13 }
 0x305   :  { %v847_v53 = vmul.f32 0.01, %v815_v14  ;;  %v848_v38 = vmul.f32 0.01, %v816_v15  ;;  %v849_v47 = vmul.f32 0.01, %v817_v16  ;;  %v2057_v1 = vsel %vm826_vm5, %v810_v9, %v842_v35 }
 0x306   :  { %v850_v32 = vmul.f32 0.01, %v818_v17  ;;  %v851_v55 = vmul.f32 0.01, %v819_v20  ;;  %v852_v23 = vmul.f32 0.01, %v820_v56  ;;  %v2060_v2 = vsel %vm827_vm6, %v811_v10, %v843_v46 }
 0x307   :  { %v853_v61 = vmul.f32 0.01, %v821_v27  ;;  %v854_v52 = vmul.f32 0.01, %v822_v29  ;;  %v855_v63 = vmul.f32 0.01, %v823_v41  ;;  %v2063_v3 = vsel %vm828_vm7, %v812_v11, %v844_v24 }
 0x308   :  { %v856_v6 = vmul.f32 0.01, %v824_v18  ;;  %v857_v59 = vmul.f32 0.01, %v825_v34  ;;  %v2066_v4 = vsel %vm829_vm8, %v813_v12, %v845_v28  ;;  %v2069_v5 = vsel %vm830_vm9, %v814_v13, %v846_v22 }
 0x309   :  { %v2072_v8 = vsel %vm831_vm10, %v815_v14, %v847_v53  ;;  %v2075_v19 = vsel %vm832_vm11, %v816_v15, %v848_v38  ;;  %v2078_v9 = vsel %vm833_vm12, %v817_v16, %v849_v47  ;;  %v2081_v35 = vsel %vm834_vm13, %v818_v17, %v850_v32  ;;  %v2531_v53 = vld [vmem:[#allocation21_spill] sm:$0xff]  ;;  %v2532_v38 = vld [vmem:[#allocation22_spill] sm:$0xff] }
 0x30a   :  { %v2084_v11 = vsel %vm835_vm14, %v819_v20, %v851_v55  ;;  %v2087_v12 = vsel %vm836_vm15, %v820_v56, %v852_v23  ;;  %v2090_v13 = vsel %vm837_vm2, %v821_v27, %v853_v61  ;;  %v2093_v14 = vsel %vm838_vm3, %v822_v29, %v854_v52 }
 0x30b   :  { %2525 = vst [vmem:[#allocation37_spill] sm:$0xff] %v2090_v13  ;;  %2526 = vst [vmem:[#allocation38_spill] sm:$0xff] %v2093_v14  ;;  %v2096_v15 = vsel %vm839_vm4, %v823_v41, %v855_v63  ;;  %v2099_v16 = vsel %vm840_vm0, %v824_v18, %v856_v6  ;;  %v2102_v17 = vsel %vm841_vm1, %v825_v34, %v857_v59  ;;  %v2530_v34 = vld [vmem:[#allocation19_spill] sm:$0xff]  ;;  %vm2554_vm3 = vcmask 64512  }
 0x30c   :  { %2527 = vst [vmem:[#allocation39_spill] sm:$0xff] %v2096_v15  ;;  %2528 = vst [vmem:[#allocation40_spill] sm:$0xff] %v2099_v16 }
 0x30d   :  { %2529 = vst [vmem:[#allocation41_spill] sm:$0xff] %v2102_v17 }
 0x369   :  { %v875_v10 = vpop.permute.xlu1 %874  ;;  %v2120_v55 = vpop.permute.xlu0 %960 }
 0x36a   :  { %v877_v20 = vmul.f32 %v875_v10, %v1674_v54  ;;  %v878_v56 = vmul.f32 %v875_v10, %v1684_v62  ;;  %v879_v46 = vmul.f32 %v875_v10, %v1700_v36  ;;  %v880_v27 = vmul.f32 %v875_v10, %v1715_v49 }
 0x36b   :  { %v881_v29 = vmul.f32 %v875_v10, %v1732_v48  ;;  %v882_v24 = vmul.f32 %v875_v10, %v1744_v31  ;;  %v883_v41 = vmul.f32 %v875_v10, %v1756_v45  ;;  %v884_v18 = vmul.f32 %v875_v10, %v1769_v33 }
 0x36c   :  { %v885_v28 = vmul.f32 %v875_v10, %v1779_v21  ;;  %v886_v22 = vmul.f32 %v875_v10, %v2530_v34  ;;  %v887_v54 = vmul.f32 %v875_v10, %v2531_v53  ;;  %v888_v62 = vmul.f32 %v875_v10, %v2532_v38  ;;  %v2535_v38 = vld [vmem:[#allocation4_spill] sm:$0xff] }
 0x36d   :  { %v889_v36 = vmul.f32 %v875_v10, %v1810_v42  ;;  %v890_v49 = vmul.f32 %v875_v10, %v1821_v50  ;;  %v891_v48 = vmul.f32 %v875_v10, %v1836_v60  ;;  %v892_v31 = vmul.f32 %v875_v10, %v1840_v30 }
 0x36e   :  { %v896_v47 = vadd.f32 %v894_v43, %v877_v20  ;;  %v897_v45 = vadd.f32 %v894_v43, %v878_v56  ;;  %v898_v32 = vadd.f32 %v894_v43, %v879_v46  ;;  %v899_v33 = vadd.f32 %v894_v43, %v880_v27  ;;  %v2533_v56 = vld [vmem:[#allocation2_spill] sm:$0xff] }
 0x36f   :  { %v900_v21 = vadd.f32 %v894_v43, %v881_v29  ;;  %v901_v23 = vadd.f32 %v894_v43, %v882_v24  ;;  %v902_v61 = vadd.f32 %v894_v43, %v883_v41  ;;  %v903_v52 = vadd.f32 %v894_v43, %v884_v18  ;;  %v2534_v41 = vld [vmem:[#allocation3_spill] sm:$0xff] }
 0x370   :  { %v904_v63 = vadd.f32 %v894_v43, %v885_v28  ;;  %v905_v6 = vadd.f32 %v894_v43, %v886_v22  ;;  %v906_v59 = vadd.f32 %v894_v43, %v887_v54  ;;  %v907_v42 = vadd.f32 %v894_v43, %v888_v62 }
 0x371   :  { %v908_v34 = vadd.f32 %v894_v43, %v889_v36  ;;  %v909_v50 = vadd.f32 %v894_v43, %v890_v49  ;;  %v2122_v53 = vadd.f32 %v894_v43, %v891_v48  ;;  %v2124_v60 = vadd.f32 %v894_v43, %v892_v31  ;;  %v2536_v48 = vld [vmem:[#allocation5_spill] sm:$0xff] }
 0x372   :  { %v928_v30 = vmul.f32 0.01, %v896_v47  ;;  %v929_v10 = vmul.f32 0.01, %v897_v45  ;;  %v930_v20 = vmul.f32 0.01, %v898_v32  ;;  %v963_v46 = vmul.f32 %v2120_v55, %v2533_v56 }
 0x373   :  { %v931_v27 = vmul.f32 0.01, %v899_v33  ;;  %v932_v29 = vmul.f32 0.01, %v900_v21  ;;  %v933_v24 = vmul.f32 0.01, %v901_v23  ;;  %v964_v18 = vmul.f32 %v2120_v55, %v2534_v41 }
 0x374   :  { %v934_v28 = vmul.f32 0.01, %v902_v61  ;;  %v935_v22 = vmul.f32 0.01, %v903_v52  ;;  %v936_v54 = vmul.f32 0.01, %v904_v63  ;;  %v965_v62 = vmul.f32 %v2120_v55, %v2535_v38 }
 0x375   :  { %v937_v43 = vmul.f32 0.01, %v905_v6  ;;  %v938_v36 = vmul.f32 0.01, %v906_v59  ;;  %v939_v49 = vmul.f32 0.01, %v907_v42  ;;  %v966_v31 = vmul.f32 %v2120_v55, %v2536_v48 }
 0x376   :  { %v940_v7 = vmul.f32 0.01, %v908_v34  ;;  %v941_v56 = vmul.f32 0.01, %v909_v50  ;;  %v2135_v0 = vmul.f32 0.01, %v2122_v53  ;;  %v967_v41 = vmul.f32 %v2120_v55, %v2537_v51 }
 0x377   :  { %v2140_v37 = vmul.f32 0.01, %v2124_v60  ;;  %vm912_vm0 = vcmp.gt.f32.partialorder %v896_v47, 0.0  ;;  %vm913_vm1 = vcmp.gt.f32.partialorder %v897_v45, 0.0  ;;  %vm914_vm5 = vcmp.gt.f32.partialorder %v898_v32, 0.0 }
 0x378   :  { %vm915_vm6 = vcmp.gt.f32.partialorder %v899_v33, 0.0  ;;  %vm916_vm7 = vcmp.gt.f32.partialorder %v900_v21, 0.0  ;;  %vm917_vm8 = vcmp.gt.f32.partialorder %v901_v23, 0.0  ;;  %vm918_vm9 = vcmp.gt.f32.partialorder %v902_v61, 0.0 }
 0x379   :  { %vm919_vm10 = vcmp.gt.f32.partialorder %v903_v52, 0.0  ;;  %vm920_vm11 = vcmp.gt.f32.partialorder %v904_v63, 0.0  ;;  %vm921_vm12 = vcmp.gt.f32.partialorder %v905_v6, 0.0  ;;  %vm922_vm13 = vcmp.gt.f32.partialorder %v906_v59, 0.0 }
 0x37a   :  { %vm923_vm14 = vcmp.gt.f32.partialorder %v907_v42, 0.0  ;;  %vm924_vm15 = vcmp.gt.f32.partialorder %v908_v34, 0.0  ;;  %vm925_vm2 = vcmp.gt.f32.partialorder %v909_v50, 0.0  ;;  %v2142_v38 = vsel %vm912_vm0, %v896_v47, %v928_v30  ;;  %v980_v30 = vpop.permute.xlu1 %979 }
 0x37b   :  { %v2144_v51 = vsel %vm913_vm1, %v897_v45, %v929_v10  ;;  %v2146_v48 = vsel %vm914_vm5, %v898_v32, %v930_v20  ;;  %v2148_v57 = vsel %vm915_vm6, %v899_v33, %v931_v27  ;;  %v2150_v26 = vsel %vm916_vm7, %v900_v21, %v932_v29  ;;  %v2541_v21 = vld [vmem:[#allocation7_spill] sm:$0xff]  ;;  %v2547_v20 = vld [vmem:[#allocation13_spill] sm:$0xff]  ;;  %v2548_v29 = vld [vmem:[#allocation14_spill] sm:$0xff] }
 0x37c   :  { %v2152_v25 = vsel %vm917_vm8, %v901_v23, %v933_v24  ;;  %v2154_v39 = vsel %vm918_vm9, %v902_v61, %v934_v28  ;;  %v2156_v44 = vsel %vm919_vm10, %v903_v52, %v935_v22  ;;  %v2158_v40 = vsel %vm920_vm11, %v904_v63, %v936_v54  ;;  %v2542_v61 = vld [vmem:[#allocation8_spill] sm:$0xff]  ;;  %v2543_v63 = vld [vmem:[#allocation9_spill] sm:$0xff]  ;;  %v2549_v28 = vld [vmem:[#allocation15_spill] sm:$0xff] }
 0x37d   :  { %v2160_v58 = vsel %vm921_vm12, %v905_v6, %v937_v43  ;;  %v2162_v47 = vsel %vm922_vm13, %v906_v59, %v938_v36  ;;  %v2164_v45 = vsel %vm923_vm14, %v907_v42, %v939_v49  ;;  %v2166_v32 = vsel %vm924_vm15, %v908_v34, %v940_v7  ;;  %v2544_v59 = vld [vmem:[#allocation10_spill] sm:$0xff]  ;;  %v2545_v42 = vld [vmem:[#allocation11_spill] sm:$0xff]  ;;  %v2550_v54 = vld [vmem:[#allocation16_spill] sm:$0xff] }
 0x37e   :  { %2538 = vst [vmem:[#allocation19_spill] sm:$0xff] %v2164_v45  ;;  %2539 = vst [vmem:[#allocation21_spill] sm:$0xff] %v2166_v32  ;;  %v2169_v33 = vsel %vm925_vm2, %v909_v50, %v941_v56  ;;  %v968_v23 = vmul.f32 %v2120_v55, %v2541_v21  ;;  %v969_v52 = vmul.f32 %v2120_v55, %v2542_v61  ;;  %v2546_v50 = vld [vmem:[#allocation12_spill] sm:$0xff]  ;;  %v2551_v36 = vld [vmem:[#allocation17_spill] sm:$0xff]  ;;  %vm2552_vm0 = vcmp.gt.f32.partialorder %v2122_v53, 0.0 }
 0x37f   :  { %2540 = vst [vmem:[#allocation22_spill] sm:$0xff] %v2169_v33  ;;  %v970_v6 = vmul.f32 %v2120_v55, %v2543_v63  ;;  %v971_v7 = vmul.f32 %v2120_v55, %v2544_v59  ;;  %v972_v34 = vmul.f32 %v2120_v55, %v2545_v42  ;;  %v973_v10 = vmul.f32 %v2120_v55, %v2546_v50 }
 0x380   :  { %v974_v27 = vmul.f32 %v2120_v55, %v2547_v20  ;;  %v975_v24 = vmul.f32 %v2120_v55, %v2548_v29  ;;  %v976_v22 = vmul.f32 %v2120_v55, %v2549_v28  ;;  %v977_v43 = vmul.f32 %v2120_v55, %v2550_v54 }
 0x381   :  { %v978_v49 = vmul.f32 %v2120_v55, %v2551_v36  ;;  %v982_v56 = vadd.f32 %v980_v30, %v963_v46  ;;  %v983_v21 = vadd.f32 %v980_v30, %v964_v18  ;;  %v984_v61 = vadd.f32 %v980_v30, %v965_v62 }
 0x382   :  { %v985_v63 = vadd.f32 %v980_v30, %v966_v31  ;;  %v986_v59 = vadd.f32 %v980_v30, %v967_v41  ;;  %v987_v42 = vadd.f32 %v980_v30, %v968_v23  ;;  %v988_v50 = vadd.f32 %v980_v30, %v969_v52 }
 0x383   :  { %v989_v20 = vadd.f32 %v980_v30, %v970_v6  ;;  %v990_v17 = vadd.f32 %v980_v30, %v971_v7  ;;  %v991_v16 = vadd.f32 %v980_v30, %v972_v34  ;;  %v992_v29 = vadd.f32 %v980_v30, %v973_v10 }
 0x384   :  { %v993_v15 = vadd.f32 %v980_v30, %v974_v27  ;;  %v994_v33 = vadd.f32 %v980_v30, %v975_v24  ;;  %v995_v28 = vadd.f32 %v980_v30, %v976_v22  ;;  %v996_v14 = vadd.f32 %v980_v30, %v977_v43 }
 0x385   :  { %v997_v32 = vadd.f32 %v980_v30, %v978_v49  ;;  %vm999_vm1 = vcmp.gt.f32.partialorder %v983_v21, 0.0  ;;  %vm1000_vm5 = vcmp.gt.f32.partialorder %v984_v61, 0.0  ;;  %vm1001_vm6 = vcmp.gt.f32.partialorder %v985_v63, 0.0 }
 0x386   :  { %vm1002_vm7 = vcmp.gt.f32.partialorder %v986_v59, 0.0  ;;  %vm1003_vm8 = vcmp.gt.f32.partialorder %v987_v42, 0.0  ;;  %vm1004_vm9 = vcmp.gt.f32.partialorder %v988_v50, 0.0  ;;  %vm1006_vm11 = vcmp.gt.f32.partialorder %v990_v17, 0.0 }
 0x387   :  { %vm1007_vm12 = vcmp.gt.f32.partialorder %v991_v16, 0.0  ;;  %vm1008_vm13 = vcmp.gt.f32.partialorder %v992_v29, 0.0  ;;  %vm1009_vm14 = vcmp.gt.f32.partialorder %v993_v15, 0.0  ;;  %vm1010_vm15 = vcmp.gt.f32.partialorder %v994_v33, 0.0 }
 0x388   :  { %vm1011_vm2 = vcmp.gt.f32.partialorder %v995_v28, 0.0  ;;  %vm1012_vm4 = vcmp.gt.f32.partialorder %v996_v14, 0.0  ;;  %v958_v55 = vsel %vm2552_vm0, %v2122_v53, %v2135_v0  ;;  %v1014_v46 = vmul.f32 0.01, %v982_v56  ;;  %vm2555_vm0 = vmmov %vm2554_vm3 }
 0x389   :  { %v1015_v18 = vmul.f32 0.01, %v983_v21  ;;  %v1016_v62 = vmul.f32 0.01, %v984_v61  ;;  %vm2553_vm10 = vcmp.gt.f32.partialorder %v2124_v60, 0.0  ;;  %v1132_v34 = vsel %vm2554_vm3, %v2057_v1, %v2142_v38 }
 0x38a   :  { %v959_v31 = vsel %vm2553_vm10, %v2124_v60, %v2140_v37  ;;  %v1017_v41 = vmul.f32 0.01, %v985_v63  ;;  %v1018_v23 = vmul.f32 0.01, %v986_v59  ;;  %v1019_v52 = vmul.f32 0.01, %v987_v42 }
 0x38b   :  { %v1020_v6 = vmul.f32 0.01, %v988_v50  ;;  %v1021_v30 = vmul.f32 0.01, %v989_v20  ;;  %v1022_v7 = vmul.f32 0.01, %v990_v17  ;;  %v1133_v27 = vsel %vm2555_vm0, %v2060_v2, %v2144_v51 }
 0x38c   :  { %v1023_v10 = vmul.f32 0.01, %v991_v16  ;;  %v1024_v0 = vmul.f32 0.01, %v992_v29  ;;  %v1025_v53 = vmul.f32 0.01, %v993_v15  ;;  %v1031_v43 = vsel %vm999_vm1, %v983_v21, %v1015_v18 }
 0x38d   :  { %v1026_v24 = vmul.f32 0.01, %v994_v33  ;;  %v1027_v22 = vmul.f32 0.01, %v995_v28  ;;  %v1028_v37 = vmul.f32 0.01, %v996_v14  ;;  %v1032_v36 = vsel %vm1000_vm5, %v984_v61, %v1016_v62  ;;  %vm2559_vm5 = vmmov %vm2555_vm0 }
 0x38e   :  { %vm2556_vm10 = vcmp.gt.f32.partialorder %v982_v56, 0.0  ;;  %v1029_v54 = vmul.f32 0.01, %v997_v32  ;;  %v1033_v49 = vsel %vm1001_vm6, %v985_v63, %v1017_v41  ;;  %v1034_v1 = vsel %vm1002_vm7, %v986_v59, %v1018_v23  ;;  %vm2560_vm6 = vmmov %vm2555_vm0 }
 0x38f   :  { %v1030_v60 = vsel %vm2556_vm10, %v982_v56, %v1014_v46  ;;  %v1035_v38 = vsel %vm1003_vm8, %v987_v42, %v1019_v52  ;;  %v1036_v13 = vsel %vm1004_vm9, %v988_v50, %v1020_v6  ;;  %vm2557_vm3 = vcmp.gt.f32.partialorder %v989_v20, 0.0  ;;  %vm2561_vm7 = vmmov %vm2555_vm0  ;;  %v2594_v6 = vld [vmem:[#allocation18_spill] sm:$0xff] }
 0x390   :  { %v1037_v2 = vsel %vm2557_vm3, %v989_v20, %v1021_v30  ;;  %v1038_v51 = vsel %vm1006_vm11, %v990_v17, %v1022_v7  ;;  %v1039_v45 = vsel %vm1007_vm12, %v991_v16, %v1023_v10  ;;  %v1040_v56 = vsel %vm1008_vm13, %v992_v29, %v1024_v0  ;;  %vm2562_vm8 = vmmov %vm2555_vm0  ;;  %v2595_v7 = vld [vmem:[#allocation20_spill] sm:$0xff]  ;;  %v2596_v10 = vld [vmem:[#allocation23_spill] sm:$0xff] }
 0x391   :  { %v1041_v21 = vsel %vm1009_vm14, %v993_v15, %v1025_v53  ;;  %v1042_v61 = vsel %vm1010_vm15, %v994_v33, %v1026_v24  ;;  %v1043_v63 = vsel %vm1011_vm2, %v995_v28, %v1027_v22  ;;  %v2223_v59 = vsel %vm1012_vm4, %v996_v14, %v1028_v37  ;;  %vm2563_vm4 = vmmov %vm2555_vm0  ;;  %v2575_v33 = vld [vmem:[#allocation39_spill] sm:$0xff]  ;;  %v2599_v22 = vld [vmem:[#allocation26_spill] sm:$0xff] }
 0x392   :  { %vm2558_vm1 = vcmp.gt.f32.partialorder %v997_v32, 0.0  ;;  %v1134_v17 = vsel %vm2559_vm5, %v2063_v3, %v2146_v48  ;;  %v1135_v16 = vsel %vm2560_vm6, %v2066_v4, %v2148_v57  ;;  %v1136_v15 = vsel %vm2561_vm7, %v2069_v5, %v2150_v26  ;;  %vm2564_vm9 = vmmov %vm2555_vm0  ;;  %v1047_v4 = vpop.permute.xlu0 %1046  ;;  %v2568_v5 = vld [vmem:[#allocation19_spill] sm:$0xff]  ;;  %v2572_v48 = vld [vmem:[#allocation38_spill] sm:$0xff] }
 0x393   :  { %v2226_v42 = vsel %vm2558_vm1, %v997_v32, %v1029_v54  ;;  %v1137_v14 = vsel %vm2562_vm8, %v2072_v8, %v2152_v25  ;;  %v1138_v32 = vsel %vm2563_vm4, %v2075_v19, %v2154_v39  ;;  %v1139_v3 = vsel %vm2564_vm9, %v2078_v9, %v2156_v44  ;;  %vm2565_vm11 = vmmov %vm2555_vm0  ;;  %v2569_v8 = vld [vmem:[#allocation37_spill] sm:$0xff]  ;;  %v2574_v9 = vld [vmem:[#allocation22_spill] sm:$0xff] }
 0x394   :  { %v1140_v57 = vsel %vm2565_vm11, %v2081_v35, %v2158_v40  ;;  %vm2566_vm12 = vmmov %vm2555_vm0  ;;  %v2571_v19 = vld [vmem:[#allocation21_spill] sm:$0xff]  ;;  %v2577_v35 = vld [vmem:[#allocation40_spill] sm:$0xff]  ;;  %vm2580_vm3 = vcmask 130048   ;;  %v1049_v30 = vmul.f32 %v1047_v4, %v2594_v6  ;;  %v1051_v0 = vmul.f32 %v1047_v4, %v2596_v10 }
 0x395   :  { %v1141_v26 = vsel %vm2566_vm12, %v2084_v11, %v2160_v58  ;;  %vm2567_vm13 = vmmov %vm2555_vm0  ;;  %v2266_v58 = vsel %vm2555_vm0, %v2577_v35, %v958_v55  ;;  %v2578_v11 = vld [vmem:[#allocation41_spill] sm:$0xff]  ;;  %v1054_v37 = vmul.f32 %v1047_v4, %v2599_v22 }
 0x396   :  { %v1142_v25 = vsel %vm2567_vm13, %v2087_v12, %v2162_v47  ;;  %vm2570_vm14 = vmmov %vm2555_vm0  ;;  %v2273_v12 = vsel %vm2580_vm3, %v1132_v34, %v1030_v60  ;;  %v1050_v34 = vmul.f32 %v1047_v4, %v2595_v7  ;;  %v2600_v60 = vld [vmem:[#allocation27_spill] sm:$0xff] }
 0x397   :  { %v1143_v39 = vsel %vm2570_vm14, %v2569_v8, %v2568_v5  ;;  %vm2573_vm15 = vmmov %vm2555_vm0  ;;  %v1055_v54 = vmul.f32 %v1047_v4, %v2600_v60 }
 0x398   :  { %v1144_v44 = vsel %vm2573_vm15, %v2572_v48, %v2571_v19  ;;  %vm2576_vm2 = vmmov %vm2555_vm0 }
 0x399   :  { %v1145_v40 = vsel %vm2576_vm2, %v2575_v33, %v2574_v9  ;;  %vm2579_vm10 = vmmov %vm2555_vm0 }
 0x39a   :  { %v2270_v50 = vsel %vm2579_vm10, %v2578_v11, %v959_v31  ;;  %vm2581_vm1 = vmmov %vm2580_vm3 }
 0x39b   :  { %v2276_v47 = vsel %vm2581_vm1, %v1133_v27, %v1031_v43  ;;  %vm2582_vm5 = vmmov %vm2581_vm1  ;;  %v2598_v27 = vld [vmem:[#allocation25_spill] sm:$0xff]  ;;  %v2601_v43 = vld [vmem:[#allocation28_spill] sm:$0xff] }
 0x39c   :  { %v2279_v20 = vsel %vm2582_vm5, %v1134_v17, %v1032_v36  ;;  %vm2583_vm6 = vmmov %vm2581_vm1  ;;  %v1053_v24 = vmul.f32 %v1047_v4, %v2598_v27  ;;  %v1056_v36 = vmul.f32 %v1047_v4, %v2601_v43  ;;  %v2606_v17 = vld [vmem:[#allocation33_spill] sm:$0xff] }
 0x39d   :  { %v2282_v29 = vsel %vm2583_vm6, %v1135_v16, %v1033_v49  ;;  %vm2584_vm7 = vmmov %vm2581_vm1  ;;  %v1066_v49 = vpop.permute.xlu0 %1065  ;;  %v1061_v16 = vmul.f32 %v1047_v4, %v2606_v17 }
 0x39e   :  { %v2285_v28 = vsel %vm2584_vm7, %v1136_v15, %v1034_v1  ;;  %vm2585_vm8 = vmmov %vm2581_vm1  ;;  %v2602_v1 = vld [vmem:[#allocation29_spill] sm:$0xff]  ;;  %v2607_v15 = vld [vmem:[#allocation34_spill] sm:$0xff]  ;;  %v1069_v5 = vadd.f32 %v1066_v49, %v1050_v34  ;;  %v1070_v8 = vadd.f32 %v1066_v49, %v1051_v0  ;;  %v1072_v19 = vadd.f32 %v1066_v49, %v1053_v24 }
 0x39f   :  { %v2288_v55 = vsel %vm2585_vm8, %v1137_v14, %v1035_v38  ;;  %vm2586_vm4 = vmmov %vm2581_vm1  ;;  %v1057_v38 = vmul.f32 %v1047_v4, %v2602_v1  ;;  %v1062_v14 = vmul.f32 %v1047_v4, %v2607_v15  ;;  %v1073_v48 = vadd.f32 %v1066_v49, %v1054_v37 }
 0x3a0   :  { %v2291_v46 = vsel %vm2586_vm4, %v1138_v32, %v1036_v13  ;;  %vm2587_vm9 = vmmov %vm2581_vm1  ;;  %v2608_v32 = vld [vmem:[#allocation35_spill] sm:$0xff]  ;;  %v1075_v9 = vadd.f32 %v1066_v49, %v1056_v36  ;;  %v1080_v6 = vadd.f32 %v1066_v49, %v1061_v16  ;;  %vm1088_vm6 = vcmp.gt.f32.partialorder %v1072_v19, 0.0 }
 0x3a1   :  { %v2294_v18 = vsel %vm2587_vm9, %v1139_v3, %v1037_v2  ;;  %vm2588_vm11 = vmmov %vm2581_vm1  ;;  %v2603_v2 = vld [vmem:[#allocation30_spill] sm:$0xff]  ;;  %v1063_v3 = vmul.f32 %v1047_v4, %v2608_v32  ;;  %v1076_v33 = vadd.f32 %v1066_v49, %v1057_v38  ;;  %v1081_v7 = vadd.f32 %v1066_v49, %v1062_v14 }
 0x3a2   :  { %v2297_v62 = vsel %vm2588_vm11, %v1140_v57, %v1038_v51  ;;  %vm2589_vm12 = vmmov %vm2581_vm1  ;;  %v1058_v51 = vmul.f32 %v1047_v4, %v2603_v2  ;;  %v2609_v57 = vld [vmem:[#allocation36_spill] sm:$0xff]  ;;  %vm1089_vm7 = vcmp.gt.f32.partialorder %v1073_v48, 0.0  ;;  %vm1091_vm4 = vcmp.gt.f32.partialorder %v1075_v9, 0.0 }
 0x3a3   :  { %v2300_v31 = vsel %vm2589_vm12, %v1141_v26, %v1039_v45  ;;  %vm2590_vm13 = vmmov %vm2581_vm1  ;;  %v2597_v45 = vld [vmem:[#allocation24_spill] sm:$0xff]  ;;  %v1064_v26 = vmul.f32 %v1047_v4, %v2609_v57  ;;  %v1082_v10 = vadd.f32 %v1066_v49, %v1063_v3  ;;  %vm1092_vm11 = vcmp.gt.f32.partialorder %v1076_v33, 0.0 }
 0x3a4   :  { %v2303_v41 = vsel %vm2590_vm13, %v1142_v25, %v1040_v56  ;;  %vm2591_vm14 = vmmov %vm2581_vm1  ;;  %v1052_v53 = vmul.f32 %v1047_v4, %v2597_v45  ;;  %v2604_v56 = vld [vmem:[#allocation31_spill] sm:$0xff]  ;;  %v1068_v25 = vadd.f32 %v1066_v49, %v1049_v30  ;;  %v1101_v34 = vmul.f32 0.01, %v1069_v5 }
 0x3a5   :  { %v2306_v23 = vsel %vm2591_vm14, %v1143_v39, %v1041_v21  ;;  %vm2592_vm15 = vmmov %vm2581_vm1  ;;  %v1059_v21 = vmul.f32 %v1047_v4, %v2604_v56  ;;  %v1083_v45 = vadd.f32 %v1066_v49, %v1064_v26  ;;  %vm1098_vm0 = vcmp.gt.f32.partialorder %v1082_v10, 0.0 }
 0x3a6   :  { %v2309_v52 = vsel %vm2592_vm15, %v1144_v44, %v1042_v61  ;;  %vm2593_vm2 = vmmov %vm2581_vm1  ;;  %v2605_v61 = vld [vmem:[#allocation32_spill] sm:$0xff]  ;;  %v1071_v39 = vadd.f32 %v1066_v49, %v1052_v53  ;;  %v1074_v44 = vadd.f32 %v1066_v49, %v1055_v54  ;;  %vm1096_vm15 = vcmp.gt.f32.partialorder %v1080_v6, 0.0 }
 0x3a7   :  { %v2312_v13 = vsel %vm2593_vm2, %v1145_v40, %v1043_v63  ;;  %v1060_v63 = vmul.f32 %v1047_v4, %v2605_v61  ;;  %v1077_v40 = vadd.f32 %v1066_v49, %v1058_v51  ;;  %v1078_v35 = vadd.f32 %v1066_v49, %v1059_v21  ;;  %vm2610_vm5 = vmmov %vm2580_vm3 }
 0x3a8   :  { %vm1087_vm1 = vcmp.gt.f32.partialorder %v1071_v39, 0.0  ;;  %vm1090_vm8 = vcmp.gt.f32.partialorder %v1074_v44, 0.0  ;;  %vm1097_vm2 = vcmp.gt.f32.partialorder %v1081_v7, 0.0  ;;  %v1162_v4 = vsel %vm2580_vm3, %v2266_v58, %v2223_v59 }
 0x3a9   :  { %v1079_v11 = vadd.f32 %v1066_v49, %v1060_v63  ;;  %vm1093_vm12 = vcmp.gt.f32.partialorder %v1077_v40, 0.0  ;;  %vm1094_vm13 = vcmp.gt.f32.partialorder %v1078_v35, 0.0  ;;  %v1100_v30 = vmul.f32 0.01, %v1068_v25 }
 0x3aa   :  { %v1102_v0 = vmul.f32 0.01, %v1070_v8  ;;  %v1163_v53 = vsel %vm2610_vm5, %v2270_v50, %v2226_v42  ;;  %v1103_v27 = vmul.f32 0.01, %v1071_v39  ;;  %v1104_v24 = vmul.f32 0.01, %v1072_v19 }
 0x3ab   :  { %vm1095_vm14 = vcmp.gt.f32.partialorder %v1079_v11, 0.0  ;;  %v1105_v22 = vmul.f32 0.01, %v1073_v48  ;;  %v1106_v37 = vmul.f32 0.01, %v1074_v44  ;;  %vm2611_vm9 = vcmp.gt.f32.partialorder %v1068_v25, 0.0 }
 0x3ac   :  { %v1107_v60 = vmul.f32 0.01, %v1075_v9  ;;  %v1108_v54 = vmul.f32 0.01, %v1076_v33  ;;  %v1116_v43 = vsel %vm2611_vm9, %v1068_v25, %v1100_v30  ;;  %v1109_v36 = vmul.f32 0.01, %v1077_v40 }
 0x3ad   :  { %v1110_v49 = vmul.f32 0.01, %v1078_v35  ;;  %v1111_v1 = vmul.f32 0.01, %v1079_v11  ;;  %vm2612_vm10 = vcmp.gt.f32.partialorder %v1069_v5, 0.0  ;;  %vm2613_vm3 = vcmp.gt.f32.partialorder %v1070_v8, 0.0 }
 0x3ae   :  { %v1117_v59 = vsel %vm2612_vm10, %v1069_v5, %v1101_v34  ;;  %v1112_v58 = vmul.f32 0.01, %v1080_v6  ;;  %v1113_v38 = vmul.f32 0.01, %v1081_v7  ;;  %v1114_v2 = vmul.f32 0.01, %v1082_v10 }
 0x3af   :  { %v1118_v51 = vsel %vm2613_vm3, %v1070_v8, %v1102_v0  ;;  %v1115_v56 = vmul.f32 0.01, %v1083_v45  ;;  %v1119_v42 = vsel %vm1087_vm1, %v1071_v39, %v1103_v27  ;;  %v1120_v50 = vsel %vm1088_vm6, %v1072_v19, %v1104_v24 }
 0x3b0   :  { %v1121_v21 = vsel %vm1089_vm7, %v1073_v48, %v1105_v22  ;;  %v1122_v61 = vsel %vm1090_vm8, %v1074_v44, %v1106_v37  ;;  %v1123_v63 = vsel %vm1091_vm4, %v1075_v9, %v1107_v60  ;;  %v1124_v17 = vsel %vm1092_vm11, %v1076_v33, %v1108_v54 }
 0x3b1   :  { %v1125_v16 = vsel %vm1093_vm12, %v1077_v40, %v1109_v36  ;;  %v1126_v15 = vsel %vm1094_vm13, %v1078_v35, %v1110_v49  ;;  %v1127_v14 = vsel %vm1095_vm14, %v1079_v11, %v1111_v1  ;;  %v1128_v32 = vsel %vm1096_vm15, %v1080_v6, %v1112_v58 }
 0x3b2   :  { %v1129_v3 = vsel %vm1097_vm2, %v1081_v7, %v1113_v38  ;;  %v1130_v57 = vsel %vm1098_vm0, %v1082_v10, %v1114_v2  ;;  %vm2614_vm10 = vcmp.gt.f32.partialorder %v1083_v45, 0.0  ;;  %vm2615_vm1 = vcmask 195584  }
 0x3b3   :  { %v1131_v26 = vsel %vm2614_vm10, %v1083_v45, %v1115_v56  ;;  %v1165_v25 = vsel %vm2615_vm1, %v2273_v12, %v1116_v43  ;;  %vm2616_vm5 = vmmov %vm2615_vm1  ;;  %vm2621_vm0 = vcmask 261120  }
 0x3b4   :  { %v1166_v5 = vsel %vm2616_vm5, %v2276_v47, %v1117_v59  ;;  %vm2617_vm6 = vmmov %vm2615_vm1  ;;  %1182 = vst.msk [vmem:[%s2450_s4] sm:$0xff] %vm2621_vm0, %v1165_v25 }
 0x3b5   :  { %v1167_v8 = vsel %vm2617_vm6, %v2279_v20, %v1118_v51  ;;  %vm2618_vm7 = vmmov %vm2615_vm1 }
 0x3b6   :  { %v1168_v39 = vsel %vm2618_vm7, %v2282_v29, %v1119_v42  ;;  %vm2619_vm8 = vmmov %vm2615_vm1 }
 0x3b7   :  { %v1169_v19 = vsel %vm2619_vm8, %v2285_v28, %v1120_v50  ;;  %vm2620_vm4 = vmmov %vm2615_vm1  ;;  %v1175_v28 = vsel %vm2615_vm1, %v2303_v41, %v1126_v15 }
 0x3b8   :  { %v1170_v48 = vsel %vm2620_vm4, %v2288_v55, %v1121_v21  ;;  %vm2622_vm9 = vmmov %vm2621_vm0 }
 0x3b9   :  { %1183 = vst.msk [vmem:[%s2450_s4 + $0x8] sm:$0xff] %vm2622_vm9, %v1166_v5  ;;  %vm2623_vm11 = vmmov %vm2615_vm1 }
 0x3ba   :  { %v1171_v12 = vsel %vm2623_vm11, %v2291_v46, %v1122_v61  ;;  %vm2624_vm12 = vmmov %vm2615_vm1 }
 0x3bb   :  { %v1172_v47 = vsel %vm2624_vm12, %v2294_v18, %v1123_v63  ;;  %vm2625_vm13 = vmmov %vm2615_vm1 }
 0x3bc   :  { %v1173_v20 = vsel %vm2625_vm13, %v2297_v62, %v1124_v17  ;;  %vm2626_vm14 = vmmov %vm2615_vm1 }
 0x3bd   :  { %v1174_v29 = vsel %vm2626_vm14, %v2300_v31, %v1125_v16  ;;  %vm2627_vm15 = vmmov %vm2621_vm0  ;;  %1190 = vst.msk [vmem:[%s2450_s4 + $0x40] sm:$0xff] %vm2621_vm0, %v1173_v20 }
 0x3be   :  { %1184 = vst.msk [vmem:[%s2450_s4 + $0x10] sm:$0xff] %vm2627_vm15, %v1167_v8  ;;  %vm2628_vm2 = vmmov %vm2621_vm0 }
 0x3bf   :  { %1185 = vst.msk [vmem:[%s2450_s4 + $0x18] sm:$0xff] %vm2628_vm2, %v1168_v39  ;;  %vm2629_vm3 = vmmov %vm2621_vm0 }
 0x3c0   :  { %1186 = vst.msk [vmem:[%s2450_s4 + $0x20] sm:$0xff] %vm2629_vm3, %v1169_v19  ;;  %vm2630_vm10 = vmmov %vm2621_vm0 }
 0x3c1   :  { %1187 = vst.msk [vmem:[%s2450_s4 + $0x28] sm:$0xff] %vm2630_vm10, %v1170_v48  ;;  %vm2631_vm5 = vmmov %vm2615_vm1 }
 0x3c2   :  { %v1176_v55 = vsel %vm2631_vm5, %v2306_v23, %v1127_v14  ;;  %vm2632_vm6 = vmmov %vm2615_vm1 }
 0x3c3   :  { %v1177_v46 = vsel %vm2632_vm6, %v2309_v52, %v1128_v32  ;;  %vm2633_vm7 = vmmov %vm2615_vm1 }
 0x3c4   :  { %v1178_v18 = vsel %vm2633_vm7, %v2312_v13, %v1129_v3  ;;  %vm2634_vm8 = vmmov %vm2621_vm0 }
 0x3c5   :  { %1188 = vst.msk [vmem:[%s2450_s4 + $0x30] sm:$0xff] %vm2634_vm8, %v1171_v12  ;;  %vm2635_vm4 = vmmov %vm2621_vm0 }
 0x3c6   :  { %1189 = vst.msk [vmem:[%s2450_s4 + $0x38] sm:$0xff] %vm2635_vm4, %v1172_v47  ;;  %vm2636_vm9 = vmmov %vm2621_vm0 }
 0x3c7   :  { %1191 = vst.msk [vmem:[%s2450_s4 + $0x48] sm:$0xff] %vm2636_vm9, %v1174_v29  ;;  %vm2637_vm11 = vmmov %vm2615_vm1 }
 0x3c8   :  { %v1179_v62 = vsel %vm2637_vm11, %v1162_v4, %v1130_v57  ;;  %vm2638_vm12 = vmmov %vm2615_vm1 }
 0x3c9   :  { %v1180_v31 = vsel %vm2638_vm12, %v1163_v53, %v1131_v26  ;;  %vm2639_vm13 = vmmov %vm2621_vm0 }
 0x3ca   :  { %1192 = vst.msk [vmem:[%s2450_s4 + $0x50] sm:$0xff] %vm2639_vm13, %v1175_v28  ;;  %vm2640_vm14 = vmmov %vm2621_vm0 }
 0x3cb   :  { %1193 = vst.msk [vmem:[%s2450_s4 + $0x58] sm:$0xff] %vm2640_vm14, %v1176_v55  ;;  %vm2641_vm15 = vmmov %vm2621_vm0 }
 0x3cc   :  { %1194 = vst.msk [vmem:[%s2450_s4 + $0x60] sm:$0xff] %vm2641_vm15, %v1177_v46  ;;  %vm2642_vm2 = vmmov %vm2621_vm0 }
 0x3cd   :  { %1195 = vst.msk [vmem:[%s2450_s4 + $0x68] sm:$0xff] %vm2642_vm2, %v1178_v18  ;;  %vm2643_vm3 = vmmov %vm2621_vm0 }
 0x3ce   :  { %1196 = vst.msk [vmem:[%s2450_s4 + $0x70] sm:$0xff] %vm2643_vm3, %v1179_v62  ;;  %vm2644_vm10 = vmmov %vm2621_vm0 }
 0x3cf   :  { %1197 = vst.msk [vmem:[%s2450_s4 + $0x78] sm:$0xff] %vm2644_vm10, %v1180_v31 }

// kernel: simple_unet_forward.15
= control target key start
LH: loop header
LB: loop body
LE: loop exit
PB: predicated region body
PF: predicated region fallthrough
CT: control target
= control target key end

     0   :  { %vm282_vm0 = vcmask 588800   ;;  %vm379_vm1 = vcmask 1043456   ;;  %vm672_vm2 = vcmask 31744   ;;  %s1459_s1 = inlined_call_operand.vmem [shape: bf16[72,4], index: 1, kind: input, shape index: {}]   ;;  %s1460_s0 = inlined_call_operand.vmem [shape: bf16[512,72], index: 0, kind: input, shape index: {}]   ;;  %s1461_s2 = inlined_call_operand.vmem [shape: f32[1,4], index: 2, kind: input, shape index: {}]   ;;  %s1462_s3 = inlined_call_operand.vmem [shape: f32[512,4], index: 3, kind: output, shape index: {}]  }
   0x1   :  { %v934_v0 = vld [vmem:[%s1459_s1] sm:$0xff]   ;;  %v935_v1 = vld [vmem:[%s1459_s1 + $0x8] sm:$0xff]   ;;  %v936_v2 = vld [vmem:[%s1459_s1 + $0x10] sm:$0xff]  }
   0x2   :  { %848 = vmatprep.subr.bf16.mxu0 %v934_v0  ;;  %922 = vmatprep.subr.bf16.mxu1 %v934_v0  ;;  %v939_v3 = vld [vmem:[%s1460_s0] sm:$0xff]   ;;  %v937_v5 = vld [vmem:[%s1459_s1 + $0x18] sm:$0xff]   ;;  %v941_v8 = vld [vmem:[%s1460_s0 + $0x8] sm:$0xff]  }
   0x3   :  { %849 = vmatpush3.bf16.msra.mxu0 %v934_v0  ;;  %927 = vmatpush3.bf16.msra.mxu1 %v934_v0  ;;  %v940_v4 = vld [vmem:[%s1460_s0 + $0x80] sm:$0xff]   ;;  %v942_v9 = vld [vmem:[%s1460_s0 + $0x88] sm:$0xff]   ;;  %v943_v10 = vld [vmem:[%s1460_s0 + $0x10] sm:$0xff]  }
   0x4   :  { %850 = vmatprep.subr.bf16.mxu0 %v935_v1  ;;  %923 = vmatprep.subr.bf16.mxu1 %v935_v1  ;;  %v938_v6 = vld [vmem:[%s1459_s1 + $0x20] ss:$0 sps:$4 sm:$0xff]   ;;  %v944_v11 = vld [vmem:[%s1460_s0 + $0x90] sm:$0xff]   ;;  %v945_v12 = vld [vmem:[%s1460_s0 + $0x18] sm:$0xff]  }
   0x5   :  { %858 = vmatprep.mubr.msk.bf16.mxu0 %vm282_vm0, %v939_v3  ;;  %890 = vmatprep.mubr.msk.bf16.mxu1 %vm282_vm0, %v940_v4  ;;  %v381_v7 = vsel %vm379_vm1, %v938_v6, 0  ;;  %v946_v13 = vld [vmem:[%s1460_s0 + $0x98] sm:$0xff]   ;;  %v947_v14 = vld [vmem:[%s1460_s0 + $0x20] sm:$0xff]   ;;  %v949_v16 = vld [vmem:[%s1460_s0 + $0x28] sm:$0xff]  }
   0x6   :  { %v948_v15 = vld [vmem:[%s1460_s0 + $0xa0] sm:$0xff]   ;;  %v950_v17 = vld [vmem:[%s1460_s0 + $0xa8] sm:$0xff]   ;;  %v951_v18 = vld [vmem:[%s1460_s0 + $0x30] sm:$0xff]  }
   0x7   :  { %851 = vmatpush3.bf16.msra.mxu0 %v935_v1  ;;  %928 = vmatpush3.bf16.msra.mxu1 %v935_v1  ;;  %v952_v19 = vld [vmem:[%s1460_s0 + $0xb0] sm:$0xff]   ;;  %v953_v20 = vld [vmem:[%s1460_s0 + $0x38] sm:$0xff]   ;;  %v955_v22 = vld [vmem:[%s1460_s0 + $0x40] sm:$0xff]  }
   0x8   :  { %852 = vmatprep.subr.bf16.mxu0 %v936_v2  ;;  %924 = vmatprep.subr.bf16.mxu1 %v936_v2  ;;  %v954_v21 = vld [vmem:[%s1460_s0 + $0xb8] sm:$0xff]   ;;  %v956_v23 = vld [vmem:[%s1460_s0 + $0xc0] sm:$0xff]   ;;  %v957_v24 = vld [vmem:[%s1460_s0 + $0x48] sm:$0xff]  }
   0x9   :  { %v958_v25 = vld [vmem:[%s1460_s0 + $0xc8] sm:$0xff]   ;;  %v959_v26 = vld [vmem:[%s1460_s0 + $0x50] sm:$0xff]   ;;  %v961_v28 = vld [vmem:[%s1460_s0 + $0x58] sm:$0xff]  }
   0xa   :  { %v960_v27 = vld [vmem:[%s1460_s0 + $0xd0] sm:$0xff]   ;;  %v962_v29 = vld [vmem:[%s1460_s0 + $0xd8] sm:$0xff]   ;;  %v963_v30 = vld [vmem:[%s1460_s0 + $0x60] sm:$0xff]  }
   0xb   :  { %853 = vmatpush3.bf16.msra.mxu0 %v936_v2  ;;  %929 = vmatpush3.bf16.msra.mxu1 %v936_v2  ;;  %v964_v31 = vld [vmem:[%s1460_s0 + $0xe0] sm:$0xff]   ;;  %v965_v32 = vld [vmem:[%s1460_s0 + $0x68] sm:$0xff]   ;;  %v967_v34 = vld [vmem:[%s1460_s0 + $0x70] sm:$0xff]  }
   0xc   :  { %854 = vmatprep.subr.bf16.mxu0 %v937_v5  ;;  %925 = vmatprep.subr.bf16.mxu1 %v937_v5  ;;  %v966_v33 = vld [vmem:[%s1460_s0 + $0xe8] sm:$0xff]   ;;  %v968_v35 = vld [vmem:[%s1460_s0 + $0xf0] sm:$0xff]   ;;  %v969_v36 = vld [vmem:[%s1460_s0 + $0x78] sm:$0xff]  }
   0xd   :  { %v970_v37 = vld [vmem:[%s1460_s0 + $0xf8] sm:$0xff]   ;;  %v1137_v38 = vld [vmem:[%s1461_s2] ss:$0 sm:$0xff] }
   0xf   :  { %855 = vmatpush3.bf16.msra.mxu0 %v937_v5  ;;  %930 = vmatpush3.bf16.msra.mxu1 %v937_v5 }
  0x10   :  { %932 = vmatprep.subr.msk.bf16.mxu0 %vm379_vm1, %v938_v6  ;;  %933 = vmatprep.subr.msk.bf16.mxu1 %vm379_vm1, %v938_v6 }
  0x13   :  { %857 = vmatpush3.bf16.msra.mxu0 %v381_v7  ;;  %931 = vmatpush3.bf16.msra.mxu1 %v381_v7 }
  0x16   :  { %859 = vmatmul.mubr.msk.bf16.vlgmr.msra.gmra.mrb[0].mxu0 %vm282_vm0, %v941_v8  ;;  %891 = vmatmul.mubr.msk.bf16.vlgmr.msra.gmra.mrb[0].mxu1 %vm282_vm0, %v942_v9 }
  0x17   :  { %862 = vmatprep.mubr.msk.bf16.mxu0 %vm282_vm0, %v943_v10  ;;  %894 = vmatprep.mubr.msk.bf16.mxu1 %vm282_vm0, %v944_v11 }
  0x1e   :  { %863 = vmatmul.mubr.msk.bf16.gmra.mrb[4].mxu0 %vm282_vm0, %v945_v12  ;;  %895 = vmatmul.mubr.msk.bf16.gmra.mrb[4].mxu1 %vm282_vm0, %v946_v13 }
  0x1f   :  { %866 = vmatprep.mubr.msk.bf16.mxu0 %vm282_vm0, %v947_v14  ;;  %898 = vmatprep.mubr.msk.bf16.mxu1 %vm282_vm0, %v948_v15 }
  0x26   :  { %867 = vmatmul.mubr.msk.bf16.gmra.mrb[8].mxu0 %vm282_vm0, %v949_v16  ;;  %899 = vmatmul.mubr.msk.bf16.gmra.mrb[8].mxu1 %vm282_vm0, %v950_v17 }
  0x27   :  { %870 = vmatprep.mubr.msk.bf16.mxu0 %vm282_vm0, %v951_v18  ;;  %902 = vmatprep.mubr.msk.bf16.mxu1 %vm282_vm0, %v952_v19 }
  0x2e   :  { %871 = vmatmul.mubr.msk.bf16.gmra.mrb[12].mxu0 %vm282_vm0, %v953_v20  ;;  %903 = vmatmul.mubr.msk.bf16.gmra.mrb[12].mxu1 %vm282_vm0, %v954_v21 }
  0x2f   :  { %874 = vmatprep.mubr.msk.bf16.mxu0 %vm282_vm0, %v955_v22  ;;  %906 = vmatprep.mubr.msk.bf16.mxu1 %vm282_vm0, %v956_v23 }
  0x36   :  { %875 = vmatmul.mubr.msk.bf16.gmra.mrb[16].mxu0 %vm282_vm0, %v957_v24  ;;  %907 = vmatmul.mubr.msk.bf16.gmra.mrb[16].mxu1 %vm282_vm0, %v958_v25 }
  0x37   :  { %878 = vmatprep.mubr.msk.bf16.mxu0 %vm282_vm0, %v959_v26  ;;  %910 = vmatprep.mubr.msk.bf16.mxu1 %vm282_vm0, %v960_v27 }
  0x3e   :  { %879 = vmatmul.mubr.msk.bf16.gmra.mrb[20].mxu0 %vm282_vm0, %v961_v28  ;;  %911 = vmatmul.mubr.msk.bf16.gmra.mrb[20].mxu1 %vm282_vm0, %v962_v29 }
  0x3f   :  { %882 = vmatprep.mubr.msk.bf16.mxu0 %vm282_vm0, %v963_v30  ;;  %914 = vmatprep.mubr.msk.bf16.mxu1 %vm282_vm0, %v964_v31 }
  0x46   :  { %883 = vmatmul.mubr.msk.bf16.gmra.mrb[24].mxu0 %vm282_vm0, %v965_v32  ;;  %915 = vmatmul.mubr.msk.bf16.gmra.mrb[24].mxu1 %vm282_vm0, %v966_v33 }
  0x47   :  { %886 = vmatprep.mubr.msk.bf16.mxu0 %vm282_vm0, %v967_v34  ;;  %918 = vmatprep.mubr.msk.bf16.mxu1 %vm282_vm0, %v968_v35 }
  0x4e   :  { %887 = vmatmul.mubr.msk.bf16.gmra.mrb[28].mxu0 %vm282_vm0, %v969_v36  ;;  %919 = vmatmul.mubr.msk.bf16.gmra.mrb[28].mxu1 %vm282_vm0, %v970_v37 }
  0xe9   :  { %v860_v39 = vpop.f32.mrb[0].mxu0  ;;  %v892_v40 = vpop.f32.mrb[0].mxu1 }
  0xea   :  { %v426_v41 = vadd.f32 %v860_v39, %v1137_v38  ;;  %v554_v42 = vadd.f32 %v892_v40, %v1137_v38  ;;  %v417_v43 = vpop.f32.mrb[1].mxu0  ;;  %v545_v44 = vpop.f32.mrb[1].mxu1 }
  0xeb   :  { %v418_v45 = vadd.f32 %v1137_v38, %v417_v43  ;;  %v546_v46 = vadd.f32 %v1137_v38, %v545_v44  ;;  %v861_v47 = vpop.f32.mrb[2].mxu0  ;;  %v893_v48 = vpop.f32.mrb[2].mxu1 }
  0xec   :  { %675 = vst.msk [vmem:[%s1462_s3 + $0x10] sm:$0xff] %vm672_vm2, %v426_v41  ;;  %707 = vst.msk [vmem:[%s1462_s3 + $0x110] sm:$0xff] %vm672_vm2, %v554_v42  ;;  %v429_v49 = vadd.f32 %v861_v47, %v1137_v38  ;;  %v557_v50 = vadd.f32 %v893_v48, %v1137_v38  ;;  %v420_v51 = vpop.f32.mrb[3].mxu0  ;;  %v548_v52 = vpop.f32.mrb[3].mxu1 }
  0xed   :  { %673 = vst.msk [vmem:[%s1462_s3] sm:$0xff] %vm672_vm2, %v418_v45  ;;  %705 = vst.msk [vmem:[%s1462_s3 + $0x100] sm:$0xff] %vm672_vm2, %v546_v46  ;;  %v421_v53 = vadd.f32 %v1137_v38, %v420_v51  ;;  %v549_v54 = vadd.f32 %v1137_v38, %v548_v52 }
  0xee   :  { %676 = vst.msk [vmem:[%s1462_s3 + $0x18] sm:$0xff] %vm672_vm2, %v429_v49  ;;  %708 = vst.msk [vmem:[%s1462_s3 + $0x118] sm:$0xff] %vm672_vm2, %v557_v50 }
  0xef   :  { %674 = vst.msk [vmem:[%s1462_s3 + $0x8] sm:$0xff] %vm672_vm2, %v421_v53  ;;  %706 = vst.msk [vmem:[%s1462_s3 + $0x108] sm:$0xff] %vm672_vm2, %v549_v54 }
  0xf1   :  { %v864_v55 = vpop.f32.mrb[4].mxu0  ;;  %v896_v56 = vpop.f32.mrb[4].mxu1 }
  0xf2   :  { %v442_v57 = vadd.f32 %v864_v55, %v1137_v38  ;;  %v570_v58 = vadd.f32 %v896_v56, %v1137_v38  ;;  %v433_v59 = vpop.f32.mrb[5].mxu0  ;;  %v561_v60 = vpop.f32.mrb[5].mxu1 }
  0xf3   :  { %v434_v61 = vadd.f32 %v1137_v38, %v433_v59  ;;  %v562_v62 = vadd.f32 %v1137_v38, %v561_v60  ;;  %v865_v63 = vpop.f32.mrb[6].mxu0  ;;  %v897_v0 = vpop.f32.mrb[6].mxu1 }
  0xf4   :  { %679 = vst.msk [vmem:[%s1462_s3 + $0x30] sm:$0xff] %vm672_vm2, %v442_v57  ;;  %711 = vst.msk [vmem:[%s1462_s3 + $0x130] sm:$0xff] %vm672_vm2, %v570_v58  ;;  %v445_v1 = vadd.f32 %v865_v63, %v1137_v38  ;;  %v573_v2 = vadd.f32 %v897_v0, %v1137_v38  ;;  %v436_v3 = vpop.f32.mrb[7].mxu0  ;;  %v564_v4 = vpop.f32.mrb[7].mxu1 }
  0xf5   :  { %677 = vst.msk [vmem:[%s1462_s3 + $0x20] sm:$0xff] %vm672_vm2, %v434_v61  ;;  %709 = vst.msk [vmem:[%s1462_s3 + $0x120] sm:$0xff] %vm672_vm2, %v562_v62  ;;  %v437_v5 = vadd.f32 %v1137_v38, %v436_v3  ;;  %v565_v6 = vadd.f32 %v1137_v38, %v564_v4 }
  0xf6   :  { %680 = vst.msk [vmem:[%s1462_s3 + $0x38] sm:$0xff] %vm672_vm2, %v445_v1  ;;  %712 = vst.msk [vmem:[%s1462_s3 + $0x138] sm:$0xff] %vm672_vm2, %v573_v2 }
  0xf7   :  { %678 = vst.msk [vmem:[%s1462_s3 + $0x28] sm:$0xff] %vm672_vm2, %v437_v5  ;;  %710 = vst.msk [vmem:[%s1462_s3 + $0x128] sm:$0xff] %vm672_vm2, %v565_v6 }
  0xf9   :  { %v868_v7 = vpop.f32.mrb[8].mxu0  ;;  %v900_v8 = vpop.f32.mrb[8].mxu1 }
  0xfa   :  { %v458_v9 = vadd.f32 %v868_v7, %v1137_v38  ;;  %v586_v10 = vadd.f32 %v900_v8, %v1137_v38  ;;  %v449_v11 = vpop.f32.mrb[9].mxu0  ;;  %v577_v12 = vpop.f32.mrb[9].mxu1 }
  0xfb   :  { %v450_v13 = vadd.f32 %v1137_v38, %v449_v11  ;;  %v578_v14 = vadd.f32 %v1137_v38, %v577_v12  ;;  %v869_v15 = vpop.f32.mrb[10].mxu0  ;;  %v901_v16 = vpop.f32.mrb[10].mxu1 }
  0xfc   :  { %683 = vst.msk [vmem:[%s1462_s3 + $0x50] sm:$0xff] %vm672_vm2, %v458_v9  ;;  %715 = vst.msk [vmem:[%s1462_s3 + $0x150] sm:$0xff] %vm672_vm2, %v586_v10  ;;  %v461_v17 = vadd.f32 %v869_v15, %v1137_v38  ;;  %v589_v18 = vadd.f32 %v901_v16, %v1137_v38  ;;  %v452_v19 = vpop.f32.mrb[11].mxu0  ;;  %v580_v20 = vpop.f32.mrb[11].mxu1 }
  0xfd   :  { %681 = vst.msk [vmem:[%s1462_s3 + $0x40] sm:$0xff] %vm672_vm2, %v450_v13  ;;  %713 = vst.msk [vmem:[%s1462_s3 + $0x140] sm:$0xff] %vm672_vm2, %v578_v14  ;;  %v453_v21 = vadd.f32 %v1137_v38, %v452_v19  ;;  %v581_v22 = vadd.f32 %v1137_v38, %v580_v20 }
  0xfe   :  { %684 = vst.msk [vmem:[%s1462_s3 + $0x58] sm:$0xff] %vm672_vm2, %v461_v17  ;;  %716 = vst.msk [vmem:[%s1462_s3 + $0x158] sm:$0xff] %vm672_vm2, %v589_v18 }
  0xff   :  { %682 = vst.msk [vmem:[%s1462_s3 + $0x48] sm:$0xff] %vm672_vm2, %v453_v21  ;;  %714 = vst.msk [vmem:[%s1462_s3 + $0x148] sm:$0xff] %vm672_vm2, %v581_v22 }
 0x101   :  { %v872_v23 = vpop.f32.mrb[12].mxu0  ;;  %v904_v24 = vpop.f32.mrb[12].mxu1 }
 0x102   :  { %v474_v25 = vadd.f32 %v872_v23, %v1137_v38  ;;  %v602_v26 = vadd.f32 %v904_v24, %v1137_v38  ;;  %v465_v27 = vpop.f32.mrb[13].mxu0  ;;  %v593_v28 = vpop.f32.mrb[13].mxu1 }
 0x103   :  { %v466_v29 = vadd.f32 %v1137_v38, %v465_v27  ;;  %v594_v30 = vadd.f32 %v1137_v38, %v593_v28  ;;  %v873_v31 = vpop.f32.mrb[14].mxu0  ;;  %v905_v32 = vpop.f32.mrb[14].mxu1 }
 0x104   :  { %687 = vst.msk [vmem:[%s1462_s3 + $0x70] sm:$0xff] %vm672_vm2, %v474_v25  ;;  %719 = vst.msk [vmem:[%s1462_s3 + $0x170] sm:$0xff] %vm672_vm2, %v602_v26  ;;  %v477_v33 = vadd.f32 %v873_v31, %v1137_v38  ;;  %v605_v34 = vadd.f32 %v905_v32, %v1137_v38  ;;  %v468_v35 = vpop.f32.mrb[15].mxu0  ;;  %v596_v36 = vpop.f32.mrb[15].mxu1 }
 0x105   :  { %685 = vst.msk [vmem:[%s1462_s3 + $0x60] sm:$0xff] %vm672_vm2, %v466_v29  ;;  %717 = vst.msk [vmem:[%s1462_s3 + $0x160] sm:$0xff] %vm672_vm2, %v594_v30  ;;  %v469_v37 = vadd.f32 %v1137_v38, %v468_v35  ;;  %v597_v39 = vadd.f32 %v1137_v38, %v596_v36 }
 0x106   :  { %688 = vst.msk [vmem:[%s1462_s3 + $0x78] sm:$0xff] %vm672_vm2, %v477_v33  ;;  %720 = vst.msk [vmem:[%s1462_s3 + $0x178] sm:$0xff] %vm672_vm2, %v605_v34 }
 0x107   :  { %686 = vst.msk [vmem:[%s1462_s3 + $0x68] sm:$0xff] %vm672_vm2, %v469_v37  ;;  %718 = vst.msk [vmem:[%s1462_s3 + $0x168] sm:$0xff] %vm672_vm2, %v597_v39 }
 0x109   :  { %v876_v40 = vpop.f32.mrb[16].mxu0  ;;  %v908_v41 = vpop.f32.mrb[16].mxu1 }
 0x10a   :  { %v490_v42 = vadd.f32 %v876_v40, %v1137_v38  ;;  %v618_v43 = vadd.f32 %v908_v41, %v1137_v38  ;;  %v481_v44 = vpop.f32.mrb[17].mxu0  ;;  %v609_v45 = vpop.f32.mrb[17].mxu1 }
 0x10b   :  { %v482_v46 = vadd.f32 %v1137_v38, %v481_v44  ;;  %v610_v47 = vadd.f32 %v1137_v38, %v609_v45  ;;  %v877_v48 = vpop.f32.mrb[18].mxu0  ;;  %v909_v49 = vpop.f32.mrb[18].mxu1 }
 0x10c   :  { %691 = vst.msk [vmem:[%s1462_s3 + $0x90] sm:$0xff] %vm672_vm2, %v490_v42  ;;  %723 = vst.msk [vmem:[%s1462_s3 + $0x190] sm:$0xff] %vm672_vm2, %v618_v43  ;;  %v493_v50 = vadd.f32 %v877_v48, %v1137_v38  ;;  %v621_v51 = vadd.f32 %v909_v49, %v1137_v38  ;;  %v484_v52 = vpop.f32.mrb[19].mxu0  ;;  %v612_v53 = vpop.f32.mrb[19].mxu1 }
 0x10d   :  { %689 = vst.msk [vmem:[%s1462_s3 + $0x80] sm:$0xff] %vm672_vm2, %v482_v46  ;;  %721 = vst.msk [vmem:[%s1462_s3 + $0x180] sm:$0xff] %vm672_vm2, %v610_v47  ;;  %v485_v54 = vadd.f32 %v1137_v38, %v484_v52  ;;  %v613_v55 = vadd.f32 %v1137_v38, %v612_v53 }
 0x10e   :  { %692 = vst.msk [vmem:[%s1462_s3 + $0x98] sm:$0xff] %vm672_vm2, %v493_v50  ;;  %724 = vst.msk [vmem:[%s1462_s3 + $0x198] sm:$0xff] %vm672_vm2, %v621_v51 }
 0x10f   :  { %690 = vst.msk [vmem:[%s1462_s3 + $0x88] sm:$0xff] %vm672_vm2, %v485_v54  ;;  %722 = vst.msk [vmem:[%s1462_s3 + $0x188] sm:$0xff] %vm672_vm2, %v613_v55 }
 0x111   :  { %v880_v56 = vpop.f32.mrb[20].mxu0  ;;  %v912_v57 = vpop.f32.mrb[20].mxu1 }
 0x112   :  { %v506_v58 = vadd.f32 %v880_v56, %v1137_v38  ;;  %v634_v59 = vadd.f32 %v912_v57, %v1137_v38  ;;  %v497_v60 = vpop.f32.mrb[21].mxu0  ;;  %v625_v61 = vpop.f32.mrb[21].mxu1 }
 0x113   :  { %v498_v62 = vadd.f32 %v1137_v38, %v497_v60  ;;  %v626_v63 = vadd.f32 %v1137_v38, %v625_v61  ;;  %v881_v0 = vpop.f32.mrb[22].mxu0  ;;  %v913_v1 = vpop.f32.mrb[22].mxu1 }
 0x114   :  { %695 = vst.msk [vmem:[%s1462_s3 + $0xb0] sm:$0xff] %vm672_vm2, %v506_v58  ;;  %727 = vst.msk [vmem:[%s1462_s3 + $0x1b0] sm:$0xff] %vm672_vm2, %v634_v59  ;;  %v509_v2 = vadd.f32 %v881_v0, %v1137_v38  ;;  %v637_v3 = vadd.f32 %v913_v1, %v1137_v38  ;;  %v500_v4 = vpop.f32.mrb[23].mxu0  ;;  %v628_v5 = vpop.f32.mrb[23].mxu1 }
 0x115   :  { %693 = vst.msk [vmem:[%s1462_s3 + $0xa0] sm:$0xff] %vm672_vm2, %v498_v62  ;;  %725 = vst.msk [vmem:[%s1462_s3 + $0x1a0] sm:$0xff] %vm672_vm2, %v626_v63  ;;  %v501_v6 = vadd.f32 %v1137_v38, %v500_v4  ;;  %v629_v7 = vadd.f32 %v1137_v38, %v628_v5 }
 0x116   :  { %696 = vst.msk [vmem:[%s1462_s3 + $0xb8] sm:$0xff] %vm672_vm2, %v509_v2  ;;  %728 = vst.msk [vmem:[%s1462_s3 + $0x1b8] sm:$0xff] %vm672_vm2, %v637_v3 }
 0x117   :  { %694 = vst.msk [vmem:[%s1462_s3 + $0xa8] sm:$0xff] %vm672_vm2, %v501_v6  ;;  %726 = vst.msk [vmem:[%s1462_s3 + $0x1a8] sm:$0xff] %vm672_vm2, %v629_v7 }
 0x119   :  { %v884_v8 = vpop.f32.mrb[24].mxu0  ;;  %v916_v9 = vpop.f32.mrb[24].mxu1 }
 0x11a   :  { %v522_v10 = vadd.f32 %v884_v8, %v1137_v38  ;;  %v650_v11 = vadd.f32 %v916_v9, %v1137_v38  ;;  %v513_v12 = vpop.f32.mrb[25].mxu0  ;;  %v641_v13 = vpop.f32.mrb[25].mxu1 }
 0x11b   :  { %v514_v14 = vadd.f32 %v1137_v38, %v513_v12  ;;  %v642_v15 = vadd.f32 %v1137_v38, %v641_v13  ;;  %v885_v16 = vpop.f32.mrb[26].mxu0  ;;  %v917_v17 = vpop.f32.mrb[26].mxu1 }
 0x11c   :  { %699 = vst.msk [vmem:[%s1462_s3 + $0xd0] sm:$0xff] %vm672_vm2, %v522_v10  ;;  %731 = vst.msk [vmem:[%s1462_s3 + $0x1d0] sm:$0xff] %vm672_vm2, %v650_v11  ;;  %v525_v18 = vadd.f32 %v885_v16, %v1137_v38  ;;  %v653_v19 = vadd.f32 %v917_v17, %v1137_v38  ;;  %v516_v20 = vpop.f32.mrb[27].mxu0  ;;  %v644_v21 = vpop.f32.mrb[27].mxu1 }
 0x11d   :  { %697 = vst.msk [vmem:[%s1462_s3 + $0xc0] sm:$0xff] %vm672_vm2, %v514_v14  ;;  %729 = vst.msk [vmem:[%s1462_s3 + $0x1c0] sm:$0xff] %vm672_vm2, %v642_v15  ;;  %v517_v22 = vadd.f32 %v1137_v38, %v516_v20  ;;  %v645_v23 = vadd.f32 %v1137_v38, %v644_v21 }
 0x11e   :  { %700 = vst.msk [vmem:[%s1462_s3 + $0xd8] sm:$0xff] %vm672_vm2, %v525_v18  ;;  %732 = vst.msk [vmem:[%s1462_s3 + $0x1d8] sm:$0xff] %vm672_vm2, %v653_v19 }
 0x11f   :  { %698 = vst.msk [vmem:[%s1462_s3 + $0xc8] sm:$0xff] %vm672_vm2, %v517_v22  ;;  %730 = vst.msk [vmem:[%s1462_s3 + $0x1c8] sm:$0xff] %vm672_vm2, %v645_v23 }
 0x121   :  { %v888_v24 = vpop.f32.mrb[28].mxu0  ;;  %v920_v25 = vpop.f32.mrb[28].mxu1 }
 0x122   :  { %v538_v26 = vadd.f32 %v888_v24, %v1137_v38  ;;  %v666_v27 = vadd.f32 %v920_v25, %v1137_v38  ;;  %v529_v28 = vpop.f32.mrb[29].mxu0  ;;  %v657_v29 = vpop.f32.mrb[29].mxu1 }
 0x123   :  { %v530_v30 = vadd.f32 %v1137_v38, %v529_v28  ;;  %v658_v31 = vadd.f32 %v1137_v38, %v657_v29  ;;  %v889_v32 = vpop.f32.mrb[30].mxu0  ;;  %v921_v33 = vpop.f32.mrb[30].mxu1 }
 0x124   :  { %703 = vst.msk [vmem:[%s1462_s3 + $0xf0] sm:$0xff] %vm672_vm2, %v538_v26  ;;  %735 = vst.msk [vmem:[%s1462_s3 + $0x1f0] sm:$0xff] %vm672_vm2, %v666_v27  ;;  %v541_v34 = vadd.f32 %v889_v32, %v1137_v38  ;;  %v669_v35 = vadd.f32 %v921_v33, %v1137_v38  ;;  %v532_v36 = vpop.f32.mrb[31].mxu0  ;;  %v660_v37 = vpop.f32.mrb[31].mxu1 }
 0x125   :  { %701 = vst.msk [vmem:[%s1462_s3 + $0xe0] sm:$0xff] %vm672_vm2, %v530_v30  ;;  %733 = vst.msk [vmem:[%s1462_s3 + $0x1e0] sm:$0xff] %vm672_vm2, %v658_v31  ;;  %v533_v39 = vadd.f32 %v1137_v38, %v532_v36  ;;  %v661_v40 = vadd.f32 %v1137_v38, %v660_v37 }
 0x126   :  { %704 = vst.msk [vmem:[%s1462_s3 + $0xf8] sm:$0xff] %vm672_vm2, %v541_v34  ;;  %736 = vst.msk [vmem:[%s1462_s3 + $0x1f8] sm:$0xff] %vm672_vm2, %v669_v35 }
 0x127   :  { %702 = vst.msk [vmem:[%s1462_s3 + $0xe8] sm:$0xff] %vm672_vm2, %v533_v39  ;;  %734 = vst.msk [vmem:[%s1462_s3 + $0x1e8] sm:$0xff] %vm672_vm2, %v661_v40 }

// kernel: simple_unet_forward.14
= control target key start
LH: loop header
LB: loop body
LE: loop exit
PB: predicated region body
PF: predicated region fallthrough
CT: control target
= control target key end

     0   :  { %vm281_vm0 = vcmask 588800   ;;  %vm378_vm1 = vcmask 1043456   ;;  %vm4253_vm2 = vcmask 64512   ;;  %s4186_s1 = inlined_call_operand.vmem [shape: bf16[72,8], index: 1, kind: input, shape index: {}]   ;;  %s4187_s0 = inlined_call_operand.vmem [shape: bf16[512,72], index: 0, kind: input, shape index: {}]   ;;  %s4188_s2 = inlined_call_operand.vmem [shape: f32[1,8], index: 2, kind: input, shape index: {}]   ;;  %s4189_s3 = inlined_call_operand.vmem [shape: f32[1,8], index: 3, kind: input, shape index: {}]   ;;  %s4190_s4 = inlined_call_operand.vmem [shape: f32[512,8], index: 4, kind: input, shape index: {}]   ;;  %s4191_s5 = inlined_call_operand.vmem [shape: f32[512,8], index: 5, kind: output, shape index: {}]  }
   0x1   :  { %v1795_v0 = vld [vmem:[%s4186_s1] sm:$0xff]   ;;  %v1796_v1 = vld [vmem:[%s4186_s1 + $0x8] sm:$0xff]   ;;  %v1797_v2 = vld [vmem:[%s4186_s1 + $0x10] sm:$0xff]  }
   0x2   :  { %1709 = vmatprep.subr.bf16.mxu0 %v1795_v0  ;;  %1783 = vmatprep.subr.bf16.mxu1 %v1795_v0  ;;  %v1800_v3 = vld [vmem:[%s4187_s0] sm:$0xff]   ;;  %v1798_v4 = vld [vmem:[%s4186_s1 + $0x18] sm:$0xff]   ;;  %v1801_v7 = vld [vmem:[%s4187_s0 + $0x8] sm:$0xff]  }
   0x3   :  { %1710 = vmatpush3.bf16.msra.mxu0 %v1795_v0  ;;  %1788 = vmatpush3.bf16.msra.mxu1 %v1795_v0  ;;  %v1799_v5 = vld [vmem:[%s4186_s1 + $0x20] ss:$0 sps:$4 sm:$0xff]   ;;  %v1802_v8 = vld [vmem:[%s4187_s0 + $0x10] sm:$0xff]   ;;  %v1817_v10 = vld [vmem:[%s4187_s0 + $0x88] sm:$0xff]  }
   0x4   :  { %1711 = vmatprep.subr.bf16.mxu0 %v1796_v1  ;;  %1784 = vmatprep.subr.bf16.mxu1 %v1796_v1  ;;  %v380_v6 = vsel %vm378_vm1, %v1799_v5, 0  ;;  %v1816_v9 = vld [vmem:[%s4187_s0 + $0x80] sm:$0xff]   ;;  %v1818_v11 = vld [vmem:[%s4187_s0 + $0x90] sm:$0xff]   ;;  %v1803_v12 = vld [vmem:[%s4187_s0 + $0x18] sm:$0xff]  }
   0x5   :  { %1719 = vmatprep.mubr.msk.bf16.mxu0 %vm281_vm0, %v1800_v3  ;;  %1751 = vmatprep.mubr.msk.bf16.mxu1 %vm281_vm0, %v1816_v9  ;;  %v1804_v13 = vld [vmem:[%s4187_s0 + $0x20] sm:$0xff]   ;;  %v1819_v14 = vld [vmem:[%s4187_s0 + $0x98] sm:$0xff]   ;;  %v1805_v16 = vld [vmem:[%s4187_s0 + $0x28] sm:$0xff]  }
   0x6   :  { %v1820_v15 = vld [vmem:[%s4187_s0 + $0xa0] sm:$0xff]   ;;  %v1806_v17 = vld [vmem:[%s4187_s0 + $0x30] sm:$0xff]   ;;  %v1821_v18 = vld [vmem:[%s4187_s0 + $0xa8] sm:$0xff]  }
   0x7   :  { %1712 = vmatpush3.bf16.msra.mxu0 %v1796_v1  ;;  %1789 = vmatpush3.bf16.msra.mxu1 %v1796_v1  ;;  %v1822_v19 = vld [vmem:[%s4187_s0 + $0xb0] sm:$0xff]   ;;  %v1807_v20 = vld [vmem:[%s4187_s0 + $0x38] sm:$0xff]   ;;  %v1808_v21 = vld [vmem:[%s4187_s0 + $0x40] sm:$0xff]  }
   0x8   :  { %1713 = vmatprep.subr.bf16.mxu0 %v1797_v2  ;;  %1785 = vmatprep.subr.bf16.mxu1 %v1797_v2  ;;  %v1823_v22 = vld [vmem:[%s4187_s0 + $0xb8] sm:$0xff]   ;;  %v1824_v23 = vld [vmem:[%s4187_s0 + $0xc0] sm:$0xff]   ;;  %v1809_v24 = vld [vmem:[%s4187_s0 + $0x48] sm:$0xff]  }
   0x9   :  { %v1810_v25 = vld [vmem:[%s4187_s0 + $0x50] sm:$0xff]   ;;  %v1825_v26 = vld [vmem:[%s4187_s0 + $0xc8] sm:$0xff]   ;;  %v1811_v28 = vld [vmem:[%s4187_s0 + $0x58] sm:$0xff]  }
   0xa   :  { %v1826_v27 = vld [vmem:[%s4187_s0 + $0xd0] sm:$0xff]   ;;  %v1812_v29 = vld [vmem:[%s4187_s0 + $0x60] sm:$0xff]   ;;  %v1827_v30 = vld [vmem:[%s4187_s0 + $0xd8] sm:$0xff]  }
   0xb   :  { %1714 = vmatpush3.bf16.msra.mxu0 %v1797_v2  ;;  %1790 = vmatpush3.bf16.msra.mxu1 %v1797_v2  ;;  %v1828_v31 = vld [vmem:[%s4187_s0 + $0xe0] sm:$0xff]   ;;  %v1813_v32 = vld [vmem:[%s4187_s0 + $0x68] sm:$0xff]   ;;  %v1814_v33 = vld [vmem:[%s4187_s0 + $0x70] sm:$0xff]  }
   0xc   :  { %1715 = vmatprep.subr.bf16.mxu0 %v1798_v4  ;;  %1786 = vmatprep.subr.bf16.mxu1 %v1798_v4  ;;  %v1829_v34 = vld [vmem:[%s4187_s0 + $0xe8] sm:$0xff]   ;;  %v1830_v35 = vld [vmem:[%s4187_s0 + $0xf0] sm:$0xff]   ;;  %v1815_v36 = vld [vmem:[%s4187_s0 + $0x78] sm:$0xff]  }
   0xd   :  { %v1831_v37 = vld [vmem:[%s4187_s0 + $0xf8] sm:$0xff]  }
   0xf   :  { %1716 = vmatpush3.bf16.msra.mxu0 %v1798_v4  ;;  %1791 = vmatpush3.bf16.msra.mxu1 %v1798_v4 }
  0x10   :  { %1793 = vmatprep.subr.msk.bf16.mxu0 %vm378_vm1, %v1799_v5  ;;  %1794 = vmatprep.subr.msk.bf16.mxu1 %vm378_vm1, %v1799_v5 }
  0x13   :  { %1718 = vmatpush3.bf16.msra.mxu0 %v380_v6  ;;  %1792 = vmatpush3.bf16.msra.mxu1 %v380_v6 }
  0x16   :  { %1720 = vmatmul.mubr.msk.bf16.vlgmr.msra.gmra.mrb[0].mxu0 %vm281_vm0, %v1801_v7  ;;  %1752 = vmatmul.mubr.msk.bf16.vlgmr.msra.gmra.mrb[0].mxu1 %vm281_vm0, %v1817_v10 }
  0x17   :  { %1723 = vmatprep.mubr.msk.bf16.mxu0 %vm281_vm0, %v1802_v8  ;;  %1755 = vmatprep.mubr.msk.bf16.mxu1 %vm281_vm0, %v1818_v11 }
  0x1e   :  { %1724 = vmatmul.mubr.msk.bf16.gmra.mrb[4].mxu0 %vm281_vm0, %v1803_v12  ;;  %1756 = vmatmul.mubr.msk.bf16.gmra.mrb[4].mxu1 %vm281_vm0, %v1819_v14 }
  0x1f   :  { %1727 = vmatprep.mubr.msk.bf16.mxu0 %vm281_vm0, %v1804_v13  ;;  %1759 = vmatprep.mubr.msk.bf16.mxu1 %vm281_vm0, %v1820_v15 }
  0x26   :  { %1728 = vmatmul.mubr.msk.bf16.gmra.mrb[8].mxu0 %vm281_vm0, %v1805_v16  ;;  %1760 = vmatmul.mubr.msk.bf16.gmra.mrb[8].mxu1 %vm281_vm0, %v1821_v18 }
  0x27   :  { %1731 = vmatprep.mubr.msk.bf16.mxu0 %vm281_vm0, %v1806_v17  ;;  %1763 = vmatprep.mubr.msk.bf16.mxu1 %vm281_vm0, %v1822_v19 }
  0x2e   :  { %1732 = vmatmul.mubr.msk.bf16.gmra.mrb[12].mxu0 %vm281_vm0, %v1807_v20  ;;  %1764 = vmatmul.mubr.msk.bf16.gmra.mrb[12].mxu1 %vm281_vm0, %v1823_v22 }
  0x2f   :  { %1735 = vmatprep.mubr.msk.bf16.mxu0 %vm281_vm0, %v1808_v21  ;;  %1767 = vmatprep.mubr.msk.bf16.mxu1 %vm281_vm0, %v1824_v23 }
  0x36   :  { %1736 = vmatmul.mubr.msk.bf16.gmra.mrb[16].mxu0 %vm281_vm0, %v1809_v24  ;;  %1768 = vmatmul.mubr.msk.bf16.gmra.mrb[16].mxu1 %vm281_vm0, %v1825_v26 }
  0x37   :  { %1739 = vmatprep.mubr.msk.bf16.mxu0 %vm281_vm0, %v1810_v25  ;;  %1771 = vmatprep.mubr.msk.bf16.mxu1 %vm281_vm0, %v1826_v27 }
  0x3e   :  { %1740 = vmatmul.mubr.msk.bf16.gmra.mrb[20].mxu0 %vm281_vm0, %v1811_v28  ;;  %1772 = vmatmul.mubr.msk.bf16.gmra.mrb[20].mxu1 %vm281_vm0, %v1827_v30 }
  0x3f   :  { %1743 = vmatprep.mubr.msk.bf16.mxu0 %vm281_vm0, %v1812_v29  ;;  %1775 = vmatprep.mubr.msk.bf16.mxu1 %vm281_vm0, %v1828_v31 }
  0x46   :  { %1744 = vmatmul.mubr.msk.bf16.gmra.mrb[24].mxu0 %vm281_vm0, %v1813_v32  ;;  %1776 = vmatmul.mubr.msk.bf16.gmra.mrb[24].mxu1 %vm281_vm0, %v1829_v34 }
  0x47   :  { %1747 = vmatprep.mubr.msk.bf16.mxu0 %vm281_vm0, %v1814_v33  ;;  %1779 = vmatprep.mubr.msk.bf16.mxu1 %vm281_vm0, %v1830_v35 }
  0x4e   :  { %1748 = vmatmul.mubr.msk.bf16.gmra.mrb[28].mxu0 %vm281_vm0, %v1815_v36  ;;  %1780 = vmatmul.mubr.msk.bf16.gmra.mrb[28].mxu1 %vm281_vm0, %v1831_v37 }
  0xe9   :  { %v2007_v38 = vpop.f32.mrb[0].mxu0  ;;  %v2013_v41 = vpop.f32.mrb[0].mxu1 }
  0xea   :  { %v2009_v39 = vpop.f32.mrb[1].mxu0  ;;  %v2017_v43 = vpop.f32.mrb[1].mxu1  ;;  %v675_v49 = vsel %vm4253_vm2, %v2007_v38, 0.0 }
  0xeb   :  { %v2011_v40 = vpop.f32.mrb[2].mxu0  ;;  %v672_v44 = vsel %vm4253_vm2, %v2009_v39, 0.0  ;;  %v2023_v46 = vpop.f32.mrb[2].mxu1 }
  0xec   :  { %v2015_v42 = vpop.f32.mrb[3].mxu0  ;;  %v2025_v48 = vpop.f32.mrb[3].mxu1  ;;  %v677_v51 = vsel %vm4253_vm2, %v2011_v40, 0.0 }
  0xed   :  { %v673_v45 = vsel %vm4253_vm2, %v2015_v42, 0.0 }
  0xee   :  { %v674_v47 = vadd.f32 %v673_v45, %v672_v44 }
  0xf0   :  { %v676_v50 = vadd.f32 %v675_v49, %v674_v47 }
  0xf1   :  { %v2031_v52 = vpop.f32.mrb[4].mxu0  ;;  %v2039_v57 = vpop.f32.mrb[4].mxu1 }
  0xf2   :  { %v2033_v53 = vpop.f32.mrb[5].mxu0  ;;  %v678_v54 = vadd.f32 %v677_v51, %v676_v50  ;;  %v2043_v60 = vpop.f32.mrb[5].mxu1  ;;  %v683_v1 = vsel %vm4253_vm2, %v2031_v52, 0.0 }
  0xf3   :  { %v679_v55 = vsel %vm4253_vm2, %v2033_v53, 0.0  ;;  %v2037_v56 = vpop.f32.mrb[6].mxu0  ;;  %v2047_v62 = vpop.f32.mrb[6].mxu1 }
  0xf4   :  { %v680_v58 = vadd.f32 %v679_v55, %v678_v54  ;;  %v2041_v59 = vpop.f32.mrb[7].mxu0  ;;  %v2049_v0 = vpop.f32.mrb[7].mxu1  ;;  %v685_v3 = vsel %vm4253_vm2, %v2037_v56, 0.0 }
  0xf5   :  { %v681_v61 = vsel %vm4253_vm2, %v2041_v59, 0.0 }
  0xf6   :  { %v682_v63 = vadd.f32 %v681_v61, %v680_v58 }
  0xf8   :  { %v684_v2 = vadd.f32 %v683_v1, %v682_v63 }
  0xf9   :  { %v2055_v4 = vpop.f32.mrb[8].mxu0  ;;  %v2063_v9 = vpop.f32.mrb[8].mxu1 }
  0xfa   :  { %v2057_v5 = vpop.f32.mrb[9].mxu0  ;;  %v686_v6 = vadd.f32 %v685_v3, %v684_v2  ;;  %v2067_v12 = vpop.f32.mrb[9].mxu1  ;;  %v691_v17 = vsel %vm4253_vm2, %v2055_v4, 0.0 }
  0xfb   :  { %v687_v7 = vsel %vm4253_vm2, %v2057_v5, 0.0  ;;  %v2061_v8 = vpop.f32.mrb[10].mxu0  ;;  %v2071_v14 = vpop.f32.mrb[10].mxu1 }
  0xfc   :  { %v688_v10 = vadd.f32 %v687_v7, %v686_v6  ;;  %v2065_v11 = vpop.f32.mrb[11].mxu0  ;;  %v2073_v16 = vpop.f32.mrb[11].mxu1  ;;  %v693_v19 = vsel %vm4253_vm2, %v2061_v8, 0.0 }
  0xfd   :  { %v689_v13 = vsel %vm4253_vm2, %v2065_v11, 0.0 }
  0xfe   :  { %v690_v15 = vadd.f32 %v689_v13, %v688_v10 }
 0x100   :  { %v692_v18 = vadd.f32 %v691_v17, %v690_v15 }
 0x101   :  { %v2079_v20 = vpop.f32.mrb[12].mxu0  ;;  %v2087_v25 = vpop.f32.mrb[12].mxu1 }
 0x102   :  { %v2081_v21 = vpop.f32.mrb[13].mxu0  ;;  %v694_v22 = vadd.f32 %v693_v19, %v692_v18  ;;  %v2091_v28 = vpop.f32.mrb[13].mxu1  ;;  %v699_v33 = vsel %vm4253_vm2, %v2079_v20, 0.0 }
 0x103   :  { %v695_v23 = vsel %vm4253_vm2, %v2081_v21, 0.0  ;;  %v2085_v24 = vpop.f32.mrb[14].mxu0  ;;  %v2095_v30 = vpop.f32.mrb[14].mxu1 }
 0x104   :  { %v696_v26 = vadd.f32 %v695_v23, %v694_v22  ;;  %v2089_v27 = vpop.f32.mrb[15].mxu0  ;;  %v2097_v32 = vpop.f32.mrb[15].mxu1  ;;  %v701_v35 = vsel %vm4253_vm2, %v2085_v24, 0.0 }
 0x105   :  { %v697_v29 = vsel %vm4253_vm2, %v2089_v27, 0.0 }
 0x106   :  { %v698_v31 = vadd.f32 %v697_v29, %v696_v26 }
 0x108   :  { %v700_v34 = vadd.f32 %v699_v33, %v698_v31 }
 0x109   :  { %v2103_v36 = vpop.f32.mrb[16].mxu0  ;;  %v2111_v49 = vpop.f32.mrb[16].mxu1 }
 0x10a   :  { %v2105_v37 = vpop.f32.mrb[17].mxu0  ;;  %v702_v44 = vadd.f32 %v701_v35, %v700_v34  ;;  %v2115_v54 = vpop.f32.mrb[17].mxu1  ;;  %v707_v1 = vsel %vm4253_vm2, %v2103_v36, 0.0 }
 0x10b   :  { %v703_v45 = vsel %vm4253_vm2, %v2105_v37, 0.0  ;;  %v2109_v47 = vpop.f32.mrb[18].mxu0  ;;  %v2119_v58 = vpop.f32.mrb[18].mxu1 }
 0x10c   :  { %4261 = vst [vmem:[#allocation2_spill] sm:$0xff] %v2109_v47  ;;  %v704_v50 = vadd.f32 %v703_v45, %v702_v44  ;;  %v2113_v51 = vpop.f32.mrb[19].mxu0  ;;  %v2121_v63 = vpop.f32.mrb[19].mxu1  ;;  %v709_v3 = vsel %vm4253_vm2, %v2109_v47, 0.0 }
 0x10d   :  { %v705_v55 = vsel %vm4253_vm2, %v2113_v51, 0.0 }
 0x10e   :  { %v706_v61 = vadd.f32 %v705_v55, %v704_v50 }
 0x110   :  { %v708_v2 = vadd.f32 %v707_v1, %v706_v61 }
 0x111   :  { %v2127_v6 = vpop.f32.mrb[20].mxu0  ;;  %v2135_v17 = vpop.f32.mrb[20].mxu1 }
 0x112   :  { %4262 = vst [vmem:[#allocation3_spill] sm:$0xff] %v2127_v6  ;;  %v2129_v7 = vpop.f32.mrb[21].mxu0  ;;  %v710_v10 = vadd.f32 %v709_v3, %v708_v2  ;;  %v2139_v22 = vpop.f32.mrb[21].mxu1  ;;  %v715_v33 = vsel %vm4253_vm2, %v2127_v6, 0.0 }
 0x113   :  { %4263 = vst [vmem:[#allocation4_spill] sm:$0xff] %v2129_v7  ;;  %v711_v13 = vsel %vm4253_vm2, %v2129_v7, 0.0  ;;  %v2133_v15 = vpop.f32.mrb[22].mxu0  ;;  %v2143_v26 = vpop.f32.mrb[22].mxu1 }
 0x114   :  { %4264 = vst [vmem:[#allocation5_spill] sm:$0xff] %v2133_v15  ;;  %v712_v18 = vadd.f32 %v711_v13, %v710_v10  ;;  %v2137_v19 = vpop.f32.mrb[23].mxu0  ;;  %v2145_v31 = vpop.f32.mrb[23].mxu1  ;;  %v717_v35 = vsel %vm4253_vm2, %v2133_v15, 0.0 }
 0x115   :  { %4265 = vst [vmem:[#allocation6_spill] sm:$0xff] %v2137_v19  ;;  %v713_v23 = vsel %vm4253_vm2, %v2137_v19, 0.0 }
 0x116   :  { %v714_v29 = vadd.f32 %v713_v23, %v712_v18 }
 0x118   :  { %v716_v34 = vadd.f32 %v715_v33, %v714_v29 }
 0x119   :  { %v2151_v44 = vpop.f32.mrb[24].mxu0  ;;  %v2159_v1 = vpop.f32.mrb[24].mxu1 }
 0x11a   :  { %4266 = vst [vmem:[#allocation7_spill] sm:$0xff] %v2151_v44  ;;  %v2153_v45 = vpop.f32.mrb[25].mxu0  ;;  %v718_v50 = vadd.f32 %v717_v35, %v716_v34  ;;  %4269 = vst [vmem:[#allocation10_spill] sm:$0xff] %v2159_v1  ;;  %v2163_v10 = vpop.f32.mrb[25].mxu1  ;;  %v723_v33 = vsel %vm4253_vm2, %v2151_v44, 0.0 }
 0x11b   :  { %4267 = vst [vmem:[#allocation8_spill] sm:$0xff] %v2153_v45  ;;  %v719_v55 = vsel %vm4253_vm2, %v2153_v45, 0.0  ;;  %v2157_v61 = vpop.f32.mrb[26].mxu0  ;;  %v2167_v18 = vpop.f32.mrb[26].mxu1 }
 0x11c   :  { %4268 = vst [vmem:[#allocation9_spill] sm:$0xff] %v2157_v61  ;;  %v720_v2 = vadd.f32 %v719_v55, %v718_v50  ;;  %v2161_v3 = vpop.f32.mrb[27].mxu0  ;;  %4271 = vst [vmem:[#allocation12_spill] sm:$0xff] %v2167_v18  ;;  %v2169_v29 = vpop.f32.mrb[27].mxu1  ;;  %v725_v35 = vsel %vm4253_vm2, %v2157_v61, 0.0 }
 0x11d   :  { %4270 = vst [vmem:[#allocation11_spill] sm:$0xff] %v2161_v3  ;;  %v721_v13 = vsel %vm4253_vm2, %v2161_v3, 0.0  ;;  %4272 = vst [vmem:[#allocation13_spill] sm:$0xff] %v2169_v29 }
 0x11e   :  { %v722_v23 = vadd.f32 %v721_v13, %v720_v2 }
 0x120   :  { %v724_v34 = vadd.f32 %v723_v33, %v722_v23 }
 0x121   :  { %v2175_v50 = vpop.f32.mrb[28].mxu0  ;;  %v2183_v2 = vpop.f32.mrb[28].mxu1 }
 0x122   :  { %4273 = vst [vmem:[#allocation14_spill] sm:$0xff] %v2175_v50  ;;  %v2177_v55 = vpop.f32.mrb[29].mxu0  ;;  %v726_v45 = vadd.f32 %v725_v35, %v724_v34  ;;  %v2187_v44 = vpop.f32.mrb[29].mxu1  ;;  %v731_v34 = vsel %vm4253_vm2, %v2175_v50, 0.0  ;;  %v741_v50 = vsel %vm4253_vm2, %v2023_v46, 0.0 }
 0x123   :  { %4274 = vst [vmem:[#allocation15_spill] sm:$0xff] %v2177_v55  ;;  %v727_v3 = vsel %vm4253_vm2, %v2177_v55, 0.0  ;;  %v2181_v15 = vpop.f32.mrb[30].mxu0  ;;  %4277 = vst [vmem:[#allocation18_spill] sm:$0xff] %v2187_v44  ;;  %v2191_v33 = vpop.f32.mrb[30].mxu1 }
 0x124   :  { %4275 = vst [vmem:[#allocation16_spill] sm:$0xff] %v2181_v15  ;;  %v728_v13 = vadd.f32 %v727_v3, %v726_v45  ;;  %v2185_v6 = vpop.f32.mrb[31].mxu0  ;;  %v2193_v19 = vpop.f32.mrb[31].mxu1  ;;  %v733_v55 = vsel %vm4253_vm2, %v2181_v15, 0.0  ;;  %v735_v45 = vsel %vm4253_vm2, %v2017_v43, 0.0 }
 0x125   :  { %4276 = vst [vmem:[#allocation17_spill] sm:$0xff] %v2185_v6  ;;  %v729_v23 = vsel %vm4253_vm2, %v2185_v6, 0.0  ;;  %v737_v6 = vsel %vm4253_vm2, %v2025_v48, 0.0 }
 0x126   :  { %v730_v61 = vadd.f32 %v729_v23, %v728_v13  ;;  %v739_v13 = vsel %vm4253_vm2, %v2013_v41, 0.0 }
 0x128   :  { %v732_v35 = vadd.f32 %v731_v34, %v730_v61  ;;  %v743_v61 = vsel %vm4253_vm2, %v2043_v60, 0.0 }
 0x12a   :  { %v734_v3 = vadd.f32 %v733_v55, %v732_v35  ;;  %v745_v55 = vsel %vm4253_vm2, %v2049_v0, 0.0 }
 0x12c   :  { %v736_v7 = vadd.f32 %v735_v45, %v734_v3  ;;  %v747_v45 = vsel %vm4253_vm2, %v2039_v57, 0.0 }
 0x12e   :  { %v738_v47 = vadd.f32 %v737_v6, %v736_v7  ;;  %v749_v7 = vsel %vm4253_vm2, %v2047_v62, 0.0 }
 0x130   :  { %v740_v23 = vadd.f32 %v739_v13, %v738_v47  ;;  %v751_v47 = vsel %vm4253_vm2, %v2067_v12, 0.0 }
 0x132   :  { %v742_v34 = vadd.f32 %v741_v50, %v740_v23  ;;  %v753_v50 = vsel %vm4253_vm2, %v2073_v16, 0.0 }
 0x134   :  { %v744_v15 = vadd.f32 %v743_v61, %v742_v34  ;;  %v755_v61 = vsel %vm4253_vm2, %v2063_v9, 0.0  ;;  %v757_v34 = vsel %vm4253_vm2, %v2071_v14, 0.0 }
 0x136   :  { %v746_v35 = vadd.f32 %v745_v55, %v744_v15  ;;  %v759_v55 = vsel %vm4253_vm2, %v2091_v28, 0.0 }
 0x138   :  { %v748_v6 = vadd.f32 %v747_v45, %v746_v35 }
 0x13a   :  { %v750_v3 = vadd.f32 %v749_v7, %v748_v6  ;;  %v761_v6 = vsel %vm4253_vm2, %v2097_v32, 0.0 }
 0x13c   :  { %v752_v13 = vadd.f32 %v751_v47, %v750_v3  ;;  %v763_v47 = vsel %vm4253_vm2, %v2087_v25, 0.0 }
 0x13e   :  { %v754_v23 = vadd.f32 %v753_v50, %v752_v13  ;;  %v765_v13 = vsel %vm4253_vm2, %v2095_v30, 0.0  ;;  %v767_v50 = vsel %vm4253_vm2, %v2115_v54, 0.0 }
 0x140   :  { %v756_v15 = vadd.f32 %v755_v61, %v754_v23 }
 0x142   :  { %v758_v35 = vadd.f32 %v757_v34, %v756_v15  ;;  %v769_v15 = vsel %vm4253_vm2, %v2121_v63, 0.0 }
 0x144   :  { %v760_v45 = vadd.f32 %v759_v55, %v758_v35  ;;  %v771_v55 = vsel %vm4253_vm2, %v2111_v49, 0.0 }
 0x146   :  { %v762_v7 = vadd.f32 %v761_v6, %v760_v45  ;;  %v773_v45 = vsel %vm4253_vm2, %v2119_v58, 0.0  ;;  %v775_v6 = vsel %vm4253_vm2, %v2139_v22, 0.0 }
 0x148   :  { %v764_v3 = vadd.f32 %v763_v47, %v762_v7 }
 0x14a   :  { %v766_v23 = vadd.f32 %v765_v13, %v764_v3  ;;  %v777_v3 = vsel %vm4253_vm2, %v2145_v31, 0.0 }
 0x14c   :  { %v768_v61 = vadd.f32 %v767_v50, %v766_v23  ;;  %v779_v50 = vsel %vm4253_vm2, %v2135_v17, 0.0 }
 0x14e   :  { %v770_v34 = vadd.f32 %v769_v15, %v768_v61  ;;  %v781_v61 = vsel %vm4253_vm2, %v2143_v26, 0.0  ;;  %v783_v15 = vsel %vm4253_vm2, %v2163_v10, 0.0 }
 0x150   :  { %v772_v35 = vadd.f32 %v771_v55, %v770_v34 }
 0x152   :  { %v774_v7 = vadd.f32 %v773_v45, %v772_v35  ;;  %v785_v35 = vsel %vm4253_vm2, %v2169_v29, 0.0 }
 0x154   :  { %v776_v47 = vadd.f32 %v775_v6, %v774_v7  ;;  %v787_v6 = vsel %vm4253_vm2, %v2159_v1, 0.0 }
 0x156   :  { %v778_v13 = vadd.f32 %v777_v3, %v776_v47  ;;  %v789_v47 = vsel %vm4253_vm2, %v2167_v18, 0.0  ;;  %v791_v3 = vsel %vm4253_vm2, %v2187_v44, 0.0 }
 0x158   :  { %v780_v23 = vadd.f32 %v779_v50, %v778_v13 }
 0x15a   :  { %v782_v34 = vadd.f32 %v781_v61, %v780_v23  ;;  %v793_v23 = vsel %vm4253_vm2, %v2193_v19, 0.0 }
 0x15c   :  { %v784_v55 = vadd.f32 %v783_v15, %v782_v34  ;;  %v795_v15 = vsel %vm4253_vm2, %v2183_v2, 0.0 }
 0x15e   :  { %v786_v45 = vadd.f32 %v785_v35, %v784_v55  ;;  %v797_v55 = vsel %vm4253_vm2, %v2191_v33, 0.0 }
 0x160   :  { %v788_v7 = vadd.f32 %v787_v6, %v786_v45 }
 0x162   :  { %v790_v13 = vadd.f32 %v789_v47, %v788_v7 }
 0x164   :  { %v792_v50 = vadd.f32 %v791_v3, %v790_v13 }
 0x166   :  { %v794_v61 = vadd.f32 %v793_v23, %v792_v50  ;;  %v4286_v23 = vld [vmem:[#allocation3_spill] sm:$0xff] }
 0x168   :  { %v796_v34 = vadd.f32 %v795_v15, %v794_v61  ;;  %v4288_v61 = vld [vmem:[#allocation5_spill] sm:$0xff]  ;;  %v4289_v15 = vld [vmem:[#allocation8_spill] sm:$0xff] }
 0x16a   :  { %v798_v35 = vadd.f32 %v797_v55, %v796_v34  ;;  %v4291_v55 = vld [vmem:[#allocation11_spill] sm:$0xff] }
 0x16c   :  { %v799_v45 = vrot.slane %v798_v35, 4 }
 0x16e   :  { %v800_v6 = vadd.f32 %v799_v45, %v798_v35  ;;  %v4293_v45 = vld [vmem:[#allocation7_spill] sm:$0xff] }
 0x170   :  { %v801_v18 = vrot.slane %v800_v6, 2 }
 0x172   :  { %v802_v1 = vadd.f32 %v801_v18, %v800_v6  ;;  %v4283_v18 = vld [vmem:[#allocation4_spill] sm:$0xff] }
 0x174   :  { %v803_v29 = vrot.slane %v802_v1, 1 }
 0x176   :  { %v804_v44 = vadd.f32 %v803_v29, %v802_v1  ;;  %v4282_v1 = vld [vmem:[#allocation2_spill] sm:$0xff] }
 0x177   :  { %v4284_v29 = vld [vmem:[#allocation6_spill] sm:$0xff] }
 0x178   :  { %v2263_v7 = vmul.f32 0.001953125, %v804_v44 }
 0x17a   :  { %v2267_v47 = vsub.f32 %v2009_v39, %v2263_v7  ;;  %v2271_v3 = vsub.f32 %v2015_v42, %v2263_v7  ;;  %v2275_v13 = vsub.f32 %v2007_v38, %v2263_v7  ;;  %v2279_v50 = vsub.f32 %v2011_v40, %v2263_v7 }
 0x17b   :  { %v2283_v44 = vsub.f32 %v2033_v53, %v2263_v7  ;;  %v2287_v39 = vsub.f32 %v2041_v59, %v2263_v7  ;;  %v2291_v42 = vsub.f32 %v2031_v52, %v2263_v7  ;;  %v2295_v38 = vsub.f32 %v2037_v56, %v2263_v7 }
 0x17c   :  { %4278 = vst [vmem:[#allocation19_spill] sm:$0xff] %v2267_v47  ;;  %4279 = vst [vmem:[#allocation20_spill] sm:$0xff] %v2271_v3  ;;  %v2299_v40 = vsub.f32 %v2057_v5, %v2263_v7  ;;  %v2303_v53 = vsub.f32 %v2065_v11, %v2263_v7  ;;  %v2307_v59 = vsub.f32 %v2055_v4, %v2263_v7 }
 0x17d   :  { %4280 = vst [vmem:[#allocation21_spill] sm:$0xff] %v2275_v13  ;;  %4281 = vst [vmem:[#allocation22_spill] sm:$0xff] %v2279_v50  ;;  %v2311_v52 = vsub.f32 %v2061_v8, %v2263_v7  ;;  %v2315_v56 = vsub.f32 %v2081_v21, %v2263_v7  ;;  %v2319_v5 = vsub.f32 %v2089_v27, %v2263_v7 }
 0x17e   :  { %v2323_v11 = vsub.f32 %v2079_v20, %v2263_v7  ;;  %v2327_v4 = vsub.f32 %v2085_v24, %v2263_v7  ;;  %v2331_v8 = vsub.f32 %v2105_v37, %v2263_v7  ;;  %v2335_v21 = vsub.f32 %v2113_v51, %v2263_v7 }
 0x17f   :  { %v2339_v27 = vsub.f32 %v2103_v36, %v2263_v7  ;;  %v2343_v20 = vsub.f32 %v4282_v1, %v2263_v7  ;;  %v2347_v24 = vsub.f32 %v4283_v18, %v2263_v7  ;;  %v2351_v37 = vsub.f32 %v4284_v29, %v2263_v7  ;;  %v4294_v1 = vld [vmem:[#allocation9_spill] sm:$0xff]  ;;  %v4295_v29 = vld [vmem:[#allocation15_spill] sm:$0xff] }
 0x180   :  { %v2355_v51 = vsub.f32 %v4286_v23, %v2263_v7  ;;  %v2359_v36 = vsub.f32 %v4288_v61, %v2263_v7  ;;  %v2363_v34 = vsub.f32 %v4289_v15, %v2263_v7  ;;  %v2367_v35 = vsub.f32 %v4291_v55, %v2263_v7  ;;  %v4296_v61 = vld [vmem:[#allocation17_spill] sm:$0xff] }
 0x181   :  { %4285 = vst [vmem:[#allocation2_spill] sm:$0xff] %v2351_v37  ;;  %v2371_v6 = vsub.f32 %v4293_v45, %v2263_v7  ;;  %v2375_v18 = vsub.f32 %v4294_v1, %v2263_v7  ;;  %v2379_v23 = vsub.f32 %v4295_v29, %v2263_v7  ;;  %v2383_v15 = vsub.f32 %v4296_v61, %v2263_v7 }
 0x182   :  { %4287 = vst [vmem:[#allocation4_spill] sm:$0xff] %v2355_v51  ;;  %4290 = vst [vmem:[#allocation6_spill] sm:$0xff] %v2363_v34  ;;  %v4297_v34 = vld [vmem:[#allocation14_spill] sm:$0xff]  ;;  %v2395_v1 = vsub.f32 %v2017_v43, %v2263_v7  ;;  %v2399_v29 = vsub.f32 %v2025_v48, %v2263_v7  ;;  %v2403_v61 = vsub.f32 %v2013_v41, %v2263_v7 }
 0x183   :  { %4292 = vst [vmem:[#allocation3_spill] sm:$0xff] %v2367_v35  ;;  %v2387_v55 = vsub.f32 %v4297_v34, %v2263_v7  ;;  %v4298_v35 = vld [vmem:[#allocation16_spill] sm:$0xff]  ;;  %v2407_v34 = vsub.f32 %v2023_v46, %v2263_v7  ;;  %v2415_v43 = vsub.f32 %v2049_v0, %v2263_v7  ;;  %v2419_v48 = vsub.f32 %v2039_v57, %v2263_v7 }
 0x184   :  { %v2391_v45 = vsub.f32 %v4298_v35, %v2263_v7  ;;  %v2411_v35 = vsub.f32 %v2043_v60, %v2263_v7  ;;  %v2423_v41 = vsub.f32 %v2047_v62, %v2263_v7  ;;  %v2427_v46 = vsub.f32 %v2067_v12, %v2263_v7 }
 0x185   :  { %v2431_v60 = vsub.f32 %v2073_v16, %v2263_v7  ;;  %v2435_v0 = vsub.f32 %v2063_v9, %v2263_v7  ;;  %v2439_v57 = vsub.f32 %v2071_v14, %v2263_v7  ;;  %v2443_v62 = vsub.f32 %v2091_v28, %v2263_v7 }
 0x186   :  { %v2447_v12 = vsub.f32 %v2097_v32, %v2263_v7  ;;  %v2451_v16 = vsub.f32 %v2087_v25, %v2263_v7  ;;  %v2455_v9 = vsub.f32 %v2095_v30, %v2263_v7  ;;  %v2459_v14 = vsub.f32 %v2115_v54, %v2263_v7 }
 0x187   :  { %4299 = vst [vmem:[#allocation5_spill] sm:$0xff] %v2431_v60  ;;  %4300 = vst [vmem:[#allocation8_spill] sm:$0xff] %v2435_v0  ;;  %v2463_v28 = vsub.f32 %v2121_v63, %v2263_v7  ;;  %v2467_v32 = vsub.f32 %v2111_v49, %v2263_v7  ;;  %v2471_v25 = vsub.f32 %v2119_v58, %v2263_v7 }
 0x188   :  { %4301 = vst [vmem:[#allocation11_spill] sm:$0xff] %v2439_v57  ;;  %4302 = vst [vmem:[#allocation7_spill] sm:$0xff] %v2443_v62  ;;  %v2475_v30 = vsub.f32 %v2139_v22, %v2263_v7  ;;  %v2479_v54 = vsub.f32 %v2145_v31, %v2263_v7  ;;  %v2483_v63 = vsub.f32 %v2135_v17, %v2263_v7 }
 0x189   :  { %4303 = vst [vmem:[#allocation9_spill] sm:$0xff] %v2447_v12  ;;  %4304 = vst [vmem:[#allocation15_spill] sm:$0xff] %v2451_v16  ;;  %v2487_v49 = vsub.f32 %v2143_v26, %v2263_v7  ;;  %v2491_v58 = vsub.f32 %v2163_v10, %v2263_v7  ;;  %v2511_v10 = vsub.f32 %v2193_v19, %v2263_v7 }
 0x18a   :  { %4305 = vst [vmem:[#allocation17_spill] sm:$0xff] %v2455_v9  ;;  %4306 = vst [vmem:[#allocation14_spill] sm:$0xff] %v2459_v14  ;;  %v874_v19 = vmul.f32 %v2279_v50, %v2279_v50  ;;  %v877_v50 = vmul.f32 %v2291_v42, %v2291_v42 }
 0x18b   :  { %4307 = vst [vmem:[#allocation16_spill] sm:$0xff] %v2463_v28  ;;  %4308 = vst [vmem:[#allocation23_spill] sm:$0xff] %v2467_v32 }
 0x18c   :  { %4309 = vst [vmem:[#allocation24_spill] sm:$0xff] %v2471_v25  ;;  %4310 = vst [vmem:[#allocation25_spill] sm:$0xff] %v2475_v30  ;;  %v4314_v25 = vld [vmem:[#allocation13_spill] sm:$0xff]  ;;  %v4315_v30 = vld [vmem:[#allocation10_spill] sm:$0xff] }
 0x18d   :  { %4311 = vst [vmem:[#allocation26_spill] sm:$0xff] %v2479_v54  ;;  %4312 = vst [vmem:[#allocation27_spill] sm:$0xff] %v2483_v63  ;;  %v2495_v22 = vsub.f32 %v4314_v25, %v2263_v7  ;;  %v2499_v31 = vsub.f32 %v4315_v30, %v2263_v7  ;;  %v4316_v54 = vld [vmem:[#allocation12_spill] sm:$0xff]  ;;  %v4318_v63 = vld [vmem:[#allocation18_spill] sm:$0xff]  ;;  %v2515_v25 = vsub.f32 %v2183_v2, %v2263_v7 }
 0x18e   :  { %4313 = vst [vmem:[#allocation28_spill] sm:$0xff] %v2487_v49  ;;  %v2503_v17 = vsub.f32 %v4316_v54, %v2263_v7  ;;  %v2507_v26 = vsub.f32 %v4318_v63, %v2263_v7  ;;  %4320 = vst [vmem:[#allocation12_spill] sm:$0xff] %v2511_v10  ;;  %v2519_v30 = vsub.f32 %v2191_v33, %v2263_v7 }
 0x18f   :  { %4321 = vst [vmem:[#allocation18_spill] sm:$0xff] %v2515_v25  ;;  %v871_v54 = vmul.f32 %v2267_v47, %v2267_v47  ;;  %v873_v63 = vmul.f32 %v2275_v13, %v2275_v13  ;;  %v875_v33 = vmul.f32 %v2283_v44, %v2283_v44 }
 0x190   :  { %4317 = vst [vmem:[#allocation13_spill] sm:$0xff] %v2503_v17  ;;  %4319 = vst [vmem:[#allocation10_spill] sm:$0xff] %v2507_v26  ;;  %v872_v17 = vmul.f32 %v2271_v3, %v2271_v3  ;;  %v876_v3 = vmul.f32 %v2287_v39, %v2287_v39 }
 0x191   :  { %4322 = vst [vmem:[#allocation29_spill] sm:$0xff] %v2519_v30  ;;  %v935_v10 = vsel %vm4253_vm2, %v871_v54, 0.0  ;;  %v938_v7 = vsel %vm4253_vm2, %v873_v63, 0.0  ;;  %v940_v30 = vsel %vm4253_vm2, %v874_v19, 0.0  ;;  %v942_v54 = vsel %vm4253_vm2, %v875_v33, 0.0 }
 0x192   :  { %v936_v2 = vsel %vm4253_vm2, %v872_v17, 0.0  ;;  %v878_v17 = vmul.f32 %v2295_v38, %v2295_v38  ;;  %v946_v63 = vsel %vm4253_vm2, %v877_v50, 0.0  ;;  %v883_v50 = vmul.f32 %v2315_v56, %v2315_v56 }
 0x193   :  { %v937_v25 = vadd.f32 %v936_v2, %v935_v10  ;;  %v944_v10 = vsel %vm4253_vm2, %v876_v3, 0.0  ;;  %v882_v3 = vmul.f32 %v2311_v52, %v2311_v52 }
 0x195   :  { %v939_v47 = vadd.f32 %v938_v7, %v937_v25  ;;  %v879_v25 = vmul.f32 %v2299_v40, %v2299_v40 }
 0x197   :  { %v941_v13 = vadd.f32 %v940_v30, %v939_v47  ;;  %v880_v47 = vmul.f32 %v2303_v53, %v2303_v53  ;;  %v948_v30 = vsel %vm4253_vm2, %v878_v17, 0.0  ;;  %v950_v33 = vsel %vm4253_vm2, %v879_v25, 0.0 }
 0x198   :  { %v884_v17 = vmul.f32 %v2319_v5, %v2319_v5  ;;  %v885_v25 = vmul.f32 %v2323_v11, %v2323_v11 }
 0x199   :  { %v943_v26 = vadd.f32 %v942_v54, %v941_v13  ;;  %v881_v13 = vmul.f32 %v2307_v59, %v2307_v59 }
 0x19b   :  { %v945_v2 = vadd.f32 %v944_v10, %v943_v26  ;;  %v952_v26 = vsel %vm4253_vm2, %v880_v47, 0.0  ;;  %v886_v47 = vmul.f32 %v2327_v4, %v2327_v4 }
 0x19d   :  { %v947_v7 = vadd.f32 %v946_v63, %v945_v2  ;;  %v954_v2 = vsel %vm4253_vm2, %v881_v13, 0.0  ;;  %v887_v13 = vmul.f32 %v2331_v8, %v2331_v8 }
 0x19f   :  { %v949_v19 = vadd.f32 %v948_v30, %v947_v7  ;;  %v956_v7 = vsel %vm4253_vm2, %v882_v3, 0.0  ;;  %v888_v3 = vmul.f32 %v2335_v21, %v2335_v21 }
 0x1a1   :  { %v951_v54 = vadd.f32 %v950_v33, %v949_v19  ;;  %v958_v19 = vsel %vm4253_vm2, %v883_v50, 0.0  ;;  %v889_v50 = vmul.f32 %v2339_v27, %v2339_v27 }
 0x1a3   :  { %v953_v10 = vadd.f32 %v952_v26, %v951_v54  ;;  %v960_v54 = vsel %vm4253_vm2, %v884_v17, 0.0  ;;  %v890_v17 = vmul.f32 %v2343_v20, %v2343_v20 }
 0x1a5   :  { %v955_v63 = vadd.f32 %v954_v2, %v953_v10  ;;  %v962_v10 = vsel %vm4253_vm2, %v885_v25, 0.0  ;;  %v891_v25 = vmul.f32 %v2347_v24, %v2347_v24 }
 0x1a7   :  { %v957_v30 = vadd.f32 %v956_v7, %v955_v63  ;;  %v964_v63 = vsel %vm4253_vm2, %v886_v47, 0.0  ;;  %v892_v47 = vmul.f32 %v2351_v37, %v2351_v37 }
 0x1a9   :  { %v959_v33 = vadd.f32 %v958_v19, %v957_v30  ;;  %v966_v30 = vsel %vm4253_vm2, %v887_v13, 0.0  ;;  %v893_v13 = vmul.f32 %v2355_v51, %v2355_v51 }
 0x1ab   :  { %v961_v26 = vadd.f32 %v960_v54, %v959_v33  ;;  %v968_v33 = vsel %vm4253_vm2, %v888_v3, 0.0  ;;  %v894_v3 = vmul.f32 %v2359_v36, %v2359_v36 }
 0x1ad   :  { %v963_v2 = vadd.f32 %v962_v10, %v961_v26  ;;  %v970_v26 = vsel %vm4253_vm2, %v889_v50, 0.0  ;;  %v4323_v50 = vld [vmem:[#allocation6_spill] sm:$0xff] }
 0x1af   :  { %v965_v7 = vadd.f32 %v964_v63, %v963_v2  ;;  %v972_v2 = vsel %vm4253_vm2, %v890_v17, 0.0  ;;  %v4324_v17 = vld [vmem:[#allocation3_spill] sm:$0xff] }
 0x1b1   :  { %v967_v19 = vadd.f32 %v966_v30, %v965_v7  ;;  %v974_v7 = vsel %vm4253_vm2, %v891_v25, 0.0  ;;  %v897_v25 = vmul.f32 %v2371_v6, %v2371_v6 }
 0x1b3   :  { %v969_v54 = vadd.f32 %v968_v33, %v967_v19  ;;  %v976_v19 = vsel %vm4253_vm2, %v892_v47, 0.0  ;;  %v898_v47 = vmul.f32 %v2375_v18, %v2375_v18 }
 0x1b5   :  { %v971_v10 = vadd.f32 %v970_v26, %v969_v54  ;;  %v895_v54 = vmul.f32 %v4323_v50, %v4323_v50  ;;  %v978_v26 = vsel %vm4253_vm2, %v893_v13, 0.0  ;;  %v899_v13 = vmul.f32 %v2379_v23, %v2379_v23 }
 0x1b7   :  { %v973_v63 = vadd.f32 %v972_v2, %v971_v10  ;;  %v896_v10 = vmul.f32 %v4324_v17, %v4324_v17  ;;  %v980_v2 = vsel %vm4253_vm2, %v894_v3, 0.0  ;;  %v988_v3 = vsel %vm4253_vm2, %v898_v47, 0.0 }
 0x1b8   :  { %v904_v47 = vmul.f32 %v2399_v29, %v2399_v29 }
 0x1b9   :  { %v975_v30 = vadd.f32 %v974_v7, %v973_v63  ;;  %v982_v63 = vsel %vm4253_vm2, %v895_v54, 0.0  ;;  %v990_v54 = vsel %vm4253_vm2, %v899_v13, 0.0  ;;  %v905_v13 = vmul.f32 %v2403_v61, %v2403_v61 }
 0x1bb   :  { %v977_v33 = vadd.f32 %v976_v19, %v975_v30  ;;  %v984_v30 = vsel %vm4253_vm2, %v896_v10, 0.0  ;;  %v902_v10 = vmul.f32 %v2391_v45, %v2391_v45 }
 0x1bd   :  { %v979_v37 = vadd.f32 %v978_v26, %v977_v33  ;;  %v986_v33 = vsel %vm4253_vm2, %v897_v25, 0.0  ;;  %v903_v25 = vmul.f32 %v2395_v1, %v2395_v1 }
 0x1bf   :  { %v981_v51 = vadd.f32 %v980_v2, %v979_v37  ;;  %v900_v37 = vmul.f32 %v2383_v15, %v2383_v15 }
 0x1c1   :  { %v983_v7 = vadd.f32 %v982_v63, %v981_v51  ;;  %v901_v51 = vmul.f32 %v2387_v55, %v2387_v55 }
 0x1c3   :  { %v985_v19 = vadd.f32 %v984_v30, %v983_v7  ;;  %v992_v7 = vsel %vm4253_vm2, %v900_v37, 0.0  ;;  %v906_v37 = vmul.f32 %v2407_v34, %v2407_v34 }
 0x1c5   :  { %v987_v26 = vadd.f32 %v986_v33, %v985_v19  ;;  %v994_v19 = vsel %vm4253_vm2, %v901_v51, 0.0  ;;  %v907_v51 = vmul.f32 %v2411_v35, %v2411_v35 }
 0x1c7   :  { %v989_v2 = vadd.f32 %v988_v3, %v987_v26  ;;  %v996_v26 = vsel %vm4253_vm2, %v902_v10, 0.0  ;;  %v908_v10 = vmul.f32 %v2415_v43, %v2415_v43 }
 0x1c9   :  { %v991_v63 = vadd.f32 %v990_v54, %v989_v2  ;;  %v998_v2 = vsel %vm4253_vm2, %v903_v25, 0.0  ;;  %v909_v25 = vmul.f32 %v2419_v48, %v2419_v48 }
 0x1cb   :  { %v993_v30 = vadd.f32 %v992_v7, %v991_v63  ;;  %v1000_v63 = vsel %vm4253_vm2, %v904_v47, 0.0  ;;  %v910_v47 = vmul.f32 %v2423_v41, %v2423_v41 }
 0x1cd   :  { %v995_v33 = vadd.f32 %v994_v19, %v993_v30  ;;  %v1002_v30 = vsel %vm4253_vm2, %v905_v13, 0.0  ;;  %v911_v13 = vmul.f32 %v2427_v46, %v2427_v46 }
 0x1cf   :  { %v997_v3 = vadd.f32 %v996_v26, %v995_v33  ;;  %v1004_v33 = vsel %vm4253_vm2, %v906_v37, 0.0  ;;  %v912_v37 = vmul.f32 %v2431_v60, %v2431_v60 }
 0x1d1   :  { %v999_v54 = vadd.f32 %v998_v2, %v997_v3  ;;  %v1006_v3 = vsel %vm4253_vm2, %v907_v51, 0.0  ;;  %v913_v51 = vmul.f32 %v2435_v0, %v2435_v0 }
 0x1d3   :  { %v1001_v7 = vadd.f32 %v1000_v63, %v999_v54  ;;  %v1008_v54 = vsel %vm4253_vm2, %v908_v10, 0.0  ;;  %v914_v10 = vmul.f32 %v2439_v57, %v2439_v57 }
 0x1d5   :  { %v1003_v19 = vadd.f32 %v1002_v30, %v1001_v7  ;;  %v1010_v7 = vsel %vm4253_vm2, %v909_v25, 0.0  ;;  %v915_v25 = vmul.f32 %v2443_v62, %v2443_v62 }
 0x1d7   :  { %v1005_v26 = vadd.f32 %v1004_v33, %v1003_v19  ;;  %v1012_v19 = vsel %vm4253_vm2, %v910_v47, 0.0  ;;  %v916_v47 = vmul.f32 %v2447_v12, %v2447_v12 }
 0x1d9   :  { %v1007_v2 = vadd.f32 %v1006_v3, %v1005_v26  ;;  %v1014_v26 = vsel %vm4253_vm2, %v911_v13, 0.0  ;;  %v917_v13 = vmul.f32 %v2451_v16, %v2451_v16 }
 0x1db   :  { %v1009_v63 = vadd.f32 %v1008_v54, %v1007_v2  ;;  %v1016_v2 = vsel %vm4253_vm2, %v912_v37, 0.0  ;;  %v918_v37 = vmul.f32 %v2455_v9, %v2455_v9 }
 0x1dd   :  { %v1011_v30 = vadd.f32 %v1010_v7, %v1009_v63  ;;  %v1018_v63 = vsel %vm4253_vm2, %v913_v51, 0.0  ;;  %v919_v51 = vmul.f32 %v2459_v14, %v2459_v14 }
 0x1df   :  { %v1013_v33 = vadd.f32 %v1012_v19, %v1011_v30  ;;  %v1020_v30 = vsel %vm4253_vm2, %v914_v10, 0.0  ;;  %v920_v10 = vmul.f32 %v2463_v28, %v2463_v28 }
 0x1e1   :  { %v1015_v3 = vadd.f32 %v1014_v26, %v1013_v33  ;;  %v1022_v33 = vsel %vm4253_vm2, %v915_v25, 0.0  ;;  %v921_v25 = vmul.f32 %v2467_v32, %v2467_v32 }
 0x1e3   :  { %v1017_v54 = vadd.f32 %v1016_v2, %v1015_v3  ;;  %v1024_v3 = vsel %vm4253_vm2, %v916_v47, 0.0  ;;  %v4325_v47 = vld [vmem:[#allocation24_spill] sm:$0xff] }
 0x1e5   :  { %v1019_v7 = vadd.f32 %v1018_v63, %v1017_v54  ;;  %v1026_v54 = vsel %vm4253_vm2, %v917_v13, 0.0  ;;  %v4326_v13 = vld [vmem:[#allocation25_spill] sm:$0xff] }
 0x1e7   :  { %v1021_v19 = vadd.f32 %v1020_v30, %v1019_v7  ;;  %v1028_v7 = vsel %vm4253_vm2, %v918_v37, 0.0  ;;  %v4327_v37 = vld [vmem:[#allocation26_spill] sm:$0xff] }
 0x1e9   :  { %v1023_v26 = vadd.f32 %v1022_v33, %v1021_v19  ;;  %v1030_v19 = vsel %vm4253_vm2, %v919_v51, 0.0  ;;  %v4328_v51 = vld [vmem:[#allocation27_spill] sm:$0xff] }
 0x1eb   :  { %v1025_v2 = vadd.f32 %v1024_v3, %v1023_v26  ;;  %v922_v26 = vmul.f32 %v4325_v47, %v4325_v47  ;;  %v1032_v3 = vsel %vm4253_vm2, %v920_v10, 0.0  ;;  %v926_v10 = vmul.f32 %v2487_v49, %v2487_v49 }
 0x1ed   :  { %v1027_v63 = vadd.f32 %v1026_v54, %v1025_v2  ;;  %v923_v2 = vmul.f32 %v4326_v13, %v4326_v13  ;;  %v1034_v54 = vsel %vm4253_vm2, %v921_v25, 0.0 }
 0x1ef   :  { %v1029_v30 = vadd.f32 %v1028_v7, %v1027_v63  ;;  %v924_v63 = vmul.f32 %v4327_v37, %v4327_v37  ;;  %v1036_v7 = vsel %vm4253_vm2, %v922_v26, 0.0  ;;  %v1044_v26 = vsel %vm4253_vm2, %v926_v10, 0.0  ;;  %v4331_v10 = vld [vmem:[#allocation12_spill] sm:$0xff] }
 0x1f1   :  { %v1031_v33 = vadd.f32 %v1030_v19, %v1029_v30  ;;  %v925_v30 = vmul.f32 %v4328_v51, %v4328_v51  ;;  %v1038_v19 = vsel %vm4253_vm2, %v923_v2, 0.0 }
 0x1f3   :  { %v1033_v14 = vadd.f32 %v1032_v3, %v1031_v33  ;;  %v1040_v33 = vsel %vm4253_vm2, %v924_v63, 0.0  ;;  %v1042_v25 = vsel %vm4253_vm2, %v925_v30, 0.0  ;;  %v4329_v63 = vld [vmem:[#allocation13_spill] sm:$0xff]  ;;  %v4330_v30 = vld [vmem:[#allocation10_spill] sm:$0xff] }
 0x1f5   :  { %v1035_v28 = vadd.f32 %v1034_v54, %v1033_v14  ;;  %v927_v14 = vmul.f32 %v2491_v58, %v2491_v58 }
 0x1f7   :  { %v1037_v32 = vadd.f32 %v1036_v7, %v1035_v28  ;;  %v928_v28 = vmul.f32 %v2495_v22, %v2495_v22  ;;  %v1046_v2 = vsel %vm4253_vm2, %v927_v14, 0.0  ;;  %v4332_v14 = vld [vmem:[#allocation18_spill] sm:$0xff] }
 0x1f9   :  { %v1039_v47 = vadd.f32 %v1038_v19, %v1037_v32  ;;  %v929_v32 = vmul.f32 %v2499_v31, %v2499_v31 }
 0x1fb   :  { %v1041_v3 = vadd.f32 %v1040_v33, %v1039_v47  ;;  %v930_v47 = vmul.f32 %v4329_v63, %v4329_v63  ;;  %v1048_v33 = vsel %vm4253_vm2, %v928_v28, 0.0  ;;  %v4333_v28 = vld [vmem:[#allocation29_spill] sm:$0xff] }
 0x1fd   :  { %v1043_v54 = vadd.f32 %v1042_v25, %v1041_v3  ;;  %v931_v3 = vmul.f32 %v4330_v30, %v4330_v30  ;;  %v1050_v25 = vsel %vm4253_vm2, %v929_v32, 0.0 }
 0x1ff   :  { %v1045_v7 = vadd.f32 %v1044_v26, %v1043_v54  ;;  %v932_v54 = vmul.f32 %v4331_v10, %v4331_v10  ;;  %v1052_v26 = vsel %vm4253_vm2, %v930_v47, 0.0 }
 0x201   :  { %v1047_v19 = vadd.f32 %v1046_v2, %v1045_v7  ;;  %v933_v7 = vmul.f32 %v4332_v14, %v4332_v14  ;;  %v1054_v2 = vsel %vm4253_vm2, %v931_v3, 0.0 }
 0x203   :  { %v1049_v49 = vadd.f32 %v1048_v33, %v1047_v19  ;;  %v934_v19 = vmul.f32 %v4333_v28, %v4333_v28  ;;  %v1056_v33 = vsel %vm4253_vm2, %v932_v54, 0.0 }
 0x205   :  { %v1051_v51 = vadd.f32 %v1050_v25, %v1049_v49  ;;  %v1058_v49 = vsel %vm4253_vm2, %v933_v7, 0.0  ;;  %v1060_v25 = vsel %vm4253_vm2, %v934_v19, 0.0  ;;  %v4343_v19 = vld [vmem:[#allocation20_spill] sm:$0xff] }
 0x207   :  { %v1053_v37 = vadd.f32 %v1052_v26, %v1051_v51 }
 0x209   :  { %v1055_v13 = vadd.f32 %v1054_v2, %v1053_v37  ;;  %v1074_v2 = vlaneseq }
 0x20b   :  { %v1057_v9 = vadd.f32 %v1056_v33, %v1055_v13  ;;  %v1075_v0 = vshrl.u32 %v1074_v2, 7  ;;  %v1069_v13 = vld [vmem:[%s4188_s2] sm:$0x1]  ;;  %v4347_v2 = vld [vmem:[#allocation4_spill] sm:$0xff] }
 0x20d   :  { %v1059_v32 = vadd.f32 %v1058_v49, %v1057_v9  ;;  %v1076_v54 = vsub.s32 0, %v1075_v0 }
 0x20f   :  { %v1061_v16 = vadd.f32 %v1060_v25, %v1059_v32  ;;  %v4345_v32 = vld [vmem:[#allocation22_spill] sm:$0xff] }
 0x211   :  { %v1062_v47 = vrot.slane %v1061_v16, 4 }
 0x213   :  { %v1063_v51 = vadd.f32 %v1062_v47, %v1061_v16 }
 0x215   :  { %v1064_v26 = vrot.slane %v1063_v51, 2 }
 0x217   :  { %v1065_v12 = vadd.f32 %v1064_v26, %v1063_v51 }
 0x219   :  { %v1066_v62 = vrot.slane %v1065_v12, 1 }
 0x21b   :  { %v1067_v57 = vadd.f32 %v1066_v62, %v1065_v12 }
 0x21d   :  { %v1068_v3 = vmul.f32 0.001953125, %v1067_v57 }
 0x21f   :  { %v1070_v37 = vadd.f32 1e-05, %v1068_v3 }
 0x221   :  { %1832 = vrsqrt.f32 %v1070_v37  ;;  %v4346_v37 = vld [vmem:[#allocation2_spill] sm:$0xff] }
 0x22b   :  { %v1833_v60 = vpop.eup %1832 }
 0x22c   :  { %v1072_v9 = vmul.f32 %v1833_v60, %v1069_v13 }
 0x22e   :  { %v2716_v7 = vrot.slane %v1072_v9, %v1076_v54  ;;  %v4348_v54 = vld [vmem:[#allocation5_spill] sm:$0xff] }
 0x230   :  { %v2720_v16 = vmul.f32 %v2716_v7, %v2491_v58  ;;  %v2724_v57 = vmul.f32 %v2716_v7, %v2495_v22  ;;  %v2728_v62 = vmul.f32 %v2716_v7, %v2499_v31  ;;  %v2732_v12 = vmul.f32 %v2716_v7, %v4329_v63  ;;  %v4342_v31 = vld [vmem:[#allocation19_spill] sm:$0xff] }
 0x231   :  { %v2736_v60 = vmul.f32 %v2716_v7, %v4330_v30  ;;  %v2740_v0 = vmul.f32 %v2716_v7, %v4331_v10  ;;  %v2744_v58 = vmul.f32 %v2716_v7, %v4332_v14  ;;  %v2748_v22 = vmul.f32 %v2716_v7, %v4333_v28  ;;  %v4344_v30 = vld [vmem:[#allocation21_spill] sm:$0xff] }
 0x232   :  { %4334 = vst [vmem:[#allocation6_spill] sm:$0xff] %v2720_v16  ;;  %4335 = vst [vmem:[#allocation3_spill] sm:$0xff] %v2724_v57  ;;  %v1079_v63 = vmul.f32 %v2716_v7, %v4342_v31  ;;  %v1080_v33 = vmul.f32 %v2716_v7, %v4343_v19  ;;  %v1081_v49 = vmul.f32 %v2716_v7, %v4344_v30  ;;  %v4349_v31 = vld [vmem:[#allocation8_spill] sm:$0xff]  ;;  %v4350_v19 = vld [vmem:[#allocation11_spill] sm:$0xff] }
 0x233   :  { %4336 = vst [vmem:[#allocation13_spill] sm:$0xff] %v2728_v62  ;;  %4337 = vst [vmem:[#allocation10_spill] sm:$0xff] %v2732_v12  ;;  %v1082_v10 = vmul.f32 %v2716_v7, %v4345_v32  ;;  %v1083_v14 = vmul.f32 %v2716_v7, %v2283_v44  ;;  %v1084_v25 = vmul.f32 %v2716_v7, %v2287_v39  ;;  %v4351_v30 = vld [vmem:[#allocation7_spill] sm:$0xff]  ;;  %v4352_v32 = vld [vmem:[#allocation9_spill] sm:$0xff] }
 0x234   :  { %4338 = vst [vmem:[#allocation12_spill] sm:$0xff] %v2736_v60  ;;  %4339 = vst [vmem:[#allocation18_spill] sm:$0xff] %v2740_v0  ;;  %v1085_v28 = vmul.f32 %v2716_v7, %v2291_v42  ;;  %v1086_v47 = vmul.f32 %v2716_v7, %v2295_v38  ;;  %v1087_v51 = vmul.f32 %v2716_v7, %v2299_v40  ;;  %v4359_v0 = vld [vmem:[#allocation24_spill] sm:$0xff]  ;;  %v4360_v60 = vld [vmem:[#allocation25_spill] sm:$0xff] }
 0x235   :  { %4340 = vst [vmem:[#allocation29_spill] sm:$0xff] %v2744_v58  ;;  %4341 = vst [vmem:[#allocation30_spill] sm:$0xff] %v2748_v22  ;;  %v1088_v26 = vmul.f32 %v2716_v7, %v2303_v53  ;;  %v1089_v3 = vmul.f32 %v2716_v7, %v2307_v59  ;;  %v1090_v44 = vmul.f32 %v2716_v7, %v2311_v52  ;;  %v4357_v22 = vld [vmem:[#allocation16_spill] sm:$0xff]  ;;  %v4358_v58 = vld [vmem:[#allocation23_spill] sm:$0xff] }
 0x236   :  { %v1091_v39 = vmul.f32 %v2716_v7, %v2315_v56  ;;  %v1092_v42 = vmul.f32 %v2716_v7, %v2319_v5  ;;  %v1093_v38 = vmul.f32 %v2716_v7, %v2323_v11  ;;  %v1094_v40 = vmul.f32 %v2716_v7, %v2327_v4  ;;  %v4361_v62 = vld [vmem:[#allocation26_spill] sm:$0xff]  ;;  %v4362_v16 = vld [vmem:[#allocation27_spill] sm:$0xff] }
 0x237   :  { %v1095_v53 = vmul.f32 %v2716_v7, %v2331_v8  ;;  %v1096_v59 = vmul.f32 %v2716_v7, %v2335_v21  ;;  %v1097_v52 = vmul.f32 %v2716_v7, %v2339_v27  ;;  %v1098_v56 = vmul.f32 %v2716_v7, %v2343_v20 }
 0x238   :  { %v1099_v5 = vmul.f32 %v2716_v7, %v2347_v24  ;;  %v1100_v11 = vmul.f32 %v2716_v7, %v4346_v37  ;;  %v1101_v4 = vmul.f32 %v2716_v7, %v4347_v2  ;;  %v1102_v8 = vmul.f32 %v2716_v7, %v2359_v36  ;;  %v4353_v37 = vld [vmem:[#allocation15_spill] sm:$0xff]  ;;  %v4355_v2 = vld [vmem:[#allocation17_spill] sm:$0xff] }
 0x239   :  { %v1103_v21 = vmul.f32 %v2716_v7, %v4323_v50  ;;  %v1104_v27 = vmul.f32 %v2716_v7, %v4324_v17  ;;  %v1105_v20 = vmul.f32 %v2716_v7, %v2371_v6  ;;  %v1106_v24 = vmul.f32 %v2716_v7, %v2375_v18 }
 0x23a   :  { %v1107_v13 = vmul.f32 %v2716_v7, %v2379_v23  ;;  %v1108_v9 = vmul.f32 %v2716_v7, %v2383_v15  ;;  %v1109_v36 = vmul.f32 %v2716_v7, %v2387_v55  ;;  %v1110_v50 = vmul.f32 %v2716_v7, %v2391_v45 }
 0x23b   :  { %v1111_v17 = vmul.f32 %v2716_v7, %v2395_v1  ;;  %v1112_v6 = vmul.f32 %v2716_v7, %v2399_v29  ;;  %v1113_v18 = vmul.f32 %v2716_v7, %v2403_v61  ;;  %v1114_v23 = vmul.f32 %v2716_v7, %v2407_v34 }
 0x23c   :  { %v1115_v15 = vmul.f32 %v2716_v7, %v2411_v35  ;;  %v1116_v55 = vmul.f32 %v2716_v7, %v2415_v43  ;;  %v1117_v45 = vmul.f32 %v2716_v7, %v2419_v48  ;;  %v1118_v1 = vmul.f32 %v2716_v7, %v2423_v41 }
 0x23d   :  { %v1119_v29 = vmul.f32 %v2716_v7, %v2427_v46  ;;  %v1120_v61 = vmul.f32 %v2716_v7, %v4348_v54  ;;  %v1121_v34 = vmul.f32 %v2716_v7, %v4349_v31  ;;  %v1122_v35 = vmul.f32 %v2716_v7, %v4350_v19  ;;  %v2847_v46 = vld [vmem:[%s4189_s3] ss:$0 sm:$0xff] }
 0x23e   :  { %v1123_v43 = vmul.f32 %v2716_v7, %v4351_v30  ;;  %v1124_v48 = vmul.f32 %v2716_v7, %v4352_v32  ;;  %v1125_v41 = vmul.f32 %v2716_v7, %v4353_v37  ;;  %4354 = vst [vmem:[#allocation19_spill] sm:$0xff] %v2847_v46  ;;  %v1126_v54 = vmul.f32 %v2716_v7, %v4355_v2  ;;  %v4356_v31 = vld [vmem:[#allocation14_spill] sm:$0xff]  ;;  %v4363_v46 = vld [vmem:[#allocation28_spill] sm:$0xff] }
 0x23f   :  { %v1127_v19 = vmul.f32 %v2716_v7, %v4356_v31  ;;  %v1128_v30 = vmul.f32 %v2716_v7, %v4357_v22  ;;  %v1129_v32 = vmul.f32 %v2716_v7, %v4358_v58  ;;  %v1130_v37 = vmul.f32 %v2716_v7, %v4359_v0 }
 0x240   :  { %v1131_v12 = vmul.f32 %v2716_v7, %v4360_v60  ;;  %v1132_v57 = vmul.f32 %v2716_v7, %v4361_v62  ;;  %v1133_v2 = vmul.f32 %v2716_v7, %v4362_v16  ;;  %v1134_v31 = vmul.f32 %v2716_v7, %v4363_v46 }
 0x245   :  { %v4364_v22 = vld [vmem:[#allocation19_spill] sm:$0xff] }
 0x246   :  { %v2868_v58 = vadd.f32 %v4364_v22, %v1079_v63  ;;  %v2871_v0 = vadd.f32 %v4364_v22, %v1080_v33  ;;  %v2874_v60 = vadd.f32 %v4364_v22, %v1081_v49  ;;  %v2877_v62 = vadd.f32 %v4364_v22, %v1082_v10 }
 0x247   :  { %v2880_v16 = vadd.f32 %v4364_v22, %v1083_v14  ;;  %v2883_v7 = vadd.f32 %v4364_v22, %v1084_v25  ;;  %v2886_v46 = vadd.f32 %v4364_v22, %v1085_v28  ;;  %v2889_v63 = vadd.f32 %v4364_v22, %v1086_v47 }
 0x248   :  { %v2892_v33 = vadd.f32 %v4364_v22, %v1087_v51  ;;  %v2895_v49 = vadd.f32 %v4364_v22, %v1088_v26  ;;  %v2898_v10 = vadd.f32 %v4364_v22, %v1089_v3  ;;  %v2901_v14 = vadd.f32 %v4364_v22, %v1090_v44 }
 0x249   :  { %v2904_v25 = vadd.f32 %v4364_v22, %v1091_v39  ;;  %v2907_v28 = vadd.f32 %v4364_v22, %v1092_v42  ;;  %v2910_v47 = vadd.f32 %v4364_v22, %v1093_v38  ;;  %v2913_v51 = vadd.f32 %v4364_v22, %v1094_v40 }
 0x24a   :  { %v2916_v26 = vadd.f32 %v4364_v22, %v1095_v53  ;;  %v2919_v3 = vadd.f32 %v4364_v22, %v1096_v59  ;;  %v2922_v44 = vadd.f32 %v4364_v22, %v1097_v52  ;;  %v2925_v39 = vadd.f32 %v4364_v22, %v1098_v56 }
 0x24b   :  { %v2928_v42 = vadd.f32 %v4364_v22, %v1099_v5  ;;  %v2931_v38 = vadd.f32 %v4364_v22, %v1100_v11  ;;  %v2934_v40 = vadd.f32 %v4364_v22, %v1101_v4  ;;  %v2937_v53 = vadd.f32 %v4364_v22, %v1102_v8 }
 0x24c   :  { %v2940_v59 = vadd.f32 %v4364_v22, %v1103_v21  ;;  %v2943_v52 = vadd.f32 %v4364_v22, %v1104_v27  ;;  %v2946_v56 = vadd.f32 %v4364_v22, %v1105_v20  ;;  %v2949_v5 = vadd.f32 %v4364_v22, %v1106_v24 }
 0x24d   :  { %v2952_v11 = vadd.f32 %v4364_v22, %v1107_v13  ;;  %v2955_v4 = vadd.f32 %v4364_v22, %v1108_v9  ;;  %v2958_v8 = vadd.f32 %v4364_v22, %v1109_v36  ;;  %v2961_v21 = vadd.f32 %v4364_v22, %v1110_v50 }
 0x24e   :  { %v2964_v27 = vadd.f32 %v4364_v22, %v1111_v17  ;;  %v2967_v20 = vadd.f32 %v4364_v22, %v1112_v6  ;;  %v2970_v24 = vadd.f32 %v4364_v22, %v1113_v18  ;;  %v2973_v13 = vadd.f32 %v4364_v22, %v1114_v23 }
 0x24f   :  { %v2976_v9 = vadd.f32 %v4364_v22, %v1115_v15  ;;  %v2979_v36 = vadd.f32 %v4364_v22, %v1116_v55  ;;  %v2982_v50 = vadd.f32 %v4364_v22, %v1117_v45  ;;  %v2985_v17 = vadd.f32 %v4364_v22, %v1118_v1 }
 0x250   :  { %v2988_v6 = vadd.f32 %v4364_v22, %v1119_v29  ;;  %v2991_v18 = vadd.f32 %v4364_v22, %v1120_v61  ;;  %v2994_v23 = vadd.f32 %v4364_v22, %v1121_v34  ;;  %v2997_v15 = vadd.f32 %v4364_v22, %v1122_v35 }
 0x251   :  { %v3000_v55 = vadd.f32 %v4364_v22, %v1123_v43  ;;  %v3003_v45 = vadd.f32 %v4364_v22, %v1124_v48  ;;  %v3006_v1 = vadd.f32 %v4364_v22, %v1125_v41  ;;  %v3009_v29 = vadd.f32 %v4364_v22, %v1126_v54 }
 0x252   :  { %v3012_v61 = vadd.f32 %v4364_v22, %v1127_v19  ;;  %v3015_v34 = vadd.f32 %v4364_v22, %v1128_v30  ;;  %v3018_v35 = vadd.f32 %v4364_v22, %v1129_v32  ;;  %v3021_v43 = vadd.f32 %v4364_v22, %v1130_v37  ;;  %v4373_v30 = vld [vmem:[#allocation6_spill] sm:$0xff]  ;;  %v4375_v32 = vld [vmem:[#allocation3_spill] sm:$0xff] }
 0x253   :  { %4365 = vst [vmem:[#allocation20_spill] sm:$0xff] %v3003_v45  ;;  %v3024_v48 = vadd.f32 %v4364_v22, %v1131_v12  ;;  %v3027_v41 = vadd.f32 %v4364_v22, %v1132_v57  ;;  %v3030_v54 = vadd.f32 %v4364_v22, %v1133_v2  ;;  %v3033_v19 = vadd.f32 %v4364_v22, %v1134_v31  ;;  %v4379_v57 = vld [vmem:[#allocation10_spill] sm:$0xff]  ;;  %v4381_v2 = vld [vmem:[#allocation12_spill] sm:$0xff] }
 0x254   :  { %4366 = vst [vmem:[#allocation21_spill] sm:$0xff] %v3015_v34  ;;  %4367 = vst [vmem:[#allocation22_spill] sm:$0xff] %v3018_v35  ;;  %v3037_v34 = vadd.f32 %v4364_v22, %v4373_v30  ;;  %v3041_v37 = vadd.f32 %v4364_v22, %v4375_v32  ;;  %v3053_v31 = vadd.f32 %v4364_v22, %v4381_v2  ;;  %vm1214_vm3 = vcmp.gt.f32.partialorder %v2868_v58, 0.0 }
 0x255   :  { %4368 = vst [vmem:[#allocation2_spill] sm:$0xff] %v3021_v43  ;;  %4369 = vst [vmem:[#allocation4_spill] sm:$0xff] %v3024_v48  ;;  %v4377_v43 = vld [vmem:[#allocation13_spill] sm:$0xff]  ;;  %vm1215_vm4 = vcmp.gt.f32.partialorder %v2871_v0, 0.0  ;;  %vm1216_vm5 = vcmp.gt.f32.partialorder %v2874_v60, 0.0  ;;  %vm1217_vm6 = vcmp.gt.f32.partialorder %v2877_v62, 0.0 }
 0x256   :  { %4370 = vst [vmem:[#allocation5_spill] sm:$0xff] %v3027_v41  ;;  %4371 = vst [vmem:[#allocation8_spill] sm:$0xff] %v3030_v54  ;;  %v3045_v12 = vadd.f32 %v4364_v22, %v4377_v43  ;;  %v3049_v41 = vadd.f32 %v4364_v22, %v4379_v57  ;;  %vm1218_vm7 = vcmp.gt.f32.partialorder %v2880_v16, 0.0  ;;  %vm1219_vm8 = vcmp.gt.f32.partialorder %v2883_v7, 0.0  ;;  %v4385_v43 = vld [vmem:[#allocation29_spill] sm:$0xff] }
 0x257   :  { %4372 = vst [vmem:[#allocation11_spill] sm:$0xff] %v3033_v19  ;;  %4374 = vst [vmem:[#allocation7_spill] sm:$0xff] %v3037_v34  ;;  %v4383_v19 = vld [vmem:[#allocation18_spill] sm:$0xff]  ;;  %vm1220_vm9 = vcmp.gt.f32.partialorder %v2886_v46, 0.0  ;;  %vm1221_vm10 = vcmp.gt.f32.partialorder %v2889_v63, 0.0  ;;  %vm1222_vm11 = vcmp.gt.f32.partialorder %v2892_v33, 0.0 }
 0x258   :  { %4376 = vst [vmem:[#allocation9_spill] sm:$0xff] %v3041_v37  ;;  %4378 = vst [vmem:[#allocation15_spill] sm:$0xff] %v3045_v12  ;;  %v3057_v30 = vadd.f32 %v4364_v22, %v4383_v19  ;;  %v3070_v19 = vadd.f32 %v4364_v22, %v4385_v43  ;;  %vm1223_vm12 = vcmp.gt.f32.partialorder %v2895_v49, 0.0  ;;  %v1278_v32 = vmul.f32 0.01, %v2868_v58 }
 0x259   :  { %4380 = vst [vmem:[#allocation17_spill] sm:$0xff] %v3049_v41  ;;  %4382 = vst [vmem:[#allocation14_spill] sm:$0xff] %v3053_v31  ;;  %v1279_v57 = vmul.f32 0.01, %v2871_v0  ;;  %v1280_v2 = vmul.f32 0.01, %v2874_v60 }
 0x25a   :  { %4384 = vst [vmem:[#allocation16_spill] sm:$0xff] %v3057_v30  ;;  %4386 = vst [vmem:[#allocation23_spill] sm:$0xff] %v3070_v19  ;;  %v4387_v30 = vld [vmem:[#allocation30_spill] sm:$0xff]  ;;  %vm1224_vm13 = vcmp.gt.f32.partialorder %v2898_v10, 0.0  ;;  %v1281_v41 = vmul.f32 0.01, %v2877_v62 }
 0x25b   :  { %v3078_v31 = vadd.f32 %v4364_v22, %v4387_v30  ;;  %v1282_v12 = vmul.f32 0.01, %v2880_v16  ;;  %v1283_v43 = vmul.f32 0.01, %v2883_v7  ;;  %vm1225_vm14 = vcmp.gt.f32.partialorder %v2901_v14, 0.0 }
 0x25c   :  { %v1284_v19 = vmul.f32 0.01, %v2886_v46  ;;  %v1285_v37 = vmul.f32 0.01, %v2889_v63  ;;  %v1286_v34 = vmul.f32 0.01, %v2892_v33  ;;  %v3091_v22 = vsel %vm1214_vm3, %v2868_v58, %v1278_v32 }
 0x25d   :  { %4388 = vst [vmem:[#allocation24_spill] sm:$0xff] %v3078_v31  ;;  %4389 = vst [vmem:[#allocation25_spill] sm:$0xff] %v3091_v22  ;;  %vm1226_vm15 = vcmp.gt.f32.partialorder %v2904_v25, 0.0  ;;  %v1287_v30 = vmul.f32 0.01, %v2895_v49  ;;  %v3102_v48 = vsel %vm1215_vm4, %v2871_v0, %v1279_v57  ;;  %vm1227_vm0 = vcmp.gt.f32.partialorder %v2907_v28, 0.0 }
 0x25e   :  { %v1288_v31 = vmul.f32 0.01, %v2898_v10  ;;  %v3097_v54 = vmul.f32 0.01, %v2901_v14  ;;  %4390 = vst [vmem:[#allocation26_spill] sm:$0xff] %v3102_v48  ;;  %v3117_v22 = vsel %vm1216_vm5, %v2874_v60, %v1280_v2  ;;  %vm1228_vm1 = vcmp.gt.f32.partialorder %v2910_v47, 0.0 }
 0x25f   :  { %v3106_v35 = vmul.f32 0.01, %v2904_v25  ;;  %v3109_v58 = vmul.f32 0.01, %v2907_v28  ;;  %v3112_v32 = vmul.f32 0.01, %v2910_v47 }
 0x260   :  { %4392 = vst [vmem:[#allocation28_spill] sm:$0xff] %v3117_v22  ;;  %v3121_v0 = vmul.f32 0.01, %v2913_v51  ;;  %v3124_v57 = vmul.f32 0.01, %v2916_v26  ;;  %vm1229_vm3 = vcmp.gt.f32.partialorder %v2913_v51, 0.0 }
 0x261   :  { %4391 = vst [vmem:[#allocation27_spill] sm:$0xff] %v3112_v32  ;;  %v3127_v48 = vmul.f32 0.01, %v2919_v3  ;;  %v3132_v32 = vsel %vm1217_vm6, %v2877_v62, %v1281_v41  ;;  %v3136_v60 = vmul.f32 0.01, %v2922_v44  ;;  %vm1230_vm4 = vcmp.gt.f32.partialorder %v2916_v26, 0.0 }
 0x262   :  { %4394 = vst [vmem:[#allocation6_spill] sm:$0xff] %v3132_v32  ;;  %v3139_v2 = vmul.f32 0.01, %v2925_v39  ;;  %v3142_v22 = vmul.f32 0.01, %v2928_v42  ;;  %vm1231_vm5 = vcmp.gt.f32.partialorder %v2919_v3, 0.0 }
 0x263   :  { %4393 = vst [vmem:[#allocation19_spill] sm:$0xff] %v3127_v48  ;;  %v3147_v48 = vsel %vm1218_vm7, %v2880_v16, %v1282_v12  ;;  %v3151_v62 = vmul.f32 0.01, %v2931_v38  ;;  %v3154_v41 = vmul.f32 0.01, %v2934_v40  ;;  %vm1232_vm6 = vcmp.gt.f32.partialorder %v2922_v44, 0.0 }
 0x264   :  { %4395 = vst [vmem:[#allocation3_spill] sm:$0xff] %v3142_v22  ;;  %4396 = vst [vmem:[#allocation13_spill] sm:$0xff] %v3147_v48  ;;  %v3157_v32 = vmul.f32 0.01, %v2937_v53  ;;  %v3162_v22 = vsel %vm1219_vm8, %v2883_v7, %v1283_v43  ;;  %v3166_v16 = vmul.f32 0.01, %v2940_v59 }
 0x265   :  { %4398 = vst [vmem:[#allocation12_spill] sm:$0xff] %v3162_v22  ;;  %v3169_v12 = vmul.f32 0.01, %v2943_v52  ;;  %v3172_v48 = vmul.f32 0.01, %v2946_v56  ;;  %vm1233_vm7 = vcmp.gt.f32.partialorder %v2925_v39, 0.0 }
 0x266   :  { %4397 = vst [vmem:[#allocation10_spill] sm:$0xff] %v3157_v32  ;;  %v3177_v32 = vsel %vm1220_vm9, %v2886_v46, %v1284_v19  ;;  %v3181_v7 = vmul.f32 0.01, %v2949_v5  ;;  %v3184_v43 = vmul.f32 0.01, %v2952_v11  ;;  %vm4453_vm8 = vcmp.gt.f32.partialorder %v2928_v42, 0.0 }
 0x267   :  { %4399 = vst [vmem:[#allocation18_spill] sm:$0xff] %v3172_v48  ;;  %4400 = vst [vmem:[#allocation29_spill] sm:$0xff] %v3177_v32  ;;  %v3187_v22 = vmul.f32 0.01, %v2955_v4  ;;  %v3192_v48 = vsel %vm1221_vm10, %v2889_v63, %v1285_v37  ;;  %v3198_v46 = vmul.f32 0.01, %v2958_v8  ;;  %v3209_v63 = vsel %vm1222_vm11, %v2892_v33, %v1286_v34 }
 0x268   :  { %4401 = vst [vmem:[#allocation30_spill] sm:$0xff] %v3192_v48  ;;  %v3201_v19 = vmul.f32 0.01, %v2961_v21  ;;  %v3204_v32 = vmul.f32 0.01, %v2964_v27  ;;  %4403 = vst [vmem:[#allocation32_spill] sm:$0xff] %v3209_v63  ;;  %v3227_v33 = vsel %vm1223_vm12, %v2895_v49, %v1287_v30  ;;  %v3245_v49 = vsel %vm1224_vm13, %v2898_v10, %v1288_v31 }
 0x269   :  { %vm1236_vm10 = vcmp.gt.f32.partialorder %v2934_v40, 0.0  ;;  %v3216_v37 = vmul.f32 0.01, %v2967_v20  ;;  %v3219_v48 = vmul.f32 0.01, %v2970_v24  ;;  %4405 = vst [vmem:[#allocation34_spill] sm:$0xff] %v3227_v33  ;;  %v3264_v10 = vsel %vm1225_vm14, %v2901_v14, %v3097_v54 }
 0x26a   :  { %4402 = vst [vmem:[#allocation31_spill] sm:$0xff] %v3204_v32  ;;  %v3222_v32 = vmul.f32 0.01, %v2973_v13  ;;  %vm1240_vm11 = vcmp.gt.f32.partialorder %v2946_v56, 0.0  ;;  %v3234_v34 = vmul.f32 0.01, %v2976_v9  ;;  %v3283_v14 = vsel %vm1226_vm15, %v2904_v25, %v3106_v35 }
 0x26b   :  { %v3237_v63 = vmul.f32 0.01, %v2979_v36  ;;  %4407 = vst [vmem:[#allocation36_spill] sm:$0xff] %v3245_v49  ;;  %vm1244_vm12 = vcmp.gt.f32.partialorder %v2958_v8, 0.0  ;;  %v3252_v30 = vmul.f32 0.01, %v2985_v17  ;;  %v3302_v25 = vsel %vm1227_vm0, %v2907_v28, %v3109_v58 }
 0x26c   :  { %4404 = vst [vmem:[#allocation33_spill] sm:$0xff] %v3222_v32  ;;  %v3240_v32 = vmul.f32 0.01, %v2982_v50  ;;  %v3255_v33 = vmul.f32 0.01, %v2988_v6  ;;  %4409 = vst [vmem:[#allocation38_spill] sm:$0xff] %v3264_v10 }
 0x26d   :  { %vm1248_vm13 = vcmp.gt.f32.partialorder %v2970_v24, 0.0  ;;  %v3271_v31 = vmul.f32 0.01, %v2994_v23  ;;  %v3274_v49 = vmul.f32 0.01, %v2997_v15  ;;  %4412 = vst [vmem:[#allocation41_spill] sm:$0xff] %v3283_v14 }
 0x26e   :  { %4406 = vst [vmem:[#allocation35_spill] sm:$0xff] %v3240_v32  ;;  %v3258_v32 = vmul.f32 0.01, %v2991_v18  ;;  %vm1252_vm14 = vcmp.gt.f32.partialorder %v2982_v50, 0.0  ;;  %v3290_v54 = vmul.f32 0.01, %v3003_v45 }
 0x26f   :  { %4410 = vst [vmem:[#allocation39_spill] sm:$0xff] %v3274_v49  ;;  %v3293_v10 = vmul.f32 0.01, %v3006_v1  ;;  %4416 = vst [vmem:[#allocation45_spill] sm:$0xff] %v3302_v25  ;;  %vm1256_vm15 = vcmp.gt.f32.partialorder %v2994_v23, 0.0  ;;  %v4418_v14 = vld [vmem:[#allocation21_spill] sm:$0xff] }
 0x270   :  { %4408 = vst [vmem:[#allocation37_spill] sm:$0xff] %v3258_v32  ;;  %v3277_v32 = vmul.f32 0.01, %v3000_v55  ;;  %4413 = vst [vmem:[#allocation42_spill] sm:$0xff] %v3290_v54  ;;  %v3309_v35 = vmul.f32 0.01, %v3012_v61 }
 0x271   :  { %4414 = vst [vmem:[#allocation43_spill] sm:$0xff] %v3293_v10  ;;  %v3312_v10 = vmul.f32 0.01, %v4418_v14  ;;  %v4422_v49 = vld [vmem:[#allocation27_spill] sm:$0xff]  ;;  %vm1260_vm0 = vcmp.gt.f32.partialorder %v3006_v1, 0.0  ;;  %v4424_v58 = vld [vmem:[#allocation2_spill] sm:$0xff] }
 0x272   :  { %4411 = vst [vmem:[#allocation40_spill] sm:$0xff] %v3277_v32  ;;  %v3296_v32 = vmul.f32 0.01, %v3009_v29  ;;  %4417 = vst [vmem:[#allocation46_spill] sm:$0xff] %v3309_v35  ;;  %v3321_v28 = vsel %vm1228_vm1, %v2910_v47, %v4422_v49  ;;  %v3328_v25 = vmul.f32 0.01, %v4424_v58  ;;  %v3340_v47 = vsel %vm1229_vm3, %v2913_v51, %v3121_v0 }
 0x273   :  { %4419 = vst [vmem:[#allocation47_spill] sm:$0xff] %v3312_v10  ;;  %4423 = vst [vmem:[#allocation27_spill] sm:$0xff] %v3321_v28  ;;  %v4426_v10 = vld [vmem:[#allocation4_spill] sm:$0xff]  ;;  %v3359_v51 = vsel %vm1230_vm4, %v2916_v26, %v3124_v57  ;;  %v4438_v0 = vld [vmem:[#allocation9_spill] sm:$0xff] }
 0x274   :  { %4415 = vst [vmem:[#allocation44_spill] sm:$0xff] %v3296_v32  ;;  %v4420_v32 = vld [vmem:[#allocation22_spill] sm:$0xff]  ;;  %4425 = vst [vmem:[#allocation2_spill] sm:$0xff] %v3328_v25  ;;  %v3331_v35 = vmul.f32 0.01, %v4426_v10  ;;  %v4431_v49 = vld [vmem:[#allocation8_spill] sm:$0xff] }
 0x275   :  { %v3315_v54 = vmul.f32 0.01, %v4420_v32  ;;  %4430 = vst [vmem:[#allocation50_spill] sm:$0xff] %v3340_v47  ;;  %vm1264_vm1 = vcmp.gt.f32.partialorder %v4420_v32, 0.0  ;;  %v3347_v28 = vmul.f32 0.01, %v4431_v49 }
 0x276   :  { %4427 = vst [vmem:[#allocation48_spill] sm:$0xff] %v3331_v35  ;;  %v4433_v35 = vld [vmem:[#allocation11_spill] sm:$0xff]  ;;  %4437 = vst [vmem:[#allocation51_spill] sm:$0xff] %v3359_v51  ;;  %vm1268_vm3 = vcmp.gt.f32.partialorder %v4431_v49, 0.0  ;;  %v3366_v47 = vmul.f32 0.01, %v4438_v0 }
 0x277   :  { %4421 = vst [vmem:[#allocation22_spill] sm:$0xff] %v3315_v54  ;;  %v4428_v54 = vld [vmem:[#allocation5_spill] sm:$0xff]  ;;  %4432 = vst [vmem:[#allocation8_spill] sm:$0xff] %v3347_v28  ;;  %v3350_v25 = vmul.f32 0.01, %v4433_v35  ;;  %v4444_v10 = vld [vmem:[#allocation19_spill] sm:$0xff] }
 0x278   :  { %v3334_v45 = vmul.f32 0.01, %v4428_v54  ;;  %4439 = vst [vmem:[#allocation52_spill] sm:$0xff] %v3366_v47  ;;  %v3378_v26 = vsel %vm1231_vm5, %v2919_v3, %v4444_v10  ;;  %v4446_v57 = vld [vmem:[#allocation14_spill] sm:$0xff]  ;;  %v4447_v51 = vld [vmem:[#allocation16_spill] sm:$0xff]  ;;  %v3397_v3 = vsel %vm1232_vm6, %v2922_v44, %v3136_v60  ;;  %vm4454_vm6 = vcmp.gt.f32.partialorder %v2931_v38, 0.0 }
 0x279   :  { %4434 = vst [vmem:[#allocation11_spill] sm:$0xff] %v3350_v25  ;;  %v4440_v25 = vld [vmem:[#allocation15_spill] sm:$0xff]  ;;  %4445 = vst [vmem:[#allocation19_spill] sm:$0xff] %v3378_v26  ;;  %v3385_v0 = vmul.f32 0.01, %v4446_v57  ;;  %v4451_v10 = vld [vmem:[#allocation24_spill] sm:$0xff]  ;;  %v3420_v44 = vsel %vm4454_vm6, %v2931_v38, %v3151_v62  ;;  %v3426_v60 = vsel %vm1236_vm10, %v2934_v40, %v3154_v41 }
 0x27a   :  { %4429 = vst [vmem:[#allocation49_spill] sm:$0xff] %v3334_v45  ;;  %v4435_v45 = vld [vmem:[#allocation7_spill] sm:$0xff]  ;;  %v3369_v28 = vmul.f32 0.01, %v4440_v25  ;;  %vm1272_vm4 = vcmp.gt.f32.partialorder %v4440_v25, 0.0  ;;  %vm1277_vm9 = vcmp.gt.f32.partialorder %v4451_v10, 0.0 }
 0x27b   :  { %v3353_v14 = vmul.f32 0.01, %v4435_v45  ;;  %v3402_v26 = vmul.f32 0.01, %v4451_v10  ;;  %vm4458_vm6 = vcmp.gt.f32.partialorder %v2943_v52, 0.0  ;;  %v4459_v40 = vld [vmem:[#allocation18_spill] sm:$0xff] }
 0x27c   :  { %4441 = vst [vmem:[#allocation15_spill] sm:$0xff] %v3369_v28  ;;  %v3388_v28 = vmul.f32 0.01, %v4447_v51  ;;  %v3408_v51 = vsel %vm1233_vm7, %v2925_v39, %v3139_v2  ;;  %v4455_v39 = vld [vmem:[#allocation10_spill] sm:$0xff]  ;;  %vm4456_vm7 = vcmp.gt.f32.partialorder %v2937_v53, 0.0  ;;  %v3444_v38 = vsel %vm4458_vm6, %v2943_v52, %v3169_v12 }
 0x27d   :  { %4436 = vst [vmem:[#allocation7_spill] sm:$0xff] %v3353_v14  ;;  %v4442_v14 = vld [vmem:[#allocation17_spill] sm:$0xff]  ;;  %v3432_v2 = vsel %vm4456_vm7, %v2937_v53, %v4455_v39  ;;  %v3450_v62 = vsel %vm1240_vm11, %v2946_v56, %v4459_v40  ;;  %vm4460_vm10 = vcmp.gt.f32.partialorder %v2949_v5, 0.0  ;;  %vm4461_vm7 = vcmp.gt.f32.partialorder %v2952_v11, 0.0  ;;  %v1410_v39 = vld [vmem:[%s4190_s4 + $0x20] sm:$0xff] }
 0x27e   :  { %v3372_v54 = vmul.f32 0.01, %v4442_v14  ;;  %vm1273_vm2 = vcmp.gt.f32.partialorder %v4442_v14, 0.0  ;;  %4448 = vst [vmem:[#allocation14_spill] sm:$0xff] %v3388_v28  ;;  %v3456_v53 = vsel %vm4460_vm10, %v2949_v5, %v3181_v7  ;;  %v3474_v56 = vsel %vm1244_vm12, %v2958_v8, %v3198_v46  ;;  %v4499_v40 = vld [vmem:[#allocation22_spill] sm:$0xff] }
 0x27f   :  { %vm4463_vm11 = vcmp.gt.f32.partialorder %v2961_v21, 0.0  ;;  %vm4465_vm6 = vcmp.gt.f32.partialorder %v2964_v27, 0.0  ;;  %vm4466_vm10 = vcmp.gt.f32.partialorder %v2967_v20, 0.0  ;;  %v3498_v8 = vsel %vm1248_vm13, %v2970_v24, %v3219_v48  ;;  %v4471_v24 = vld [vmem:[#allocation35_spill] sm:$0xff] }
 0x280   :  { %4443 = vst [vmem:[#allocation17_spill] sm:$0xff] %v3372_v54  ;;  %v4449_v54 = vld [vmem:[#allocation23_spill] sm:$0xff]  ;;  %v3480_v5 = vsel %vm4463_vm11, %v2961_v21, %v3201_v19  ;;  %v4467_v21 = vld [vmem:[#allocation33_spill] sm:$0xff]  ;;  %vm4468_vm12 = vcmp.gt.f32.partialorder %v2973_v13, 0.0  ;;  %v3522_v48 = vsel %vm1252_vm14, %v2982_v50, %v4471_v24  ;;  %vm4472_vm13 = vcmp.gt.f32.partialorder %v2985_v17, 0.0 }
 0x281   :  { %v3391_v47 = vmul.f32 0.01, %v4449_v54  ;;  %vm1276_vm5 = vcmp.gt.f32.partialorder %v4449_v54, 0.0  ;;  %vm4473_vm11 = vcmp.gt.f32.partialorder %v2988_v6, 0.0  ;;  %v3546_v50 = vsel %vm1256_vm15, %v2994_v23, %v3271_v31  ;;  %v1406_v23 = vld [vmem:[%s4190_s4] sm:$0xff]  ;;  %v4487_v19 = vld [vmem:[#allocation43_spill] sm:$0xff] }
 0x282   :  { %4476 = vst [vmem:[#allocation24_spill] sm:$0xff] %v3546_v50  ;;  %vm4478_vm14 = vcmp.gt.f32.partialorder %v2997_v15, 0.0  ;;  %vm4490_vm15 = vcmp.gt.f32.partialorder %v3009_v29, 0.0  ;;  %v4496_v31 = vld [vmem:[#allocation21_spill] sm:$0xff] }
 0x283   :  { %4450 = vst [vmem:[#allocation23_spill] sm:$0xff] %v3391_v47  ;;  %v4452_v47 = vld [vmem:[#allocation3_spill] sm:$0xff] }
 0x284   :  { %v3414_v28 = vsel %vm4453_vm8, %v2928_v42, %v4452_v47  ;;  %vm4457_vm8 = vcmp.gt.f32.partialorder %v2940_v59, 0.0 }
 0x285   :  { %v3438_v42 = vsel %vm4457_vm8, %v2940_v59, %v3166_v16  ;;  %v3462_v59 = vsel %vm4461_vm7, %v2952_v11, %v3184_v43  ;;  %vm4462_vm8 = vcmp.gt.f32.partialorder %v2955_v4, 0.0  ;;  %v4464_v11 = vld [vmem:[#allocation31_spill] sm:$0xff]  ;;  %vm4469_vm7 = vcmp.gt.f32.partialorder %v2976_v9, 0.0  ;;  %v4484_v43 = vld [vmem:[#allocation20_spill] sm:$0xff] }
 0x286   :  { %v3468_v52 = vsel %vm4462_vm8, %v2955_v4, %v3187_v22  ;;  %v3486_v41 = vsel %vm4465_vm6, %v2964_v27, %v4464_v11  ;;  %v3492_v4 = vsel %vm4466_vm10, %v2967_v20, %v3216_v37  ;;  %v3504_v22 = vsel %vm4468_vm12, %v2973_v13, %v4467_v21  ;;  %v4501_v21 = vld [vmem:[#allocation2_spill] sm:$0xff] }
 0x287   :  { %v3510_v27 = vsel %vm4469_vm7, %v2976_v9, %v3234_v34  ;;  %vm4470_vm8 = vcmp.gt.f32.partialorder %v2979_v36, 0.0  ;;  %v3528_v13 = vsel %vm4472_vm13, %v2985_v17, %v3252_v30  ;;  %v3534_v9 = vsel %vm4473_vm11, %v2988_v6, %v3255_v33  ;;  %v4477_v17 = vld [vmem:[#allocation39_spill] sm:$0xff]  ;;  %v4480_v6 = vld [vmem:[#allocation40_spill] sm:$0xff]  ;;  %v4492_v33 = vld [vmem:[#allocation46_spill] sm:$0xff] }
 0x288   :  { %v3516_v20 = vsel %vm4470_vm8, %v2979_v36, %v3237_v63  ;;  %v4474_v36 = vld [vmem:[#allocation37_spill] sm:$0xff]  ;;  %vm4475_vm6 = vcmp.gt.f32.partialorder %v2991_v18, 0.0  ;;  %v3552_v12 = vsel %vm4478_vm14, %v2997_v15, %v4477_v17  ;;  %vm4481_vm10 = vcmp.gt.f32.partialorder %v3000_v55, 0.0  ;;  %v1407_v15 = vld [vmem:[%s4190_s4 + $0x8] sm:$0xff]  ;;  %v4489_v63 = vld [vmem:[#allocation44_spill] sm:$0xff] }
 0x289   :  { %v3540_v16 = vsel %vm4475_vm6, %v2991_v18, %v4474_v36  ;;  %4479 = vst [vmem:[#allocation3_spill] sm:$0xff] %v3552_v12  ;;  %v3558_v7 = vsel %vm4481_vm10, %v3000_v55, %v4480_v6  ;;  %v4483_v18 = vld [vmem:[#allocation42_spill] sm:$0xff]  ;;  %vm4485_vm12 = vcmp.gt.f32.partialorder %v4484_v43, 0.0  ;;  %v3576_v55 = vsel %vm1260_vm0, %v3006_v1, %v4487_v19  ;;  %v4495_v30 = vld [vmem:[#allocation47_spill] sm:$0xff]  ;;  %v1408_v1 = vld [vmem:[%s4190_s4 + $0x10] sm:$0xff] }
 0x28a   :  { %4482 = vst [vmem:[#allocation10_spill] sm:$0xff] %v3558_v7  ;;  %v3564_v46 = vsel %vm4485_vm12, %v4484_v43, %v4483_v18  ;;  %4488 = vst [vmem:[#allocation31_spill] sm:$0xff] %v3576_v55  ;;  %v3582_v37 = vsel %vm4490_vm15, %v3009_v29, %v4489_v63  ;;  %vm4493_vm7 = vcmp.gt.f32.partialorder %v3012_v61, 0.0  ;;  %vm4497_vm8 = vcmp.gt.f32.partialorder %v4496_v31, 0.0  ;;  %v1409_v29 = vld [vmem:[%s4190_s4 + $0x18] sm:$0xff]  ;;  %v4504_v36 = vld [vmem:[#allocation48_spill] sm:$0xff] }
 0x28b   :  { %4486 = vst [vmem:[#allocation18_spill] sm:$0xff] %v3564_v46  ;;  %4491 = vst [vmem:[#allocation33_spill] sm:$0xff] %v3582_v37  ;;  %v3588_v34 = vsel %vm4493_vm7, %v3012_v61, %v4492_v33  ;;  %v3594_v47 = vsel %vm4497_vm8, %v4496_v31, %v4495_v30  ;;  %v1411_v61 = vld [vmem:[%s4190_s4 + $0x28] sm:$0xff]  ;;  %v3612_v11 = vsel %vm1264_vm1, %v4420_v32, %v4499_v40  ;;  %vm4502_vm0 = vcmp.gt.f32.partialorder %v4424_v58, 0.0  ;;  %v4505_v17 = vld [vmem:[#allocation4_spill] sm:$0xff] }
 0x28c   :  { %4494 = vst [vmem:[#allocation35_spill] sm:$0xff] %v3588_v34  ;;  %4498 = vst [vmem:[#allocation37_spill] sm:$0xff] %v3594_v47  ;;  %v3618_v24 = vsel %vm4502_vm0, %v4424_v58, %v4501_v21  ;;  %vm4506_vm13 = vcmp.gt.f32.partialorder %v4505_v17, 0.0  ;;  %v4508_v18 = vld [vmem:[#allocation49_spill] sm:$0xff]  ;;  %v1412_v32 = vld [vmem:[%s4190_s4 + $0x30] sm:$0xff]  ;;  %vm4515_vm1 = vcmp.gt.f32.partialorder %v4433_v35, 0.0 }
 0x28d   :  { %4500 = vst [vmem:[#allocation39_spill] sm:$0xff] %v3612_v11  ;;  %4503 = vst [vmem:[#allocation40_spill] sm:$0xff] %v3618_v24  ;;  %v3624_v6 = vsel %vm4506_vm13, %v4505_v17, %v4504_v36  ;;  %v4509_v43 = vld [vmem:[#allocation5_spill] sm:$0xff]  ;;  %v1414_v63 = vld [vmem:[%s4190_s4 + $0x40] sm:$0xff]  ;;  %vm4518_vm6 = vcmp.gt.f32.partialorder %v4435_v45, 0.0 }
 0x28e   :  { %4507 = vst [vmem:[#allocation42_spill] sm:$0xff] %v3624_v6  ;;  %vm4510_vm11 = vcmp.gt.f32.partialorder %v4509_v43, 0.0  ;;  %v1413_v58 = vld [vmem:[%s4190_s4 + $0x38] sm:$0xff]  ;;  %v1415_v33 = vld [vmem:[%s4190_s4 + $0x48] sm:$0xff]  ;;  %v4512_v30 = vld [vmem:[#allocation8_spill] sm:$0xff] }
 0x28f   :  { %v3630_v19 = vsel %vm4510_vm11, %v4509_v43, %v4508_v18  ;;  %v3648_v31 = vsel %vm1268_vm3, %v4431_v49, %v4512_v30  ;;  %v4514_v40 = vld [vmem:[#allocation11_spill] sm:$0xff]  ;;  %v4520_v18 = vld [vmem:[#allocation52_spill] sm:$0xff]  ;;  %v4521_v43 = vld [vmem:[#allocation9_spill] sm:$0xff]  ;;  %vm4528_vm3 = vcmp.gt.f32.partialorder %v4446_v57, 0.0 }
 0x290   :  { %4511 = vst [vmem:[#allocation20_spill] sm:$0xff] %v3630_v19  ;;  %4513 = vst [vmem:[#allocation43_spill] sm:$0xff] %v3648_v31  ;;  %v3654_v21 = vsel %vm4515_vm1, %v4433_v35, %v4514_v40  ;;  %v4517_v36 = vld [vmem:[#allocation7_spill] sm:$0xff]  ;;  %vm4522_vm14 = vcmp.gt.f32.partialorder %v4521_v43, 0.0  ;;  %v1416_v49 = vld [vmem:[%s4190_s4 + $0x50] sm:$0xff] }
 0x291   :  { %4516 = vst [vmem:[#allocation44_spill] sm:$0xff] %v3654_v21  ;;  %v3660_v17 = vsel %vm4518_vm6, %v4435_v45, %v4517_v36  ;;  %v3666_v19 = vsel %vm4522_vm14, %v4521_v43, %v4520_v18  ;;  %v1417_v35 = vld [vmem:[%s4190_s4 + $0x58] sm:$0xff]  ;;  %v1418_v30 = vld [vmem:[%s4190_s4 + $0x60] sm:$0xff]  ;;  %v1419_v45 = vld [vmem:[%s4190_s4 + $0x68] sm:$0xff] }
 0x292   :  { %4519 = vst [vmem:[#allocation46_spill] sm:$0xff] %v3660_v17  ;;  %4523 = vst [vmem:[#allocation47_spill] sm:$0xff] %v3666_v19  ;;  %v4524_v40 = vld [vmem:[#allocation15_spill] sm:$0xff]  ;;  %v4526_v18 = vld [vmem:[#allocation17_spill] sm:$0xff]  ;;  %v3696_v19 = vsel %vm4528_vm3, %v4446_v57, %v3385_v0 }
 0x293   :  { %v3684_v36 = vsel %vm1272_vm4, %v4440_v25, %v4524_v40  ;;  %v3690_v43 = vsel %vm1273_vm2, %v4442_v14, %v4526_v18  ;;  %4529 = vst [vmem:[#allocation2_spill] sm:$0xff] %v3696_v19  ;;  %v4530_v17 = vld [vmem:[#allocation14_spill] sm:$0xff]  ;;  %v4531_v21 = vld [vmem:[#allocation16_spill] sm:$0xff]  ;;  %v1421_v14 = vld [vmem:[%s4190_s4 + $0x78] sm:$0xff]  ;;  %vm4547_vm2 = vcmask 64512  }
 0x294   :  { %4525 = vst [vmem:[#allocation21_spill] sm:$0xff] %v3684_v36  ;;  %4527 = vst [vmem:[#allocation22_spill] sm:$0xff] %v3690_v43  ;;  %vm4532_vm10 = vcmp.gt.f32.partialorder %v4531_v21, 0.0  ;;  %v1420_v25 = vld [vmem:[%s4190_s4 + $0x70] sm:$0xff]  ;;  %v1422_v40 = vld [vmem:[%s4190_s4 + $0x80] sm:$0xff] }
 0x295   :  { %v3702_v31 = vsel %vm4532_vm10, %v4531_v21, %v4530_v17  ;;  %v1423_v0 = vld [vmem:[%s4190_s4 + $0x88] sm:$0xff]  ;;  %v3726_v17 = vsel %vm1277_vm9, %v4451_v10, %v3402_v26  ;;  %v1424_v18 = vld [vmem:[%s4190_s4 + $0x90] sm:$0xff]  ;;  %v1426_v19 = vld [vmem:[%s4190_s4 + $0xa0] sm:$0xff] }
 0x296   :  { %4533 = vst [vmem:[#allocation48_spill] sm:$0xff] %v3702_v31  ;;  %v4534_v57 = vld [vmem:[#allocation23_spill] sm:$0xff]  ;;  %4536 = vst [vmem:[#allocation49_spill] sm:$0xff] %v3726_v17  ;;  %v1425_v31 = vld [vmem:[%s4190_s4 + $0x98] sm:$0xff] }
 0x297   :  { %v3720_v21 = vsel %vm1276_vm5, %v4449_v54, %v4534_v57  ;;  %v1427_v54 = vld [vmem:[%s4190_s4 + $0xa8] sm:$0xff]  ;;  %v4537_v57 = vld [vmem:[#allocation25_spill] sm:$0xff]  ;;  %v4538_v26 = vld [vmem:[#allocation26_spill] sm:$0xff] }
 0x298   :  { %4535 = vst [vmem:[#allocation4_spill] sm:$0xff] %v3720_v21  ;;  %v1470_v21 = vadd.f32 %v1406_v23, %v4537_v57  ;;  %v1471_v10 = vadd.f32 %v1407_v15, %v4538_v26  ;;  %v1428_v17 = vld [vmem:[%s4190_s4 + $0xb0] sm:$0xff]  ;;  %v1429_v43 = vld [vmem:[%s4190_s4 + $0xb8] sm:$0xff]  ;;  %v1430_v36 = vld [vmem:[%s4190_s4 + $0xc0] sm:$0xff] }
 0x299   :  { %v1431_v6 = vld [vmem:[%s4190_s4 + $0xc8] sm:$0xff]  ;;  %v4539_v24 = vld [vmem:[#allocation28_spill] sm:$0xff]  ;;  %v4540_v57 = vld [vmem:[#allocation6_spill] sm:$0xff] }
 0x29a   :  { %v1472_v23 = vadd.f32 %v1408_v1, %v4539_v24  ;;  %v1473_v15 = vadd.f32 %v1409_v29, %v4540_v57  ;;  %v4541_v26 = vld [vmem:[#allocation13_spill] sm:$0xff]  ;;  %v4542_v47 = vld [vmem:[#allocation12_spill] sm:$0xff]  ;;  %v1434_v46 = vld [vmem:[%s4190_s4 + $0xe0] sm:$0xff]  ;;  %1534 = vst.msk [vmem:[%s4191_s5] sm:$0xff] %vm4547_vm2, %v1470_v21 }
 0x29b   :  { %v1474_v11 = vadd.f32 %v1410_v39, %v4541_v26  ;;  %v1475_v34 = vadd.f32 %v1411_v61, %v4542_v47  ;;  %v1432_v37 = vld [vmem:[%s4190_s4 + $0xd0] sm:$0xff]  ;;  %v1433_v55 = vld [vmem:[%s4190_s4 + $0xd8] sm:$0xff]  ;;  %v1435_v1 = vld [vmem:[%s4190_s4 + $0xe8] sm:$0xff] }
 0x29c   :  { %v4543_v29 = vld [vmem:[#allocation29_spill] sm:$0xff]  ;;  %v4544_v24 = vld [vmem:[#allocation30_spill] sm:$0xff]  ;;  %v4545_v61 = vld [vmem:[#allocation32_spill] sm:$0xff] }
 0x29d   :  { %v1476_v39 = vadd.f32 %v1412_v32, %v4543_v29  ;;  %v1477_v47 = vadd.f32 %v1413_v58, %v4544_v24  ;;  %v1478_v57 = vadd.f32 %v1414_v63, %v4545_v61  ;;  %v4546_v26 = vld [vmem:[#allocation34_spill] sm:$0xff]  ;;  %vm4548_vm9 = vmmov %vm4547_vm2  ;;  %v1436_v32 = vld [vmem:[%s4190_s4 + $0xf0] sm:$0xff] }
 0x29e   :  { %v1479_v7 = vadd.f32 %v1415_v33, %v4546_v26  ;;  %1535 = vst.msk [vmem:[%s4191_s5 + $0x8] sm:$0xff] %vm4548_vm9, %v1471_v10  ;;  %v1437_v58 = vld [vmem:[%s4190_s4 + $0xf8] sm:$0xff]  ;;  %v1438_v63 = vld [vmem:[%s4190_s4 + $0x100] sm:$0xff]  ;;  %v1439_v33 = vld [vmem:[%s4190_s4 + $0x108] sm:$0xff] }
 0x29f   :  { %v4549_v21 = vld [vmem:[#allocation36_spill] sm:$0xff]  ;;  %v4550_v24 = vld [vmem:[#allocation38_spill] sm:$0xff]  ;;  %v4551_v61 = vld [vmem:[#allocation41_spill] sm:$0xff] }
 0x2a0   :  { %v1480_v29 = vadd.f32 %v1416_v49, %v4549_v21  ;;  %v1481_v10 = vadd.f32 %v1417_v35, %v4550_v24  ;;  %v1482_v26 = vadd.f32 %v1418_v30, %v4551_v61  ;;  %v4552_v12 = vld [vmem:[#allocation45_spill] sm:$0xff]  ;;  %vm4553_vm4 = vmmov %vm4547_vm2  ;;  %v1442_v35 = vld [vmem:[%s4190_s4 + $0x120] sm:$0xff] }
 0x2a1   :  { %v1483_v50 = vadd.f32 %v1419_v45, %v4552_v12  ;;  %1536 = vst.msk [vmem:[%s4191_s5 + $0x10] sm:$0xff] %vm4553_vm4, %v1472_v23  ;;  %vm4554_vm5 = vmmov %vm4547_vm2  ;;  %v1440_v12 = vld [vmem:[%s4190_s4 + $0x110] sm:$0xff]  ;;  %v1441_v49 = vld [vmem:[%s4190_s4 + $0x118] sm:$0xff] }
 0x2a2   :  { %1537 = vst.msk [vmem:[%s4191_s5 + $0x18] sm:$0xff] %vm4554_vm5, %v1473_v15  ;;  %vm4555_vm12 = vmmov %vm4547_vm2  ;;  %v4557_v30 = vld [vmem:[#allocation27_spill] sm:$0xff]  ;;  %v4558_v23 = vld [vmem:[#allocation50_spill] sm:$0xff] }
 0x2a3   :  { %1538 = vst.msk [vmem:[%s4191_s5 + $0x20] sm:$0xff] %vm4555_vm12, %v1474_v11  ;;  %vm4556_vm15 = vmmov %vm4547_vm2  ;;  %v1443_v11 = vld [vmem:[%s4190_s4 + $0x128] sm:$0xff]  ;;  %v1484_v45 = vadd.f32 %v1420_v25, %v4557_v30  ;;  %v1444_v25 = vld [vmem:[%s4190_s4 + $0x130] sm:$0xff] }
 0x2a4   :  { %1539 = vst.msk [vmem:[%s4191_s5 + $0x28] sm:$0xff] %vm4556_vm15, %v1475_v34  ;;  %v1485_v34 = vadd.f32 %v1421_v14, %v4558_v23  ;;  %v4559_v15 = vld [vmem:[#allocation51_spill] sm:$0xff]  ;;  %vm4561_vm7 = vmmov %vm4547_vm2  ;;  %v1445_v14 = vld [vmem:[%s4190_s4 + $0x138] sm:$0xff] }
 0x2a5   :  { %v1486_v21 = vadd.f32 %v1422_v40, %v4559_v15  ;;  %v4560_v24 = vld [vmem:[#allocation19_spill] sm:$0xff]  ;;  %1540 = vst.msk [vmem:[%s4191_s5 + $0x30] sm:$0xff] %vm4561_vm7, %v1476_v39  ;;  %vm4562_vm8 = vmmov %vm4547_vm2  ;;  %v1446_v40 = vld [vmem:[%s4190_s4 + $0x140] sm:$0xff]  ;;  %v1489_v39 = vadd.f32 %v1425_v31, %v3408_v51  ;;  %v1494_v31 = vadd.f32 %v1430_v36, %v3438_v42  ;;  %v1498_v36 = vadd.f32 %v1434_v46, %v3462_v59 }
 0x2a6   :  { %v1487_v61 = vadd.f32 %v1423_v0, %v4560_v24  ;;  %1541 = vst.msk [vmem:[%s4191_s5 + $0x38] sm:$0xff] %vm4562_vm8, %v1477_v47  ;;  %vm4563_vm0 = vmmov %vm4547_vm2  ;;  %v1488_v0 = vadd.f32 %v1424_v18, %v3397_v3  ;;  %v1490_v47 = vadd.f32 %v1426_v19, %v3414_v28  ;;  %v1447_v28 = vld [vmem:[%s4190_s4 + $0x148] sm:$0xff]  ;;  %v1448_v51 = vld [vmem:[%s4190_s4 + $0x150] sm:$0xff]  ;;  %v1493_v19 = vadd.f32 %v1429_v43, %v3432_v2 }
 0x2a7   :  { %1542 = vst.msk [vmem:[%s4191_s5 + $0x40] sm:$0xff] %vm4563_vm0, %v1478_v57  ;;  %vm4564_vm13 = vmmov %vm4563_vm0  ;;  %v1449_v3 = vld [vmem:[%s4190_s4 + $0x158] sm:$0xff]  ;;  %v1451_v2 = vld [vmem:[%s4190_s4 + $0x168] sm:$0xff]  ;;  %v1499_v43 = vadd.f32 %v1435_v1, %v3468_v52  ;;  %v1500_v52 = vadd.f32 %v1436_v32, %v3474_v56  ;;  %v1501_v46 = vadd.f32 %v1437_v58, %v3480_v5  ;;  %v1506_v18 = vadd.f32 %v1442_v35, %v3510_v27 }
 0x2a8   :  { %1543 = vst.msk [vmem:[%s4191_s5 + $0x48] sm:$0xff] %vm4564_vm13, %v1479_v7  ;;  %v1491_v7 = vadd.f32 %v1427_v54, %v3420_v44  ;;  %vm4565_vm11 = vmmov %vm4563_vm0  ;;  %v1492_v44 = vadd.f32 %v1428_v17, %v3426_v60  ;;  %v1450_v60 = vld [vmem:[%s4190_s4 + $0x160] sm:$0xff]  ;;  %v1452_v42 = vld [vmem:[%s4190_s4 + $0x170] sm:$0xff]  ;;  %v1505_v17 = vadd.f32 %v1441_v49, %v3504_v22  ;;  %v1507_v54 = vadd.f32 %v1443_v11, %v3516_v20 }
 0x2a9   :  { %1544 = vst.msk [vmem:[%s4191_s5 + $0x50] sm:$0xff] %vm4565_vm11, %v1480_v29  ;;  %vm4566_vm1 = vmmov %vm4563_vm0  ;;  %v1455_v59 = vld [vmem:[%s4190_s4 + $0x188] sm:$0xff]  ;;  %v1456_v56 = vld [vmem:[%s4190_s4 + $0x190] sm:$0xff]  ;;  %v1508_v20 = vadd.f32 %v1444_v25, %v3522_v48  ;;  %v1509_v1 = vadd.f32 %v1445_v14, %v3528_v13  ;;  %v1510_v57 = vadd.f32 %v1446_v40, %v3534_v9  ;;  %v1511_v32 = vadd.f32 %v1447_v28, %v3540_v16 }
 0x2aa   :  { %1545 = vst.msk [vmem:[%s4191_s5 + $0x58] sm:$0xff] %vm4566_vm1, %v1481_v10  ;;  %vm4567_vm6 = vmmov %vm4563_vm0  ;;  %v1457_v5 = vld [vmem:[%s4190_s4 + $0x198] sm:$0xff]  ;;  %v1460_v22 = vld [vmem:[%s4190_s4 + $0x1b0] sm:$0xff] }
 0x2ab   :  { %1546 = vst.msk [vmem:[%s4191_s5 + $0x60] sm:$0xff] %vm4567_vm6, %v1482_v26  ;;  %vm4568_vm14 = vmmov %vm4563_vm0  ;;  %v1461_v27 = vld [vmem:[%s4190_s4 + $0x1b8] sm:$0xff]  ;;  %v1462_v48 = vld [vmem:[%s4190_s4 + $0x1c0] sm:$0xff] }
 0x2ac   :  { %1547 = vst.msk [vmem:[%s4191_s5 + $0x68] sm:$0xff] %vm4568_vm14, %v1483_v50  ;;  %v1495_v50 = vadd.f32 %v1431_v6, %v3444_v38  ;;  %vm4569_vm3 = vmmov %vm4563_vm0  ;;  %v1496_v38 = vadd.f32 %v1432_v37, %v3450_v62  ;;  %v1497_v6 = vadd.f32 %v1433_v55, %v3456_v53  ;;  %v1453_v62 = vld [vmem:[%s4190_s4 + $0x178] sm:$0xff]  ;;  %v1454_v53 = vld [vmem:[%s4190_s4 + $0x180] sm:$0xff]  ;;  %v1502_v55 = vadd.f32 %v1438_v63, %v3486_v41 }
 0x2ad   :  { %1548 = vst.msk [vmem:[%s4191_s5 + $0x70] sm:$0xff] %vm4569_vm3, %v1484_v45  ;;  %vm4570_vm10 = vmmov %vm4563_vm0  ;;  %v1503_v37 = vadd.f32 %v1439_v33, %v3492_v4  ;;  %v1458_v41 = vld [vmem:[%s4190_s4 + $0x1a0] sm:$0xff]  ;;  %v1504_v4 = vadd.f32 %v1440_v12, %v3498_v8  ;;  %v1459_v8 = vld [vmem:[%s4190_s4 + $0x1a8] sm:$0xff] }
 0x2ae   :  { %1549 = vst.msk [vmem:[%s4191_s5 + $0x78] sm:$0xff] %vm4570_vm10, %v1485_v34  ;;  %vm4571_vm2 = vmmov %vm4563_vm0  ;;  %v1463_v13 = vld [vmem:[%s4190_s4 + $0x1c8] sm:$0xff]  ;;  %v1464_v9 = vld [vmem:[%s4190_s4 + $0x1d0] sm:$0xff] }
 0x2af   :  { %1550 = vst.msk [vmem:[%s4191_s5 + $0x80] sm:$0xff] %vm4571_vm2, %v1486_v21  ;;  %vm4572_vm9 = vmmov %vm4563_vm0  ;;  %v4588_v16 = vld [vmem:[#allocation24_spill] sm:$0xff]  ;;  %v4589_v63 = vld [vmem:[#allocation3_spill] sm:$0xff] }
 0x2b0   :  { %1551 = vst.msk [vmem:[%s4191_s5 + $0x88] sm:$0xff] %vm4572_vm9, %v1487_v61  ;;  %vm4573_vm4 = vmmov %vm4563_vm0  ;;  %v1512_v58 = vadd.f32 %v1448_v51, %v4588_v16  ;;  %v1513_v33 = vadd.f32 %v1449_v3, %v4589_v63  ;;  %v4590_v29 = vld [vmem:[#allocation10_spill] sm:$0xff]  ;;  %v1465_v49 = vld [vmem:[%s4190_s4 + $0x1d8] sm:$0xff] }
 0x2b1   :  { %1552 = vst.msk [vmem:[%s4191_s5 + $0x90] sm:$0xff] %vm4573_vm4, %v1488_v0  ;;  %vm4574_vm5 = vmmov %vm4563_vm0  ;;  %v1514_v10 = vadd.f32 %v1450_v60, %v4590_v29  ;;  %v4591_v26 = vld [vmem:[#allocation18_spill] sm:$0xff]  ;;  %v1467_v11 = vld [vmem:[%s4190_s4 + $0x1e8] sm:$0xff] }
 0x2b2   :  { %1553 = vst.msk [vmem:[%s4191_s5 + $0x98] sm:$0xff] %vm4574_vm5, %v1489_v39  ;;  %vm4575_vm12 = vmmov %vm4563_vm0  ;;  %v1515_v12 = vadd.f32 %v1451_v2, %v4591_v26  ;;  %v1466_v35 = vld [vmem:[%s4190_s4 + $0x1e0] sm:$0xff]  ;;  %v4596_v30 = vld [vmem:[#allocation31_spill] sm:$0xff] }
 0x2b3   :  { %1554 = vst.msk [vmem:[%s4191_s5 + $0xa0] sm:$0xff] %vm4575_vm12, %v1490_v47  ;;  %vm4576_vm15 = vmmov %vm4563_vm0  ;;  %v1516_v45 = vadd.f32 %v1452_v42, %v4596_v30  ;;  %v4597_v23 = vld [vmem:[#allocation33_spill] sm:$0xff]  ;;  %v4598_v15 = vld [vmem:[#allocation35_spill] sm:$0xff] }
 0x2b4   :  { %1555 = vst.msk [vmem:[%s4191_s5 + $0xa8] sm:$0xff] %vm4576_vm15, %v1491_v7  ;;  %vm4577_vm7 = vmmov %vm4563_vm0  ;;  %v1517_v34 = vadd.f32 %v1453_v62, %v4597_v23  ;;  %v1518_v21 = vadd.f32 %v1454_v53, %v4598_v15  ;;  %v4599_v24 = vld [vmem:[#allocation37_spill] sm:$0xff]  ;;  %v1468_v25 = vld [vmem:[%s4190_s4 + $0x1f0] sm:$0xff] }
 0x2b5   :  { %1556 = vst.msk [vmem:[%s4191_s5 + $0xb0] sm:$0xff] %vm4577_vm7, %v1492_v44  ;;  %vm4578_vm8 = vmmov %vm4563_vm0  ;;  %v1519_v61 = vadd.f32 %v1455_v59, %v4599_v24  ;;  %v1469_v14 = vld [vmem:[%s4190_s4 + $0x1f8] sm:$0xff]  ;;  %v4603_v40 = vld [vmem:[#allocation39_spill] sm:$0xff] }
 0x2b6   :  { %1557 = vst.msk [vmem:[%s4191_s5 + $0xb8] sm:$0xff] %vm4578_vm8, %v1493_v19  ;;  %vm4579_vm13 = vmmov %vm4563_vm0  ;;  %v1520_v0 = vadd.f32 %v1456_v56, %v4603_v40  ;;  %v4604_v39 = vld [vmem:[#allocation40_spill] sm:$0xff]  ;;  %v4605_v7 = vld [vmem:[#allocation42_spill] sm:$0xff] }
 0x2b7   :  { %1558 = vst.msk [vmem:[%s4191_s5 + $0xc0] sm:$0xff] %vm4563_vm0, %v1494_v31  ;;  %vm4580_vm11 = vmmov %vm4563_vm0  ;;  %v1521_v47 = vadd.f32 %v1457_v5, %v4604_v39  ;;  %v1522_v28 = vadd.f32 %v1458_v41, %v4605_v7  ;;  %v4606_v51 = vld [vmem:[#allocation20_spill] sm:$0xff]  ;;  %v4611_v44 = vld [vmem:[#allocation43_spill] sm:$0xff] }
 0x2b8   :  { %1559 = vst.msk [vmem:[%s4191_s5 + $0xc8] sm:$0xff] %vm4579_vm13, %v1495_v50  ;;  %vm4581_vm1 = vmmov %vm4563_vm0  ;;  %v1523_v3 = vadd.f32 %v1459_v8, %v4606_v51  ;;  %v1524_v19 = vadd.f32 %v1460_v22, %v4611_v44  ;;  %v4612_v31 = vld [vmem:[#allocation44_spill] sm:$0xff]  ;;  %v4613_v60 = vld [vmem:[#allocation46_spill] sm:$0xff] }
 0x2b9   :  { %1560 = vst.msk [vmem:[%s4191_s5 + $0xd0] sm:$0xff] %vm4580_vm11, %v1496_v38  ;;  %vm4582_vm6 = vmmov %vm4563_vm0  ;;  %v1525_v50 = vadd.f32 %v1461_v27, %v4612_v31  ;;  %v1526_v2 = vadd.f32 %v1462_v48, %v4613_v60  ;;  %v4614_v42 = vld [vmem:[#allocation47_spill] sm:$0xff]  ;;  %v4621_v53 = vld [vmem:[#allocation2_spill] sm:$0xff] }
 0x2ba   :  { %1561 = vst.msk [vmem:[%s4191_s5 + $0xd8] sm:$0xff] %vm4581_vm1, %v1497_v6  ;;  %vm4583_vm14 = vmmov %vm4563_vm0  ;;  %v1527_v38 = vadd.f32 %v1463_v13, %v4614_v42  ;;  %v4619_v6 = vld [vmem:[#allocation21_spill] sm:$0xff]  ;;  %v1530_v59 = vadd.f32 %v1466_v35, %v4621_v53 }
 0x2bb   :  { %1562 = vst.msk [vmem:[%s4191_s5 + $0xe0] sm:$0xff] %vm4582_vm6, %v1498_v36  ;;  %vm4584_vm3 = vmmov %vm4563_vm0  ;;  %v1528_v36 = vadd.f32 %v1464_v9, %v4619_v6  ;;  %v4628_v56 = vld [vmem:[#allocation49_spill] sm:$0xff] }
 0x2bc   :  { %1563 = vst.msk [vmem:[%s4191_s5 + $0xe8] sm:$0xff] %vm4583_vm14, %v1499_v43  ;;  %vm4585_vm10 = vmmov %vm4563_vm0  ;;  %v4620_v43 = vld [vmem:[#allocation22_spill] sm:$0xff]  ;;  %v1533_v5 = vadd.f32 %v1469_v14, %v4628_v56 }
 0x2bd   :  { %1564 = vst.msk [vmem:[%s4191_s5 + $0xf0] sm:$0xff] %vm4584_vm3, %v1500_v52  ;;  %vm4586_vm2 = vmmov %vm4563_vm0  ;;  %v1529_v62 = vadd.f32 %v1465_v49, %v4620_v43  ;;  %v4622_v52 = vld [vmem:[#allocation48_spill] sm:$0xff] }
 0x2be   :  { %1565 = vst.msk [vmem:[%s4191_s5 + $0xf8] sm:$0xff] %vm4585_vm10, %v1501_v46  ;;  %vm4587_vm9 = vmmov %vm4563_vm0  ;;  %v1531_v46 = vadd.f32 %v1467_v11, %v4622_v52 }
 0x2bf   :  { %1566 = vst.msk [vmem:[%s4191_s5 + $0x100] sm:$0xff] %vm4586_vm2, %v1502_v55  ;;  %vm4592_vm4 = vmmov %vm4563_vm0  ;;  %v4627_v55 = vld [vmem:[#allocation4_spill] sm:$0xff] }
 0x2c0   :  { %1567 = vst.msk [vmem:[%s4191_s5 + $0x108] sm:$0xff] %vm4587_vm9, %v1503_v37  ;;  %vm4593_vm5 = vmmov %vm4563_vm0  ;;  %v1532_v37 = vadd.f32 %v1468_v25, %v4627_v55 }
 0x2c1   :  { %1568 = vst.msk [vmem:[%s4191_s5 + $0x110] sm:$0xff] %vm4592_vm4, %v1504_v4  ;;  %vm4594_vm12 = vmmov %vm4563_vm0 }
 0x2c2   :  { %1569 = vst.msk [vmem:[%s4191_s5 + $0x118] sm:$0xff] %vm4593_vm5, %v1505_v17  ;;  %vm4595_vm15 = vmmov %vm4563_vm0 }
 0x2c3   :  { %1570 = vst.msk [vmem:[%s4191_s5 + $0x120] sm:$0xff] %vm4594_vm12, %v1506_v18  ;;  %vm4600_vm7 = vmmov %vm4563_vm0 }
 0x2c4   :  { %1571 = vst.msk [vmem:[%s4191_s5 + $0x128] sm:$0xff] %vm4595_vm15, %v1507_v54  ;;  %vm4601_vm8 = vmmov %vm4563_vm0 }
 0x2c5   :  { %1572 = vst.msk [vmem:[%s4191_s5 + $0x130] sm:$0xff] %vm4600_vm7, %v1508_v20  ;;  %vm4602_vm13 = vmmov %vm4563_vm0 }
 0x2c6   :  { %1573 = vst.msk [vmem:[%s4191_s5 + $0x138] sm:$0xff] %vm4601_vm8, %v1509_v1  ;;  %vm4607_vm11 = vmmov %vm4563_vm0 }
 0x2c7   :  { %1574 = vst.msk [vmem:[%s4191_s5 + $0x140] sm:$0xff] %vm4563_vm0, %v1510_v57  ;;  %vm4608_vm1 = vmmov %vm4563_vm0 }
 0x2c8   :  { %1575 = vst.msk [vmem:[%s4191_s5 + $0x148] sm:$0xff] %vm4602_vm13, %v1511_v32  ;;  %vm4609_vm6 = vmmov %vm4563_vm0 }
 0x2c9   :  { %1576 = vst.msk [vmem:[%s4191_s5 + $0x150] sm:$0xff] %vm4607_vm11, %v1512_v58  ;;  %vm4610_vm14 = vmmov %vm4563_vm0 }
 0x2ca   :  { %1577 = vst.msk [vmem:[%s4191_s5 + $0x158] sm:$0xff] %vm4608_vm1, %v1513_v33  ;;  %vm4615_vm3 = vmmov %vm4563_vm0 }
 0x2cb   :  { %1578 = vst.msk [vmem:[%s4191_s5 + $0x160] sm:$0xff] %vm4609_vm6, %v1514_v10  ;;  %vm4616_vm10 = vmmov %vm4563_vm0 }
 0x2cc   :  { %1579 = vst.msk [vmem:[%s4191_s5 + $0x168] sm:$0xff] %vm4610_vm14, %v1515_v12  ;;  %vm4617_vm2 = vmmov %vm4563_vm0 }
 0x2cd   :  { %1580 = vst.msk [vmem:[%s4191_s5 + $0x170] sm:$0xff] %vm4615_vm3, %v1516_v45  ;;  %vm4618_vm9 = vmmov %vm4563_vm0 }
 0x2ce   :  { %1581 = vst.msk [vmem:[%s4191_s5 + $0x178] sm:$0xff] %vm4616_vm10, %v1517_v34  ;;  %vm4623_vm4 = vmmov %vm4563_vm0 }
 0x2cf   :  { %1582 = vst.msk [vmem:[%s4191_s5 + $0x180] sm:$0xff] %vm4617_vm2, %v1518_v21  ;;  %vm4624_vm5 = vmmov %vm4563_vm0 }
 0x2d0   :  { %1583 = vst.msk [vmem:[%s4191_s5 + $0x188] sm:$0xff] %vm4618_vm9, %v1519_v61  ;;  %vm4625_vm12 = vmmov %vm4563_vm0 }
 0x2d1   :  { %1584 = vst.msk [vmem:[%s4191_s5 + $0x190] sm:$0xff] %vm4623_vm4, %v1520_v0  ;;  %vm4626_vm15 = vmmov %vm4563_vm0 }
 0x2d2   :  { %1585 = vst.msk [vmem:[%s4191_s5 + $0x198] sm:$0xff] %vm4624_vm5, %v1521_v47  ;;  %vm4629_vm7 = vmmov %vm4563_vm0 }
 0x2d3   :  { %1586 = vst.msk [vmem:[%s4191_s5 + $0x1a0] sm:$0xff] %vm4625_vm12, %v1522_v28  ;;  %vm4630_vm8 = vmmov %vm4563_vm0 }
 0x2d4   :  { %1587 = vst.msk [vmem:[%s4191_s5 + $0x1a8] sm:$0xff] %vm4626_vm15, %v1523_v3  ;;  %vm4631_vm13 = vmmov %vm4563_vm0 }
 0x2d5   :  { %1588 = vst.msk [vmem:[%s4191_s5 + $0x1b0] sm:$0xff] %vm4629_vm7, %v1524_v19  ;;  %vm4632_vm11 = vmmov %vm4563_vm0 }
 0x2d6   :  { %1589 = vst.msk [vmem:[%s4191_s5 + $0x1b8] sm:$0xff] %vm4630_vm8, %v1525_v50  ;;  %vm4633_vm1 = vmmov %vm4563_vm0 }
 0x2d7   :  { %1590 = vst.msk [vmem:[%s4191_s5 + $0x1c0] sm:$0xff] %vm4563_vm0, %v1526_v2  ;;  %vm4634_vm6 = vmmov %vm4563_vm0 }
 0x2d8   :  { %1591 = vst.msk [vmem:[%s4191_s5 + $0x1c8] sm:$0xff] %vm4631_vm13, %v1527_v38  ;;  %vm4635_vm14 = vmmov %vm4563_vm0 }
 0x2d9   :  { %1592 = vst.msk [vmem:[%s4191_s5 + $0x1d0] sm:$0xff] %vm4632_vm11, %v1528_v36  ;;  %vm4636_vm3 = vmmov %vm4563_vm0 }
 0x2da   :  { %1593 = vst.msk [vmem:[%s4191_s5 + $0x1d8] sm:$0xff] %vm4633_vm1, %v1529_v62  ;;  %vm4637_vm10 = vmmov %vm4563_vm0 }
 0x2db   :  { %1594 = vst.msk [vmem:[%s4191_s5 + $0x1e0] sm:$0xff] %vm4634_vm6, %v1530_v59 }
 0x2dc   :  { %1595 = vst.msk [vmem:[%s4191_s5 + $0x1e8] sm:$0xff] %vm4635_vm14, %v1531_v46 }
 0x2dd   :  { %1596 = vst.msk [vmem:[%s4191_s5 + $0x1f0] sm:$0xff] %vm4636_vm3, %v1532_v37 }
 0x2de   :  { %1597 = vst.msk [vmem:[%s4191_s5 + $0x1f8] sm:$0xff] %vm4637_vm10, %v1533_v5 }

</bundles_post_ra>
